<compile_context>
chip_gen: v5e
topology: v5e:2x2
jax: 0.10.0
libtpu: 0.0.40
codegen_flags: <defaults>
</compile_context>

<pallas_src>
import math

import jax
import jax.numpy as jnp
from jax.experimental import pallas as pl
from jax.experimental.pallas import tpu as pltpu


_BN_EPS = 1e-5
_LEAKY_SLOPE = 0.01


def _default_vmem_limit():
    """Generation-aware scoped-VMEM budget (v5e/v6e: 128 MiB phys -> ~96 MiB,
    v7x: 64 MiB phys -> ~48 MiB)."""
    cap = 64 * 1024 * 1024
    try:
        cap = int(getattr(pltpu.get_tpu_info(), "vmem_capacity_bytes", cap))
    except Exception:
        pass
    return int(min(cap * 3 // 4, 96 * 1024 * 1024))


_VMEM_LIMIT = _default_vmem_limit()


def _pick_time_chunk(T, target):
    """Largest divisor of T that is <= target (so chunks tile T exactly)."""
    tc = min(T, max(1, target))
    while T % tc != 0:
        tc -= 1
    return tc


# ----------------------------------------------------------------------------
# (1a) Layer-0 input projection: Gi = x @ Wi + bi for both directions.
#      bf16 MXU operands, f32 accumulation, bf16 gi output.
# ----------------------------------------------------------------------------
def _proj_first_kernel(x_ref, wf_ref, wb_ref, bf_ref, bb_ref, gf_ref, gb_ref):
    x = x_ref[...].astype(jnp.bfloat16)
    gf_ref[...] = (jnp.dot(x, wf_ref[...], preferred_element_type=jnp.float32)
                   + bf_ref[...]).astype(gf_ref.dtype)
    gb_ref[...] = (jnp.dot(x, wb_ref[...], preferred_element_type=jnp.float32)
                   + bb_ref[...]).astype(gb_ref.dtype)


def _input_projection_first(x2d, wf, wb, bf, bb, *, row_tile=1024):
    M, D = x2d.shape
    g3 = wf.shape[1]
    tm = min(M, row_tile)
    grid = (pl.cdiv(M, tm),)
    return pl.pallas_call(
        _proj_first_kernel,
        out_shape=[jax.ShapeDtypeStruct((M, g3), jnp.bfloat16)] * 2,
        grid_spec=pltpu.PrefetchScalarGridSpec(
            num_scalar_prefetch=0, grid=grid,
            in_specs=[pl.BlockSpec((tm, D), lambda i: (i, 0)),
                      pl.BlockSpec((D, g3), lambda i: (0, 0)),
                      pl.BlockSpec((D, g3), lambda i: (0, 0)),
                      pl.BlockSpec((1, g3), lambda i: (0, 0)),
                      pl.BlockSpec((1, g3), lambda i: (0, 0))],
            out_specs=[pl.BlockSpec((tm, g3), lambda i: (i, 0)),
                       pl.BlockSpec((tm, g3), lambda i: (i, 0))]),
        compiler_params=pltpu.CompilerParams(
            dimension_semantics=("parallel",),
            vmem_limit_bytes=_VMEM_LIMIT),
    )(x2d, wf, wb, bf, bb)


# ----------------------------------------------------------------------------
# (1b) Layers > 0: BatchNorm (batch stats) + leaky_relu of the previous layer
#      is fused into the input projection.  Raw GRU outputs of the previous
#      layer (two (M,H) slabs) are normalized in-register, concatenated to a
#      lane-dense (tm, 2H) tile and fed to a single K=2H MXU dot per
#      direction.  The normalized activations never round-trip through HBM.
# ----------------------------------------------------------------------------
def _proj_bn_kernel(yf_ref, yb_ref, mf_ref, vf_ref, mb_ref, vb_ref,
                    wf_ref, wb_ref, bf_ref, bb_ref, gf_ref, gb_ref):
    def bn_lrelu(y, m, v):
        z = (y - m) * jax.lax.rsqrt(v + _BN_EPS)
        return jnp.where(z >= 0.0, z, _LEAKY_SLOPE * z)

    xf = bn_lrelu(yf_ref[...], mf_ref[...], vf_ref[...])
    xb = bn_lrelu(yb_ref[...], mb_ref[...], vb_ref[...])
    x2h = jnp.concatenate([xf, xb], axis=-1).astype(jnp.bfloat16)
    gf_ref[...] = (jnp.dot(x2h, wf_ref[...], preferred_element_type=jnp.float32)
                   + bf_ref[...]).astype(gf_ref.dtype)
    gb_ref[...] = (jnp.dot(x2h, wb_ref[...], preferred_element_type=jnp.float32)
                   + bb_ref[...]).astype(gb_ref.dtype)


def _input_projection_bn(yf2d, yb2d, mf, vf, mb, vb, wf, wb, bf, bb,
                         *, row_tile=1024):
    M, H = yf2d.shape
    g3 = wf.shape[1]
    tm = min(M, row_tile)
    grid = (pl.cdiv(M, tm),)
    row_spec = pl.BlockSpec((tm, H), lambda i: (i, 0))
    stat_spec = pl.BlockSpec((1, H), lambda i: (0, 0))
    return pl.pallas_call(
        _proj_bn_kernel,
        out_shape=[jax.ShapeDtypeStruct((M, g3), jnp.bfloat16)] * 2,
        grid_spec=pltpu.PrefetchScalarGridSpec(
            num_scalar_prefetch=0, grid=grid,
            in_specs=[row_spec, row_spec,
                      stat_spec, stat_spec, stat_spec, stat_spec,
                      pl.BlockSpec((2 * H, g3), lambda i: (0, 0)),
                      pl.BlockSpec((2 * H, g3), lambda i: (0, 0)),
                      pl.BlockSpec((1, g3), lambda i: (0, 0)),
                      pl.BlockSpec((1, g3), lambda i: (0, 0))],
            out_specs=[pl.BlockSpec((tm, g3), lambda i: (i, 0)),
                       pl.BlockSpec((tm, g3), lambda i: (i, 0))]),
        compiler_params=pltpu.CompilerParams(
            dimension_semantics=("parallel",),
            vmem_limit_bytes=_VMEM_LIMIT),
    )(yf2d, yb2d, mf, vf, mb, vb, wf, wb, bf, bb)


# ----------------------------------------------------------------------------
# (2) Time-chunked fused bidirectional GRU recurrence with in-kernel
#     BatchNorm statistics accumulation.
#     grid = (T/Tc,); chunk c: forward times [c*Tc, c*Tc+Tc) ascending,
#     backward times mirrored (descending).  Hidden states live in VMEM
#     scratch; BN sums/sumsqs are accumulated into resident (1,H) output
#     blocks and finalized (mean, biased var) at the last chunk.
# ----------------------------------------------------------------------------
def _make_bigru_kernel(H, B, Tc, last_chunk, inv_m):
    def kernel(gif_ref, gib_ref, whf_ref, whb_ref, bhf_ref, bhb_ref,
               yf_ref, yb_ref, hfo_ref, hbo_ref,
               mf_ref, vf_ref, mb_ref, vb_ref,
               hf_sc, hb_sc):
        c = pl.program_id(0)

        @pl.when(c == 0)
        def _():
            hf_sc[...] = jnp.zeros_like(hf_sc)
            hb_sc[...] = jnp.zeros_like(hb_sc)
            mf_ref[...] = jnp.zeros_like(mf_ref)
            vf_ref[...] = jnp.zeros_like(vf_ref)
            mb_ref[...] = jnp.zeros_like(mb_ref)
            vb_ref[...] = jnp.zeros_like(vb_ref)

        whf = whf_ref[...]
        whb = whb_ref[...]
        bhf = bhf_ref[...]
        bhb = bhb_ref[...]

        def gru_step(gi, h, wh, bh):
            # gi already holds W_i x + b_i (hoisted bf16 GEMM), packed [r|z|n].
            gh = jnp.dot(h.astype(jnp.bfloat16), wh,
                         preferred_element_type=jnp.float32) + bh
            r = jax.nn.sigmoid(gi[:, 0:H] + gh[:, 0:H])
            z = jax.nn.sigmoid(gi[:, H:2 * H] + gh[:, H:2 * H])
            n = jnp.tanh(gi[:, 2 * H:] + r * gh[:, 2 * H:])
            return n + z * (h - n)          # == (1-z)*n + z*h, one VALU op less

        def body(s, carry):
            h_f, h_b = carry
            gi_f = gif_ref[s].astype(jnp.float32)             # (B, 3H)
            gi_b = gib_ref[Tc - 1 - s].astype(jnp.float32)    # mirrored chunk
            h_f = gru_step(gi_f, h_f, whf, bhf)
            h_b = gru_step(gi_b, h_b, whb, bhb)
            yf_ref[s] = h_f
            yb_ref[Tc - 1 - s] = h_b
            return h_f, h_b

        h_f, h_b = jax.lax.fori_loop(0, Tc, body,
                                     (hf_sc[...], hb_sc[...]),
                                     unroll=bool(Tc <= 16))
        hf_sc[...] = h_f
        hb_sc[...] = h_b

        # BN statistics from the freshly written VMEM tiles (no HBM re-read).
        yf_chunk = yf_ref[...].reshape(Tc * B, H)
        yb_chunk = yb_ref[...].reshape(Tc * B, H)
        mf_ref[...] += jnp.sum(yf_chunk, axis=0, keepdims=True)
        vf_ref[...] += jnp.sum(yf_chunk * yf_chunk, axis=0, keepdims=True)
        mb_ref[...] += jnp.sum(yb_chunk, axis=0, keepdims=True)
        vb_ref[...] += jnp.sum(yb_chunk * yb_chunk, axis=0, keepdims=True)

        @pl.when(c == last_chunk)
        def _():
            hfo_ref[...] = h_f        # forward final hidden (t = T-1), pre-BN
            hbo_ref[...] = h_b        # backward final hidden (t = 0), pre-BN
            mean_f = mf_ref[...] * inv_m
            mean_b = mb_ref[...] * inv_m
            mf_ref[...] = mean_f
            mb_ref[...] = mean_b
            # Biased variance (PyTorch BN training normalization); clamp >= 0.
            vf_ref[...] = jnp.maximum(vf_ref[...] * inv_m - mean_f * mean_f, 0.0)
            vb_ref[...] = jnp.maximum(vb_ref[...] * inv_m - mean_b * mean_b, 0.0)
    return kernel


def _bigru_recurrence(gi_f, gi_b, whf, whb, bhf, bhb, Tc):
    T, B, g3 = gi_f.shape
    H = whf.shape[0]
    n_chunks = T // Tc
    inv_m = 1.0 / float(T * B)

    out_shape = [
        jax.ShapeDtypeStruct((T, B, H), jnp.float32),   # y_f (raw, pre-BN)
        jax.ShapeDtypeStruct((T, B, H), jnp.float32),   # y_b (raw, pre-BN)
        jax.ShapeDtypeStruct((B, H), jnp.float32),      # h_fwd final
        jax.ShapeDtypeStruct((B, H), jnp.float32),      # h_bwd final
        jax.ShapeDtypeStruct((1, H), jnp.float32),      # mean_f
        jax.ShapeDtypeStruct((1, H), jnp.float32),      # var_f
        jax.ShapeDtypeStruct((1, H), jnp.float32),      # mean_b
        jax.ShapeDtypeStruct((1, H), jnp.float32),      # var_b
    ]
    stat_spec = pl.BlockSpec((1, H), lambda c: (0, 0))
    # TODO(synk): if the gi DMA is still exposed after chunking, add
    # pipeline_mode=pl.Buffered(3) to the two gi BlockSpecs.
    return pl.pallas_call(
        _make_bigru_kernel(H, B, Tc, n_chunks - 1, inv_m),
        out_shape=out_shape,
        grid_spec=pltpu.PrefetchScalarGridSpec(
            num_scalar_prefetch=0, grid=(n_chunks,),
            in_specs=[
                pl.BlockSpec((Tc, B, g3), lambda c: (c, 0, 0)),
                pl.BlockSpec((Tc, B, g3), lambda c: (n_chunks - 1 - c, 0, 0)),
                pl.BlockSpec((H, g3), lambda c: (0, 0)),
                pl.BlockSpec((H, g3), lambda c: (0, 0)),
                pl.BlockSpec((1, g3), lambda c: (0, 0)),
                pl.BlockSpec((1, g3), lambda c: (0, 0)),
            ],
            out_specs=[
                pl.BlockSpec((Tc, B, H), lambda c: (c, 0, 0)),
                pl.BlockSpec((Tc, B, H), lambda c: (n_chunks - 1 - c, 0, 0)),
                pl.BlockSpec((B, H), lambda c: (0, 0)),
                pl.BlockSpec((B, H), lambda c: (0, 0)),
                stat_spec, stat_spec, stat_spec, stat_spec,
            ],
            scratch_shapes=[pltpu.VMEM((B, H), jnp.float32),
                            pltpu.VMEM((B, H), jnp.float32)],
        ),
        compiler_params=pltpu.CompilerParams(
            dimension_semantics=("arbitrary",),
            vmem_limit_bytes=_VMEM_LIMIT),
    )(gi_f, gi_b, whf, whb, bhf, bhb)


# ----------------------------------------------------------------------------
# (3) Final layer only: standalone BatchNorm + leaky_relu that writes one
#     fused lane-dense (T*B, 2H) slab (fwd -> cols [0,H), bwd -> [H,2H)).
# ----------------------------------------------------------------------------
def _final_bn_lrelu_kernel(yf_ref, yb_ref, mf_ref, vf_ref, mb_ref, vb_ref,
                           o_ref):
    def bn_lrelu(y, m, v):
        z = (y - m) * jax.lax.rsqrt(v + _BN_EPS)
        return jnp.where(z >= 0.0, z, _LEAKY_SLOPE * z)
    o_ref[...] = jnp.concatenate(
        [bn_lrelu(yf_ref[...], mf_ref[...], vf_ref[...]),
         bn_lrelu(yb_ref[...], mb_ref[...], vb_ref[...])], axis=-1)


def _final_bn_lrelu(yf2d, yb2d, mf, vf, mb, vb, *, row_tile=1024):
    M, H = yf2d.shape
    tm = min(M, row_tile)
    grid = (pl.cdiv(M, tm),)
    row_spec = pl.BlockSpec((tm, H), lambda i: (i, 0))
    stat_spec = pl.BlockSpec((1, H), lambda i: (0, 0))
    return pl.pallas_call(
        _final_bn_lrelu_kernel,
        out_shape=jax.ShapeDtypeStruct((M, 2 * H), jnp.float32),
        grid_spec=pltpu.PrefetchScalarGridSpec(
            num_scalar_prefetch=0, grid=grid,
            in_specs=[row_spec, row_spec,
                      stat_spec, stat_spec, stat_spec, stat_spec],
            out_specs=pl.BlockSpec((tm, 2 * H), lambda i: (i, 0))),
        compiler_params=pltpu.CompilerParams(
            dimension_semantics=("parallel",),
            vmem_limit_bytes=_VMEM_LIMIT),
    )(yf2d, yb2d, mf, vf, mb, vb)


# ----------------------------------------------------------------------------
# (4) Final fc: Linear(2*enc_hid_dim -> dec_hid_dim), concat-free, bf16 MXU.
# ----------------------------------------------------------------------------
def _fc_kernel(hf_ref, hb_ref, wf_ref, wb_ref, b_ref, o_ref):
    hf = hf_ref[...].astype(jnp.bfloat16)
    hb = hb_ref[...].astype(jnp.bfloat16)
    o_ref[...] = (jnp.dot(hf, wf_ref[...], preferred_element_type=jnp.float32)
                  + jnp.dot(hb, wb_ref[...], preferred_element_type=jnp.float32)
                  + b_ref[...])


def _fc(h_fwd, h_bwd, wf, wb, b, *, row_tile=512):
    B, H = h_fwd.shape
    dec = wf.shape[1]
    tb = min(B, row_tile)
    grid = (pl.cdiv(B, tb),)
    return pl.pallas_call(
        _fc_kernel,
        out_shape=jax.ShapeDtypeStruct((B, dec), jnp.float32),
        grid_spec=pltpu.PrefetchScalarGridSpec(
            num_scalar_prefetch=0, grid=grid,
            in_specs=[pl.BlockSpec((tb, H), lambda i: (i, 0)),
                      pl.BlockSpec((tb, H), lambda i: (i, 0)),
                      pl.BlockSpec((H, dec), lambda i: (0, 0)),
                      pl.BlockSpec((H, dec), lambda i: (0, 0)),
                      pl.BlockSpec((1, dec), lambda i: (0, 0))],
            out_specs=pl.BlockSpec((tb, dec), lambda i: (i, 0))),
        compiler_params=pltpu.CompilerParams(
            dimension_semantics=("parallel",),
            vmem_limit_bytes=_VMEM_LIMIT),
    )(h_fwd, h_bwd, wf, wb, b)


# ----------------------------------------------------------------------------
# Parameter init (deterministic, PyTorch-style uniform(-1/sqrt(H), 1/sqrt(H)))
# Gates are packed along the last dim in PyTorch order [r | z | n].
# ----------------------------------------------------------------------------
def init_encoder_params(key, input_size, enc_hid_dim, num_gru, dec_hid_dim):
    H = enc_hid_dim
    params = {"gru_layers": []}
    bound = 1.0 / math.sqrt(H)
    for i in range(num_gru):
        d_in = input_size if i == 0 else 2 * H
        layer = {}
        for direction in ("fwd", "bwd"):
            key, k1, k2, k3, k4 = jax.random.split(key, 5)
            layer[direction] = {
                "wi": jax.random.uniform(k1, (d_in, 3 * H), jnp.float32,
                                         -bound, bound),
                "wh": jax.random.uniform(k2, (H, 3 * H), jnp.float32,
                                         -bound, bound),
                "bi": jax.random.uniform(k3, (1, 3 * H), jnp.float32,
                                         -bound, bound),
                "bh": jax.random.uniform(k4, (1, 3 * H), jnp.float32,
                                         -bound, bound),
            }
        params["gru_layers"].append(layer)
    fc_bound = 1.0 / math.sqrt(2 * H)
    key, kwf, kwb, kb = jax.random.split(key, 4)
    params["fc_wf"] = jax.random.uniform(kwf, (H, dec_hid_dim), jnp.float32,
                                         -fc_bound, fc_bound)
    params["fc_wb"] = jax.random.uniform(kwb, (H, dec_hid_dim), jnp.float32,
                                         -fc_bound, fc_bound)
    params["fc_b"] = jax.random.uniform(kb, (1, dec_hid_dim), jnp.float32,
                                        -fc_bound, fc_bound)
    return params


# ----------------------------------------------------------------------------
# Encoder forward (mirrors the PyTorch module's forward)
# ----------------------------------------------------------------------------
def encoder_forward(params, x, *, time_chunk=32):
    """x: (B, T, input_size) batch-first (PyTorch batch_first=True).
    Returns (output (B,T,2H), h_n (2,B,H), init_hidden_decoder (B,dec))."""
    B, T, D = x.shape
    Tc = _pick_time_chunk(T, time_chunk)

    # One-time layout change to time-major rows (row = t*B + b).
    x_tm = jnp.transpose(x, (1, 0, 2)).astype(jnp.float32)        # (T, B, D)
    x2d = x_tm.reshape(T * B, D)

    y_f2d = y_b2d = None
    mf = vf = mb = vb = None
    h_fwd = h_bwd = None

    for li, layer in enumerate(params["gru_layers"]):
        f, bw = layer["fwd"], layer["bwd"]
        H = f["wh"].shape[0]
        wi_f = f["wi"].astype(jnp.bfloat16)
        wi_b = bw["wi"].astype(jnp.bfloat16)
        wh_f = f["wh"].astype(jnp.bfloat16)
        wh_b = bw["wh"].astype(jnp.bfloat16)

        # (1) hoisted input projection (layers > 0: fused with the previous
        #     layer's BatchNorm + leaky_relu, single K=2H dot per direction)
        if li == 0:
            gi_f2d, gi_b2d = _input_projection_first(
                x2d, wi_f, wi_b, f["bi"], bw["bi"])
        else:
            gi_f2d, gi_b2d = _input_projection_bn(
                y_f2d, y_b2d, mf, vf, mb, vb,
                wi_f, wi_b, f["bi"], bw["bi"])

        gi_f = gi_f2d.reshape(T, B, 3 * H)     # no-copy leading-dim split
        gi_b = gi_b2d.reshape(T, B, 3 * H)

        # (2) time-chunked fused bidirectional recurrence + in-kernel BN stats
        (y_f, y_b, h_fwd, h_bwd, mf, vf, mb, vb) = _bigru_recurrence(
            gi_f, gi_b, wh_f, wh_b, f["bh"], bw["bh"], Tc)
        y_f2d = y_f.reshape(T * B, H)
        y_b2d = y_b.reshape(T * B, H)

    # (3) final layer's BatchNorm + leaky_relu -> fused (T*B, 2H) slab.
    H = params["gru_layers"][-1]["fwd"]["wh"].shape[0]
    out2d = _final_bn_lrelu(y_f2d, y_b2d, mf, vf, mb, vb)
    # Final batch-first assembly required by the public API.
    output = jnp.transpose(out2d.reshape(T, B, 2 * H), (1, 0, 2))

    h_n = jnp.stack([h_fwd, h_bwd], axis=0)                       # (2, B, H)
    init_hidden_decoder = _fc(h_fwd, h_bwd,
                              params["fc_wf"].astype(jnp.bfloat16),
                              params["fc_wb"].astype(jnp.bfloat16),
                              params["fc_b"])
    return output, h_n, init_hidden_decoder


# TODO(synk): `use_pooling=True` raises NotImplementedError in the reference
# PyTorch module, so it is intentionally not implemented here.  (nn.GRU
# dropout is a no-op for single-layer GRUs, matching PyTorch.)

if __name__ == "__main__":
    B, T = 2, 8
    input_size, enc_hid_dim, num_gru, dec_hid_dim = 4, 16, 2, 32

    key = jax.random.PRNGKey(0)
    k_param, k_x = jax.random.split(key)
    params = init_encoder_params(k_param, input_size, enc_hid_dim,
                                 num_gru, dec_hid_dim)
    x = jax.random.normal(k_x, (B, T, input_size), dtype=jnp.float32)

    fwd = jax.jit(encoder_forward)
    output, h_n, init_hidden = fwd(params, x)
    jax.block_until_ready((output, h_n, init_hidden))

    assert output.shape == (B, T, 2 * enc_hid_dim)
    assert h_n.shape == (2, B, enc_hid_dim)
    assert init_hidden.shape == (B, dec_hid_dim)
    assert bool(jnp.all(jnp.isfinite(output)))
    assert bool(jnp.all(jnp.isfinite(h_n)))
    assert bool(jnp.all(jnp.isfinite(init_hidden)))
    print("KERNEL_OK")
</pallas_src>

<mosaic_0001>
module attributes {stable_mosaic.version = 11 : i64} {
  func.func @_proj_first_kernel(%arg0: i32, %arg1: memref<16x4xf32, #tpu.memory_space<vmem>>, %arg2: memref<4x48xbf16, #tpu.memory_space<vmem>>, %arg3: memref<4x48xbf16, #tpu.memory_space<vmem>>, %arg4: memref<1x48xf32, #tpu.memory_space<vmem>>, %arg5: memref<1x48xf32, #tpu.memory_space<vmem>>, %arg6: memref<16x48xbf16, #tpu.memory_space<vmem>>, %arg7: memref<16x48xbf16, #tpu.memory_space<vmem>>) attributes {dimension_semantics = [#tpu.dimension_semantics<parallel>], iteration_bounds = array<i64: 1>, scalar_prefetch = 0 : i64, scratch_operands = 0 : i64, tpu.core_type = #tpu.core_type<tc>, window_params = [{transform_indices = @transform_0, window_bounds = array<i64: 16, 4>}, {pipeline_mode = #tpu.pipeline_mode<synchronous>, transform_indices = @transform_1, window_bounds = array<i64: 4, 48>}, {pipeline_mode = #tpu.pipeline_mode<synchronous>, transform_indices = @transform_2, window_bounds = array<i64: 4, 48>}, {pipeline_mode = #tpu.pipeline_mode<synchronous>, transform_indices = @transform_3, window_bounds = array<i64: 1, 48>}, {pipeline_mode = #tpu.pipeline_mode<synchronous>, transform_indices = @transform_4, window_bounds = array<i64: 1, 48>}, {transform_indices = @transform_5, window_bounds = array<i64: 16, 48>}, {transform_indices = @transform_6, window_bounds = array<i64: 16, 48>}]} {
    %c0 = arith.constant 0 : index
    %c0_0 = arith.constant 0 : index
    %0 = vector.load %arg1[%c0, %c0_0] : memref<16x4xf32, #tpu.memory_space<vmem>>, vector<16x4xf32>
    %1 = arith.truncf %0 : vector<16x4xf32> to vector<16x4xbf16>
    %c0_1 = arith.constant 0 : index
    %c0_2 = arith.constant 0 : index
    %2 = vector.load %arg2[%c0_1, %c0_2] : memref<4x48xbf16, #tpu.memory_space<vmem>>, vector<4x48xbf16>
    %cst = arith.constant dense<0.000000e+00> : vector<16x48xf32>
    %3 = tpu.matmul %1, %2, %cst {dimension_numbers = #tpu.dot_dimension_numbers<[1], [0], [0], [1], [0, 0, 1, 1], [], []>} : vector<16x4xbf16>, vector<4x48xbf16>, vector<16x48xf32> -> vector<16x48xf32>
    %c0_3 = arith.constant 0 : index
    %c0_4 = arith.constant 0 : index
    %4 = vector.load %arg4[%c0_3, %c0_4] : memref<1x48xf32, #tpu.memory_space<vmem>>, vector<1x48xf32>
    %5 = vector.broadcast %4 : vector<1x48xf32> to vector<16x48xf32>
    %6 = arith.addf %3, %5 : vector<16x48xf32>
    %7 = arith.truncf %6 : vector<16x48xf32> to vector<16x48xbf16>
    %c0_5 = arith.constant 0 : index
    %c0_6 = arith.constant 0 : index
    %8 = vector.load %arg6[%c0_5, %c0_6] : memref<16x48xbf16, #tpu.memory_space<vmem>>, vector<16x48xbf16>
    tpu.vector_store %arg6[%c0_5, %c0_6], %7 {strides = array<i32>} : memref<16x48xbf16, #tpu.memory_space<vmem>>, vector<16x48xbf16>,
    %c0_7 = arith.constant 0 : index
    %c0_8 = arith.constant 0 : index
    %9 = vector.load %arg3[%c0_7, %c0_8] : memref<4x48xbf16, #tpu.memory_space<vmem>>, vector<4x48xbf16>
    %cst_9 = arith.constant dense<0.000000e+00> : vector<16x48xf32>
    %10 = tpu.matmul %1, %9, %cst_9 {dimension_numbers = #tpu.dot_dimension_numbers<[1], [0], [0], [1], [0, 0, 1, 1], [], []>} : vector<16x4xbf16>, vector<4x48xbf16>, vector<16x48xf32> -> vector<16x48xf32>
    %c0_10 = arith.constant 0 : index
    %c0_11 = arith.constant 0 : index
    %11 = vector.load %arg5[%c0_10, %c0_11] : memref<1x48xf32, #tpu.memory_space<vmem>>, vector<1x48xf32>
    %12 = vector.broadcast %11 : vector<1x48xf32> to vector<16x48xf32>
    %13 = arith.addf %10, %12 : vector<16x48xf32>
    %14 = arith.truncf %13 : vector<16x48xf32> to vector<16x48xbf16>
    %c0_12 = arith.constant 0 : index
    %c0_13 = arith.constant 0 : index
    %15 = vector.load %arg7[%c0_12, %c0_13] : memref<16x48xbf16, #tpu.memory_space<vmem>>, vector<16x48xbf16>
    tpu.vector_store %arg7[%c0_12, %c0_13], %14 {strides = array<i32>} : memref<16x48xbf16, #tpu.memory_space<vmem>>, vector<16x48xbf16>,
    return
  }
  func.func @transform_0(%arg0: i32) -> (i32, i32) {
    %c0_i32 = arith.constant 0 : i32
    %c0_i32_0 = arith.constant 0 : i32
    return %arg0, %c0_i32 : i32, i32
  }
  func.func @transform_1(%arg0: i32) -> (i32, i32) {
    %c0_i32 = arith.constant 0 : i32
    %c0_i32_0 = arith.constant 0 : i32
    %c0_i32_1 = arith.constant 0 : i32
    return %c0_i32, %c0_i32_0 : i32, i32
  }
  func.func @transform_2(%arg0: i32) -> (i32, i32) {
    %c0_i32 = arith.constant 0 : i32
    %c0_i32_0 = arith.constant 0 : i32
    %c0_i32_1 = arith.constant 0 : i32
    return %c0_i32, %c0_i32_0 : i32, i32
  }
  func.func @transform_3(%arg0: i32) -> (i32, i32) {
    %c0_i32 = arith.constant 0 : i32
    %c0_i32_0 = arith.constant 0 : i32
    %c0_i32_1 = arith.constant 0 : i32
    return %c0_i32, %c0_i32_0 : i32, i32
  }
  func.func @transform_4(%arg0: i32) -> (i32, i32) {
    %c0_i32 = arith.constant 0 : i32
    %c0_i32_0 = arith.constant 0 : i32
    %c0_i32_1 = arith.constant 0 : i32
    return %c0_i32, %c0_i32_0 : i32, i32
  }
  func.func @transform_5(%arg0: i32) -> (i32, i32) {
    %c0_i32 = arith.constant 0 : i32
    %c0_i32_0 = arith.constant 0 : i32
    return %arg0, %c0_i32 : i32, i32
  }
  func.func @transform_6(%arg0: i32) -> (i32, i32) {
    %c0_i32 = arith.constant 0 : i32
    %c0_i32_0 = arith.constant 0 : i32
    return %arg0, %c0_i32 : i32, i32
  }
}

module attributes {stable_mosaic.version = 11 : i64} {
  func.func @_proj_bn_kernel(%arg0: i32, %arg1: memref<16x16xf32, #tpu.memory_space<vmem>>, %arg2: memref<16x16xf32, #tpu.memory_space<vmem>>, %arg3: memref<1x16xf32, #tpu.memory_space<vmem>>, %arg4: memref<1x16xf32, #tpu.memory_space<vmem>>, %arg5: memref<1x16xf32, #tpu.memory_space<vmem>>, %arg6: memref<1x16xf32, #tpu.memory_space<vmem>>, %arg7: memref<32x48xbf16, #tpu.memory_space<vmem>>, %arg8: memref<32x48xbf16, #tpu.memory_space<vmem>>, %arg9: memref<1x48xf32, #tpu.memory_space<vmem>>, %arg10: memref<1x48xf32, #tpu.memory_space<vmem>>, %arg11: memref<16x48xbf16, #tpu.memory_space<vmem>>, %arg12: memref<16x48xbf16, #tpu.memory_space<vmem>>) attributes {dimension_semantics = [#tpu.dimension_semantics<parallel>], iteration_bounds = array<i64: 1>, scalar_prefetch = 0 : i64, scratch_operands = 0 : i64, tpu.core_type = #tpu.core_type<tc>, window_params = [{transform_indices = @transform_0, window_bounds = array<i64: 16, 16>}, {transform_indices = @transform_1, window_bounds = array<i64: 16, 16>}, {pipeline_mode = #tpu.pipeline_mode<synchronous>, transform_indices = @transform_2, window_bounds = array<i64: 1, 16>}, {pipeline_mode = #tpu.pipeline_mode<synchronous>, transform_indices = @transform_3, window_bounds = array<i64: 1, 16>}, {pipeline_mode = #tpu.pipeline_mode<synchronous>, transform_indices = @transform_4, window_bounds = array<i64: 1, 16>}, {pipeline_mode = #tpu.pipeline_mode<synchronous>, transform_indices = @transform_5, window_bounds = array<i64: 1, 16>}, {pipeline_mode = #tpu.pipeline_mode<synchronous>, transform_indices = @transform_6, window_bounds = array<i64: 32, 48>}, {pipeline_mode = #tpu.pipeline_mode<synchronous>, transform_indices = @transform_7, window_bounds = array<i64: 32, 48>}, {pipeline_mode = #tpu.pipeline_mode<synchronous>, transform_indices = @transform_8, window_bounds = array<i64: 1, 48>}, {pipeline_mode = #tpu.pipeline_mode<synchronous>, transform_indices = @transform_9, window_bounds = array<i64: 1, 48>}, {transform_indices = @transform_10, window_bounds = array<i64: 16, 48>}, {transform_indices = @transform_11, window_bounds = array<i64: 16, 48>}]} {
    %c0 = arith.constant 0 : index
    %c0_0 = arith.constant 0 : index
    %0 = vector.load %arg1[%c0, %c0_0] : memref<16x16xf32, #tpu.memory_space<vmem>>, vector<16x16xf32>
    %c0_1 = arith.constant 0 : index
    %c0_2 = arith.constant 0 : index
    %1 = vector.load %arg3[%c0_1, %c0_2] : memref<1x16xf32, #tpu.memory_space<vmem>>, vector<1x16xf32>
    %c0_3 = arith.constant 0 : index
    %c0_4 = arith.constant 0 : index
    %2 = vector.load %arg4[%c0_3, %c0_4] : memref<1x16xf32, #tpu.memory_space<vmem>>, vector<1x16xf32>
    %3 = vector.broadcast %1 : vector<1x16xf32> to vector<16x16xf32>
    %4 = arith.subf %0, %3 : vector<16x16xf32>
    %cst = arith.constant 9.99999974E-6 : f32
    %5 = vector.broadcast %cst : f32 to vector<1x16xf32>
    %6 = arith.addf %2, %5 : vector<1x16xf32>
    %7 = math.rsqrt %6 : vector<1x16xf32>
    %8 = vector.broadcast %7 : vector<1x16xf32> to vector<16x16xf32>
    %9 = arith.mulf %4, %8 : vector<16x16xf32>
    %cst_5 = arith.constant 0.000000e+00 : f32
    %10 = vector.broadcast %cst_5 : f32 to vector<16x16xf32>
    %11 = arith.cmpf oge, %9, %10 : vector<16x16xf32>
    %cst_6 = arith.constant 0.00999999977 : f32
    %12 = vector.broadcast %cst_6 : f32 to vector<16x16xf32>
    %13 = arith.mulf %12, %9 : vector<16x16xf32>
    %14 = arith.select %11, %9, %13 : vector<16x16xi1>, vector<16x16xf32>
    %c0_7 = arith.constant 0 : index
    %c0_8 = arith.constant 0 : index
    %15 = vector.load %arg2[%c0_7, %c0_8] : memref<16x16xf32, #tpu.memory_space<vmem>>, vector<16x16xf32>
    %c0_9 = arith.constant 0 : index
    %c0_10 = arith.constant 0 : index
    %16 = vector.load %arg5[%c0_9, %c0_10] : memref<1x16xf32, #tpu.memory_space<vmem>>, vector<1x16xf32>
    %c0_11 = arith.constant 0 : index
    %c0_12 = arith.constant 0 : index
    %17 = vector.load %arg6[%c0_11, %c0_12] : memref<1x16xf32, #tpu.memory_space<vmem>>, vector<1x16xf32>
    %18 = vector.broadcast %16 : vector<1x16xf32> to vector<16x16xf32>
    %19 = arith.subf %15, %18 : vector<16x16xf32>
    %cst_13 = arith.constant 9.99999974E-6 : f32
    %20 = vector.broadcast %cst_13 : f32 to vector<1x16xf32>
    %21 = arith.addf %17, %20 : vector<1x16xf32>
    %22 = math.rsqrt %21 : vector<1x16xf32>
    %23 = vector.broadcast %22 : vector<1x16xf32> to vector<16x16xf32>
    %24 = arith.mulf %19, %23 : vector<16x16xf32>
    %cst_14 = arith.constant 0.000000e+00 : f32
    %25 = vector.broadcast %cst_14 : f32 to vector<16x16xf32>
    %26 = arith.cmpf oge, %24, %25 : vector<16x16xf32>
    %cst_15 = arith.constant 0.00999999977 : f32
    %27 = vector.broadcast %cst_15 : f32 to vector<16x16xf32>
    %28 = arith.mulf %27, %24 : vector<16x16xf32>
    %29 = arith.select %26, %24, %28 : vector<16x16xi1>, vector<16x16xf32>
    %30 = tpu.concatenate %14, %29 in 1 : vector<16x16xf32>, vector<16x16xf32> -> vector<16x32xf32>
    %31 = arith.truncf %30 : vector<16x32xf32> to vector<16x32xbf16>
    %c0_16 = arith.constant 0 : index
    %c0_17 = arith.constant 0 : index
    %32 = vector.load %arg7[%c0_16, %c0_17] : memref<32x48xbf16, #tpu.memory_space<vmem>>, vector<32x48xbf16>
    %cst_18 = arith.constant dense<0.000000e+00> : vector<16x48xf32>
    %33 = tpu.matmul %31, %32, %cst_18 {dimension_numbers = #tpu.dot_dimension_numbers<[1], [0], [0], [1], [0, 0, 1, 1], [], []>} : vector<16x32xbf16>, vector<32x48xbf16>, vector<16x48xf32> -> vector<16x48xf32>
    %c0_19 = arith.constant 0 : index
    %c0_20 = arith.constant 0 : index
    %34 = vector.load %arg9[%c0_19, %c0_20] : memref<1x48xf32, #tpu.memory_space<vmem>>, vector<1x48xf32>
    %35 = vector.broadcast %34 : vector<1x48xf32> to vector<16x48xf32>
    %36 = arith.addf %33, %35 : vector<16x48xf32>
    %37 = arith.truncf %36 : vector<16x48xf32> to vector<16x48xbf16>
    %c0_21 = arith.constant 0 : index
    %c0_22 = arith.constant 0 : index
    %38 = vector.load %arg11[%c0_21, %c0_22] : memref<16x48xbf16, #tpu.memory_space<vmem>>, vector<16x48xbf16>
    tpu.vector_store %arg11[%c0_21, %c0_22], %37 {strides = array<i32>} : memref<16x48xbf16, #tpu.memory_space<vmem>>, vector<16x48xbf16>,
    %c0_23 = arith.constant 0 : index
    %c0_24 = arith.constant 0 : index
    %39 = vector.load %arg8[%c0_23, %c0_24] : memref<32x48xbf16, #tpu.memory_space<vmem>>, vector<32x48xbf16>
    %cst_25 = arith.constant dense<0.000000e+00> : vector<16x48xf32>
    %40 = tpu.matmul %31, %39, %cst_25 {dimension_numbers = #tpu.dot_dimension_numbers<[1], [0], [0], [1], [0, 0, 1, 1], [], []>} : vector<16x32xbf16>, vector<32x48xbf16>, vector<16x48xf32> -> vector<16x48xf32>
    %c0_26 = arith.constant 0 : index
    %c0_27 = arith.constant 0 : index
    %41 = vector.load %arg10[%c0_26, %c0_27] : memref<1x48xf32, #tpu.memory_space<vmem>>, vector<1x48xf32>
    %42 = vector.broadcast %41 : vector<1x48xf32> to vector<16x48xf32>
    %43 = arith.addf %40, %42 : vector<16x48xf32>
    %44 = arith.truncf %43 : vector<16x48xf32> to vector<16x48xbf16>
    %c0_28 = arith.constant 0 : index
    %c0_29 = arith.constant 0 : index
    %45 = vector.load %arg12[%c0_28, %c0_29] : memref<16x48xbf16, #tpu.memory_space<vmem>>, vector<16x48xbf16>
    tpu.vector_store %arg12[%c0_28, %c0_29], %44 {strides = array<i32>} : memref<16x48xbf16, #tpu.memory_space<vmem>>, vector<16x48xbf16>,
    return
  }
  func.func @transform_0(%arg0: i32) -> (i32, i32) {
    %c0_i32 = arith.constant 0 : i32
    %c0_i32_0 = arith.constant 0 : i32
    return %arg0, %c0_i32 : i32, i32
  }
  func.func @transform_1(%arg0: i32) -> (i32, i32) {
    %c0_i32 = arith.constant 0 : i32
    %c0_i32_0 = arith.constant 0 : i32
    return %arg0, %c0_i32 : i32, i32
  }
  func.func @transform_2(%arg0: i32) -> (i32, i32) {
    %c0_i32 = arith.constant 0 : i32
    %c0_i32_0 = arith.constant 0 : i32
    %c0_i32_1 = arith.constant 0 : i32
    return %c0_i32, %c0_i32_0 : i32, i32
  }
  func.func @transform_3(%arg0: i32) -> (i32, i32) {
    %c0_i32 = arith.constant 0 : i32
    %c0_i32_0 = arith.constant 0 : i32
    %c0_i32_1 = arith.constant 0 : i32
    return %c0_i32, %c0_i32_0 : i32, i32
  }
  func.func @transform_4(%arg0: i32) -> (i32, i32) {
    %c0_i32 = arith.constant 0 : i32
    %c0_i32_0 = arith.constant 0 : i32
    %c0_i32_1 = arith.constant 0 : i32
    return %c0_i32, %c0_i32_0 : i32, i32
  }
  func.func @transform_5(%arg0: i32) -> (i32, i32) {
    %c0_i32 = arith.constant 0 : i32
    %c0_i32_0 = arith.constant 0 : i32
    %c0_i32_1 = arith.constant 0 : i32
    return %c0_i32, %c0_i32_0 : i32, i32
  }
  func.func @transform_6(%arg0: i32) -> (i32, i32) {
    %c0_i32 = arith.constant 0 : i32
    %c0_i32_0 = arith.constant 0 : i32
    %c0_i32_1 = arith.constant 0 : i32
    return %c0_i32, %c0_i32_0 : i32, i32
  }
  func.func @transform_7(%arg0: i32) -> (i32, i32) {
    %c0_i32 = arith.constant 0 : i32
    %c0_i32_0 = arith.constant 0 : i32
    %c0_i32_1 = arith.constant 0 : i32
    return %c0_i32, %c0_i32_0 : i32, i32
  }
  func.func @transform_8(%arg0: i32) -> (i32, i32) {
    %c0_i32 = arith.constant 0 : i32
    %c0_i32_0 = arith.constant 0 : i32
    %c0_i32_1 = arith.constant 0 : i32
    return %c0_i32, %c0_i32_0 : i32, i32
  }
  func.func @transform_9(%arg0: i32) -> (i32, i32) {
    %c0_i32 = arith.constant 0 : i32
    %c0_i32_0 = arith.constant 0 : i32
    %c0_i32_1 = arith.constant 0 : i32
    return %c0_i32, %c0_i32_0 : i32, i32
  }
  func.func @transform_10(%arg0: i32) -> (i32, i32) {
    %c0_i32 = arith.constant 0 : i32
    %c0_i32_0 = arith.constant 0 : i32
    return %arg0, %c0_i32 : i32, i32
  }
  func.func @transform_11(%arg0: i32) -> (i32, i32) {
    %c0_i32 = arith.constant 0 : i32
    %c0_i32_0 = arith.constant 0 : i32
    return %arg0, %c0_i32 : i32, i32
  }
}

module attributes {stable_mosaic.version = 11 : i64} {
  func.func @kernel(%arg0: i32, %arg1: memref<8x2x48xbf16, #tpu.memory_space<vmem>>, %arg2: memref<8x2x48xbf16, #tpu.memory_space<vmem>>, %arg3: memref<16x48xbf16, #tpu.memory_space<vmem>>, %arg4: memref<16x48xbf16, #tpu.memory_space<vmem>>, %arg5: memref<1x48xf32, #tpu.memory_space<vmem>>, %arg6: memref<1x48xf32, #tpu.memory_space<vmem>>, %arg7: memref<8x2x16xf32, #tpu.memory_space<vmem>>, %arg8: memref<8x2x16xf32, #tpu.memory_space<vmem>>, %arg9: memref<2x16xf32, #tpu.memory_space<vmem>>, %arg10: memref<2x16xf32, #tpu.memory_space<vmem>>, %arg11: memref<1x16xf32, #tpu.memory_space<vmem>>, %arg12: memref<1x16xf32, #tpu.memory_space<vmem>>, %arg13: memref<1x16xf32, #tpu.memory_space<vmem>>, %arg14: memref<1x16xf32, #tpu.memory_space<vmem>>, %arg15: memref<2x16xf32, #tpu.memory_space<vmem>>, %arg16: memref<2x16xf32, #tpu.memory_space<vmem>>) attributes {dimension_semantics = [#tpu.dimension_semantics<arbitrary>], iteration_bounds = array<i64: 1>, scalar_prefetch = 0 : i64, scratch_operands = 2 : i64, tpu.core_type = #tpu.core_type<tc>, window_params = [{transform_indices = @transform_0, window_bounds = array<i64: 8, 2, 48>}, {transform_indices = @transform_1, window_bounds = array<i64: 8, 2, 48>}, {pipeline_mode = #tpu.pipeline_mode<synchronous>, transform_indices = @transform_2, window_bounds = array<i64: 16, 48>}, {pipeline_mode = #tpu.pipeline_mode<synchronous>, transform_indices = @transform_3, window_bounds = array<i64: 16, 48>}, {pipeline_mode = #tpu.pipeline_mode<synchronous>, transform_indices = @transform_4, window_bounds = array<i64: 1, 48>}, {pipeline_mode = #tpu.pipeline_mode<synchronous>, transform_indices = @transform_5, window_bounds = array<i64: 1, 48>}, {transform_indices = @transform_6, window_bounds = array<i64: 8, 2, 16>}, {transform_indices = @transform_7, window_bounds = array<i64: 8, 2, 16>}, {pipeline_mode = #tpu.pipeline_mode<synchronous>, transform_indices = @transform_8, window_bounds = array<i64: 2, 16>}, {pipeline_mode = #tpu.pipeline_mode<synchronous>, transform_indices = @transform_9, window_bounds = array<i64: 2, 16>}, {pipeline_mode = #tpu.pipeline_mode<synchronous>, transform_indices = @transform_10, window_bounds = array<i64: 1, 16>}, {pipeline_mode = #tpu.pipeline_mode<synchronous>, transform_indices = @transform_11, window_bounds = array<i64: 1, 16>}, {pipeline_mode = #tpu.pipeline_mode<synchronous>, transform_indices = @transform_12, window_bounds = array<i64: 1, 16>}, {pipeline_mode = #tpu.pipeline_mode<synchronous>, transform_indices = @transform_13, window_bounds = array<i64: 1, 16>}]} {
    %c0_i32 = arith.constant 0 : i32
    %0 = arith.cmpi eq, %arg0, %c0_i32 : i32
    %1 = arith.extui %0 : i1 to i32
    %c0_i32_0 = arith.constant 0 : i32
    %2 = arith.cmpi ne, %1, %c0_i32_0 : i32
    scf.if %2 {
      %cst_172 = arith.constant 0.000000e+00 : f32
      %632 = vector.broadcast %cst_172 : f32 to vector<2x16xf32>
      %c0_173 = arith.constant 0 : index
      %c0_174 = arith.constant 0 : index
      %633 = vector.load %arg15[%c0_173, %c0_174] : memref<2x16xf32, #tpu.memory_space<vmem>>, vector<2x16xf32>
      tpu.vector_store %arg15[%c0_173, %c0_174], %632 {strides = array<i32>} : memref<2x16xf32, #tpu.memory_space<vmem>>, vector<2x16xf32>,
      %cst_175 = arith.constant 0.000000e+00 : f32
      %634 = vector.broadcast %cst_175 : f32 to vector<2x16xf32>
      %c0_176 = arith.constant 0 : index
      %c0_177 = arith.constant 0 : index
      %635 = vector.load %arg16[%c0_176, %c0_177] : memref<2x16xf32, #tpu.memory_space<vmem>>, vector<2x16xf32>
      tpu.vector_store %arg16[%c0_176, %c0_177], %634 {strides = array<i32>} : memref<2x16xf32, #tpu.memory_space<vmem>>, vector<2x16xf32>,
      %cst_178 = arith.constant 0.000000e+00 : f32
      %636 = vector.broadcast %cst_178 : f32 to vector<1x16xf32>
      %c0_179 = arith.constant 0 : index
      %c0_180 = arith.constant 0 : index
      %637 = vector.load %arg11[%c0_179, %c0_180] : memref<1x16xf32, #tpu.memory_space<vmem>>, vector<1x16xf32>
      tpu.vector_store %arg11[%c0_179, %c0_180], %636 {strides = array<i32>} : memref<1x16xf32, #tpu.memory_space<vmem>>, vector<1x16xf32>,
      %cst_181 = arith.constant 0.000000e+00 : f32
      %638 = vector.broadcast %cst_181 : f32 to vector<1x16xf32>
      %c0_182 = arith.constant 0 : index
      %c0_183 = arith.constant 0 : index
      %639 = vector.load %arg12[%c0_182, %c0_183] : memref<1x16xf32, #tpu.memory_space<vmem>>, vector<1x16xf32>
      tpu.vector_store %arg12[%c0_182, %c0_183], %638 {strides = array<i32>} : memref<1x16xf32, #tpu.memory_space<vmem>>, vector<1x16xf32>,
      %cst_184 = arith.constant 0.000000e+00 : f32
      %640 = vector.broadcast %cst_184 : f32 to vector<1x16xf32>
      %c0_185 = arith.constant 0 : index
      %c0_186 = arith.constant 0 : index
      %641 = vector.load %arg13[%c0_185, %c0_186] : memref<1x16xf32, #tpu.memory_space<vmem>>, vector<1x16xf32>
      tpu.vector_store %arg13[%c0_185, %c0_186], %640 {strides = array<i32>} : memref<1x16xf32, #tpu.memory_space<vmem>>, vector<1x16xf32>,
      %cst_187 = arith.constant 0.000000e+00 : f32
      %642 = vector.broadcast %cst_187 : f32 to vector<1x16xf32>
      %c0_188 = arith.constant 0 : index
      %c0_189 = arith.constant 0 : index
      %643 = vector.load %arg14[%c0_188, %c0_189] : memref<1x16xf32, #tpu.memory_space<vmem>>, vector<1x16xf32>
      tpu.vector_store %arg14[%c0_188, %c0_189], %642 {strides = array<i32>} : memref<1x16xf32, #tpu.memory_space<vmem>>, vector<1x16xf32>,
    } else {
    }
    %c0 = arith.constant 0 : index
    %c0_1 = arith.constant 0 : index
    %3 = vector.load %arg3[%c0, %c0_1] : memref<16x48xbf16, #tpu.memory_space<vmem>>, vector<16x48xbf16>
    %c0_2 = arith.constant 0 : index
    %c0_3 = arith.constant 0 : index
    %4 = vector.load %arg4[%c0_2, %c0_3] : memref<16x48xbf16, #tpu.memory_space<vmem>>, vector<16x48xbf16>
    %c0_4 = arith.constant 0 : index
    %c0_5 = arith.constant 0 : index
    %5 = vector.load %arg5[%c0_4, %c0_5] : memref<1x48xf32, #tpu.memory_space<vmem>>, vector<1x48xf32>
    %c0_6 = arith.constant 0 : index
    %c0_7 = arith.constant 0 : index
    %6 = vector.load %arg6[%c0_6, %c0_7] : memref<1x48xf32, #tpu.memory_space<vmem>>, vector<1x48xf32>
    %c0_8 = arith.constant 0 : index
    %c0_9 = arith.constant 0 : index
    %7 = vector.load %arg15[%c0_8, %c0_9] : memref<2x16xf32, #tpu.memory_space<vmem>>, vector<2x16xf32>
    %c0_10 = arith.constant 0 : index
    %c0_11 = arith.constant 0 : index
    %8 = vector.load %arg16[%c0_10, %c0_11] : memref<2x16xf32, #tpu.memory_space<vmem>>, vector<2x16xf32>
    %c0_i32_12 = arith.constant 0 : i32
    %9 = arith.index_cast %c0_i32_12 : i32 to index
    %c0_13 = arith.constant 0 : index
    %c0_14 = arith.constant 0 : index
    %10 = vector.load %arg1[%9, %c0_13, %c0_14] : memref<8x2x48xbf16, #tpu.memory_space<vmem>>, vector<1x2x48xbf16>
    %11 = vector.shape_cast %10 : vector<1x2x48xbf16> to vector<2x48xbf16>
    %12 = arith.extf %11 : vector<2x48xbf16> to vector<2x48xf32>
    %c7_i32 = arith.constant 7 : i32
    %13 = arith.subi %c7_i32, %c0_i32_12 : i32
    %14 = arith.index_cast %13 : i32 to index
    %c0_15 = arith.constant 0 : index
    %c0_16 = arith.constant 0 : index
    %15 = vector.load %arg2[%14, %c0_15, %c0_16] : memref<8x2x48xbf16, #tpu.memory_space<vmem>>, vector<1x2x48xbf16>
    %16 = vector.shape_cast %15 : vector<1x2x48xbf16> to vector<2x48xbf16>
    %17 = arith.extf %16 : vector<2x48xbf16> to vector<2x48xf32>
    %18 = arith.truncf %7 : vector<2x16xf32> to vector<2x16xbf16>
    %cst = arith.constant dense<0.000000e+00> : vector<2x48xf32>
    %19 = tpu.matmul %18, %3, %cst {dimension_numbers = #tpu.dot_dimension_numbers<[1], [0], [0], [1], [0, 0, 1, 1], [], []>} : vector<2x16xbf16>, vector<16x48xbf16>, vector<2x48xf32> -> vector<2x48xf32>
    %20 = vector.broadcast %5 : vector<1x48xf32> to vector<2x48xf32>
    %21 = arith.addf %19, %20 : vector<2x48xf32>
    %22 = vector.extract_strided_slice %12 {offsets = [0, 0], sizes = [2, 16], strides = [1, 1]} : vector<2x48xf32> to vector<2x16xf32>
    %23 = vector.extract_strided_slice %21 {offsets = [0, 0], sizes = [2, 16], strides = [1, 1]} : vector<2x48xf32> to vector<2x16xf32>
    %24 = arith.addf %22, %23 : vector<2x16xf32>
    %25 = arith.negf %24 : vector<2x16xf32>
    %26 = math.exp %25 : vector<2x16xf32>
    %cst_17 = arith.constant 1.000000e+00 : f32
    %27 = vector.broadcast %cst_17 : f32 to vector<2x16xf32>
    %28 = arith.addf %27, %26 : vector<2x16xf32>
    %29 = arith.divf %27, %28 : vector<2x16xf32>
    %30 = vector.extract_strided_slice %12 {offsets = [0, 16], sizes = [2, 16], strides = [1, 1]} : vector<2x48xf32> to vector<2x16xf32>
    %31 = vector.extract_strided_slice %21 {offsets = [0, 16], sizes = [2, 16], strides = [1, 1]} : vector<2x48xf32> to vector<2x16xf32>
    %32 = arith.addf %30, %31 : vector<2x16xf32>
    %33 = arith.negf %32 : vector<2x16xf32>
    %34 = math.exp %33 : vector<2x16xf32>
    %cst_18 = arith.constant 1.000000e+00 : f32
    %35 = vector.broadcast %cst_18 : f32 to vector<2x16xf32>
    %36 = arith.addf %35, %34 : vector<2x16xf32>
    %37 = arith.divf %35, %36 : vector<2x16xf32>
    %38 = vector.extract_strided_slice %12 {offsets = [0, 32], sizes = [2, 16], strides = [1, 1]} : vector<2x48xf32> to vector<2x16xf32>
    %39 = vector.extract_strided_slice %21 {offsets = [0, 32], sizes = [2, 16], strides = [1, 1]} : vector<2x48xf32> to vector<2x16xf32>
    %40 = arith.mulf %29, %39 : vector<2x16xf32>
    %41 = arith.addf %38, %40 : vector<2x16xf32>
    %42 = math.tanh %41 : vector<2x16xf32>
    %43 = arith.subf %7, %42 : vector<2x16xf32>
    %44 = arith.mulf %37, %43 : vector<2x16xf32>
    %45 = arith.addf %42, %44 : vector<2x16xf32>
    %46 = arith.truncf %8 : vector<2x16xf32> to vector<2x16xbf16>
    %cst_19 = arith.constant dense<0.000000e+00> : vector<2x48xf32>
    %47 = tpu.matmul %46, %4, %cst_19 {dimension_numbers = #tpu.dot_dimension_numbers<[1], [0], [0], [1], [0, 0, 1, 1], [], []>} : vector<2x16xbf16>, vector<16x48xbf16>, vector<2x48xf32> -> vector<2x48xf32>
    %48 = vector.broadcast %6 : vector<1x48xf32> to vector<2x48xf32>
    %49 = arith.addf %47, %48 : vector<2x48xf32>
    %50 = vector.extract_strided_slice %17 {offsets = [0, 0], sizes = [2, 16], strides = [1, 1]} : vector<2x48xf32> to vector<2x16xf32>
    %51 = vector.extract_strided_slice %49 {offsets = [0, 0], sizes = [2, 16], strides = [1, 1]} : vector<2x48xf32> to vector<2x16xf32>
    %52 = arith.addf %50, %51 : vector<2x16xf32>
    %53 = arith.negf %52 : vector<2x16xf32>
    %54 = math.exp %53 : vector<2x16xf32>
    %cst_20 = arith.constant 1.000000e+00 : f32
    %55 = vector.broadcast %cst_20 : f32 to vector<2x16xf32>
    %56 = arith.addf %55, %54 : vector<2x16xf32>
    %57 = arith.divf %55, %56 : vector<2x16xf32>
    %58 = vector.extract_strided_slice %17 {offsets = [0, 16], sizes = [2, 16], strides = [1, 1]} : vector<2x48xf32> to vector<2x16xf32>
    %59 = vector.extract_strided_slice %49 {offsets = [0, 16], sizes = [2, 16], strides = [1, 1]} : vector<2x48xf32> to vector<2x16xf32>
    %60 = arith.addf %58, %59 : vector<2x16xf32>
    %61 = arith.negf %60 : vector<2x16xf32>
    %62 = math.exp %61 : vector<2x16xf32>
    %cst_21 = arith.constant 1.000000e+00 : f32
    %63 = vector.broadcast %cst_21 : f32 to vector<2x16xf32>
    %64 = arith.addf %63, %62 : vector<2x16xf32>
    %65 = arith.divf %63, %64 : vector<2x16xf32>
    %66 = vector.extract_strided_slice %17 {offsets = [0, 32], sizes = [2, 16], strides = [1, 1]} : vector<2x48xf32> to vector<2x16xf32>
    %67 = vector.extract_strided_slice %49 {offsets = [0, 32], sizes = [2, 16], strides = [1, 1]} : vector<2x48xf32> to vector<2x16xf32>
    %68 = arith.mulf %57, %67 : vector<2x16xf32>
    %69 = arith.addf %66, %68 : vector<2x16xf32>
    %70 = math.tanh %69 : vector<2x16xf32>
    %71 = arith.subf %8, %70 : vector<2x16xf32>
    %72 = arith.mulf %65, %71 : vector<2x16xf32>
    %73 = arith.addf %70, %72 : vector<2x16xf32>
    %74 = arith.index_cast %c0_i32_12 : i32 to index
    %c0_22 = arith.constant 0 : index
    %c0_23 = arith.constant 0 : index
    %75 = vector.load %arg7[%74, %c0_22, %c0_23] : memref<8x2x16xf32, #tpu.memory_space<vmem>>, vector<1x2x16xf32>
    %76 = vector.shape_cast %75 : vector<1x2x16xf32> to vector<2x16xf32>
    %77 = vector.shape_cast %45 : vector<2x16xf32> to vector<1x2x16xf32>
    tpu.vector_store %arg7[%74, %c0_22, %c0_23], %77 {strides = array<i32>} : memref<8x2x16xf32, #tpu.memory_space<vmem>>, vector<1x2x16xf32>,
    %c7_i32_24 = arith.constant 7 : i32
    %78 = arith.subi %c7_i32_24, %c0_i32_12 : i32
    %79 = arith.index_cast %78 : i32 to index
    %c0_25 = arith.constant 0 : index
    %c0_26 = arith.constant 0 : index
    %80 = vector.load %arg8[%79, %c0_25, %c0_26] : memref<8x2x16xf32, #tpu.memory_space<vmem>>, vector<1x2x16xf32>
    %81 = vector.shape_cast %80 : vector<1x2x16xf32> to vector<2x16xf32>
    %82 = vector.shape_cast %73 : vector<2x16xf32> to vector<1x2x16xf32>
    tpu.vector_store %arg8[%79, %c0_25, %c0_26], %82 {strides = array<i32>} : memref<8x2x16xf32, #tpu.memory_space<vmem>>, vector<1x2x16xf32>,
    %c1_i32 = arith.constant 1 : i32
    %83 = arith.index_cast %c1_i32 : i32 to index
    %c0_27 = arith.constant 0 : index
    %c0_28 = arith.constant 0 : index
    %84 = vector.load %arg1[%83, %c0_27, %c0_28] : memref<8x2x48xbf16, #tpu.memory_space<vmem>>, vector<1x2x48xbf16>
    %85 = vector.shape_cast %84 : vector<1x2x48xbf16> to vector<2x48xbf16>
    %86 = arith.extf %85 : vector<2x48xbf16> to vector<2x48xf32>
    %c7_i32_29 = arith.constant 7 : i32
    %87 = arith.subi %c7_i32_29, %c1_i32 : i32
    %88 = arith.index_cast %87 : i32 to index
    %c0_30 = arith.constant 0 : index
    %c0_31 = arith.constant 0 : index
    %89 = vector.load %arg2[%88, %c0_30, %c0_31] : memref<8x2x48xbf16, #tpu.memory_space<vmem>>, vector<1x2x48xbf16>
    %90 = vector.shape_cast %89 : vector<1x2x48xbf16> to vector<2x48xbf16>
    %91 = arith.extf %90 : vector<2x48xbf16> to vector<2x48xf32>
    %92 = arith.truncf %45 : vector<2x16xf32> to vector<2x16xbf16>
    %cst_32 = arith.constant dense<0.000000e+00> : vector<2x48xf32>
    %93 = tpu.matmul %92, %3, %cst_32 {dimension_numbers = #tpu.dot_dimension_numbers<[1], [0], [0], [1], [0, 0, 1, 1], [], []>} : vector<2x16xbf16>, vector<16x48xbf16>, vector<2x48xf32> -> vector<2x48xf32>
    %94 = vector.broadcast %5 : vector<1x48xf32> to vector<2x48xf32>
    %95 = arith.addf %93, %94 : vector<2x48xf32>
    %96 = vector.extract_strided_slice %86 {offsets = [0, 0], sizes = [2, 16], strides = [1, 1]} : vector<2x48xf32> to vector<2x16xf32>
    %97 = vector.extract_strided_slice %95 {offsets = [0, 0], sizes = [2, 16], strides = [1, 1]} : vector<2x48xf32> to vector<2x16xf32>
    %98 = arith.addf %96, %97 : vector<2x16xf32>
    %99 = arith.negf %98 : vector<2x16xf32>
    %100 = math.exp %99 : vector<2x16xf32>
    %cst_33 = arith.constant 1.000000e+00 : f32
    %101 = vector.broadcast %cst_33 : f32 to vector<2x16xf32>
    %102 = arith.addf %101, %100 : vector<2x16xf32>
    %103 = arith.divf %101, %102 : vector<2x16xf32>
    %104 = vector.extract_strided_slice %86 {offsets = [0, 16], sizes = [2, 16], strides = [1, 1]} : vector<2x48xf32> to vector<2x16xf32>
    %105 = vector.extract_strided_slice %95 {offsets = [0, 16], sizes = [2, 16], strides = [1, 1]} : vector<2x48xf32> to vector<2x16xf32>
    %106 = arith.addf %104, %105 : vector<2x16xf32>
    %107 = arith.negf %106 : vector<2x16xf32>
    %108 = math.exp %107 : vector<2x16xf32>
    %cst_34 = arith.constant 1.000000e+00 : f32
    %109 = vector.broadcast %cst_34 : f32 to vector<2x16xf32>
    %110 = arith.addf %109, %108 : vector<2x16xf32>
    %111 = arith.divf %109, %110 : vector<2x16xf32>
    %112 = vector.extract_strided_slice %86 {offsets = [0, 32], sizes = [2, 16], strides = [1, 1]} : vector<2x48xf32> to vector<2x16xf32>
    %113 = vector.extract_strided_slice %95 {offsets = [0, 32], sizes = [2, 16], strides = [1, 1]} : vector<2x48xf32> to vector<2x16xf32>
    %114 = arith.mulf %103, %113 : vector<2x16xf32>
    %115 = arith.addf %112, %114 : vector<2x16xf32>
    %116 = math.tanh %115 : vector<2x16xf32>
    %117 = arith.subf %45, %116 : vector<2x16xf32>
    %118 = arith.mulf %111, %117 : vector<2x16xf32>
    %119 = arith.addf %116, %118 : vector<2x16xf32>
    %120 = arith.truncf %73 : vector<2x16xf32> to vector<2x16xbf16>
    %cst_35 = arith.constant dense<0.000000e+00> : vector<2x48xf32>
    %121 = tpu.matmul %120, %4, %cst_35 {dimension_numbers = #tpu.dot_dimension_numbers<[1], [0], [0], [1], [0, 0, 1, 1], [], []>} : vector<2x16xbf16>, vector<16x48xbf16>, vector<2x48xf32> -> vector<2x48xf32>
    %122 = vector.broadcast %6 : vector<1x48xf32> to vector<2x48xf32>
    %123 = arith.addf %121, %122 : vector<2x48xf32>
    %124 = vector.extract_strided_slice %91 {offsets = [0, 0], sizes = [2, 16], strides = [1, 1]} : vector<2x48xf32> to vector<2x16xf32>
    %125 = vector.extract_strided_slice %123 {offsets = [0, 0], sizes = [2, 16], strides = [1, 1]} : vector<2x48xf32> to vector<2x16xf32>
    %126 = arith.addf %124, %125 : vector<2x16xf32>
    %127 = arith.negf %126 : vector<2x16xf32>
    %128 = math.exp %127 : vector<2x16xf32>
    %cst_36 = arith.constant 1.000000e+00 : f32
    %129 = vector.broadcast %cst_36 : f32 to vector<2x16xf32>
    %130 = arith.addf %129, %128 : vector<2x16xf32>
    %131 = arith.divf %129, %130 : vector<2x16xf32>
    %132 = vector.extract_strided_slice %91 {offsets = [0, 16], sizes = [2, 16], strides = [1, 1]} : vector<2x48xf32> to vector<2x16xf32>
    %133 = vector.extract_strided_slice %123 {offsets = [0, 16], sizes = [2, 16], strides = [1, 1]} : vector<2x48xf32> to vector<2x16xf32>
    %134 = arith.addf %132, %133 : vector<2x16xf32>
    %135 = arith.negf %134 : vector<2x16xf32>
    %136 = math.exp %135 : vector<2x16xf32>
    %cst_37 = arith.constant 1.000000e+00 : f32
    %137 = vector.broadcast %cst_37 : f32 to vector<2x16xf32>
    %138 = arith.addf %137, %136 : vector<2x16xf32>
    %139 = arith.divf %137, %138 : vector<2x16xf32>
    %140 = vector.extract_strided_slice %91 {offsets = [0, 32], sizes = [2, 16], strides = [1, 1]} : vector<2x48xf32> to vector<2x16xf32>
    %141 = vector.extract_strided_slice %123 {offsets = [0, 32], sizes = [2, 16], strides = [1, 1]} : vector<2x48xf32> to vector<2x16xf32>
    %142 = arith.mulf %131, %141 : vector<2x16xf32>
    %143 = arith.addf %140, %142 : vector<2x16xf32>
    %144 = math.tanh %143 : vector<2x16xf32>
    %145 = arith.subf %73, %144 : vector<2x16xf32>
    %146 = arith.mulf %139, %145 : vector<2x16xf32>
    %147 = arith.addf %144, %146 : vector<2x16xf32>
    %148 = arith.index_cast %c1_i32 : i32 to index
    %c0_38 = arith.constant 0 : index
    %c0_39 = arith.constant 0 : index
    %149 = vector.load %arg7[%148, %c0_38, %c0_39] : memref<8x2x16xf32, #tpu.memory_space<vmem>>, vector<1x2x16xf32>
    %150 = vector.shape_cast %149 : vector<1x2x16xf32> to vector<2x16xf32>
    %151 = vector.shape_cast %119 : vector<2x16xf32> to vector<1x2x16xf32>
    tpu.vector_store %arg7[%148, %c0_38, %c0_39], %151 {strides = array<i32>} : memref<8x2x16xf32, #tpu.memory_space<vmem>>, vector<1x2x16xf32>,
    %c7_i32_40 = arith.constant 7 : i32
    %152 = arith.subi %c7_i32_40, %c1_i32 : i32
    %153 = arith.index_cast %152 : i32 to index
    %c0_41 = arith.constant 0 : index
    %c0_42 = arith.constant 0 : index
    %154 = vector.load %arg8[%153, %c0_41, %c0_42] : memref<8x2x16xf32, #tpu.memory_space<vmem>>, vector<1x2x16xf32>
    %155 = vector.shape_cast %154 : vector<1x2x16xf32> to vector<2x16xf32>
    %156 = vector.shape_cast %147 : vector<2x16xf32> to vector<1x2x16xf32>
    tpu.vector_store %arg8[%153, %c0_41, %c0_42], %156 {strides = array<i32>} : memref<8x2x16xf32, #tpu.memory_space<vmem>>, vector<1x2x16xf32>,
    %c2_i32 = arith.constant 2 : i32
    %157 = arith.index_cast %c2_i32 : i32 to index
    %c0_43 = arith.constant 0 : index
    %c0_44 = arith.constant 0 : index
    %158 = vector.load %arg1[%157, %c0_43, %c0_44] : memref<8x2x48xbf16, #tpu.memory_space<vmem>>, vector<1x2x48xbf16>
    %159 = vector.shape_cast %158 : vector<1x2x48xbf16> to vector<2x48xbf16>
    %160 = arith.extf %159 : vector<2x48xbf16> to vector<2x48xf32>
    %c7_i32_45 = arith.constant 7 : i32
    %161 = arith.subi %c7_i32_45, %c2_i32 : i32
    %162 = arith.index_cast %161 : i32 to index
    %c0_46 = arith.constant 0 : index
    %c0_47 = arith.constant 0 : index
    %163 = vector.load %arg2[%162, %c0_46, %c0_47] : memref<8x2x48xbf16, #tpu.memory_space<vmem>>, vector<1x2x48xbf16>
    %164 = vector.shape_cast %163 : vector<1x2x48xbf16> to vector<2x48xbf16>
    %165 = arith.extf %164 : vector<2x48xbf16> to vector<2x48xf32>
    %166 = arith.truncf %119 : vector<2x16xf32> to vector<2x16xbf16>
    %cst_48 = arith.constant dense<0.000000e+00> : vector<2x48xf32>
    %167 = tpu.matmul %166, %3, %cst_48 {dimension_numbers = #tpu.dot_dimension_numbers<[1], [0], [0], [1], [0, 0, 1, 1], [], []>} : vector<2x16xbf16>, vector<16x48xbf16>, vector<2x48xf32> -> vector<2x48xf32>
    %168 = vector.broadcast %5 : vector<1x48xf32> to vector<2x48xf32>
    %169 = arith.addf %167, %168 : vector<2x48xf32>
    %170 = vector.extract_strided_slice %160 {offsets = [0, 0], sizes = [2, 16], strides = [1, 1]} : vector<2x48xf32> to vector<2x16xf32>
    %171 = vector.extract_strided_slice %169 {offsets = [0, 0], sizes = [2, 16], strides = [1, 1]} : vector<2x48xf32> to vector<2x16xf32>
    %172 = arith.addf %170, %171 : vector<2x16xf32>
    %173 = arith.negf %172 : vector<2x16xf32>
    %174 = math.exp %173 : vector<2x16xf32>
    %cst_49 = arith.constant 1.000000e+00 : f32
    %175 = vector.broadcast %cst_49 : f32 to vector<2x16xf32>
    %176 = arith.addf %175, %174 : vector<2x16xf32>
    %177 = arith.divf %175, %176 : vector<2x16xf32>
    %178 = vector.extract_strided_slice %160 {offsets = [0, 16], sizes = [2, 16], strides = [1, 1]} : vector<2x48xf32> to vector<2x16xf32>
    %179 = vector.extract_strided_slice %169 {offsets = [0, 16], sizes = [2, 16], strides = [1, 1]} : vector<2x48xf32> to vector<2x16xf32>
    %180 = arith.addf %178, %179 : vector<2x16xf32>
    %181 = arith.negf %180 : vector<2x16xf32>
    %182 = math.exp %181 : vector<2x16xf32>
    %cst_50 = arith.constant 1.000000e+00 : f32
    %183 = vector.broadcast %cst_50 : f32 to vector<2x16xf32>
    %184 = arith.addf %183, %182 : vector<2x16xf32>
    %185 = arith.divf %183, %184 : vector<2x16xf32>
    %186 = vector.extract_strided_slice %160 {offsets = [0, 32], sizes = [2, 16], strides = [1, 1]} : vector<2x48xf32> to vector<2x16xf32>
    %187 = vector.extract_strided_slice %169 {offsets = [0, 32], sizes = [2, 16], strides = [1, 1]} : vector<2x48xf32> to vector<2x16xf32>
    %188 = arith.mulf %177, %187 : vector<2x16xf32>
    %189 = arith.addf %186, %188 : vector<2x16xf32>
    %190 = math.tanh %189 : vector<2x16xf32>
    %191 = arith.subf %119, %190 : vector<2x16xf32>
    %192 = arith.mulf %185, %191 : vector<2x16xf32>
    %193 = arith.addf %190, %192 : vector<2x16xf32>
    %194 = arith.truncf %147 : vector<2x16xf32> to vector<2x16xbf16>
    %cst_51 = arith.constant dense<0.000000e+00> : vector<2x48xf32>
    %195 = tpu.matmul %194, %4, %cst_51 {dimension_numbers = #tpu.dot_dimension_numbers<[1], [0], [0], [1], [0, 0, 1, 1], [], []>} : vector<2x16xbf16>, vector<16x48xbf16>, vector<2x48xf32> -> vector<2x48xf32>
    %196 = vector.broadcast %6 : vector<1x48xf32> to vector<2x48xf32>
    %197 = arith.addf %195, %196 : vector<2x48xf32>
    %198 = vector.extract_strided_slice %165 {offsets = [0, 0], sizes = [2, 16], strides = [1, 1]} : vector<2x48xf32> to vector<2x16xf32>
    %199 = vector.extract_strided_slice %197 {offsets = [0, 0], sizes = [2, 16], strides = [1, 1]} : vector<2x48xf32> to vector<2x16xf32>
    %200 = arith.addf %198, %199 : vector<2x16xf32>
    %201 = arith.negf %200 : vector<2x16xf32>
    %202 = math.exp %201 : vector<2x16xf32>
    %cst_52 = arith.constant 1.000000e+00 : f32
    %203 = vector.broadcast %cst_52 : f32 to vector<2x16xf32>
    %204 = arith.addf %203, %202 : vector<2x16xf32>
    %205 = arith.divf %203, %204 : vector<2x16xf32>
    %206 = vector.extract_strided_slice %165 {offsets = [0, 16], sizes = [2, 16], strides = [1, 1]} : vector<2x48xf32> to vector<2x16xf32>
    %207 = vector.extract_strided_slice %197 {offsets = [0, 16], sizes = [2, 16], strides = [1, 1]} : vector<2x48xf32> to vector<2x16xf32>
    %208 = arith.addf %206, %207 : vector<2x16xf32>
    %209 = arith.negf %208 : vector<2x16xf32>
    %210 = math.exp %209 : vector<2x16xf32>
    %cst_53 = arith.constant 1.000000e+00 : f32
    %211 = vector.broadcast %cst_53 : f32 to vector<2x16xf32>
    %212 = arith.addf %211, %210 : vector<2x16xf32>
    %213 = arith.divf %211, %212 : vector<2x16xf32>
    %214 = vector.extract_strided_slice %165 {offsets = [0, 32], sizes = [2, 16], strides = [1, 1]} : vector<2x48xf32> to vector<2x16xf32>
    %215 = vector.extract_strided_slice %197 {offsets = [0, 32], sizes = [2, 16], strides = [1, 1]} : vector<2x48xf32> to vector<2x16xf32>
    %216 = arith.mulf %205, %215 : vector<2x16xf32>
    %217 = arith.addf %214, %216 : vector<2x16xf32>
    %218 = math.tanh %217 : vector<2x16xf32>
    %219 = arith.subf %147, %218 : vector<2x16xf32>
    %220 = arith.mulf %213, %219 : vector<2x16xf32>
    %221 = arith.addf %218, %220 : vector<2x16xf32>
    %222 = arith.index_cast %c2_i32 : i32 to index
    %c0_54 = arith.constant 0 : index
    %c0_55 = arith.constant 0 : index
    %223 = vector.load %arg7[%222, %c0_54, %c0_55] : memref<8x2x16xf32, #tpu.memory_space<vmem>>, vector<1x2x16xf32>
    %224 = vector.shape_cast %223 : vector<1x2x16xf32> to vector<2x16xf32>
    %225 = vector.shape_cast %193 : vector<2x16xf32> to vector<1x2x16xf32>
    tpu.vector_store %arg7[%222, %c0_54, %c0_55], %225 {strides = array<i32>} : memref<8x2x16xf32, #tpu.memory_space<vmem>>, vector<1x2x16xf32>,
    %c7_i32_56 = arith.constant 7 : i32
    %226 = arith.subi %c7_i32_56, %c2_i32 : i32
    %227 = arith.index_cast %226 : i32 to index
    %c0_57 = arith.constant 0 : index
    %c0_58 = arith.constant 0 : index
    %228 = vector.load %arg8[%227, %c0_57, %c0_58] : memref<8x2x16xf32, #tpu.memory_space<vmem>>, vector<1x2x16xf32>
    %229 = vector.shape_cast %228 : vector<1x2x16xf32> to vector<2x16xf32>
    %230 = vector.shape_cast %221 : vector<2x16xf32> to vector<1x2x16xf32>
    tpu.vector_store %arg8[%227, %c0_57, %c0_58], %230 {strides = array<i32>} : memref<8x2x16xf32, #tpu.memory_space<vmem>>, vector<1x2x16xf32>,
    %c3_i32 = arith.constant 3 : i32
    %231 = arith.index_cast %c3_i32 : i32 to index
    %c0_59 = arith.constant 0 : index
    %c0_60 = arith.constant 0 : index
    %232 = vector.load %arg1[%231, %c0_59, %c0_60] : memref<8x2x48xbf16, #tpu.memory_space<vmem>>, vector<1x2x48xbf16>
    %233 = vector.shape_cast %232 : vector<1x2x48xbf16> to vector<2x48xbf16>
    %234 = arith.extf %233 : vector<2x48xbf16> to vector<2x48xf32>
    %c7_i32_61 = arith.constant 7 : i32
    %235 = arith.subi %c7_i32_61, %c3_i32 : i32
    %236 = arith.index_cast %235 : i32 to index
    %c0_62 = arith.constant 0 : index
    %c0_63 = arith.constant 0 : index
    %237 = vector.load %arg2[%236, %c0_62, %c0_63] : memref<8x2x48xbf16, #tpu.memory_space<vmem>>, vector<1x2x48xbf16>
    %238 = vector.shape_cast %237 : vector<1x2x48xbf16> to vector<2x48xbf16>
    %239 = arith.extf %238 : vector<2x48xbf16> to vector<2x48xf32>
    %240 = arith.truncf %193 : vector<2x16xf32> to vector<2x16xbf16>
    %cst_64 = arith.constant dense<0.000000e+00> : vector<2x48xf32>
    %241 = tpu.matmul %240, %3, %cst_64 {dimension_numbers = #tpu.dot_dimension_numbers<[1], [0], [0], [1], [0, 0, 1, 1], [], []>} : vector<2x16xbf16>, vector<16x48xbf16>, vector<2x48xf32> -> vector<2x48xf32>
    %242 = vector.broadcast %5 : vector<1x48xf32> to vector<2x48xf32>
    %243 = arith.addf %241, %242 : vector<2x48xf32>
    %244 = vector.extract_strided_slice %234 {offsets = [0, 0], sizes = [2, 16], strides = [1, 1]} : vector<2x48xf32> to vector<2x16xf32>
    %245 = vector.extract_strided_slice %243 {offsets = [0, 0], sizes = [2, 16], strides = [1, 1]} : vector<2x48xf32> to vector<2x16xf32>
    %246 = arith.addf %244, %245 : vector<2x16xf32>
    %247 = arith.negf %246 : vector<2x16xf32>
    %248 = math.exp %247 : vector<2x16xf32>
    %cst_65 = arith.constant 1.000000e+00 : f32
    %249 = vector.broadcast %cst_65 : f32 to vector<2x16xf32>
    %250 = arith.addf %249, %248 : vector<2x16xf32>
    %251 = arith.divf %249, %250 : vector<2x16xf32>
    %252 = vector.extract_strided_slice %234 {offsets = [0, 16], sizes = [2, 16], strides = [1, 1]} : vector<2x48xf32> to vector<2x16xf32>
    %253 = vector.extract_strided_slice %243 {offsets = [0, 16], sizes = [2, 16], strides = [1, 1]} : vector<2x48xf32> to vector<2x16xf32>
    %254 = arith.addf %252, %253 : vector<2x16xf32>
    %255 = arith.negf %254 : vector<2x16xf32>
    %256 = math.exp %255 : vector<2x16xf32>
    %cst_66 = arith.constant 1.000000e+00 : f32
    %257 = vector.broadcast %cst_66 : f32 to vector<2x16xf32>
    %258 = arith.addf %257, %256 : vector<2x16xf32>
    %259 = arith.divf %257, %258 : vector<2x16xf32>
    %260 = vector.extract_strided_slice %234 {offsets = [0, 32], sizes = [2, 16], strides = [1, 1]} : vector<2x48xf32> to vector<2x16xf32>
    %261 = vector.extract_strided_slice %243 {offsets = [0, 32], sizes = [2, 16], strides = [1, 1]} : vector<2x48xf32> to vector<2x16xf32>
    %262 = arith.mulf %251, %261 : vector<2x16xf32>
    %263 = arith.addf %260, %262 : vector<2x16xf32>
    %264 = math.tanh %263 : vector<2x16xf32>
    %265 = arith.subf %193, %264 : vector<2x16xf32>
    %266 = arith.mulf %259, %265 : vector<2x16xf32>
    %267 = arith.addf %264, %266 : vector<2x16xf32>
    %268 = arith.truncf %221 : vector<2x16xf32> to vector<2x16xbf16>
    %cst_67 = arith.constant dense<0.000000e+00> : vector<2x48xf32>
    %269 = tpu.matmul %268, %4, %cst_67 {dimension_numbers = #tpu.dot_dimension_numbers<[1], [0], [0], [1], [0, 0, 1, 1], [], []>} : vector<2x16xbf16>, vector<16x48xbf16>, vector<2x48xf32> -> vector<2x48xf32>
    %270 = vector.broadcast %6 : vector<1x48xf32> to vector<2x48xf32>
    %271 = arith.addf %269, %270 : vector<2x48xf32>
    %272 = vector.extract_strided_slice %239 {offsets = [0, 0], sizes = [2, 16], strides = [1, 1]} : vector<2x48xf32> to vector<2x16xf32>
    %273 = vector.extract_strided_slice %271 {offsets = [0, 0], sizes = [2, 16], strides = [1, 1]} : vector<2x48xf32> to vector<2x16xf32>
    %274 = arith.addf %272, %273 : vector<2x16xf32>
    %275 = arith.negf %274 : vector<2x16xf32>
    %276 = math.exp %275 : vector<2x16xf32>
    %cst_68 = arith.constant 1.000000e+00 : f32
    %277 = vector.broadcast %cst_68 : f32 to vector<2x16xf32>
    %278 = arith.addf %277, %276 : vector<2x16xf32>
    %279 = arith.divf %277, %278 : vector<2x16xf32>
    %280 = vector.extract_strided_slice %239 {offsets = [0, 16], sizes = [2, 16], strides = [1, 1]} : vector<2x48xf32> to vector<2x16xf32>
    %281 = vector.extract_strided_slice %271 {offsets = [0, 16], sizes = [2, 16], strides = [1, 1]} : vector<2x48xf32> to vector<2x16xf32>
    %282 = arith.addf %280, %281 : vector<2x16xf32>
    %283 = arith.negf %282 : vector<2x16xf32>
    %284 = math.exp %283 : vector<2x16xf32>
    %cst_69 = arith.constant 1.000000e+00 : f32
    %285 = vector.broadcast %cst_69 : f32 to vector<2x16xf32>
    %286 = arith.addf %285, %284 : vector<2x16xf32>
    %287 = arith.divf %285, %286 : vector<2x16xf32>
    %288 = vector.extract_strided_slice %239 {offsets = [0, 32], sizes = [2, 16], strides = [1, 1]} : vector<2x48xf32> to vector<2x16xf32>
    %289 = vector.extract_strided_slice %271 {offsets = [0, 32], sizes = [2, 16], strides = [1, 1]} : vector<2x48xf32> to vector<2x16xf32>
    %290 = arith.mulf %279, %289 : vector<2x16xf32>
    %291 = arith.addf %288, %290 : vector<2x16xf32>
    %292 = math.tanh %291 : vector<2x16xf32>
    %293 = arith.subf %221, %292 : vector<2x16xf32>
    %294 = arith.mulf %287, %293 : vector<2x16xf32>
    %295 = arith.addf %292, %294 : vector<2x16xf32>
    %296 = arith.index_cast %c3_i32 : i32 to index
    %c0_70 = arith.constant 0 : index
    %c0_71 = arith.constant 0 : index
    %297 = vector.load %arg7[%296, %c0_70, %c0_71] : memref<8x2x16xf32, #tpu.memory_space<vmem>>, vector<1x2x16xf32>
    %298 = vector.shape_cast %297 : vector<1x2x16xf32> to vector<2x16xf32>
    %299 = vector.shape_cast %267 : vector<2x16xf32> to vector<1x2x16xf32>
    tpu.vector_store %arg7[%296, %c0_70, %c0_71], %299 {strides = array<i32>} : memref<8x2x16xf32, #tpu.memory_space<vmem>>, vector<1x2x16xf32>,
    %c7_i32_72 = arith.constant 7 : i32
    %300 = arith.subi %c7_i32_72, %c3_i32 : i32
    %301 = arith.index_cast %300 : i32 to index
    %c0_73 = arith.constant 0 : index
    %c0_74 = arith.constant 0 : index
    %302 = vector.load %arg8[%301, %c0_73, %c0_74] : memref<8x2x16xf32, #tpu.memory_space<vmem>>, vector<1x2x16xf32>
    %303 = vector.shape_cast %302 : vector<1x2x16xf32> to vector<2x16xf32>
    %304 = vector.shape_cast %295 : vector<2x16xf32> to vector<1x2x16xf32>
    tpu.vector_store %arg8[%301, %c0_73, %c0_74], %304 {strides = array<i32>} : memref<8x2x16xf32, #tpu.memory_space<vmem>>, vector<1x2x16xf32>,
    %c4_i32 = arith.constant 4 : i32
    %305 = arith.index_cast %c4_i32 : i32 to index
    %c0_75 = arith.constant 0 : index
    %c0_76 = arith.constant 0 : index
    %306 = vector.load %arg1[%305, %c0_75, %c0_76] : memref<8x2x48xbf16, #tpu.memory_space<vmem>>, vector<1x2x48xbf16>
    %307 = vector.shape_cast %306 : vector<1x2x48xbf16> to vector<2x48xbf16>
    %308 = arith.extf %307 : vector<2x48xbf16> to vector<2x48xf32>
    %c7_i32_77 = arith.constant 7 : i32
    %309 = arith.subi %c7_i32_77, %c4_i32 : i32
    %310 = arith.index_cast %309 : i32 to index
    %c0_78 = arith.constant 0 : index
    %c0_79 = arith.constant 0 : index
    %311 = vector.load %arg2[%310, %c0_78, %c0_79] : memref<8x2x48xbf16, #tpu.memory_space<vmem>>, vector<1x2x48xbf16>
    %312 = vector.shape_cast %311 : vector<1x2x48xbf16> to vector<2x48xbf16>
    %313 = arith.extf %312 : vector<2x48xbf16> to vector<2x48xf32>
    %314 = arith.truncf %267 : vector<2x16xf32> to vector<2x16xbf16>
    %cst_80 = arith.constant dense<0.000000e+00> : vector<2x48xf32>
    %315 = tpu.matmul %314, %3, %cst_80 {dimension_numbers = #tpu.dot_dimension_numbers<[1], [0], [0], [1], [0, 0, 1, 1], [], []>} : vector<2x16xbf16>, vector<16x48xbf16>, vector<2x48xf32> -> vector<2x48xf32>
    %316 = vector.broadcast %5 : vector<1x48xf32> to vector<2x48xf32>
    %317 = arith.addf %315, %316 : vector<2x48xf32>
    %318 = vector.extract_strided_slice %308 {offsets = [0, 0], sizes = [2, 16], strides = [1, 1]} : vector<2x48xf32> to vector<2x16xf32>
    %319 = vector.extract_strided_slice %317 {offsets = [0, 0], sizes = [2, 16], strides = [1, 1]} : vector<2x48xf32> to vector<2x16xf32>
    %320 = arith.addf %318, %319 : vector<2x16xf32>
    %321 = arith.negf %320 : vector<2x16xf32>
    %322 = math.exp %321 : vector<2x16xf32>
    %cst_81 = arith.constant 1.000000e+00 : f32
    %323 = vector.broadcast %cst_81 : f32 to vector<2x16xf32>
    %324 = arith.addf %323, %322 : vector<2x16xf32>
    %325 = arith.divf %323, %324 : vector<2x16xf32>
    %326 = vector.extract_strided_slice %308 {offsets = [0, 16], sizes = [2, 16], strides = [1, 1]} : vector<2x48xf32> to vector<2x16xf32>
    %327 = vector.extract_strided_slice %317 {offsets = [0, 16], sizes = [2, 16], strides = [1, 1]} : vector<2x48xf32> to vector<2x16xf32>
    %328 = arith.addf %326, %327 : vector<2x16xf32>
    %329 = arith.negf %328 : vector<2x16xf32>
    %330 = math.exp %329 : vector<2x16xf32>
    %cst_82 = arith.constant 1.000000e+00 : f32
    %331 = vector.broadcast %cst_82 : f32 to vector<2x16xf32>
    %332 = arith.addf %331, %330 : vector<2x16xf32>
    %333 = arith.divf %331, %332 : vector<2x16xf32>
    %334 = vector.extract_strided_slice %308 {offsets = [0, 32], sizes = [2, 16], strides = [1, 1]} : vector<2x48xf32> to vector<2x16xf32>
    %335 = vector.extract_strided_slice %317 {offsets = [0, 32], sizes = [2, 16], strides = [1, 1]} : vector<2x48xf32> to vector<2x16xf32>
    %336 = arith.mulf %325, %335 : vector<2x16xf32>
    %337 = arith.addf %334, %336 : vector<2x16xf32>
    %338 = math.tanh %337 : vector<2x16xf32>
    %339 = arith.subf %267, %338 : vector<2x16xf32>
    %340 = arith.mulf %333, %339 : vector<2x16xf32>
    %341 = arith.addf %338, %340 : vector<2x16xf32>
    %342 = arith.truncf %295 : vector<2x16xf32> to vector<2x16xbf16>
    %cst_83 = arith.constant dense<0.000000e+00> : vector<2x48xf32>
    %343 = tpu.matmul %342, %4, %cst_83 {dimension_numbers = #tpu.dot_dimension_numbers<[1], [0], [0], [1], [0, 0, 1, 1], [], []>} : vector<2x16xbf16>, vector<16x48xbf16>, vector<2x48xf32> -> vector<2x48xf32>
    %344 = vector.broadcast %6 : vector<1x48xf32> to vector<2x48xf32>
    %345 = arith.addf %343, %344 : vector<2x48xf32>
    %346 = vector.extract_strided_slice %313 {offsets = [0, 0], sizes = [2, 16], strides = [1, 1]} : vector<2x48xf32> to vector<2x16xf32>
    %347 = vector.extract_strided_slice %345 {offsets = [0, 0], sizes = [2, 16], strides = [1, 1]} : vector<2x48xf32> to vector<2x16xf32>
    %348 = arith.addf %346, %347 : vector<2x16xf32>
    %349 = arith.negf %348 : vector<2x16xf32>
    %350 = math.exp %349 : vector<2x16xf32>
    %cst_84 = arith.constant 1.000000e+00 : f32
    %351 = vector.broadcast %cst_84 : f32 to vector<2x16xf32>
    %352 = arith.addf %351, %350 : vector<2x16xf32>
    %353 = arith.divf %351, %352 : vector<2x16xf32>
    %354 = vector.extract_strided_slice %313 {offsets = [0, 16], sizes = [2, 16], strides = [1, 1]} : vector<2x48xf32> to vector<2x16xf32>
    %355 = vector.extract_strided_slice %345 {offsets = [0, 16], sizes = [2, 16], strides = [1, 1]} : vector<2x48xf32> to vector<2x16xf32>
    %356 = arith.addf %354, %355 : vector<2x16xf32>
    %357 = arith.negf %356 : vector<2x16xf32>
    %358 = math.exp %357 : vector<2x16xf32>
    %cst_85 = arith.constant 1.000000e+00 : f32
    %359 = vector.broadcast %cst_85 : f32 to vector<2x16xf32>
    %360 = arith.addf %359, %358 : vector<2x16xf32>
    %361 = arith.divf %359, %360 : vector<2x16xf32>
    %362 = vector.extract_strided_slice %313 {offsets = [0, 32], sizes = [2, 16], strides = [1, 1]} : vector<2x48xf32> to vector<2x16xf32>
    %363 = vector.extract_strided_slice %345 {offsets = [0, 32], sizes = [2, 16], strides = [1, 1]} : vector<2x48xf32> to vector<2x16xf32>
    %364 = arith.mulf %353, %363 : vector<2x16xf32>
    %365 = arith.addf %362, %364 : vector<2x16xf32>
    %366 = math.tanh %365 : vector<2x16xf32>
    %367 = arith.subf %295, %366 : vector<2x16xf32>
    %368 = arith.mulf %361, %367 : vector<2x16xf32>
    %369 = arith.addf %366, %368 : vector<2x16xf32>
    %370 = arith.index_cast %c4_i32 : i32 to index
    %c0_86 = arith.constant 0 : index
    %c0_87 = arith.constant 0 : index
    %371 = vector.load %arg7[%370, %c0_86, %c0_87] : memref<8x2x16xf32, #tpu.memory_space<vmem>>, vector<1x2x16xf32>
    %372 = vector.shape_cast %371 : vector<1x2x16xf32> to vector<2x16xf32>
    %373 = vector.shape_cast %341 : vector<2x16xf32> to vector<1x2x16xf32>
    tpu.vector_store %arg7[%370, %c0_86, %c0_87], %373 {strides = array<i32>} : memref<8x2x16xf32, #tpu.memory_space<vmem>>, vector<1x2x16xf32>,
    %c7_i32_88 = arith.constant 7 : i32
    %374 = arith.subi %c7_i32_88, %c4_i32 : i32
    %375 = arith.index_cast %374 : i32 to index
    %c0_89 = arith.constant 0 : index
    %c0_90 = arith.constant 0 : index
    %376 = vector.load %arg8[%375, %c0_89, %c0_90] : memref<8x2x16xf32, #tpu.memory_space<vmem>>, vector<1x2x16xf32>
    %377 = vector.shape_cast %376 : vector<1x2x16xf32> to vector<2x16xf32>
    %378 = vector.shape_cast %369 : vector<2x16xf32> to vector<1x2x16xf32>
    tpu.vector_store %arg8[%375, %c0_89, %c0_90], %378 {strides = array<i32>} : memref<8x2x16xf32, #tpu.memory_space<vmem>>, vector<1x2x16xf32>,
    %c5_i32 = arith.constant 5 : i32
    %379 = arith.index_cast %c5_i32 : i32 to index
    %c0_91 = arith.constant 0 : index
    %c0_92 = arith.constant 0 : index
    %380 = vector.load %arg1[%379, %c0_91, %c0_92] : memref<8x2x48xbf16, #tpu.memory_space<vmem>>, vector<1x2x48xbf16>
    %381 = vector.shape_cast %380 : vector<1x2x48xbf16> to vector<2x48xbf16>
    %382 = arith.extf %381 : vector<2x48xbf16> to vector<2x48xf32>
    %c7_i32_93 = arith.constant 7 : i32
    %383 = arith.subi %c7_i32_93, %c5_i32 : i32
    %384 = arith.index_cast %383 : i32 to index
    %c0_94 = arith.constant 0 : index
    %c0_95 = arith.constant 0 : index
    %385 = vector.load %arg2[%384, %c0_94, %c0_95] : memref<8x2x48xbf16, #tpu.memory_space<vmem>>, vector<1x2x48xbf16>
    %386 = vector.shape_cast %385 : vector<1x2x48xbf16> to vector<2x48xbf16>
    %387 = arith.extf %386 : vector<2x48xbf16> to vector<2x48xf32>
    %388 = arith.truncf %341 : vector<2x16xf32> to vector<2x16xbf16>
    %cst_96 = arith.constant dense<0.000000e+00> : vector<2x48xf32>
    %389 = tpu.matmul %388, %3, %cst_96 {dimension_numbers = #tpu.dot_dimension_numbers<[1], [0], [0], [1], [0, 0, 1, 1], [], []>} : vector<2x16xbf16>, vector<16x48xbf16>, vector<2x48xf32> -> vector<2x48xf32>
    %390 = vector.broadcast %5 : vector<1x48xf32> to vector<2x48xf32>
    %391 = arith.addf %389, %390 : vector<2x48xf32>
    %392 = vector.extract_strided_slice %382 {offsets = [0, 0], sizes = [2, 16], strides = [1, 1]} : vector<2x48xf32> to vector<2x16xf32>
    %393 = vector.extract_strided_slice %391 {offsets = [0, 0], sizes = [2, 16], strides = [1, 1]} : vector<2x48xf32> to vector<2x16xf32>
    %394 = arith.addf %392, %393 : vector<2x16xf32>
    %395 = arith.negf %394 : vector<2x16xf32>
    %396 = math.exp %395 : vector<2x16xf32>
    %cst_97 = arith.constant 1.000000e+00 : f32
    %397 = vector.broadcast %cst_97 : f32 to vector<2x16xf32>
    %398 = arith.addf %397, %396 : vector<2x16xf32>
    %399 = arith.divf %397, %398 : vector<2x16xf32>
    %400 = vector.extract_strided_slice %382 {offsets = [0, 16], sizes = [2, 16], strides = [1, 1]} : vector<2x48xf32> to vector<2x16xf32>
    %401 = vector.extract_strided_slice %391 {offsets = [0, 16], sizes = [2, 16], strides = [1, 1]} : vector<2x48xf32> to vector<2x16xf32>
    %402 = arith.addf %400, %401 : vector<2x16xf32>
    %403 = arith.negf %402 : vector<2x16xf32>
    %404 = math.exp %403 : vector<2x16xf32>
    %cst_98 = arith.constant 1.000000e+00 : f32
    %405 = vector.broadcast %cst_98 : f32 to vector<2x16xf32>
    %406 = arith.addf %405, %404 : vector<2x16xf32>
    %407 = arith.divf %405, %406 : vector<2x16xf32>
    %408 = vector.extract_strided_slice %382 {offsets = [0, 32], sizes = [2, 16], strides = [1, 1]} : vector<2x48xf32> to vector<2x16xf32>
    %409 = vector.extract_strided_slice %391 {offsets = [0, 32], sizes = [2, 16], strides = [1, 1]} : vector<2x48xf32> to vector<2x16xf32>
    %410 = arith.mulf %399, %409 : vector<2x16xf32>
    %411 = arith.addf %408, %410 : vector<2x16xf32>
    %412 = math.tanh %411 : vector<2x16xf32>
    %413 = arith.subf %341, %412 : vector<2x16xf32>
    %414 = arith.mulf %407, %413 : vector<2x16xf32>
    %415 = arith.addf %412, %414 : vector<2x16xf32>
    %416 = arith.truncf %369 : vector<2x16xf32> to vector<2x16xbf16>
    %cst_99 = arith.constant dense<0.000000e+00> : vector<2x48xf32>
    %417 = tpu.matmul %416, %4, %cst_99 {dimension_numbers = #tpu.dot_dimension_numbers<[1], [0], [0], [1], [0, 0, 1, 1], [], []>} : vector<2x16xbf16>, vector<16x48xbf16>, vector<2x48xf32> -> vector<2x48xf32>
    %418 = vector.broadcast %6 : vector<1x48xf32> to vector<2x48xf32>
    %419 = arith.addf %417, %418 : vector<2x48xf32>
    %420 = vector.extract_strided_slice %387 {offsets = [0, 0], sizes = [2, 16], strides = [1, 1]} : vector<2x48xf32> to vector<2x16xf32>
    %421 = vector.extract_strided_slice %419 {offsets = [0, 0], sizes = [2, 16], strides = [1, 1]} : vector<2x48xf32> to vector<2x16xf32>
    %422 = arith.addf %420, %421 : vector<2x16xf32>
    %423 = arith.negf %422 : vector<2x16xf32>
    %424 = math.exp %423 : vector<2x16xf32>
    %cst_100 = arith.constant 1.000000e+00 : f32
    %425 = vector.broadcast %cst_100 : f32 to vector<2x16xf32>
    %426 = arith.addf %425, %424 : vector<2x16xf32>
    %427 = arith.divf %425, %426 : vector<2x16xf32>
    %428 = vector.extract_strided_slice %387 {offsets = [0, 16], sizes = [2, 16], strides = [1, 1]} : vector<2x48xf32> to vector<2x16xf32>
    %429 = vector.extract_strided_slice %419 {offsets = [0, 16], sizes = [2, 16], strides = [1, 1]} : vector<2x48xf32> to vector<2x16xf32>
    %430 = arith.addf %428, %429 : vector<2x16xf32>
    %431 = arith.negf %430 : vector<2x16xf32>
    %432 = math.exp %431 : vector<2x16xf32>
    %cst_101 = arith.constant 1.000000e+00 : f32
    %433 = vector.broadcast %cst_101 : f32 to vector<2x16xf32>
    %434 = arith.addf %433, %432 : vector<2x16xf32>
    %435 = arith.divf %433, %434 : vector<2x16xf32>
    %436 = vector.extract_strided_slice %387 {offsets = [0, 32], sizes = [2, 16], strides = [1, 1]} : vector<2x48xf32> to vector<2x16xf32>
    %437 = vector.extract_strided_slice %419 {offsets = [0, 32], sizes = [2, 16], strides = [1, 1]} : vector<2x48xf32> to vector<2x16xf32>
    %438 = arith.mulf %427, %437 : vector<2x16xf32>
    %439 = arith.addf %436, %438 : vector<2x16xf32>
    %440 = math.tanh %439 : vector<2x16xf32>
    %441 = arith.subf %369, %440 : vector<2x16xf32>
    %442 = arith.mulf %435, %441 : vector<2x16xf32>
    %443 = arith.addf %440, %442 : vector<2x16xf32>
    %444 = arith.index_cast %c5_i32 : i32 to index
    %c0_102 = arith.constant 0 : index
    %c0_103 = arith.constant 0 : index
    %445 = vector.load %arg7[%444, %c0_102, %c0_103] : memref<8x2x16xf32, #tpu.memory_space<vmem>>, vector<1x2x16xf32>
    %446 = vector.shape_cast %445 : vector<1x2x16xf32> to vector<2x16xf32>
    %447 = vector.shape_cast %415 : vector<2x16xf32> to vector<1x2x16xf32>
    tpu.vector_store %arg7[%444, %c0_102, %c0_103], %447 {strides = array<i32>} : memref<8x2x16xf32, #tpu.memory_space<vmem>>, vector<1x2x16xf32>,
    %c7_i32_104 = arith.constant 7 : i32
    %448 = arith.subi %c7_i32_104, %c5_i32 : i32
    %449 = arith.index_cast %448 : i32 to index
    %c0_105 = arith.constant 0 : index
    %c0_106 = arith.constant 0 : index
    %450 = vector.load %arg8[%449, %c0_105, %c0_106] : memref<8x2x16xf32, #tpu.memory_space<vmem>>, vector<1x2x16xf32>
    %451 = vector.shape_cast %450 : vector<1x2x16xf32> to vector<2x16xf32>
    %452 = vector.shape_cast %443 : vector<2x16xf32> to vector<1x2x16xf32>
    tpu.vector_store %arg8[%449, %c0_105, %c0_106], %452 {strides = array<i32>} : memref<8x2x16xf32, #tpu.memory_space<vmem>>, vector<1x2x16xf32>,
    %c6_i32 = arith.constant 6 : i32
    %453 = arith.index_cast %c6_i32 : i32 to index
    %c0_107 = arith.constant 0 : index
    %c0_108 = arith.constant 0 : index
    %454 = vector.load %arg1[%453, %c0_107, %c0_108] : memref<8x2x48xbf16, #tpu.memory_space<vmem>>, vector<1x2x48xbf16>
    %455 = vector.shape_cast %454 : vector<1x2x48xbf16> to vector<2x48xbf16>
    %456 = arith.extf %455 : vector<2x48xbf16> to vector<2x48xf32>
    %c7_i32_109 = arith.constant 7 : i32
    %457 = arith.subi %c7_i32_109, %c6_i32 : i32
    %458 = arith.index_cast %457 : i32 to index
    %c0_110 = arith.constant 0 : index
    %c0_111 = arith.constant 0 : index
    %459 = vector.load %arg2[%458, %c0_110, %c0_111] : memref<8x2x48xbf16, #tpu.memory_space<vmem>>, vector<1x2x48xbf16>
    %460 = vector.shape_cast %459 : vector<1x2x48xbf16> to vector<2x48xbf16>
    %461 = arith.extf %460 : vector<2x48xbf16> to vector<2x48xf32>
    %462 = arith.truncf %415 : vector<2x16xf32> to vector<2x16xbf16>
    %cst_112 = arith.constant dense<0.000000e+00> : vector<2x48xf32>
    %463 = tpu.matmul %462, %3, %cst_112 {dimension_numbers = #tpu.dot_dimension_numbers<[1], [0], [0], [1], [0, 0, 1, 1], [], []>} : vector<2x16xbf16>, vector<16x48xbf16>, vector<2x48xf32> -> vector<2x48xf32>
    %464 = vector.broadcast %5 : vector<1x48xf32> to vector<2x48xf32>
    %465 = arith.addf %463, %464 : vector<2x48xf32>
    %466 = vector.extract_strided_slice %456 {offsets = [0, 0], sizes = [2, 16], strides = [1, 1]} : vector<2x48xf32> to vector<2x16xf32>
    %467 = vector.extract_strided_slice %465 {offsets = [0, 0], sizes = [2, 16], strides = [1, 1]} : vector<2x48xf32> to vector<2x16xf32>
    %468 = arith.addf %466, %467 : vector<2x16xf32>
    %469 = arith.negf %468 : vector<2x16xf32>
    %470 = math.exp %469 : vector<2x16xf32>
    %cst_113 = arith.constant 1.000000e+00 : f32
    %471 = vector.broadcast %cst_113 : f32 to vector<2x16xf32>
    %472 = arith.addf %471, %470 : vector<2x16xf32>
    %473 = arith.divf %471, %472 : vector<2x16xf32>
    %474 = vector.extract_strided_slice %456 {offsets = [0, 16], sizes = [2, 16], strides = [1, 1]} : vector<2x48xf32> to vector<2x16xf32>
    %475 = vector.extract_strided_slice %465 {offsets = [0, 16], sizes = [2, 16], strides = [1, 1]} : vector<2x48xf32> to vector<2x16xf32>
    %476 = arith.addf %474, %475 : vector<2x16xf32>
    %477 = arith.negf %476 : vector<2x16xf32>
    %478 = math.exp %477 : vector<2x16xf32>
    %cst_114 = arith.constant 1.000000e+00 : f32
    %479 = vector.broadcast %cst_114 : f32 to vector<2x16xf32>
    %480 = arith.addf %479, %478 : vector<2x16xf32>
    %481 = arith.divf %479, %480 : vector<2x16xf32>
    %482 = vector.extract_strided_slice %456 {offsets = [0, 32], sizes = [2, 16], strides = [1, 1]} : vector<2x48xf32> to vector<2x16xf32>
    %483 = vector.extract_strided_slice %465 {offsets = [0, 32], sizes = [2, 16], strides = [1, 1]} : vector<2x48xf32> to vector<2x16xf32>
    %484 = arith.mulf %473, %483 : vector<2x16xf32>
    %485 = arith.addf %482, %484 : vector<2x16xf32>
    %486 = math.tanh %485 : vector<2x16xf32>
    %487 = arith.subf %415, %486 : vector<2x16xf32>
    %488 = arith.mulf %481, %487 : vector<2x16xf32>
    %489 = arith.addf %486, %488 : vector<2x16xf32>
    %490 = arith.truncf %443 : vector<2x16xf32> to vector<2x16xbf16>
    %cst_115 = arith.constant dense<0.000000e+00> : vector<2x48xf32>
    %491 = tpu.matmul %490, %4, %cst_115 {dimension_numbers = #tpu.dot_dimension_numbers<[1], [0], [0], [1], [0, 0, 1, 1], [], []>} : vector<2x16xbf16>, vector<16x48xbf16>, vector<2x48xf32> -> vector<2x48xf32>
    %492 = vector.broadcast %6 : vector<1x48xf32> to vector<2x48xf32>
    %493 = arith.addf %491, %492 : vector<2x48xf32>
    %494 = vector.extract_strided_slice %461 {offsets = [0, 0], sizes = [2, 16], strides = [1, 1]} : vector<2x48xf32> to vector<2x16xf32>
    %495 = vector.extract_strided_slice %493 {offsets = [0, 0], sizes = [2, 16], strides = [1, 1]} : vector<2x48xf32> to vector<2x16xf32>
    %496 = arith.addf %494, %495 : vector<2x16xf32>
    %497 = arith.negf %496 : vector<2x16xf32>
    %498 = math.exp %497 : vector<2x16xf32>
    %cst_116 = arith.constant 1.000000e+00 : f32
    %499 = vector.broadcast %cst_116 : f32 to vector<2x16xf32>
    %500 = arith.addf %499, %498 : vector<2x16xf32>
    %501 = arith.divf %499, %500 : vector<2x16xf32>
    %502 = vector.extract_strided_slice %461 {offsets = [0, 16], sizes = [2, 16], strides = [1, 1]} : vector<2x48xf32> to vector<2x16xf32>
    %503 = vector.extract_strided_slice %493 {offsets = [0, 16], sizes = [2, 16], strides = [1, 1]} : vector<2x48xf32> to vector<2x16xf32>
    %504 = arith.addf %502, %503 : vector<2x16xf32>
    %505 = arith.negf %504 : vector<2x16xf32>
    %506 = math.exp %505 : vector<2x16xf32>
    %cst_117 = arith.constant 1.000000e+00 : f32
    %507 = vector.broadcast %cst_117 : f32 to vector<2x16xf32>
    %508 = arith.addf %507, %506 : vector<2x16xf32>
    %509 = arith.divf %507, %508 : vector<2x16xf32>
    %510 = vector.extract_strided_slice %461 {offsets = [0, 32], sizes = [2, 16], strides = [1, 1]} : vector<2x48xf32> to vector<2x16xf32>
    %511 = vector.extract_strided_slice %493 {offsets = [0, 32], sizes = [2, 16], strides = [1, 1]} : vector<2x48xf32> to vector<2x16xf32>
    %512 = arith.mulf %501, %511 : vector<2x16xf32>
    %513 = arith.addf %510, %512 : vector<2x16xf32>
    %514 = math.tanh %513 : vector<2x16xf32>
    %515 = arith.subf %443, %514 : vector<2x16xf32>
    %516 = arith.mulf %509, %515 : vector<2x16xf32>
    %517 = arith.addf %514, %516 : vector<2x16xf32>
    %518 = arith.index_cast %c6_i32 : i32 to index
    %c0_118 = arith.constant 0 : index
    %c0_119 = arith.constant 0 : index
    %519 = vector.load %arg7[%518, %c0_118, %c0_119] : memref<8x2x16xf32, #tpu.memory_space<vmem>>, vector<1x2x16xf32>
    %520 = vector.shape_cast %519 : vector<1x2x16xf32> to vector<2x16xf32>
    %521 = vector.shape_cast %489 : vector<2x16xf32> to vector<1x2x16xf32>
    tpu.vector_store %arg7[%518, %c0_118, %c0_119], %521 {strides = array<i32>} : memref<8x2x16xf32, #tpu.memory_space<vmem>>, vector<1x2x16xf32>,
    %c7_i32_120 = arith.constant 7 : i32
    %522 = arith.subi %c7_i32_120, %c6_i32 : i32
    %523 = arith.index_cast %522 : i32 to index
    %c0_121 = arith.constant 0 : index
    %c0_122 = arith.constant 0 : index
    %524 = vector.load %arg8[%523, %c0_121, %c0_122] : memref<8x2x16xf32, #tpu.memory_space<vmem>>, vector<1x2x16xf32>
    %525 = vector.shape_cast %524 : vector<1x2x16xf32> to vector<2x16xf32>
    %526 = vector.shape_cast %517 : vector<2x16xf32> to vector<1x2x16xf32>
    tpu.vector_store %arg8[%523, %c0_121, %c0_122], %526 {strides = array<i32>} : memref<8x2x16xf32, #tpu.memory_space<vmem>>, vector<1x2x16xf32>,
    %c7_i32_123 = arith.constant 7 : i32
    %527 = arith.index_cast %c7_i32_123 : i32 to index
    %c0_124 = arith.constant 0 : index
    %c0_125 = arith.constant 0 : index
    %528 = vector.load %arg1[%527, %c0_124, %c0_125] : memref<8x2x48xbf16, #tpu.memory_space<vmem>>, vector<1x2x48xbf16>
    %529 = vector.shape_cast %528 : vector<1x2x48xbf16> to vector<2x48xbf16>
    %530 = arith.extf %529 : vector<2x48xbf16> to vector<2x48xf32>
    %c7_i32_126 = arith.constant 7 : i32
    %531 = arith.subi %c7_i32_126, %c7_i32_123 : i32
    %532 = arith.index_cast %531 : i32 to index
    %c0_127 = arith.constant 0 : index
    %c0_128 = arith.constant 0 : index
    %533 = vector.load %arg2[%532, %c0_127, %c0_128] : memref<8x2x48xbf16, #tpu.memory_space<vmem>>, vector<1x2x48xbf16>
    %534 = vector.shape_cast %533 : vector<1x2x48xbf16> to vector<2x48xbf16>
    %535 = arith.extf %534 : vector<2x48xbf16> to vector<2x48xf32>
    %536 = arith.truncf %489 : vector<2x16xf32> to vector<2x16xbf16>
    %cst_129 = arith.constant dense<0.000000e+00> : vector<2x48xf32>
    %537 = tpu.matmul %536, %3, %cst_129 {dimension_numbers = #tpu.dot_dimension_numbers<[1], [0], [0], [1], [0, 0, 1, 1], [], []>} : vector<2x16xbf16>, vector<16x48xbf16>, vector<2x48xf32> -> vector<2x48xf32>
    %538 = vector.broadcast %5 : vector<1x48xf32> to vector<2x48xf32>
    %539 = arith.addf %537, %538 : vector<2x48xf32>
    %540 = vector.extract_strided_slice %530 {offsets = [0, 0], sizes = [2, 16], strides = [1, 1]} : vector<2x48xf32> to vector<2x16xf32>
    %541 = vector.extract_strided_slice %539 {offsets = [0, 0], sizes = [2, 16], strides = [1, 1]} : vector<2x48xf32> to vector<2x16xf32>
    %542 = arith.addf %540, %541 : vector<2x16xf32>
    %543 = arith.negf %542 : vector<2x16xf32>
    %544 = math.exp %543 : vector<2x16xf32>
    %cst_130 = arith.constant 1.000000e+00 : f32
    %545 = vector.broadcast %cst_130 : f32 to vector<2x16xf32>
    %546 = arith.addf %545, %544 : vector<2x16xf32>
    %547 = arith.divf %545, %546 : vector<2x16xf32>
    %548 = vector.extract_strided_slice %530 {offsets = [0, 16], sizes = [2, 16], strides = [1, 1]} : vector<2x48xf32> to vector<2x16xf32>
    %549 = vector.extract_strided_slice %539 {offsets = [0, 16], sizes = [2, 16], strides = [1, 1]} : vector<2x48xf32> to vector<2x16xf32>
    %550 = arith.addf %548, %549 : vector<2x16xf32>
    %551 = arith.negf %550 : vector<2x16xf32>
    %552 = math.exp %551 : vector<2x16xf32>
    %cst_131 = arith.constant 1.000000e+00 : f32
    %553 = vector.broadcast %cst_131 : f32 to vector<2x16xf32>
    %554 = arith.addf %553, %552 : vector<2x16xf32>
    %555 = arith.divf %553, %554 : vector<2x16xf32>
    %556 = vector.extract_strided_slice %530 {offsets = [0, 32], sizes = [2, 16], strides = [1, 1]} : vector<2x48xf32> to vector<2x16xf32>
    %557 = vector.extract_strided_slice %539 {offsets = [0, 32], sizes = [2, 16], strides = [1, 1]} : vector<2x48xf32> to vector<2x16xf32>
    %558 = arith.mulf %547, %557 : vector<2x16xf32>
    %559 = arith.addf %556, %558 : vector<2x16xf32>
    %560 = math.tanh %559 : vector<2x16xf32>
    %561 = arith.subf %489, %560 : vector<2x16xf32>
    %562 = arith.mulf %555, %561 : vector<2x16xf32>
    %563 = arith.addf %560, %562 : vector<2x16xf32>
    %564 = arith.truncf %517 : vector<2x16xf32> to vector<2x16xbf16>
    %cst_132 = arith.constant dense<0.000000e+00> : vector<2x48xf32>
    %565 = tpu.matmul %564, %4, %cst_132 {dimension_numbers = #tpu.dot_dimension_numbers<[1], [0], [0], [1], [0, 0, 1, 1], [], []>} : vector<2x16xbf16>, vector<16x48xbf16>, vector<2x48xf32> -> vector<2x48xf32>
    %566 = vector.broadcast %6 : vector<1x48xf32> to vector<2x48xf32>
    %567 = arith.addf %565, %566 : vector<2x48xf32>
    %568 = vector.extract_strided_slice %535 {offsets = [0, 0], sizes = [2, 16], strides = [1, 1]} : vector<2x48xf32> to vector<2x16xf32>
    %569 = vector.extract_strided_slice %567 {offsets = [0, 0], sizes = [2, 16], strides = [1, 1]} : vector<2x48xf32> to vector<2x16xf32>
    %570 = arith.addf %568, %569 : vector<2x16xf32>
    %571 = arith.negf %570 : vector<2x16xf32>
    %572 = math.exp %571 : vector<2x16xf32>
    %cst_133 = arith.constant 1.000000e+00 : f32
    %573 = vector.broadcast %cst_133 : f32 to vector<2x16xf32>
    %574 = arith.addf %573, %572 : vector<2x16xf32>
    %575 = arith.divf %573, %574 : vector<2x16xf32>
    %576 = vector.extract_strided_slice %535 {offsets = [0, 16], sizes = [2, 16], strides = [1, 1]} : vector<2x48xf32> to vector<2x16xf32>
    %577 = vector.extract_strided_slice %567 {offsets = [0, 16], sizes = [2, 16], strides = [1, 1]} : vector<2x48xf32> to vector<2x16xf32>
    %578 = arith.addf %576, %577 : vector<2x16xf32>
    %579 = arith.negf %578 : vector<2x16xf32>
    %580 = math.exp %579 : vector<2x16xf32>
    %cst_134 = arith.constant 1.000000e+00 : f32
    %581 = vector.broadcast %cst_134 : f32 to vector<2x16xf32>
    %582 = arith.addf %581, %580 : vector<2x16xf32>
    %583 = arith.divf %581, %582 : vector<2x16xf32>
    %584 = vector.extract_strided_slice %535 {offsets = [0, 32], sizes = [2, 16], strides = [1, 1]} : vector<2x48xf32> to vector<2x16xf32>
    %585 = vector.extract_strided_slice %567 {offsets = [0, 32], sizes = [2, 16], strides = [1, 1]} : vector<2x48xf32> to vector<2x16xf32>
    %586 = arith.mulf %575, %585 : vector<2x16xf32>
    %587 = arith.addf %584, %586 : vector<2x16xf32>
    %588 = math.tanh %587 : vector<2x16xf32>
    %589 = arith.subf %517, %588 : vector<2x16xf32>
    %590 = arith.mulf %583, %589 : vector<2x16xf32>
    %591 = arith.addf %588, %590 : vector<2x16xf32>
    %592 = arith.index_cast %c7_i32_123 : i32 to index
    %c0_135 = arith.constant 0 : index
    %c0_136 = arith.constant 0 : index
    %593 = vector.load %arg7[%592, %c0_135, %c0_136] : memref<8x2x16xf32, #tpu.memory_space<vmem>>, vector<1x2x16xf32>
    %594 = vector.shape_cast %593 : vector<1x2x16xf32> to vector<2x16xf32>
    %595 = vector.shape_cast %563 : vector<2x16xf32> to vector<1x2x16xf32>
    tpu.vector_store %arg7[%592, %c0_135, %c0_136], %595 {strides = array<i32>} : memref<8x2x16xf32, #tpu.memory_space<vmem>>, vector<1x2x16xf32>,
    %c7_i32_137 = arith.constant 7 : i32
    %596 = arith.subi %c7_i32_137, %c7_i32_123 : i32
    %597 = arith.index_cast %596 : i32 to index
    %c0_138 = arith.constant 0 : index
    %c0_139 = arith.constant 0 : index
    %598 = vector.load %arg8[%597, %c0_138, %c0_139] : memref<8x2x16xf32, #tpu.memory_space<vmem>>, vector<1x2x16xf32>
    %599 = vector.shape_cast %598 : vector<1x2x16xf32> to vector<2x16xf32>
    %600 = vector.shape_cast %591 : vector<2x16xf32> to vector<1x2x16xf32>
    tpu.vector_store %arg8[%597, %c0_138, %c0_139], %600 {strides = array<i32>} : memref<8x2x16xf32, #tpu.memory_space<vmem>>, vector<1x2x16xf32>,
    %c8_i32 = arith.constant 8 : i32
    %c0_140 = arith.constant 0 : index
    %c0_141 = arith.constant 0 : index
    %601 = vector.load %arg15[%c0_140, %c0_141] : memref<2x16xf32, #tpu.memory_space<vmem>>, vector<2x16xf32>
    tpu.vector_store %arg15[%c0_140, %c0_141], %563 {strides = array<i32>} : memref<2x16xf32, #tpu.memory_space<vmem>>, vector<2x16xf32>,
    %c0_142 = arith.constant 0 : index
    %c0_143 = arith.constant 0 : index
    %602 = vector.load %arg16[%c0_142, %c0_143] : memref<2x16xf32, #tpu.memory_space<vmem>>, vector<2x16xf32>
    tpu.vector_store %arg16[%c0_142, %c0_143], %591 {strides = array<i32>} : memref<2x16xf32, #tpu.memory_space<vmem>>, vector<2x16xf32>,
    %c0_144 = arith.constant 0 : index
    %c0_145 = arith.constant 0 : index
    %c0_146 = arith.constant 0 : index
    %603 = vector.load %arg7[%c0_144, %c0_145, %c0_146] : memref<8x2x16xf32, #tpu.memory_space<vmem>>, vector<8x2x16xf32>
    %604 = vector.shape_cast %603 : vector<8x2x16xf32> to vector<16x16xf32>
    %c0_147 = arith.constant 0 : index
    %c0_148 = arith.constant 0 : index
    %c0_149 = arith.constant 0 : index
    %605 = vector.load %arg8[%c0_147, %c0_148, %c0_149] : memref<8x2x16xf32, #tpu.memory_space<vmem>>, vector<8x2x16xf32>
    %606 = vector.shape_cast %605 : vector<8x2x16xf32> to vector<16x16xf32>
    %c0_150 = arith.constant 0 : index
    %c0_151 = arith.constant 0 : index
    %607 = vector.load %arg11[%c0_150, %c0_151] : memref<1x16xf32, #tpu.memory_space<vmem>>, vector<1x16xf32>
    %cst_152 = arith.constant dense<0.000000e+00> : vector<16xf32>
    %608 = vector.multi_reduction <add>, %604, %cst_152 [0] : vector<16x16xf32> to vector<16xf32>
    %609 = vector.shape_cast %608 : vector<16xf32> to vector<1x16xf32>
    %610 = arith.addf %607, %609 : vector<1x16xf32>
    %c0_153 = arith.constant 0 : index
    %c0_154 = arith.constant 0 : index
    %611 = vector.load %arg11[%c0_153, %c0_154] : memref<1x16xf32, #tpu.memory_space<vmem>>, vector<1x16xf32>
    tpu.vector_store %arg11[%c0_153, %c0_154], %610 {strides = array<i32>} : memref<1x16xf32, #tpu.memory_space<vmem>>, vector<1x16xf32>,
    %c0_155 = arith.constant 0 : index
    %c0_156 = arith.constant 0 : index
    %612 = vector.load %arg12[%c0_155, %c0_156] : memref<1x16xf32, #tpu.memory_space<vmem>>, vector<1x16xf32>
    %613 = arith.mulf %604, %604 : vector<16x16xf32>
    %cst_157 = arith.constant dense<0.000000e+00> : vector<16xf32>
    %614 = vector.multi_reduction <add>, %613, %cst_157 [0] : vector<16x16xf32> to vector<16xf32>
    %615 = vector.shape_cast %614 : vector<16xf32> to vector<1x16xf32>
    %616 = arith.addf %612, %615 : vector<1x16xf32>
    %c0_158 = arith.constant 0 : index
    %c0_159 = arith.constant 0 : index
    %617 = vector.load %arg12[%c0_158, %c0_159] : memref<1x16xf32, #tpu.memory_space<vmem>>, vector<1x16xf32>
    tpu.vector_store %arg12[%c0_158, %c0_159], %616 {strides = array<i32>} : memref<1x16xf32, #tpu.memory_space<vmem>>, vector<1x16xf32>,
    %c0_160 = arith.constant 0 : index
    %c0_161 = arith.constant 0 : index
    %618 = vector.load %arg13[%c0_160, %c0_161] : memref<1x16xf32, #tpu.memory_space<vmem>>, vector<1x16xf32>
    %cst_162 = arith.constant dense<0.000000e+00> : vector<16xf32>
    %619 = vector.multi_reduction <add>, %606, %cst_162 [0] : vector<16x16xf32> to vector<16xf32>
    %620 = vector.shape_cast %619 : vector<16xf32> to vector<1x16xf32>
    %621 = arith.addf %618, %620 : vector<1x16xf32>
    %c0_163 = arith.constant 0 : index
    %c0_164 = arith.constant 0 : index
    %622 = vector.load %arg13[%c0_163, %c0_164] : memref<1x16xf32, #tpu.memory_space<vmem>>, vector<1x16xf32>
    tpu.vector_store %arg13[%c0_163, %c0_164], %621 {strides = array<i32>} : memref<1x16xf32, #tpu.memory_space<vmem>>, vector<1x16xf32>,
    %c0_165 = arith.constant 0 : index
    %c0_166 = arith.constant 0 : index
    %623 = vector.load %arg14[%c0_165, %c0_166] : memref<1x16xf32, #tpu.memory_space<vmem>>, vector<1x16xf32>
    %624 = arith.mulf %606, %606 : vector<16x16xf32>
    %cst_167 = arith.constant dense<0.000000e+00> : vector<16xf32>
    %625 = vector.multi_reduction <add>, %624, %cst_167 [0] : vector<16x16xf32> to vector<16xf32>
    %626 = vector.shape_cast %625 : vector<16xf32> to vector<1x16xf32>
    %627 = arith.addf %623, %626 : vector<1x16xf32>
    %c0_168 = arith.constant 0 : index
    %c0_169 = arith.constant 0 : index
    %628 = vector.load %arg14[%c0_168, %c0_169] : memref<1x16xf32, #tpu.memory_space<vmem>>, vector<1x16xf32>
    tpu.vector_store %arg14[%c0_168, %c0_169], %627 {strides = array<i32>} : memref<1x16xf32, #tpu.memory_space<vmem>>, vector<1x16xf32>,
    %c0_i32_170 = arith.constant 0 : i32
    %629 = arith.cmpi eq, %arg0, %c0_i32_170 : i32
    %630 = arith.extui %629 : i1 to i32
    %c0_i32_171 = arith.constant 0 : i32
    %631 = arith.cmpi ne, %630, %c0_i32_171 : i32
    scf.if %631 {
      %c0_172 = arith.constant 0 : index
      %c0_173 = arith.constant 0 : index
      %632 = vector.load %arg9[%c0_172, %c0_173] : memref<2x16xf32, #tpu.memory_space<vmem>>, vector<2x16xf32>
      tpu.vector_store %arg9[%c0_172, %c0_173], %563 {strides = array<i32>} : memref<2x16xf32, #tpu.memory_space<vmem>>, vector<2x16xf32>,
      %c0_174 = arith.constant 0 : index
      %c0_175 = arith.constant 0 : index
      %633 = vector.load %arg10[%c0_174, %c0_175] : memref<2x16xf32, #tpu.memory_space<vmem>>, vector<2x16xf32>
      tpu.vector_store %arg10[%c0_174, %c0_175], %591 {strides = array<i32>} : memref<2x16xf32, #tpu.memory_space<vmem>>, vector<2x16xf32>,
      %c0_176 = arith.constant 0 : index
      %c0_177 = arith.constant 0 : index
      %634 = vector.load %arg11[%c0_176, %c0_177] : memref<1x16xf32, #tpu.memory_space<vmem>>, vector<1x16xf32>
      %cst_178 = arith.constant 6.250000e-02 : f32
      %635 = vector.broadcast %cst_178 : f32 to vector<1x16xf32>
      %636 = arith.mulf %634, %635 : vector<1x16xf32>
      %c0_179 = arith.constant 0 : index
      %c0_180 = arith.constant 0 : index
      %637 = vector.load %arg13[%c0_179, %c0_180] : memref<1x16xf32, #tpu.memory_space<vmem>>, vector<1x16xf32>
      %cst_181 = arith.constant 6.250000e-02 : f32
      %638 = vector.broadcast %cst_181 : f32 to vector<1x16xf32>
      %639 = arith.mulf %637, %638 : vector<1x16xf32>
      %c0_182 = arith.constant 0 : index
      %c0_183 = arith.constant 0 : index
      %640 = vector.load %arg11[%c0_182, %c0_183] : memref<1x16xf32, #tpu.memory_space<vmem>>, vector<1x16xf32>
      tpu.vector_store %arg11[%c0_182, %c0_183], %636 {strides = array<i32>} : memref<1x16xf32, #tpu.memory_space<vmem>>, vector<1x16xf32>,
      %c0_184 = arith.constant 0 : index
      %c0_185 = arith.constant 0 : index
      %641 = vector.load %arg13[%c0_184, %c0_185] : memref<1x16xf32, #tpu.memory_space<vmem>>, vector<1x16xf32>
      tpu.vector_store %arg13[%c0_184, %c0_185], %639 {strides = array<i32>} : memref<1x16xf32, #tpu.memory_space<vmem>>, vector<1x16xf32>,
      %c0_186 = arith.constant 0 : index
      %c0_187 = arith.constant 0 : index
      %642 = vector.load %arg12[%c0_186, %c0_187] : memref<1x16xf32, #tpu.memory_space<vmem>>, vector<1x16xf32>
      %cst_188 = arith.constant 6.250000e-02 : f32
      %643 = vector.broadcast %cst_188 : f32 to vector<1x16xf32>
      %644 = arith.mulf %642, %643 : vector<1x16xf32>
      %645 = arith.mulf %636, %636 : vector<1x16xf32>
      %646 = arith.subf %644, %645 : vector<1x16xf32>
      %cst_189 = arith.constant 0.000000e+00 : f32
      %647 = vector.broadcast %cst_189 : f32 to vector<1x16xf32>
      %648 = arith.maximumf %646, %647 : vector<1x16xf32>
      %c0_190 = arith.constant 0 : index
      %c0_191 = arith.constant 0 : index
      %649 = vector.load %arg12[%c0_190, %c0_191] : memref<1x16xf32, #tpu.memory_space<vmem>>, vector<1x16xf32>
      tpu.vector_store %arg12[%c0_190, %c0_191], %648 {strides = array<i32>} : memref<1x16xf32, #tpu.memory_space<vmem>>, vector<1x16xf32>,
      %c0_192 = arith.constant 0 : index
      %c0_193 = arith.constant 0 : index
      %650 = vector.load %arg14[%c0_192, %c0_193] : memref<1x16xf32, #tpu.memory_space<vmem>>, vector<1x16xf32>
      %cst_194 = arith.constant 6.250000e-02 : f32
      %651 = vector.broadcast %cst_194 : f32 to vector<1x16xf32>
      %652 = arith.mulf %650, %651 : vector<1x16xf32>
      %653 = arith.mulf %639, %639 : vector<1x16xf32>
      %654 = arith.subf %652, %653 : vector<1x16xf32>
      %cst_195 = arith.constant 0.000000e+00 : f32
      %655 = vector.broadcast %cst_195 : f32 to vector<1x16xf32>
      %656 = arith.maximumf %654, %655 : vector<1x16xf32>
      %c0_196 = arith.constant 0 : index
      %c0_197 = arith.constant 0 : index
      %657 = vector.load %arg14[%c0_196, %c0_197] : memref<1x16xf32, #tpu.memory_space<vmem>>, vector<1x16xf32>
      tpu.vector_store %arg14[%c0_196, %c0_197], %656 {strides = array<i32>} : memref<1x16xf32, #tpu.memory_space<vmem>>, vector<1x16xf32>,
    } else {
    }
    return
  }
  func.func @transform_0(%arg0: i32) -> (i32, i32, i32) {
    %c0_i32 = arith.constant 0 : i32
    %c0_i32_0 = arith.constant 0 : i32
    %c0_i32_1 = arith.constant 0 : i32
    return %arg0, %c0_i32, %c0_i32_0 : i32, i32, i32
  }
  func.func @transform_1(%arg0: i32) -> (i32, i32, i32) {
    %c0_i32 = arith.constant 0 : i32
    %0 = arith.subi %c0_i32, %arg0 : i32
    %c0_i32_0 = arith.constant 0 : i32
    %c0_i32_1 = arith.constant 0 : i32
    %c0_i32_2 = arith.constant 0 : i32
    return %0, %c0_i32_0, %c0_i32_1 : i32, i32, i32
  }
  func.func @transform_2(%arg0: i32) -> (i32, i32) {
    %c0_i32 = arith.constant 0 : i32
    %c0_i32_0 = arith.constant 0 : i32
    %c0_i32_1 = arith.constant 0 : i32
    return %c0_i32, %c0_i32_0 : i32, i32
  }
  func.func @transform_3(%arg0: i32) -> (i32, i32) {
    %c0_i32 = arith.constant 0 : i32
    %c0_i32_0 = arith.constant 0 : i32
    %c0_i32_1 = arith.constant 0 : i32
    return %c0_i32, %c0_i32_0 : i32, i32
  }
  func.func @transform_4(%arg0: i32) -> (i32, i32) {
    %c0_i32 = arith.constant 0 : i32
    %c0_i32_0 = arith.constant 0 : i32
    %c0_i32_1 = arith.constant 0 : i32
    return %c0_i32, %c0_i32_0 : i32, i32
  }
  func.func @transform_5(%arg0: i32) -> (i32, i32) {
    %c0_i32 = arith.constant 0 : i32
    %c0_i32_0 = arith.constant 0 : i32
    %c0_i32_1 = arith.constant 0 : i32
    return %c0_i32, %c0_i32_0 : i32, i32
  }
  func.func @transform_6(%arg0: i32) -> (i32, i32, i32) {
    %c0_i32 = arith.constant 0 : i32
    %c0_i32_0 = arith.constant 0 : i32
    %c0_i32_1 = arith.constant 0 : i32
    return %arg0, %c0_i32, %c0_i32_0 : i32, i32, i32
  }
  func.func @transform_7(%arg0: i32) -> (i32, i32, i32) {
    %c0_i32 = arith.constant 0 : i32
    %0 = arith.subi %c0_i32, %arg0 : i32
    %c0_i32_0 = arith.constant 0 : i32
    %c0_i32_1 = arith.constant 0 : i32
    %c0_i32_2 = arith.constant 0 : i32
    return %0, %c0_i32_0, %c0_i32_1 : i32, i32, i32
  }
  func.func @transform_8(%arg0: i32) -> (i32, i32) {
    %c0_i32 = arith.constant 0 : i32
    %c0_i32_0 = arith.constant 0 : i32
    %c0_i32_1 = arith.constant 0 : i32
    return %c0_i32, %c0_i32_0 : i32, i32
  }
  func.func @transform_9(%arg0: i32) -> (i32, i32) {
    %c0_i32 = arith.constant 0 : i32
    %c0_i32_0 = arith.constant 0 : i32
    %c0_i32_1 = arith.constant 0 : i32
    return %c0_i32, %c0_i32_0 : i32, i32
  }
  func.func @transform_10(%arg0: i32) -> (i32, i32) {
    %c0_i32 = arith.constant 0 : i32
    %c0_i32_0 = arith.constant 0 : i32
    %c0_i32_1 = arith.constant 0 : i32
    return %c0_i32, %c0_i32_0 : i32, i32
  }
  func.func @transform_11(%arg0: i32) -> (i32, i32) {
    %c0_i32 = arith.constant 0 : i32
    %c0_i32_0 = arith.constant 0 : i32
    %c0_i32_1 = arith.constant 0 : i32
    return %c0_i32, %c0_i32_0 : i32, i32
  }
  func.func @transform_12(%arg0: i32) -> (i32, i32) {
    %c0_i32 = arith.constant 0 : i32
    %c0_i32_0 = arith.constant 0 : i32
    %c0_i32_1 = arith.constant 0 : i32
    return %c0_i32, %c0_i32_0 : i32, i32
  }
  func.func @transform_13(%arg0: i32) -> (i32, i32) {
    %c0_i32 = arith.constant 0 : i32
    %c0_i32_0 = arith.constant 0 : i32
    %c0_i32_1 = arith.constant 0 : i32
    return %c0_i32, %c0_i32_0 : i32, i32
  }
}

module attributes {stable_mosaic.version = 11 : i64} {
  func.func @kernel(%arg0: i32, %arg1: memref<8x2x48xbf16, #tpu.memory_space<vmem>>, %arg2: memref<8x2x48xbf16, #tpu.memory_space<vmem>>, %arg3: memref<16x48xbf16, #tpu.memory_space<vmem>>, %arg4: memref<16x48xbf16, #tpu.memory_space<vmem>>, %arg5: memref<1x48xf32, #tpu.memory_space<vmem>>, %arg6: memref<1x48xf32, #tpu.memory_space<vmem>>, %arg7: memref<8x2x16xf32, #tpu.memory_space<vmem>>, %arg8: memref<8x2x16xf32, #tpu.memory_space<vmem>>, %arg9: memref<2x16xf32, #tpu.memory_space<vmem>>, %arg10: memref<2x16xf32, #tpu.memory_space<vmem>>, %arg11: memref<1x16xf32, #tpu.memory_space<vmem>>, %arg12: memref<1x16xf32, #tpu.memory_space<vmem>>, %arg13: memref<1x16xf32, #tpu.memory_space<vmem>>, %arg14: memref<1x16xf32, #tpu.memory_space<vmem>>, %arg15: memref<2x16xf32, #tpu.memory_space<vmem>>, %arg16: memref<2x16xf32, #tpu.memory_space<vmem>>) attributes {dimension_semantics = [#tpu.dimension_semantics<arbitrary>], iteration_bounds = array<i64: 1>, scalar_prefetch = 0 : i64, scratch_operands = 2 : i64, tpu.core_type = #tpu.core_type<tc>, window_params = [{transform_indices = @transform_0, window_bounds = array<i64: 8, 2, 48>}, {transform_indices = @transform_1, window_bounds = array<i64: 8, 2, 48>}, {pipeline_mode = #tpu.pipeline_mode<synchronous>, transform_indices = @transform_2, window_bounds = array<i64: 16, 48>}, {pipeline_mode = #tpu.pipeline_mode<synchronous>, transform_indices = @transform_3, window_bounds = array<i64: 16, 48>}, {pipeline_mode = #tpu.pipeline_mode<synchronous>, transform_indices = @transform_4, window_bounds = array<i64: 1, 48>}, {pipeline_mode = #tpu.pipeline_mode<synchronous>, transform_indices = @transform_5, window_bounds = array<i64: 1, 48>}, {transform_indices = @transform_6, window_bounds = array<i64: 8, 2, 16>}, {transform_indices = @transform_7, window_bounds = array<i64: 8, 2, 16>}, {pipeline_mode = #tpu.pipeline_mode<synchronous>, transform_indices = @transform_8, window_bounds = array<i64: 2, 16>}, {pipeline_mode = #tpu.pipeline_mode<synchronous>, transform_indices = @transform_9, window_bounds = array<i64: 2, 16>}, {pipeline_mode = #tpu.pipeline_mode<synchronous>, transform_indices = @transform_10, window_bounds = array<i64: 1, 16>}, {pipeline_mode = #tpu.pipeline_mode<synchronous>, transform_indices = @transform_11, window_bounds = array<i64: 1, 16>}, {pipeline_mode = #tpu.pipeline_mode<synchronous>, transform_indices = @transform_12, window_bounds = array<i64: 1, 16>}, {pipeline_mode = #tpu.pipeline_mode<synchronous>, transform_indices = @transform_13, window_bounds = array<i64: 1, 16>}]} {
    %c0_i32 = arith.constant 0 : i32
    %0 = arith.cmpi eq, %arg0, %c0_i32 : i32
    %1 = arith.extui %0 : i1 to i32
    %c0_i32_0 = arith.constant 0 : i32
    %2 = arith.cmpi ne, %1, %c0_i32_0 : i32
    scf.if %2 {
      %cst_172 = arith.constant 0.000000e+00 : f32
      %632 = vector.broadcast %cst_172 : f32 to vector<2x16xf32>
      %c0_173 = arith.constant 0 : index
      %c0_174 = arith.constant 0 : index
      %633 = vector.load %arg15[%c0_173, %c0_174] : memref<2x16xf32, #tpu.memory_space<vmem>>, vector<2x16xf32>
      tpu.vector_store %arg15[%c0_173, %c0_174], %632 {strides = array<i32>} : memref<2x16xf32, #tpu.memory_space<vmem>>, vector<2x16xf32>,
      %cst_175 = arith.constant 0.000000e+00 : f32
      %634 = vector.broadcast %cst_175 : f32 to vector<2x16xf32>
      %c0_176 = arith.constant 0 : index
      %c0_177 = arith.constant 0 : index
      %635 = vector.load %arg16[%c0_176, %c0_177] : memref<2x16xf32, #tpu.memory_space<vmem>>, vector<2x16xf32>
      tpu.vector_store %arg16[%c0_176, %c0_177], %634 {strides = array<i32>} : memref<2x16xf32, #tpu.memory_space<vmem>>, vector<2x16xf32>,
      %cst_178 = arith.constant 0.000000e+00 : f32
      %636 = vector.broadcast %cst_178 : f32 to vector<1x16xf32>
      %c0_179 = arith.constant 0 : index
      %c0_180 = arith.constant 0 : index
      %637 = vector.load %arg11[%c0_179, %c0_180] : memref<1x16xf32, #tpu.memory_space<vmem>>, vector<1x16xf32>
      tpu.vector_store %arg11[%c0_179, %c0_180], %636 {strides = array<i32>} : memref<1x16xf32, #tpu.memory_space<vmem>>, vector<1x16xf32>,
      %cst_181 = arith.constant 0.000000e+00 : f32
      %638 = vector.broadcast %cst_181 : f32 to vector<1x16xf32>
      %c0_182 = arith.constant 0 : index
      %c0_183 = arith.constant 0 : index
      %639 = vector.load %arg12[%c0_182, %c0_183] : memref<1x16xf32, #tpu.memory_space<vmem>>, vector<1x16xf32>
      tpu.vector_store %arg12[%c0_182, %c0_183], %638 {strides = array<i32>} : memref<1x16xf32, #tpu.memory_space<vmem>>, vector<1x16xf32>,
      %cst_184 = arith.constant 0.000000e+00 : f32
      %640 = vector.broadcast %cst_184 : f32 to vector<1x16xf32>
      %c0_185 = arith.constant 0 : index
      %c0_186 = arith.constant 0 : index
      %641 = vector.load %arg13[%c0_185, %c0_186] : memref<1x16xf32, #tpu.memory_space<vmem>>, vector<1x16xf32>
      tpu.vector_store %arg13[%c0_185, %c0_186], %640 {strides = array<i32>} : memref<1x16xf32, #tpu.memory_space<vmem>>, vector<1x16xf32>,
      %cst_187 = arith.constant 0.000000e+00 : f32
      %642 = vector.broadcast %cst_187 : f32 to vector<1x16xf32>
      %c0_188 = arith.constant 0 : index
      %c0_189 = arith.constant 0 : index
      %643 = vector.load %arg14[%c0_188, %c0_189] : memref<1x16xf32, #tpu.memory_space<vmem>>, vector<1x16xf32>
      tpu.vector_store %arg14[%c0_188, %c0_189], %642 {strides = array<i32>} : memref<1x16xf32, #tpu.memory_space<vmem>>, vector<1x16xf32>,
    } else {
    }
    %c0 = arith.constant 0 : index
    %c0_1 = arith.constant 0 : index
    %3 = vector.load %arg3[%c0, %c0_1] : memref<16x48xbf16, #tpu.memory_space<vmem>>, vector<16x48xbf16>
    %c0_2 = arith.constant 0 : index
    %c0_3 = arith.constant 0 : index
    %4 = vector.load %arg4[%c0_2, %c0_3] : memref<16x48xbf16, #tpu.memory_space<vmem>>, vector<16x48xbf16>
    %c0_4 = arith.constant 0 : index
    %c0_5 = arith.constant 0 : index
    %5 = vector.load %arg5[%c0_4, %c0_5] : memref<1x48xf32, #tpu.memory_space<vmem>>, vector<1x48xf32>
    %c0_6 = arith.constant 0 : index
    %c0_7 = arith.constant 0 : index
    %6 = vector.load %arg6[%c0_6, %c0_7] : memref<1x48xf32, #tpu.memory_space<vmem>>, vector<1x48xf32>
    %c0_8 = arith.constant 0 : index
    %c0_9 = arith.constant 0 : index
    %7 = vector.load %arg15[%c0_8, %c0_9] : memref<2x16xf32, #tpu.memory_space<vmem>>, vector<2x16xf32>
    %c0_10 = arith.constant 0 : index
    %c0_11 = arith.constant 0 : index
    %8 = vector.load %arg16[%c0_10, %c0_11] : memref<2x16xf32, #tpu.memory_space<vmem>>, vector<2x16xf32>
    %c0_i32_12 = arith.constant 0 : i32
    %9 = arith.index_cast %c0_i32_12 : i32 to index
    %c0_13 = arith.constant 0 : index
    %c0_14 = arith.constant 0 : index
    %10 = vector.load %arg1[%9, %c0_13, %c0_14] : memref<8x2x48xbf16, #tpu.memory_space<vmem>>, vector<1x2x48xbf16>
    %11 = vector.shape_cast %10 : vector<1x2x48xbf16> to vector<2x48xbf16>
    %12 = arith.extf %11 : vector<2x48xbf16> to vector<2x48xf32>
    %c7_i32 = arith.constant 7 : i32
    %13 = arith.subi %c7_i32, %c0_i32_12 : i32
    %14 = arith.index_cast %13 : i32 to index
    %c0_15 = arith.constant 0 : index
    %c0_16 = arith.constant 0 : index
    %15 = vector.load %arg2[%14, %c0_15, %c0_16] : memref<8x2x48xbf16, #tpu.memory_space<vmem>>, vector<1x2x48xbf16>
    %16 = vector.shape_cast %15 : vector<1x2x48xbf16> to vector<2x48xbf16>
    %17 = arith.extf %16 : vector<2x48xbf16> to vector<2x48xf32>
    %18 = arith.truncf %7 : vector<2x16xf32> to vector<2x16xbf16>
    %cst = arith.constant dense<0.000000e+00> : vector<2x48xf32>
    %19 = tpu.matmul %18, %3, %cst {dimension_numbers = #tpu.dot_dimension_numbers<[1], [0], [0], [1], [0, 0, 1, 1], [], []>} : vector<2x16xbf16>, vector<16x48xbf16>, vector<2x48xf32> -> vector<2x48xf32>
    %20 = vector.broadcast %5 : vector<1x48xf32> to vector<2x48xf32>
    %21 = arith.addf %19, %20 : vector<2x48xf32>
    %22 = vector.extract_strided_slice %12 {offsets = [0, 0], sizes = [2, 16], strides = [1, 1]} : vector<2x48xf32> to vector<2x16xf32>
    %23 = vector.extract_strided_slice %21 {offsets = [0, 0], sizes = [2, 16], strides = [1, 1]} : vector<2x48xf32> to vector<2x16xf32>
    %24 = arith.addf %22, %23 : vector<2x16xf32>
    %25 = arith.negf %24 : vector<2x16xf32>
    %26 = math.exp %25 : vector<2x16xf32>
    %cst_17 = arith.constant 1.000000e+00 : f32
    %27 = vector.broadcast %cst_17 : f32 to vector<2x16xf32>
    %28 = arith.addf %27, %26 : vector<2x16xf32>
    %29 = arith.divf %27, %28 : vector<2x16xf32>
    %30 = vector.extract_strided_slice %12 {offsets = [0, 16], sizes = [2, 16], strides = [1, 1]} : vector<2x48xf32> to vector<2x16xf32>
    %31 = vector.extract_strided_slice %21 {offsets = [0, 16], sizes = [2, 16], strides = [1, 1]} : vector<2x48xf32> to vector<2x16xf32>
    %32 = arith.addf %30, %31 : vector<2x16xf32>
    %33 = arith.negf %32 : vector<2x16xf32>
    %34 = math.exp %33 : vector<2x16xf32>
    %cst_18 = arith.constant 1.000000e+00 : f32
    %35 = vector.broadcast %cst_18 : f32 to vector<2x16xf32>
    %36 = arith.addf %35, %34 : vector<2x16xf32>
    %37 = arith.divf %35, %36 : vector<2x16xf32>
    %38 = vector.extract_strided_slice %12 {offsets = [0, 32], sizes = [2, 16], strides = [1, 1]} : vector<2x48xf32> to vector<2x16xf32>
    %39 = vector.extract_strided_slice %21 {offsets = [0, 32], sizes = [2, 16], strides = [1, 1]} : vector<2x48xf32> to vector<2x16xf32>
    %40 = arith.mulf %29, %39 : vector<2x16xf32>
    %41 = arith.addf %38, %40 : vector<2x16xf32>
    %42 = math.tanh %41 : vector<2x16xf32>
    %43 = arith.subf %7, %42 : vector<2x16xf32>
    %44 = arith.mulf %37, %43 : vector<2x16xf32>
    %45 = arith.addf %42, %44 : vector<2x16xf32>
    %46 = arith.truncf %8 : vector<2x16xf32> to vector<2x16xbf16>
    %cst_19 = arith.constant dense<0.000000e+00> : vector<2x48xf32>
    %47 = tpu.matmul %46, %4, %cst_19 {dimension_numbers = #tpu.dot_dimension_numbers<[1], [0], [0], [1], [0, 0, 1, 1], [], []>} : vector<2x16xbf16>, vector<16x48xbf16>, vector<2x48xf32> -> vector<2x48xf32>
    %48 = vector.broadcast %6 : vector<1x48xf32> to vector<2x48xf32>
    %49 = arith.addf %47, %48 : vector<2x48xf32>
    %50 = vector.extract_strided_slice %17 {offsets = [0, 0], sizes = [2, 16], strides = [1, 1]} : vector<2x48xf32> to vector<2x16xf32>
    %51 = vector.extract_strided_slice %49 {offsets = [0, 0], sizes = [2, 16], strides = [1, 1]} : vector<2x48xf32> to vector<2x16xf32>
    %52 = arith.addf %50, %51 : vector<2x16xf32>
    %53 = arith.negf %52 : vector<2x16xf32>
    %54 = math.exp %53 : vector<2x16xf32>
    %cst_20 = arith.constant 1.000000e+00 : f32
    %55 = vector.broadcast %cst_20 : f32 to vector<2x16xf32>
    %56 = arith.addf %55, %54 : vector<2x16xf32>
    %57 = arith.divf %55, %56 : vector<2x16xf32>
    %58 = vector.extract_strided_slice %17 {offsets = [0, 16], sizes = [2, 16], strides = [1, 1]} : vector<2x48xf32> to vector<2x16xf32>
    %59 = vector.extract_strided_slice %49 {offsets = [0, 16], sizes = [2, 16], strides = [1, 1]} : vector<2x48xf32> to vector<2x16xf32>
    %60 = arith.addf %58, %59 : vector<2x16xf32>
    %61 = arith.negf %60 : vector<2x16xf32>
    %62 = math.exp %61 : vector<2x16xf32>
    %cst_21 = arith.constant 1.000000e+00 : f32
    %63 = vector.broadcast %cst_21 : f32 to vector<2x16xf32>
    %64 = arith.addf %63, %62 : vector<2x16xf32>
    %65 = arith.divf %63, %64 : vector<2x16xf32>
    %66 = vector.extract_strided_slice %17 {offsets = [0, 32], sizes = [2, 16], strides = [1, 1]} : vector<2x48xf32> to vector<2x16xf32>
    %67 = vector.extract_strided_slice %49 {offsets = [0, 32], sizes = [2, 16], strides = [1, 1]} : vector<2x48xf32> to vector<2x16xf32>
    %68 = arith.mulf %57, %67 : vector<2x16xf32>
    %69 = arith.addf %66, %68 : vector<2x16xf32>
    %70 = math.tanh %69 : vector<2x16xf32>
    %71 = arith.subf %8, %70 : vector<2x16xf32>
    %72 = arith.mulf %65, %71 : vector<2x16xf32>
    %73 = arith.addf %70, %72 : vector<2x16xf32>
    %74 = arith.index_cast %c0_i32_12 : i32 to index
    %c0_22 = arith.constant 0 : index
    %c0_23 = arith.constant 0 : index
    %75 = vector.load %arg7[%74, %c0_22, %c0_23] : memref<8x2x16xf32, #tpu.memory_space<vmem>>, vector<1x2x16xf32>
    %76 = vector.shape_cast %75 : vector<1x2x16xf32> to vector<2x16xf32>
    %77 = vector.shape_cast %45 : vector<2x16xf32> to vector<1x2x16xf32>
    tpu.vector_store %arg7[%74, %c0_22, %c0_23], %77 {strides = array<i32>} : memref<8x2x16xf32, #tpu.memory_space<vmem>>, vector<1x2x16xf32>,
    %c7_i32_24 = arith.constant 7 : i32
    %78 = arith.subi %c7_i32_24, %c0_i32_12 : i32
    %79 = arith.index_cast %78 : i32 to index
    %c0_25 = arith.constant 0 : index
    %c0_26 = arith.constant 0 : index
    %80 = vector.load %arg8[%79, %c0_25, %c0_26] : memref<8x2x16xf32, #tpu.memory_space<vmem>>, vector<1x2x16xf32>
    %81 = vector.shape_cast %80 : vector<1x2x16xf32> to vector<2x16xf32>
    %82 = vector.shape_cast %73 : vector<2x16xf32> to vector<1x2x16xf32>
    tpu.vector_store %arg8[%79, %c0_25, %c0_26], %82 {strides = array<i32>} : memref<8x2x16xf32, #tpu.memory_space<vmem>>, vector<1x2x16xf32>,
    %c1_i32 = arith.constant 1 : i32
    %83 = arith.index_cast %c1_i32 : i32 to index
    %c0_27 = arith.constant 0 : index
    %c0_28 = arith.constant 0 : index
    %84 = vector.load %arg1[%83, %c0_27, %c0_28] : memref<8x2x48xbf16, #tpu.memory_space<vmem>>, vector<1x2x48xbf16>
    %85 = vector.shape_cast %84 : vector<1x2x48xbf16> to vector<2x48xbf16>
    %86 = arith.extf %85 : vector<2x48xbf16> to vector<2x48xf32>
    %c7_i32_29 = arith.constant 7 : i32
    %87 = arith.subi %c7_i32_29, %c1_i32 : i32
    %88 = arith.index_cast %87 : i32 to index
    %c0_30 = arith.constant 0 : index
    %c0_31 = arith.constant 0 : index
    %89 = vector.load %arg2[%88, %c0_30, %c0_31] : memref<8x2x48xbf16, #tpu.memory_space<vmem>>, vector<1x2x48xbf16>
    %90 = vector.shape_cast %89 : vector<1x2x48xbf16> to vector<2x48xbf16>
    %91 = arith.extf %90 : vector<2x48xbf16> to vector<2x48xf32>
    %92 = arith.truncf %45 : vector<2x16xf32> to vector<2x16xbf16>
    %cst_32 = arith.constant dense<0.000000e+00> : vector<2x48xf32>
    %93 = tpu.matmul %92, %3, %cst_32 {dimension_numbers = #tpu.dot_dimension_numbers<[1], [0], [0], [1], [0, 0, 1, 1], [], []>} : vector<2x16xbf16>, vector<16x48xbf16>, vector<2x48xf32> -> vector<2x48xf32>
    %94 = vector.broadcast %5 : vector<1x48xf32> to vector<2x48xf32>
    %95 = arith.addf %93, %94 : vector<2x48xf32>
    %96 = vector.extract_strided_slice %86 {offsets = [0, 0], sizes = [2, 16], strides = [1, 1]} : vector<2x48xf32> to vector<2x16xf32>
    %97 = vector.extract_strided_slice %95 {offsets = [0, 0], sizes = [2, 16], strides = [1, 1]} : vector<2x48xf32> to vector<2x16xf32>
    %98 = arith.addf %96, %97 : vector<2x16xf32>
    %99 = arith.negf %98 : vector<2x16xf32>
    %100 = math.exp %99 : vector<2x16xf32>
    %cst_33 = arith.constant 1.000000e+00 : f32
    %101 = vector.broadcast %cst_33 : f32 to vector<2x16xf32>
    %102 = arith.addf %101, %100 : vector<2x16xf32>
    %103 = arith.divf %101, %102 : vector<2x16xf32>
    %104 = vector.extract_strided_slice %86 {offsets = [0, 16], sizes = [2, 16], strides = [1, 1]} : vector<2x48xf32> to vector<2x16xf32>
    %105 = vector.extract_strided_slice %95 {offsets = [0, 16], sizes = [2, 16], strides = [1, 1]} : vector<2x48xf32> to vector<2x16xf32>
    %106 = arith.addf %104, %105 : vector<2x16xf32>
    %107 = arith.negf %106 : vector<2x16xf32>
    %108 = math.exp %107 : vector<2x16xf32>
    %cst_34 = arith.constant 1.000000e+00 : f32
    %109 = vector.broadcast %cst_34 : f32 to vector<2x16xf32>
    %110 = arith.addf %109, %108 : vector<2x16xf32>
    %111 = arith.divf %109, %110 : vector<2x16xf32>
    %112 = vector.extract_strided_slice %86 {offsets = [0, 32], sizes = [2, 16], strides = [1, 1]} : vector<2x48xf32> to vector<2x16xf32>
    %113 = vector.extract_strided_slice %95 {offsets = [0, 32], sizes = [2, 16], strides = [1, 1]} : vector<2x48xf32> to vector<2x16xf32>
    %114 = arith.mulf %103, %113 : vector<2x16xf32>
    %115 = arith.addf %112, %114 : vector<2x16xf32>
    %116 = math.tanh %115 : vector<2x16xf32>
    %117 = arith.subf %45, %116 : vector<2x16xf32>
    %118 = arith.mulf %111, %117 : vector<2x16xf32>
    %119 = arith.addf %116, %118 : vector<2x16xf32>
    %120 = arith.truncf %73 : vector<2x16xf32> to vector<2x16xbf16>
    %cst_35 = arith.constant dense<0.000000e+00> : vector<2x48xf32>
    %121 = tpu.matmul %120, %4, %cst_35 {dimension_numbers = #tpu.dot_dimension_numbers<[1], [0], [0], [1], [0, 0, 1, 1], [], []>} : vector<2x16xbf16>, vector<16x48xbf16>, vector<2x48xf32> -> vector<2x48xf32>
    %122 = vector.broadcast %6 : vector<1x48xf32> to vector<2x48xf32>
    %123 = arith.addf %121, %122 : vector<2x48xf32>
    %124 = vector.extract_strided_slice %91 {offsets = [0, 0], sizes = [2, 16], strides = [1, 1]} : vector<2x48xf32> to vector<2x16xf32>
    %125 = vector.extract_strided_slice %123 {offsets = [0, 0], sizes = [2, 16], strides = [1, 1]} : vector<2x48xf32> to vector<2x16xf32>
    %126 = arith.addf %124, %125 : vector<2x16xf32>
    %127 = arith.negf %126 : vector<2x16xf32>
    %128 = math.exp %127 : vector<2x16xf32>
    %cst_36 = arith.constant 1.000000e+00 : f32
    %129 = vector.broadcast %cst_36 : f32 to vector<2x16xf32>
    %130 = arith.addf %129, %128 : vector<2x16xf32>
    %131 = arith.divf %129, %130 : vector<2x16xf32>
    %132 = vector.extract_strided_slice %91 {offsets = [0, 16], sizes = [2, 16], strides = [1, 1]} : vector<2x48xf32> to vector<2x16xf32>
    %133 = vector.extract_strided_slice %123 {offsets = [0, 16], sizes = [2, 16], strides = [1, 1]} : vector<2x48xf32> to vector<2x16xf32>
    %134 = arith.addf %132, %133 : vector<2x16xf32>
    %135 = arith.negf %134 : vector<2x16xf32>
    %136 = math.exp %135 : vector<2x16xf32>
    %cst_37 = arith.constant 1.000000e+00 : f32
    %137 = vector.broadcast %cst_37 : f32 to vector<2x16xf32>
    %138 = arith.addf %137, %136 : vector<2x16xf32>
    %139 = arith.divf %137, %138 : vector<2x16xf32>
    %140 = vector.extract_strided_slice %91 {offsets = [0, 32], sizes = [2, 16], strides = [1, 1]} : vector<2x48xf32> to vector<2x16xf32>
    %141 = vector.extract_strided_slice %123 {offsets = [0, 32], sizes = [2, 16], strides = [1, 1]} : vector<2x48xf32> to vector<2x16xf32>
    %142 = arith.mulf %131, %141 : vector<2x16xf32>
    %143 = arith.addf %140, %142 : vector<2x16xf32>
    %144 = math.tanh %143 : vector<2x16xf32>
    %145 = arith.subf %73, %144 : vector<2x16xf32>
    %146 = arith.mulf %139, %145 : vector<2x16xf32>
    %147 = arith.addf %144, %146 : vector<2x16xf32>
    %148 = arith.index_cast %c1_i32 : i32 to index
    %c0_38 = arith.constant 0 : index
    %c0_39 = arith.constant 0 : index
    %149 = vector.load %arg7[%148, %c0_38, %c0_39] : memref<8x2x16xf32, #tpu.memory_space<vmem>>, vector<1x2x16xf32>
    %150 = vector.shape_cast %149 : vector<1x2x16xf32> to vector<2x16xf32>
    %151 = vector.shape_cast %119 : vector<2x16xf32> to vector<1x2x16xf32>
    tpu.vector_store %arg7[%148, %c0_38, %c0_39], %151 {strides = array<i32>} : memref<8x2x16xf32, #tpu.memory_space<vmem>>, vector<1x2x16xf32>,
    %c7_i32_40 = arith.constant 7 : i32
    %152 = arith.subi %c7_i32_40, %c1_i32 : i32
    %153 = arith.index_cast %152 : i32 to index
    %c0_41 = arith.constant 0 : index
    %c0_42 = arith.constant 0 : index
    %154 = vector.load %arg8[%153, %c0_41, %c0_42] : memref<8x2x16xf32, #tpu.memory_space<vmem>>, vector<1x2x16xf32>
    %155 = vector.shape_cast %154 : vector<1x2x16xf32> to vector<2x16xf32>
    %156 = vector.shape_cast %147 : vector<2x16xf32> to vector<1x2x16xf32>
    tpu.vector_store %arg8[%153, %c0_41, %c0_42], %156 {strides = array<i32>} : memref<8x2x16xf32, #tpu.memory_space<vmem>>, vector<1x2x16xf32>,
    %c2_i32 = arith.constant 2 : i32
    %157 = arith.index_cast %c2_i32 : i32 to index
    %c0_43 = arith.constant 0 : index
    %c0_44 = arith.constant 0 : index
    %158 = vector.load %arg1[%157, %c0_43, %c0_44] : memref<8x2x48xbf16, #tpu.memory_space<vmem>>, vector<1x2x48xbf16>
    %159 = vector.shape_cast %158 : vector<1x2x48xbf16> to vector<2x48xbf16>
    %160 = arith.extf %159 : vector<2x48xbf16> to vector<2x48xf32>
    %c7_i32_45 = arith.constant 7 : i32
    %161 = arith.subi %c7_i32_45, %c2_i32 : i32
    %162 = arith.index_cast %161 : i32 to index
    %c0_46 = arith.constant 0 : index
    %c0_47 = arith.constant 0 : index
    %163 = vector.load %arg2[%162, %c0_46, %c0_47] : memref<8x2x48xbf16, #tpu.memory_space<vmem>>, vector<1x2x48xbf16>
    %164 = vector.shape_cast %163 : vector<1x2x48xbf16> to vector<2x48xbf16>
    %165 = arith.extf %164 : vector<2x48xbf16> to vector<2x48xf32>
    %166 = arith.truncf %119 : vector<2x16xf32> to vector<2x16xbf16>
    %cst_48 = arith.constant dense<0.000000e+00> : vector<2x48xf32>
    %167 = tpu.matmul %166, %3, %cst_48 {dimension_numbers = #tpu.dot_dimension_numbers<[1], [0], [0], [1], [0, 0, 1, 1], [], []>} : vector<2x16xbf16>, vector<16x48xbf16>, vector<2x48xf32> -> vector<2x48xf32>
    %168 = vector.broadcast %5 : vector<1x48xf32> to vector<2x48xf32>
    %169 = arith.addf %167, %168 : vector<2x48xf32>
    %170 = vector.extract_strided_slice %160 {offsets = [0, 0], sizes = [2, 16], strides = [1, 1]} : vector<2x48xf32> to vector<2x16xf32>
    %171 = vector.extract_strided_slice %169 {offsets = [0, 0], sizes = [2, 16], strides = [1, 1]} : vector<2x48xf32> to vector<2x16xf32>
    %172 = arith.addf %170, %171 : vector<2x16xf32>
    %173 = arith.negf %172 : vector<2x16xf32>
    %174 = math.exp %173 : vector<2x16xf32>
    %cst_49 = arith.constant 1.000000e+00 : f32
    %175 = vector.broadcast %cst_49 : f32 to vector<2x16xf32>
    %176 = arith.addf %175, %174 : vector<2x16xf32>
    %177 = arith.divf %175, %176 : vector<2x16xf32>
    %178 = vector.extract_strided_slice %160 {offsets = [0, 16], sizes = [2, 16], strides = [1, 1]} : vector<2x48xf32> to vector<2x16xf32>
    %179 = vector.extract_strided_slice %169 {offsets = [0, 16], sizes = [2, 16], strides = [1, 1]} : vector<2x48xf32> to vector<2x16xf32>
    %180 = arith.addf %178, %179 : vector<2x16xf32>
    %181 = arith.negf %180 : vector<2x16xf32>
    %182 = math.exp %181 : vector<2x16xf32>
    %cst_50 = arith.constant 1.000000e+00 : f32
    %183 = vector.broadcast %cst_50 : f32 to vector<2x16xf32>
    %184 = arith.addf %183, %182 : vector<2x16xf32>
    %185 = arith.divf %183, %184 : vector<2x16xf32>
    %186 = vector.extract_strided_slice %160 {offsets = [0, 32], sizes = [2, 16], strides = [1, 1]} : vector<2x48xf32> to vector<2x16xf32>
    %187 = vector.extract_strided_slice %169 {offsets = [0, 32], sizes = [2, 16], strides = [1, 1]} : vector<2x48xf32> to vector<2x16xf32>
    %188 = arith.mulf %177, %187 : vector<2x16xf32>
    %189 = arith.addf %186, %188 : vector<2x16xf32>
    %190 = math.tanh %189 : vector<2x16xf32>
    %191 = arith.subf %119, %190 : vector<2x16xf32>
    %192 = arith.mulf %185, %191 : vector<2x16xf32>
    %193 = arith.addf %190, %192 : vector<2x16xf32>
    %194 = arith.truncf %147 : vector<2x16xf32> to vector<2x16xbf16>
    %cst_51 = arith.constant dense<0.000000e+00> : vector<2x48xf32>
    %195 = tpu.matmul %194, %4, %cst_51 {dimension_numbers = #tpu.dot_dimension_numbers<[1], [0], [0], [1], [0, 0, 1, 1], [], []>} : vector<2x16xbf16>, vector<16x48xbf16>, vector<2x48xf32> -> vector<2x48xf32>
    %196 = vector.broadcast %6 : vector<1x48xf32> to vector<2x48xf32>
    %197 = arith.addf %195, %196 : vector<2x48xf32>
    %198 = vector.extract_strided_slice %165 {offsets = [0, 0], sizes = [2, 16], strides = [1, 1]} : vector<2x48xf32> to vector<2x16xf32>
    %199 = vector.extract_strided_slice %197 {offsets = [0, 0], sizes = [2, 16], strides = [1, 1]} : vector<2x48xf32> to vector<2x16xf32>
    %200 = arith.addf %198, %199 : vector<2x16xf32>
    %201 = arith.negf %200 : vector<2x16xf32>
    %202 = math.exp %201 : vector<2x16xf32>
    %cst_52 = arith.constant 1.000000e+00 : f32
    %203 = vector.broadcast %cst_52 : f32 to vector<2x16xf32>
    %204 = arith.addf %203, %202 : vector<2x16xf32>
    %205 = arith.divf %203, %204 : vector<2x16xf32>
    %206 = vector.extract_strided_slice %165 {offsets = [0, 16], sizes = [2, 16], strides = [1, 1]} : vector<2x48xf32> to vector<2x16xf32>
    %207 = vector.extract_strided_slice %197 {offsets = [0, 16], sizes = [2, 16], strides = [1, 1]} : vector<2x48xf32> to vector<2x16xf32>
    %208 = arith.addf %206, %207 : vector<2x16xf32>
    %209 = arith.negf %208 : vector<2x16xf32>
    %210 = math.exp %209 : vector<2x16xf32>
    %cst_53 = arith.constant 1.000000e+00 : f32
    %211 = vector.broadcast %cst_53 : f32 to vector<2x16xf32>
    %212 = arith.addf %211, %210 : vector<2x16xf32>
    %213 = arith.divf %211, %212 : vector<2x16xf32>
    %214 = vector.extract_strided_slice %165 {offsets = [0, 32], sizes = [2, 16], strides = [1, 1]} : vector<2x48xf32> to vector<2x16xf32>
    %215 = vector.extract_strided_slice %197 {offsets = [0, 32], sizes = [2, 16], strides = [1, 1]} : vector<2x48xf32> to vector<2x16xf32>
    %216 = arith.mulf %205, %215 : vector<2x16xf32>
    %217 = arith.addf %214, %216 : vector<2x16xf32>
    %218 = math.tanh %217 : vector<2x16xf32>
    %219 = arith.subf %147, %218 : vector<2x16xf32>
    %220 = arith.mulf %213, %219 : vector<2x16xf32>
    %221 = arith.addf %218, %220 : vector<2x16xf32>
    %222 = arith.index_cast %c2_i32 : i32 to index
    %c0_54 = arith.constant 0 : index
    %c0_55 = arith.constant 0 : index
    %223 = vector.load %arg7[%222, %c0_54, %c0_55] : memref<8x2x16xf32, #tpu.memory_space<vmem>>, vector<1x2x16xf32>
    %224 = vector.shape_cast %223 : vector<1x2x16xf32> to vector<2x16xf32>
    %225 = vector.shape_cast %193 : vector<2x16xf32> to vector<1x2x16xf32>
    tpu.vector_store %arg7[%222, %c0_54, %c0_55], %225 {strides = array<i32>} : memref<8x2x16xf32, #tpu.memory_space<vmem>>, vector<1x2x16xf32>,
    %c7_i32_56 = arith.constant 7 : i32
    %226 = arith.subi %c7_i32_56, %c2_i32 : i32
    %227 = arith.index_cast %226 : i32 to index
    %c0_57 = arith.constant 0 : index
    %c0_58 = arith.constant 0 : index
    %228 = vector.load %arg8[%227, %c0_57, %c0_58] : memref<8x2x16xf32, #tpu.memory_space<vmem>>, vector<1x2x16xf32>
    %229 = vector.shape_cast %228 : vector<1x2x16xf32> to vector<2x16xf32>
    %230 = vector.shape_cast %221 : vector<2x16xf32> to vector<1x2x16xf32>
    tpu.vector_store %arg8[%227, %c0_57, %c0_58], %230 {strides = array<i32>} : memref<8x2x16xf32, #tpu.memory_space<vmem>>, vector<1x2x16xf32>,
    %c3_i32 = arith.constant 3 : i32
    %231 = arith.index_cast %c3_i32 : i32 to index
    %c0_59 = arith.constant 0 : index
    %c0_60 = arith.constant 0 : index
    %232 = vector.load %arg1[%231, %c0_59, %c0_60] : memref<8x2x48xbf16, #tpu.memory_space<vmem>>, vector<1x2x48xbf16>
    %233 = vector.shape_cast %232 : vector<1x2x48xbf16> to vector<2x48xbf16>
    %234 = arith.extf %233 : vector<2x48xbf16> to vector<2x48xf32>
    %c7_i32_61 = arith.constant 7 : i32
    %235 = arith.subi %c7_i32_61, %c3_i32 : i32
    %236 = arith.index_cast %235 : i32 to index
    %c0_62 = arith.constant 0 : index
    %c0_63 = arith.constant 0 : index
    %237 = vector.load %arg2[%236, %c0_62, %c0_63] : memref<8x2x48xbf16, #tpu.memory_space<vmem>>, vector<1x2x48xbf16>
    %238 = vector.shape_cast %237 : vector<1x2x48xbf16> to vector<2x48xbf16>
    %239 = arith.extf %238 : vector<2x48xbf16> to vector<2x48xf32>
    %240 = arith.truncf %193 : vector<2x16xf32> to vector<2x16xbf16>
    %cst_64 = arith.constant dense<0.000000e+00> : vector<2x48xf32>
    %241 = tpu.matmul %240, %3, %cst_64 {dimension_numbers = #tpu.dot_dimension_numbers<[1], [0], [0], [1], [0, 0, 1, 1], [], []>} : vector<2x16xbf16>, vector<16x48xbf16>, vector<2x48xf32> -> vector<2x48xf32>
    %242 = vector.broadcast %5 : vector<1x48xf32> to vector<2x48xf32>
    %243 = arith.addf %241, %242 : vector<2x48xf32>
    %244 = vector.extract_strided_slice %234 {offsets = [0, 0], sizes = [2, 16], strides = [1, 1]} : vector<2x48xf32> to vector<2x16xf32>
    %245 = vector.extract_strided_slice %243 {offsets = [0, 0], sizes = [2, 16], strides = [1, 1]} : vector<2x48xf32> to vector<2x16xf32>
    %246 = arith.addf %244, %245 : vector<2x16xf32>
    %247 = arith.negf %246 : vector<2x16xf32>
    %248 = math.exp %247 : vector<2x16xf32>
    %cst_65 = arith.constant 1.000000e+00 : f32
    %249 = vector.broadcast %cst_65 : f32 to vector<2x16xf32>
    %250 = arith.addf %249, %248 : vector<2x16xf32>
    %251 = arith.divf %249, %250 : vector<2x16xf32>
    %252 = vector.extract_strided_slice %234 {offsets = [0, 16], sizes = [2, 16], strides = [1, 1]} : vector<2x48xf32> to vector<2x16xf32>
    %253 = vector.extract_strided_slice %243 {offsets = [0, 16], sizes = [2, 16], strides = [1, 1]} : vector<2x48xf32> to vector<2x16xf32>
    %254 = arith.addf %252, %253 : vector<2x16xf32>
    %255 = arith.negf %254 : vector<2x16xf32>
    %256 = math.exp %255 : vector<2x16xf32>
    %cst_66 = arith.constant 1.000000e+00 : f32
    %257 = vector.broadcast %cst_66 : f32 to vector<2x16xf32>
    %258 = arith.addf %257, %256 : vector<2x16xf32>
    %259 = arith.divf %257, %258 : vector<2x16xf32>
    %260 = vector.extract_strided_slice %234 {offsets = [0, 32], sizes = [2, 16], strides = [1, 1]} : vector<2x48xf32> to vector<2x16xf32>
    %261 = vector.extract_strided_slice %243 {offsets = [0, 32], sizes = [2, 16], strides = [1, 1]} : vector<2x48xf32> to vector<2x16xf32>
    %262 = arith.mulf %251, %261 : vector<2x16xf32>
    %263 = arith.addf %260, %262 : vector<2x16xf32>
    %264 = math.tanh %263 : vector<2x16xf32>
    %265 = arith.subf %193, %264 : vector<2x16xf32>
    %266 = arith.mulf %259, %265 : vector<2x16xf32>
    %267 = arith.addf %264, %266 : vector<2x16xf32>
    %268 = arith.truncf %221 : vector<2x16xf32> to vector<2x16xbf16>
    %cst_67 = arith.constant dense<0.000000e+00> : vector<2x48xf32>
    %269 = tpu.matmul %268, %4, %cst_67 {dimension_numbers = #tpu.dot_dimension_numbers<[1], [0], [0], [1], [0, 0, 1, 1], [], []>} : vector<2x16xbf16>, vector<16x48xbf16>, vector<2x48xf32> -> vector<2x48xf32>
    %270 = vector.broadcast %6 : vector<1x48xf32> to vector<2x48xf32>
    %271 = arith.addf %269, %270 : vector<2x48xf32>
    %272 = vector.extract_strided_slice %239 {offsets = [0, 0], sizes = [2, 16], strides = [1, 1]} : vector<2x48xf32> to vector<2x16xf32>
    %273 = vector.extract_strided_slice %271 {offsets = [0, 0], sizes = [2, 16], strides = [1, 1]} : vector<2x48xf32> to vector<2x16xf32>
    %274 = arith.addf %272, %273 : vector<2x16xf32>
    %275 = arith.negf %274 : vector<2x16xf32>
    %276 = math.exp %275 : vector<2x16xf32>
    %cst_68 = arith.constant 1.000000e+00 : f32
    %277 = vector.broadcast %cst_68 : f32 to vector<2x16xf32>
    %278 = arith.addf %277, %276 : vector<2x16xf32>
    %279 = arith.divf %277, %278 : vector<2x16xf32>
    %280 = vector.extract_strided_slice %239 {offsets = [0, 16], sizes = [2, 16], strides = [1, 1]} : vector<2x48xf32> to vector<2x16xf32>
    %281 = vector.extract_strided_slice %271 {offsets = [0, 16], sizes = [2, 16], strides = [1, 1]} : vector<2x48xf32> to vector<2x16xf32>
    %282 = arith.addf %280, %281 : vector<2x16xf32>
    %283 = arith.negf %282 : vector<2x16xf32>
    %284 = math.exp %283 : vector<2x16xf32>
    %cst_69 = arith.constant 1.000000e+00 : f32
    %285 = vector.broadcast %cst_69 : f32 to vector<2x16xf32>
    %286 = arith.addf %285, %284 : vector<2x16xf32>
    %287 = arith.divf %285, %286 : vector<2x16xf32>
    %288 = vector.extract_strided_slice %239 {offsets = [0, 32], sizes = [2, 16], strides = [1, 1]} : vector<2x48xf32> to vector<2x16xf32>
    %289 = vector.extract_strided_slice %271 {offsets = [0, 32], sizes = [2, 16], strides = [1, 1]} : vector<2x48xf32> to vector<2x16xf32>
    %290 = arith.mulf %279, %289 : vector<2x16xf32>
    %291 = arith.addf %288, %290 : vector<2x16xf32>
    %292 = math.tanh %291 : vector<2x16xf32>
    %293 = arith.subf %221, %292 : vector<2x16xf32>
    %294 = arith.mulf %287, %293 : vector<2x16xf32>
    %295 = arith.addf %292, %294 : vector<2x16xf32>
    %296 = arith.index_cast %c3_i32 : i32 to index
    %c0_70 = arith.constant 0 : index
    %c0_71 = arith.constant 0 : index
    %297 = vector.load %arg7[%296, %c0_70, %c0_71] : memref<8x2x16xf32, #tpu.memory_space<vmem>>, vector<1x2x16xf32>
    %298 = vector.shape_cast %297 : vector<1x2x16xf32> to vector<2x16xf32>
    %299 = vector.shape_cast %267 : vector<2x16xf32> to vector<1x2x16xf32>
    tpu.vector_store %arg7[%296, %c0_70, %c0_71], %299 {strides = array<i32>} : memref<8x2x16xf32, #tpu.memory_space<vmem>>, vector<1x2x16xf32>,
    %c7_i32_72 = arith.constant 7 : i32
    %300 = arith.subi %c7_i32_72, %c3_i32 : i32
    %301 = arith.index_cast %300 : i32 to index
    %c0_73 = arith.constant 0 : index
    %c0_74 = arith.constant 0 : index
    %302 = vector.load %arg8[%301, %c0_73, %c0_74] : memref<8x2x16xf32, #tpu.memory_space<vmem>>, vector<1x2x16xf32>
    %303 = vector.shape_cast %302 : vector<1x2x16xf32> to vector<2x16xf32>
    %304 = vector.shape_cast %295 : vector<2x16xf32> to vector<1x2x16xf32>
    tpu.vector_store %arg8[%301, %c0_73, %c0_74], %304 {strides = array<i32>} : memref<8x2x16xf32, #tpu.memory_space<vmem>>, vector<1x2x16xf32>,
    %c4_i32 = arith.constant 4 : i32
    %305 = arith.index_cast %c4_i32 : i32 to index
    %c0_75 = arith.constant 0 : index
    %c0_76 = arith.constant 0 : index
    %306 = vector.load %arg1[%305, %c0_75, %c0_76] : memref<8x2x48xbf16, #tpu.memory_space<vmem>>, vector<1x2x48xbf16>
    %307 = vector.shape_cast %306 : vector<1x2x48xbf16> to vector<2x48xbf16>
    %308 = arith.extf %307 : vector<2x48xbf16> to vector<2x48xf32>
    %c7_i32_77 = arith.constant 7 : i32
    %309 = arith.subi %c7_i32_77, %c4_i32 : i32
    %310 = arith.index_cast %309 : i32 to index
    %c0_78 = arith.constant 0 : index
    %c0_79 = arith.constant 0 : index
    %311 = vector.load %arg2[%310, %c0_78, %c0_79] : memref<8x2x48xbf16, #tpu.memory_space<vmem>>, vector<1x2x48xbf16>
    %312 = vector.shape_cast %311 : vector<1x2x48xbf16> to vector<2x48xbf16>
    %313 = arith.extf %312 : vector<2x48xbf16> to vector<2x48xf32>
    %314 = arith.truncf %267 : vector<2x16xf32> to vector<2x16xbf16>
    %cst_80 = arith.constant dense<0.000000e+00> : vector<2x48xf32>
    %315 = tpu.matmul %314, %3, %cst_80 {dimension_numbers = #tpu.dot_dimension_numbers<[1], [0], [0], [1], [0, 0, 1, 1], [], []>} : vector<2x16xbf16>, vector<16x48xbf16>, vector<2x48xf32> -> vector<2x48xf32>
    %316 = vector.broadcast %5 : vector<1x48xf32> to vector<2x48xf32>
    %317 = arith.addf %315, %316 : vector<2x48xf32>
    %318 = vector.extract_strided_slice %308 {offsets = [0, 0], sizes = [2, 16], strides = [1, 1]} : vector<2x48xf32> to vector<2x16xf32>
    %319 = vector.extract_strided_slice %317 {offsets = [0, 0], sizes = [2, 16], strides = [1, 1]} : vector<2x48xf32> to vector<2x16xf32>
    %320 = arith.addf %318, %319 : vector<2x16xf32>
    %321 = arith.negf %320 : vector<2x16xf32>
    %322 = math.exp %321 : vector<2x16xf32>
    %cst_81 = arith.constant 1.000000e+00 : f32
    %323 = vector.broadcast %cst_81 : f32 to vector<2x16xf32>
    %324 = arith.addf %323, %322 : vector<2x16xf32>
    %325 = arith.divf %323, %324 : vector<2x16xf32>
    %326 = vector.extract_strided_slice %308 {offsets = [0, 16], sizes = [2, 16], strides = [1, 1]} : vector<2x48xf32> to vector<2x16xf32>
    %327 = vector.extract_strided_slice %317 {offsets = [0, 16], sizes = [2, 16], strides = [1, 1]} : vector<2x48xf32> to vector<2x16xf32>
    %328 = arith.addf %326, %327 : vector<2x16xf32>
    %329 = arith.negf %328 : vector<2x16xf32>
    %330 = math.exp %329 : vector<2x16xf32>
    %cst_82 = arith.constant 1.000000e+00 : f32
    %331 = vector.broadcast %cst_82 : f32 to vector<2x16xf32>
    %332 = arith.addf %331, %330 : vector<2x16xf32>
    %333 = arith.divf %331, %332 : vector<2x16xf32>
    %334 = vector.extract_strided_slice %308 {offsets = [0, 32], sizes = [2, 16], strides = [1, 1]} : vector<2x48xf32> to vector<2x16xf32>
    %335 = vector.extract_strided_slice %317 {offsets = [0, 32], sizes = [2, 16], strides = [1, 1]} : vector<2x48xf32> to vector<2x16xf32>
    %336 = arith.mulf %325, %335 : vector<2x16xf32>
    %337 = arith.addf %334, %336 : vector<2x16xf32>
    %338 = math.tanh %337 : vector<2x16xf32>
    %339 = arith.subf %267, %338 : vector<2x16xf32>
    %340 = arith.mulf %333, %339 : vector<2x16xf32>
    %341 = arith.addf %338, %340 : vector<2x16xf32>
    %342 = arith.truncf %295 : vector<2x16xf32> to vector<2x16xbf16>
    %cst_83 = arith.constant dense<0.000000e+00> : vector<2x48xf32>
    %343 = tpu.matmul %342, %4, %cst_83 {dimension_numbers = #tpu.dot_dimension_numbers<[1], [0], [0], [1], [0, 0, 1, 1], [], []>} : vector<2x16xbf16>, vector<16x48xbf16>, vector<2x48xf32> -> vector<2x48xf32>
    %344 = vector.broadcast %6 : vector<1x48xf32> to vector<2x48xf32>
    %345 = arith.addf %343, %344 : vector<2x48xf32>
    %346 = vector.extract_strided_slice %313 {offsets = [0, 0], sizes = [2, 16], strides = [1, 1]} : vector<2x48xf32> to vector<2x16xf32>
    %347 = vector.extract_strided_slice %345 {offsets = [0, 0], sizes = [2, 16], strides = [1, 1]} : vector<2x48xf32> to vector<2x16xf32>
    %348 = arith.addf %346, %347 : vector<2x16xf32>
    %349 = arith.negf %348 : vector<2x16xf32>
    %350 = math.exp %349 : vector<2x16xf32>
    %cst_84 = arith.constant 1.000000e+00 : f32
    %351 = vector.broadcast %cst_84 : f32 to vector<2x16xf32>
    %352 = arith.addf %351, %350 : vector<2x16xf32>
    %353 = arith.divf %351, %352 : vector<2x16xf32>
    %354 = vector.extract_strided_slice %313 {offsets = [0, 16], sizes = [2, 16], strides = [1, 1]} : vector<2x48xf32> to vector<2x16xf32>
    %355 = vector.extract_strided_slice %345 {offsets = [0, 16], sizes = [2, 16], strides = [1, 1]} : vector<2x48xf32> to vector<2x16xf32>
    %356 = arith.addf %354, %355 : vector<2x16xf32>
    %357 = arith.negf %356 : vector<2x16xf32>
    %358 = math.exp %357 : vector<2x16xf32>
    %cst_85 = arith.constant 1.000000e+00 : f32
    %359 = vector.broadcast %cst_85 : f32 to vector<2x16xf32>
    %360 = arith.addf %359, %358 : vector<2x16xf32>
    %361 = arith.divf %359, %360 : vector<2x16xf32>
    %362 = vector.extract_strided_slice %313 {offsets = [0, 32], sizes = [2, 16], strides = [1, 1]} : vector<2x48xf32> to vector<2x16xf32>
    %363 = vector.extract_strided_slice %345 {offsets = [0, 32], sizes = [2, 16], strides = [1, 1]} : vector<2x48xf32> to vector<2x16xf32>
    %364 = arith.mulf %353, %363 : vector<2x16xf32>
    %365 = arith.addf %362, %364 : vector<2x16xf32>
    %366 = math.tanh %365 : vector<2x16xf32>
    %367 = arith.subf %295, %366 : vector<2x16xf32>
    %368 = arith.mulf %361, %367 : vector<2x16xf32>
    %369 = arith.addf %366, %368 : vector<2x16xf32>
    %370 = arith.index_cast %c4_i32 : i32 to index
    %c0_86 = arith.constant 0 : index
    %c0_87 = arith.constant 0 : index
    %371 = vector.load %arg7[%370, %c0_86, %c0_87] : memref<8x2x16xf32, #tpu.memory_space<vmem>>, vector<1x2x16xf32>
    %372 = vector.shape_cast %371 : vector<1x2x16xf32> to vector<2x16xf32>
    %373 = vector.shape_cast %341 : vector<2x16xf32> to vector<1x2x16xf32>
    tpu.vector_store %arg7[%370, %c0_86, %c0_87], %373 {strides = array<i32>} : memref<8x2x16xf32, #tpu.memory_space<vmem>>, vector<1x2x16xf32>,
    %c7_i32_88 = arith.constant 7 : i32
    %374 = arith.subi %c7_i32_88, %c4_i32 : i32
    %375 = arith.index_cast %374 : i32 to index
    %c0_89 = arith.constant 0 : index
    %c0_90 = arith.constant 0 : index
    %376 = vector.load %arg8[%375, %c0_89, %c0_90] : memref<8x2x16xf32, #tpu.memory_space<vmem>>, vector<1x2x16xf32>
    %377 = vector.shape_cast %376 : vector<1x2x16xf32> to vector<2x16xf32>
    %378 = vector.shape_cast %369 : vector<2x16xf32> to vector<1x2x16xf32>
    tpu.vector_store %arg8[%375, %c0_89, %c0_90], %378 {strides = array<i32>} : memref<8x2x16xf32, #tpu.memory_space<vmem>>, vector<1x2x16xf32>,
    %c5_i32 = arith.constant 5 : i32
    %379 = arith.index_cast %c5_i32 : i32 to index
    %c0_91 = arith.constant 0 : index
    %c0_92 = arith.constant 0 : index
    %380 = vector.load %arg1[%379, %c0_91, %c0_92] : memref<8x2x48xbf16, #tpu.memory_space<vmem>>, vector<1x2x48xbf16>
    %381 = vector.shape_cast %380 : vector<1x2x48xbf16> to vector<2x48xbf16>
    %382 = arith.extf %381 : vector<2x48xbf16> to vector<2x48xf32>
    %c7_i32_93 = arith.constant 7 : i32
    %383 = arith.subi %c7_i32_93, %c5_i32 : i32
    %384 = arith.index_cast %383 : i32 to index
    %c0_94 = arith.constant 0 : index
    %c0_95 = arith.constant 0 : index
    %385 = vector.load %arg2[%384, %c0_94, %c0_95] : memref<8x2x48xbf16, #tpu.memory_space<vmem>>, vector<1x2x48xbf16>
    %386 = vector.shape_cast %385 : vector<1x2x48xbf16> to vector<2x48xbf16>
    %387 = arith.extf %386 : vector<2x48xbf16> to vector<2x48xf32>
    %388 = arith.truncf %341 : vector<2x16xf32> to vector<2x16xbf16>
    %cst_96 = arith.constant dense<0.000000e+00> : vector<2x48xf32>
    %389 = tpu.matmul %388, %3, %cst_96 {dimension_numbers = #tpu.dot_dimension_numbers<[1], [0], [0], [1], [0, 0, 1, 1], [], []>} : vector<2x16xbf16>, vector<16x48xbf16>, vector<2x48xf32> -> vector<2x48xf32>
    %390 = vector.broadcast %5 : vector<1x48xf32> to vector<2x48xf32>
    %391 = arith.addf %389, %390 : vector<2x48xf32>
    %392 = vector.extract_strided_slice %382 {offsets = [0, 0], sizes = [2, 16], strides = [1, 1]} : vector<2x48xf32> to vector<2x16xf32>
    %393 = vector.extract_strided_slice %391 {offsets = [0, 0], sizes = [2, 16], strides = [1, 1]} : vector<2x48xf32> to vector<2x16xf32>
    %394 = arith.addf %392, %393 : vector<2x16xf32>
    %395 = arith.negf %394 : vector<2x16xf32>
    %396 = math.exp %395 : vector<2x16xf32>
    %cst_97 = arith.constant 1.000000e+00 : f32
    %397 = vector.broadcast %cst_97 : f32 to vector<2x16xf32>
    %398 = arith.addf %397, %396 : vector<2x16xf32>
    %399 = arith.divf %397, %398 : vector<2x16xf32>
    %400 = vector.extract_strided_slice %382 {offsets = [0, 16], sizes = [2, 16], strides = [1, 1]} : vector<2x48xf32> to vector<2x16xf32>
    %401 = vector.extract_strided_slice %391 {offsets = [0, 16], sizes = [2, 16], strides = [1, 1]} : vector<2x48xf32> to vector<2x16xf32>
    %402 = arith.addf %400, %401 : vector<2x16xf32>
    %403 = arith.negf %402 : vector<2x16xf32>
    %404 = math.exp %403 : vector<2x16xf32>
    %cst_98 = arith.constant 1.000000e+00 : f32
    %405 = vector.broadcast %cst_98 : f32 to vector<2x16xf32>
    %406 = arith.addf %405, %404 : vector<2x16xf32>
    %407 = arith.divf %405, %406 : vector<2x16xf32>
    %408 = vector.extract_strided_slice %382 {offsets = [0, 32], sizes = [2, 16], strides = [1, 1]} : vector<2x48xf32> to vector<2x16xf32>
    %409 = vector.extract_strided_slice %391 {offsets = [0, 32], sizes = [2, 16], strides = [1, 1]} : vector<2x48xf32> to vector<2x16xf32>
    %410 = arith.mulf %399, %409 : vector<2x16xf32>
    %411 = arith.addf %408, %410 : vector<2x16xf32>
    %412 = math.tanh %411 : vector<2x16xf32>
    %413 = arith.subf %341, %412 : vector<2x16xf32>
    %414 = arith.mulf %407, %413 : vector<2x16xf32>
    %415 = arith.addf %412, %414 : vector<2x16xf32>
    %416 = arith.truncf %369 : vector<2x16xf32> to vector<2x16xbf16>
    %cst_99 = arith.constant dense<0.000000e+00> : vector<2x48xf32>
    %417 = tpu.matmul %416, %4, %cst_99 {dimension_numbers = #tpu.dot_dimension_numbers<[1], [0], [0], [1], [0, 0, 1, 1], [], []>} : vector<2x16xbf16>, vector<16x48xbf16>, vector<2x48xf32> -> vector<2x48xf32>
    %418 = vector.broadcast %6 : vector<1x48xf32> to vector<2x48xf32>
    %419 = arith.addf %417, %418 : vector<2x48xf32>
    %420 = vector.extract_strided_slice %387 {offsets = [0, 0], sizes = [2, 16], strides = [1, 1]} : vector<2x48xf32> to vector<2x16xf32>
    %421 = vector.extract_strided_slice %419 {offsets = [0, 0], sizes = [2, 16], strides = [1, 1]} : vector<2x48xf32> to vector<2x16xf32>
    %422 = arith.addf %420, %421 : vector<2x16xf32>
    %423 = arith.negf %422 : vector<2x16xf32>
    %424 = math.exp %423 : vector<2x16xf32>
    %cst_100 = arith.constant 1.000000e+00 : f32
    %425 = vector.broadcast %cst_100 : f32 to vector<2x16xf32>
    %426 = arith.addf %425, %424 : vector<2x16xf32>
    %427 = arith.divf %425, %426 : vector<2x16xf32>
    %428 = vector.extract_strided_slice %387 {offsets = [0, 16], sizes = [2, 16], strides = [1, 1]} : vector<2x48xf32> to vector<2x16xf32>
    %429 = vector.extract_strided_slice %419 {offsets = [0, 16], sizes = [2, 16], strides = [1, 1]} : vector<2x48xf32> to vector<2x16xf32>
    %430 = arith.addf %428, %429 : vector<2x16xf32>
    %431 = arith.negf %430 : vector<2x16xf32>
    %432 = math.exp %431 : vector<2x16xf32>
    %cst_101 = arith.constant 1.000000e+00 : f32
    %433 = vector.broadcast %cst_101 : f32 to vector<2x16xf32>
    %434 = arith.addf %433, %432 : vector<2x16xf32>
    %435 = arith.divf %433, %434 : vector<2x16xf32>
    %436 = vector.extract_strided_slice %387 {offsets = [0, 32], sizes = [2, 16], strides = [1, 1]} : vector<2x48xf32> to vector<2x16xf32>
    %437 = vector.extract_strided_slice %419 {offsets = [0, 32], sizes = [2, 16], strides = [1, 1]} : vector<2x48xf32> to vector<2x16xf32>
    %438 = arith.mulf %427, %437 : vector<2x16xf32>
    %439 = arith.addf %436, %438 : vector<2x16xf32>
    %440 = math.tanh %439 : vector<2x16xf32>
    %441 = arith.subf %369, %440 : vector<2x16xf32>
    %442 = arith.mulf %435, %441 : vector<2x16xf32>
    %443 = arith.addf %440, %442 : vector<2x16xf32>
    %444 = arith.index_cast %c5_i32 : i32 to index
    %c0_102 = arith.constant 0 : index
    %c0_103 = arith.constant 0 : index
    %445 = vector.load %arg7[%444, %c0_102, %c0_103] : memref<8x2x16xf32, #tpu.memory_space<vmem>>, vector<1x2x16xf32>
    %446 = vector.shape_cast %445 : vector<1x2x16xf32> to vector<2x16xf32>
    %447 = vector.shape_cast %415 : vector<2x16xf32> to vector<1x2x16xf32>
    tpu.vector_store %arg7[%444, %c0_102, %c0_103], %447 {strides = array<i32>} : memref<8x2x16xf32, #tpu.memory_space<vmem>>, vector<1x2x16xf32>,
    %c7_i32_104 = arith.constant 7 : i32
    %448 = arith.subi %c7_i32_104, %c5_i32 : i32
    %449 = arith.index_cast %448 : i32 to index
    %c0_105 = arith.constant 0 : index
    %c0_106 = arith.constant 0 : index
    %450 = vector.load %arg8[%449, %c0_105, %c0_106] : memref<8x2x16xf32, #tpu.memory_space<vmem>>, vector<1x2x16xf32>
    %451 = vector.shape_cast %450 : vector<1x2x16xf32> to vector<2x16xf32>
    %452 = vector.shape_cast %443 : vector<2x16xf32> to vector<1x2x16xf32>
    tpu.vector_store %arg8[%449, %c0_105, %c0_106], %452 {strides = array<i32>} : memref<8x2x16xf32, #tpu.memory_space<vmem>>, vector<1x2x16xf32>,
    %c6_i32 = arith.constant 6 : i32
    %453 = arith.index_cast %c6_i32 : i32 to index
    %c0_107 = arith.constant 0 : index
    %c0_108 = arith.constant 0 : index
    %454 = vector.load %arg1[%453, %c0_107, %c0_108] : memref<8x2x48xbf16, #tpu.memory_space<vmem>>, vector<1x2x48xbf16>
    %455 = vector.shape_cast %454 : vector<1x2x48xbf16> to vector<2x48xbf16>
    %456 = arith.extf %455 : vector<2x48xbf16> to vector<2x48xf32>
    %c7_i32_109 = arith.constant 7 : i32
    %457 = arith.subi %c7_i32_109, %c6_i32 : i32
    %458 = arith.index_cast %457 : i32 to index
    %c0_110 = arith.constant 0 : index
    %c0_111 = arith.constant 0 : index
    %459 = vector.load %arg2[%458, %c0_110, %c0_111] : memref<8x2x48xbf16, #tpu.memory_space<vmem>>, vector<1x2x48xbf16>
    %460 = vector.shape_cast %459 : vector<1x2x48xbf16> to vector<2x48xbf16>
    %461 = arith.extf %460 : vector<2x48xbf16> to vector<2x48xf32>
    %462 = arith.truncf %415 : vector<2x16xf32> to vector<2x16xbf16>
    %cst_112 = arith.constant dense<0.000000e+00> : vector<2x48xf32>
    %463 = tpu.matmul %462, %3, %cst_112 {dimension_numbers = #tpu.dot_dimension_numbers<[1], [0], [0], [1], [0, 0, 1, 1], [], []>} : vector<2x16xbf16>, vector<16x48xbf16>, vector<2x48xf32> -> vector<2x48xf32>
    %464 = vector.broadcast %5 : vector<1x48xf32> to vector<2x48xf32>
    %465 = arith.addf %463, %464 : vector<2x48xf32>
    %466 = vector.extract_strided_slice %456 {offsets = [0, 0], sizes = [2, 16], strides = [1, 1]} : vector<2x48xf32> to vector<2x16xf32>
    %467 = vector.extract_strided_slice %465 {offsets = [0, 0], sizes = [2, 16], strides = [1, 1]} : vector<2x48xf32> to vector<2x16xf32>
    %468 = arith.addf %466, %467 : vector<2x16xf32>
    %469 = arith.negf %468 : vector<2x16xf32>
    %470 = math.exp %469 : vector<2x16xf32>
    %cst_113 = arith.constant 1.000000e+00 : f32
    %471 = vector.broadcast %cst_113 : f32 to vector<2x16xf32>
    %472 = arith.addf %471, %470 : vector<2x16xf32>
    %473 = arith.divf %471, %472 : vector<2x16xf32>
    %474 = vector.extract_strided_slice %456 {offsets = [0, 16], sizes = [2, 16], strides = [1, 1]} : vector<2x48xf32> to vector<2x16xf32>
    %475 = vector.extract_strided_slice %465 {offsets = [0, 16], sizes = [2, 16], strides = [1, 1]} : vector<2x48xf32> to vector<2x16xf32>
    %476 = arith.addf %474, %475 : vector<2x16xf32>
    %477 = arith.negf %476 : vector<2x16xf32>
    %478 = math.exp %477 : vector<2x16xf32>
    %cst_114 = arith.constant 1.000000e+00 : f32
    %479 = vector.broadcast %cst_114 : f32 to vector<2x16xf32>
    %480 = arith.addf %479, %478 : vector<2x16xf32>
    %481 = arith.divf %479, %480 : vector<2x16xf32>
    %482 = vector.extract_strided_slice %456 {offsets = [0, 32], sizes = [2, 16], strides = [1, 1]} : vector<2x48xf32> to vector<2x16xf32>
    %483 = vector.extract_strided_slice %465 {offsets = [0, 32], sizes = [2, 16], strides = [1, 1]} : vector<2x48xf32> to vector<2x16xf32>
    %484 = arith.mulf %473, %483 : vector<2x16xf32>
    %485 = arith.addf %482, %484 : vector<2x16xf32>
    %486 = math.tanh %485 : vector<2x16xf32>
    %487 = arith.subf %415, %486 : vector<2x16xf32>
    %488 = arith.mulf %481, %487 : vector<2x16xf32>
    %489 = arith.addf %486, %488 : vector<2x16xf32>
    %490 = arith.truncf %443 : vector<2x16xf32> to vector<2x16xbf16>
    %cst_115 = arith.constant dense<0.000000e+00> : vector<2x48xf32>
    %491 = tpu.matmul %490, %4, %cst_115 {dimension_numbers = #tpu.dot_dimension_numbers<[1], [0], [0], [1], [0, 0, 1, 1], [], []>} : vector<2x16xbf16>, vector<16x48xbf16>, vector<2x48xf32> -> vector<2x48xf32>
    %492 = vector.broadcast %6 : vector<1x48xf32> to vector<2x48xf32>
    %493 = arith.addf %491, %492 : vector<2x48xf32>
    %494 = vector.extract_strided_slice %461 {offsets = [0, 0], sizes = [2, 16], strides = [1, 1]} : vector<2x48xf32> to vector<2x16xf32>
    %495 = vector.extract_strided_slice %493 {offsets = [0, 0], sizes = [2, 16], strides = [1, 1]} : vector<2x48xf32> to vector<2x16xf32>
    %496 = arith.addf %494, %495 : vector<2x16xf32>
    %497 = arith.negf %496 : vector<2x16xf32>
    %498 = math.exp %497 : vector<2x16xf32>
    %cst_116 = arith.constant 1.000000e+00 : f32
    %499 = vector.broadcast %cst_116 : f32 to vector<2x16xf32>
    %500 = arith.addf %499, %498 : vector<2x16xf32>
    %501 = arith.divf %499, %500 : vector<2x16xf32>
    %502 = vector.extract_strided_slice %461 {offsets = [0, 16], sizes = [2, 16], strides = [1, 1]} : vector<2x48xf32> to vector<2x16xf32>
    %503 = vector.extract_strided_slice %493 {offsets = [0, 16], sizes = [2, 16], strides = [1, 1]} : vector<2x48xf32> to vector<2x16xf32>
    %504 = arith.addf %502, %503 : vector<2x16xf32>
    %505 = arith.negf %504 : vector<2x16xf32>
    %506 = math.exp %505 : vector<2x16xf32>
    %cst_117 = arith.constant 1.000000e+00 : f32
    %507 = vector.broadcast %cst_117 : f32 to vector<2x16xf32>
    %508 = arith.addf %507, %506 : vector<2x16xf32>
    %509 = arith.divf %507, %508 : vector<2x16xf32>
    %510 = vector.extract_strided_slice %461 {offsets = [0, 32], sizes = [2, 16], strides = [1, 1]} : vector<2x48xf32> to vector<2x16xf32>
    %511 = vector.extract_strided_slice %493 {offsets = [0, 32], sizes = [2, 16], strides = [1, 1]} : vector<2x48xf32> to vector<2x16xf32>
    %512 = arith.mulf %501, %511 : vector<2x16xf32>
    %513 = arith.addf %510, %512 : vector<2x16xf32>
    %514 = math.tanh %513 : vector<2x16xf32>
    %515 = arith.subf %443, %514 : vector<2x16xf32>
    %516 = arith.mulf %509, %515 : vector<2x16xf32>
    %517 = arith.addf %514, %516 : vector<2x16xf32>
    %518 = arith.index_cast %c6_i32 : i32 to index
    %c0_118 = arith.constant 0 : index
    %c0_119 = arith.constant 0 : index
    %519 = vector.load %arg7[%518, %c0_118, %c0_119] : memref<8x2x16xf32, #tpu.memory_space<vmem>>, vector<1x2x16xf32>
    %520 = vector.shape_cast %519 : vector<1x2x16xf32> to vector<2x16xf32>
    %521 = vector.shape_cast %489 : vector<2x16xf32> to vector<1x2x16xf32>
    tpu.vector_store %arg7[%518, %c0_118, %c0_119], %521 {strides = array<i32>} : memref<8x2x16xf32, #tpu.memory_space<vmem>>, vector<1x2x16xf32>,
    %c7_i32_120 = arith.constant 7 : i32
    %522 = arith.subi %c7_i32_120, %c6_i32 : i32
    %523 = arith.index_cast %522 : i32 to index
    %c0_121 = arith.constant 0 : index
    %c0_122 = arith.constant 0 : index
    %524 = vector.load %arg8[%523, %c0_121, %c0_122] : memref<8x2x16xf32, #tpu.memory_space<vmem>>, vector<1x2x16xf32>
    %525 = vector.shape_cast %524 : vector<1x2x16xf32> to vector<2x16xf32>
    %526 = vector.shape_cast %517 : vector<2x16xf32> to vector<1x2x16xf32>
    tpu.vector_store %arg8[%523, %c0_121, %c0_122], %526 {strides = array<i32>} : memref<8x2x16xf32, #tpu.memory_space<vmem>>, vector<1x2x16xf32>,
    %c7_i32_123 = arith.constant 7 : i32
    %527 = arith.index_cast %c7_i32_123 : i32 to index
    %c0_124 = arith.constant 0 : index
    %c0_125 = arith.constant 0 : index
    %528 = vector.load %arg1[%527, %c0_124, %c0_125] : memref<8x2x48xbf16, #tpu.memory_space<vmem>>, vector<1x2x48xbf16>
    %529 = vector.shape_cast %528 : vector<1x2x48xbf16> to vector<2x48xbf16>
    %530 = arith.extf %529 : vector<2x48xbf16> to vector<2x48xf32>
    %c7_i32_126 = arith.constant 7 : i32
    %531 = arith.subi %c7_i32_126, %c7_i32_123 : i32
    %532 = arith.index_cast %531 : i32 to index
    %c0_127 = arith.constant 0 : index
    %c0_128 = arith.constant 0 : index
    %533 = vector.load %arg2[%532, %c0_127, %c0_128] : memref<8x2x48xbf16, #tpu.memory_space<vmem>>, vector<1x2x48xbf16>
    %534 = vector.shape_cast %533 : vector<1x2x48xbf16> to vector<2x48xbf16>
    %535 = arith.extf %534 : vector<2x48xbf16> to vector<2x48xf32>
    %536 = arith.truncf %489 : vector<2x16xf32> to vector<2x16xbf16>
    %cst_129 = arith.constant dense<0.000000e+00> : vector<2x48xf32>
    %537 = tpu.matmul %536, %3, %cst_129 {dimension_numbers = #tpu.dot_dimension_numbers<[1], [0], [0], [1], [0, 0, 1, 1], [], []>} : vector<2x16xbf16>, vector<16x48xbf16>, vector<2x48xf32> -> vector<2x48xf32>
    %538 = vector.broadcast %5 : vector<1x48xf32> to vector<2x48xf32>
    %539 = arith.addf %537, %538 : vector<2x48xf32>
    %540 = vector.extract_strided_slice %530 {offsets = [0, 0], sizes = [2, 16], strides = [1, 1]} : vector<2x48xf32> to vector<2x16xf32>
    %541 = vector.extract_strided_slice %539 {offsets = [0, 0], sizes = [2, 16], strides = [1, 1]} : vector<2x48xf32> to vector<2x16xf32>
    %542 = arith.addf %540, %541 : vector<2x16xf32>
    %543 = arith.negf %542 : vector<2x16xf32>
    %544 = math.exp %543 : vector<2x16xf32>
    %cst_130 = arith.constant 1.000000e+00 : f32
    %545 = vector.broadcast %cst_130 : f32 to vector<2x16xf32>
    %546 = arith.addf %545, %544 : vector<2x16xf32>
    %547 = arith.divf %545, %546 : vector<2x16xf32>
    %548 = vector.extract_strided_slice %530 {offsets = [0, 16], sizes = [2, 16], strides = [1, 1]} : vector<2x48xf32> to vector<2x16xf32>
    %549 = vector.extract_strided_slice %539 {offsets = [0, 16], sizes = [2, 16], strides = [1, 1]} : vector<2x48xf32> to vector<2x16xf32>
    %550 = arith.addf %548, %549 : vector<2x16xf32>
    %551 = arith.negf %550 : vector<2x16xf32>
    %552 = math.exp %551 : vector<2x16xf32>
    %cst_131 = arith.constant 1.000000e+00 : f32
    %553 = vector.broadcast %cst_131 : f32 to vector<2x16xf32>
    %554 = arith.addf %553, %552 : vector<2x16xf32>
    %555 = arith.divf %553, %554 : vector<2x16xf32>
    %556 = vector.extract_strided_slice %530 {offsets = [0, 32], sizes = [2, 16], strides = [1, 1]} : vector<2x48xf32> to vector<2x16xf32>
    %557 = vector.extract_strided_slice %539 {offsets = [0, 32], sizes = [2, 16], strides = [1, 1]} : vector<2x48xf32> to vector<2x16xf32>
    %558 = arith.mulf %547, %557 : vector<2x16xf32>
    %559 = arith.addf %556, %558 : vector<2x16xf32>
    %560 = math.tanh %559 : vector<2x16xf32>
    %561 = arith.subf %489, %560 : vector<2x16xf32>
    %562 = arith.mulf %555, %561 : vector<2x16xf32>
    %563 = arith.addf %560, %562 : vector<2x16xf32>
    %564 = arith.truncf %517 : vector<2x16xf32> to vector<2x16xbf16>
    %cst_132 = arith.constant dense<0.000000e+00> : vector<2x48xf32>
    %565 = tpu.matmul %564, %4, %cst_132 {dimension_numbers = #tpu.dot_dimension_numbers<[1], [0], [0], [1], [0, 0, 1, 1], [], []>} : vector<2x16xbf16>, vector<16x48xbf16>, vector<2x48xf32> -> vector<2x48xf32>
    %566 = vector.broadcast %6 : vector<1x48xf32> to vector<2x48xf32>
    %567 = arith.addf %565, %566 : vector<2x48xf32>
    %568 = vector.extract_strided_slice %535 {offsets = [0, 0], sizes = [2, 16], strides = [1, 1]} : vector<2x48xf32> to vector<2x16xf32>
    %569 = vector.extract_strided_slice %567 {offsets = [0, 0], sizes = [2, 16], strides = [1, 1]} : vector<2x48xf32> to vector<2x16xf32>
    %570 = arith.addf %568, %569 : vector<2x16xf32>
    %571 = arith.negf %570 : vector<2x16xf32>
    %572 = math.exp %571 : vector<2x16xf32>
    %cst_133 = arith.constant 1.000000e+00 : f32
    %573 = vector.broadcast %cst_133 : f32 to vector<2x16xf32>
    %574 = arith.addf %573, %572 : vector<2x16xf32>
    %575 = arith.divf %573, %574 : vector<2x16xf32>
    %576 = vector.extract_strided_slice %535 {offsets = [0, 16], sizes = [2, 16], strides = [1, 1]} : vector<2x48xf32> to vector<2x16xf32>
    %577 = vector.extract_strided_slice %567 {offsets = [0, 16], sizes = [2, 16], strides = [1, 1]} : vector<2x48xf32> to vector<2x16xf32>
    %578 = arith.addf %576, %577 : vector<2x16xf32>
    %579 = arith.negf %578 : vector<2x16xf32>
    %580 = math.exp %579 : vector<2x16xf32>
    %cst_134 = arith.constant 1.000000e+00 : f32
    %581 = vector.broadcast %cst_134 : f32 to vector<2x16xf32>
    %582 = arith.addf %581, %580 : vector<2x16xf32>
    %583 = arith.divf %581, %582 : vector<2x16xf32>
    %584 = vector.extract_strided_slice %535 {offsets = [0, 32], sizes = [2, 16], strides = [1, 1]} : vector<2x48xf32> to vector<2x16xf32>
    %585 = vector.extract_strided_slice %567 {offsets = [0, 32], sizes = [2, 16], strides = [1, 1]} : vector<2x48xf32> to vector<2x16xf32>
    %586 = arith.mulf %575, %585 : vector<2x16xf32>
    %587 = arith.addf %584, %586 : vector<2x16xf32>
    %588 = math.tanh %587 : vector<2x16xf32>
    %589 = arith.subf %517, %588 : vector<2x16xf32>
    %590 = arith.mulf %583, %589 : vector<2x16xf32>
    %591 = arith.addf %588, %590 : vector<2x16xf32>
    %592 = arith.index_cast %c7_i32_123 : i32 to index
    %c0_135 = arith.constant 0 : index
    %c0_136 = arith.constant 0 : index
    %593 = vector.load %arg7[%592, %c0_135, %c0_136] : memref<8x2x16xf32, #tpu.memory_space<vmem>>, vector<1x2x16xf32>
    %594 = vector.shape_cast %593 : vector<1x2x16xf32> to vector<2x16xf32>
    %595 = vector.shape_cast %563 : vector<2x16xf32> to vector<1x2x16xf32>
    tpu.vector_store %arg7[%592, %c0_135, %c0_136], %595 {strides = array<i32>} : memref<8x2x16xf32, #tpu.memory_space<vmem>>, vector<1x2x16xf32>,
    %c7_i32_137 = arith.constant 7 : i32
    %596 = arith.subi %c7_i32_137, %c7_i32_123 : i32
    %597 = arith.index_cast %596 : i32 to index
    %c0_138 = arith.constant 0 : index
    %c0_139 = arith.constant 0 : index
    %598 = vector.load %arg8[%597, %c0_138, %c0_139] : memref<8x2x16xf32, #tpu.memory_space<vmem>>, vector<1x2x16xf32>
    %599 = vector.shape_cast %598 : vector<1x2x16xf32> to vector<2x16xf32>
    %600 = vector.shape_cast %591 : vector<2x16xf32> to vector<1x2x16xf32>
    tpu.vector_store %arg8[%597, %c0_138, %c0_139], %600 {strides = array<i32>} : memref<8x2x16xf32, #tpu.memory_space<vmem>>, vector<1x2x16xf32>,
    %c8_i32 = arith.constant 8 : i32
    %c0_140 = arith.constant 0 : index
    %c0_141 = arith.constant 0 : index
    %601 = vector.load %arg15[%c0_140, %c0_141] : memref<2x16xf32, #tpu.memory_space<vmem>>, vector<2x16xf32>
    tpu.vector_store %arg15[%c0_140, %c0_141], %563 {strides = array<i32>} : memref<2x16xf32, #tpu.memory_space<vmem>>, vector<2x16xf32>,
    %c0_142 = arith.constant 0 : index
    %c0_143 = arith.constant 0 : index
    %602 = vector.load %arg16[%c0_142, %c0_143] : memref<2x16xf32, #tpu.memory_space<vmem>>, vector<2x16xf32>
    tpu.vector_store %arg16[%c0_142, %c0_143], %591 {strides = array<i32>} : memref<2x16xf32, #tpu.memory_space<vmem>>, vector<2x16xf32>,
    %c0_144 = arith.constant 0 : index
    %c0_145 = arith.constant 0 : index
    %c0_146 = arith.constant 0 : index
    %603 = vector.load %arg7[%c0_144, %c0_145, %c0_146] : memref<8x2x16xf32, #tpu.memory_space<vmem>>, vector<8x2x16xf32>
    %604 = vector.shape_cast %603 : vector<8x2x16xf32> to vector<16x16xf32>
    %c0_147 = arith.constant 0 : index
    %c0_148 = arith.constant 0 : index
    %c0_149 = arith.constant 0 : index
    %605 = vector.load %arg8[%c0_147, %c0_148, %c0_149] : memref<8x2x16xf32, #tpu.memory_space<vmem>>, vector<8x2x16xf32>
    %606 = vector.shape_cast %605 : vector<8x2x16xf32> to vector<16x16xf32>
    %c0_150 = arith.constant 0 : index
    %c0_151 = arith.constant 0 : index
    %607 = vector.load %arg11[%c0_150, %c0_151] : memref<1x16xf32, #tpu.memory_space<vmem>>, vector<1x16xf32>
    %cst_152 = arith.constant dense<0.000000e+00> : vector<16xf32>
    %608 = vector.multi_reduction <add>, %604, %cst_152 [0] : vector<16x16xf32> to vector<16xf32>
    %609 = vector.shape_cast %608 : vector<16xf32> to vector<1x16xf32>
    %610 = arith.addf %607, %609 : vector<1x16xf32>
    %c0_153 = arith.constant 0 : index
    %c0_154 = arith.constant 0 : index
    %611 = vector.load %arg11[%c0_153, %c0_154] : memref<1x16xf32, #tpu.memory_space<vmem>>, vector<1x16xf32>
    tpu.vector_store %arg11[%c0_153, %c0_154], %610 {strides = array<i32>} : memref<1x16xf32, #tpu.memory_space<vmem>>, vector<1x16xf32>,
    %c0_155 = arith.constant 0 : index
    %c0_156 = arith.constant 0 : index
    %612 = vector.load %arg12[%c0_155, %c0_156] : memref<1x16xf32, #tpu.memory_space<vmem>>, vector<1x16xf32>
    %613 = arith.mulf %604, %604 : vector<16x16xf32>
    %cst_157 = arith.constant dense<0.000000e+00> : vector<16xf32>
    %614 = vector.multi_reduction <add>, %613, %cst_157 [0] : vector<16x16xf32> to vector<16xf32>
    %615 = vector.shape_cast %614 : vector<16xf32> to vector<1x16xf32>
    %616 = arith.addf %612, %615 : vector<1x16xf32>
    %c0_158 = arith.constant 0 : index
    %c0_159 = arith.constant 0 : index
    %617 = vector.load %arg12[%c0_158, %c0_159] : memref<1x16xf32, #tpu.memory_space<vmem>>, vector<1x16xf32>
    tpu.vector_store %arg12[%c0_158, %c0_159], %616 {strides = array<i32>} : memref<1x16xf32, #tpu.memory_space<vmem>>, vector<1x16xf32>,
    %c0_160 = arith.constant 0 : index
    %c0_161 = arith.constant 0 : index
    %618 = vector.load %arg13[%c0_160, %c0_161] : memref<1x16xf32, #tpu.memory_space<vmem>>, vector<1x16xf32>
    %cst_162 = arith.constant dense<0.000000e+00> : vector<16xf32>
    %619 = vector.multi_reduction <add>, %606, %cst_162 [0] : vector<16x16xf32> to vector<16xf32>
    %620 = vector.shape_cast %619 : vector<16xf32> to vector<1x16xf32>
    %621 = arith.addf %618, %620 : vector<1x16xf32>
    %c0_163 = arith.constant 0 : index
    %c0_164 = arith.constant 0 : index
    %622 = vector.load %arg13[%c0_163, %c0_164] : memref<1x16xf32, #tpu.memory_space<vmem>>, vector<1x16xf32>
    tpu.vector_store %arg13[%c0_163, %c0_164], %621 {strides = array<i32>} : memref<1x16xf32, #tpu.memory_space<vmem>>, vector<1x16xf32>,
    %c0_165 = arith.constant 0 : index
    %c0_166 = arith.constant 0 : index
    %623 = vector.load %arg14[%c0_165, %c0_166] : memref<1x16xf32, #tpu.memory_space<vmem>>, vector<1x16xf32>
    %624 = arith.mulf %606, %606 : vector<16x16xf32>
    %cst_167 = arith.constant dense<0.000000e+00> : vector<16xf32>
    %625 = vector.multi_reduction <add>, %624, %cst_167 [0] : vector<16x16xf32> to vector<16xf32>
    %626 = vector.shape_cast %625 : vector<16xf32> to vector<1x16xf32>
    %627 = arith.addf %623, %626 : vector<1x16xf32>
    %c0_168 = arith.constant 0 : index
    %c0_169 = arith.constant 0 : index
    %628 = vector.load %arg14[%c0_168, %c0_169] : memref<1x16xf32, #tpu.memory_space<vmem>>, vector<1x16xf32>
    tpu.vector_store %arg14[%c0_168, %c0_169], %627 {strides = array<i32>} : memref<1x16xf32, #tpu.memory_space<vmem>>, vector<1x16xf32>,
    %c0_i32_170 = arith.constant 0 : i32
    %629 = arith.cmpi eq, %arg0, %c0_i32_170 : i32
    %630 = arith.extui %629 : i1 to i32
    %c0_i32_171 = arith.constant 0 : i32
    %631 = arith.cmpi ne, %630, %c0_i32_171 : i32
    scf.if %631 {
      %c0_172 = arith.constant 0 : index
      %c0_173 = arith.constant 0 : index
      %632 = vector.load %arg9[%c0_172, %c0_173] : memref<2x16xf32, #tpu.memory_space<vmem>>, vector<2x16xf32>
      tpu.vector_store %arg9[%c0_172, %c0_173], %563 {strides = array<i32>} : memref<2x16xf32, #tpu.memory_space<vmem>>, vector<2x16xf32>,
      %c0_174 = arith.constant 0 : index
      %c0_175 = arith.constant 0 : index
      %633 = vector.load %arg10[%c0_174, %c0_175] : memref<2x16xf32, #tpu.memory_space<vmem>>, vector<2x16xf32>
      tpu.vector_store %arg10[%c0_174, %c0_175], %591 {strides = array<i32>} : memref<2x16xf32, #tpu.memory_space<vmem>>, vector<2x16xf32>,
      %c0_176 = arith.constant 0 : index
      %c0_177 = arith.constant 0 : index
      %634 = vector.load %arg11[%c0_176, %c0_177] : memref<1x16xf32, #tpu.memory_space<vmem>>, vector<1x16xf32>
      %cst_178 = arith.constant 6.250000e-02 : f32
      %635 = vector.broadcast %cst_178 : f32 to vector<1x16xf32>
      %636 = arith.mulf %634, %635 : vector<1x16xf32>
      %c0_179 = arith.constant 0 : index
      %c0_180 = arith.constant 0 : index
      %637 = vector.load %arg13[%c0_179, %c0_180] : memref<1x16xf32, #tpu.memory_space<vmem>>, vector<1x16xf32>
      %cst_181 = arith.constant 6.250000e-02 : f32
      %638 = vector.broadcast %cst_181 : f32 to vector<1x16xf32>
      %639 = arith.mulf %637, %638 : vector<1x16xf32>
      %c0_182 = arith.constant 0 : index
      %c0_183 = arith.constant 0 : index
      %640 = vector.load %arg11[%c0_182, %c0_183] : memref<1x16xf32, #tpu.memory_space<vmem>>, vector<1x16xf32>
      tpu.vector_store %arg11[%c0_182, %c0_183], %636 {strides = array<i32>} : memref<1x16xf32, #tpu.memory_space<vmem>>, vector<1x16xf32>,
      %c0_184 = arith.constant 0 : index
      %c0_185 = arith.constant 0 : index
      %641 = vector.load %arg13[%c0_184, %c0_185] : memref<1x16xf32, #tpu.memory_space<vmem>>, vector<1x16xf32>
      tpu.vector_store %arg13[%c0_184, %c0_185], %639 {strides = array<i32>} : memref<1x16xf32, #tpu.memory_space<vmem>>, vector<1x16xf32>,
      %c0_186 = arith.constant 0 : index
      %c0_187 = arith.constant 0 : index
      %642 = vector.load %arg12[%c0_186, %c0_187] : memref<1x16xf32, #tpu.memory_space<vmem>>, vector<1x16xf32>
      %cst_188 = arith.constant 6.250000e-02 : f32
      %643 = vector.broadcast %cst_188 : f32 to vector<1x16xf32>
      %644 = arith.mulf %642, %643 : vector<1x16xf32>
      %645 = arith.mulf %636, %636 : vector<1x16xf32>
      %646 = arith.subf %644, %645 : vector<1x16xf32>
      %cst_189 = arith.constant 0.000000e+00 : f32
      %647 = vector.broadcast %cst_189 : f32 to vector<1x16xf32>
      %648 = arith.maximumf %646, %647 : vector<1x16xf32>
      %c0_190 = arith.constant 0 : index
      %c0_191 = arith.constant 0 : index
      %649 = vector.load %arg12[%c0_190, %c0_191] : memref<1x16xf32, #tpu.memory_space<vmem>>, vector<1x16xf32>
      tpu.vector_store %arg12[%c0_190, %c0_191], %648 {strides = array<i32>} : memref<1x16xf32, #tpu.memory_space<vmem>>, vector<1x16xf32>,
      %c0_192 = arith.constant 0 : index
      %c0_193 = arith.constant 0 : index
      %650 = vector.load %arg14[%c0_192, %c0_193] : memref<1x16xf32, #tpu.memory_space<vmem>>, vector<1x16xf32>
      %cst_194 = arith.constant 6.250000e-02 : f32
      %651 = vector.broadcast %cst_194 : f32 to vector<1x16xf32>
      %652 = arith.mulf %650, %651 : vector<1x16xf32>
      %653 = arith.mulf %639, %639 : vector<1x16xf32>
      %654 = arith.subf %652, %653 : vector<1x16xf32>
      %cst_195 = arith.constant 0.000000e+00 : f32
      %655 = vector.broadcast %cst_195 : f32 to vector<1x16xf32>
      %656 = arith.maximumf %654, %655 : vector<1x16xf32>
      %c0_196 = arith.constant 0 : index
      %c0_197 = arith.constant 0 : index
      %657 = vector.load %arg14[%c0_196, %c0_197] : memref<1x16xf32, #tpu.memory_space<vmem>>, vector<1x16xf32>
      tpu.vector_store %arg14[%c0_196, %c0_197], %656 {strides = array<i32>} : memref<1x16xf32, #tpu.memory_space<vmem>>, vector<1x16xf32>,
    } else {
    }
    return
  }
  func.func @transform_0(%arg0: i32) -> (i32, i32, i32) {
    %c0_i32 = arith.constant 0 : i32
    %c0_i32_0 = arith.constant 0 : i32
    %c0_i32_1 = arith.constant 0 : i32
    return %arg0, %c0_i32, %c0_i32_0 : i32, i32, i32
  }
  func.func @transform_1(%arg0: i32) -> (i32, i32, i32) {
    %c0_i32 = arith.constant 0 : i32
    %0 = arith.subi %c0_i32, %arg0 : i32
    %c0_i32_0 = arith.constant 0 : i32
    %c0_i32_1 = arith.constant 0 : i32
    %c0_i32_2 = arith.constant 0 : i32
    return %0, %c0_i32_0, %c0_i32_1 : i32, i32, i32
  }
  func.func @transform_2(%arg0: i32) -> (i32, i32) {
    %c0_i32 = arith.constant 0 : i32
    %c0_i32_0 = arith.constant 0 : i32
    %c0_i32_1 = arith.constant 0 : i32
    return %c0_i32, %c0_i32_0 : i32, i32
  }
  func.func @transform_3(%arg0: i32) -> (i32, i32) {
    %c0_i32 = arith.constant 0 : i32
    %c0_i32_0 = arith.constant 0 : i32
    %c0_i32_1 = arith.constant 0 : i32
    return %c0_i32, %c0_i32_0 : i32, i32
  }
  func.func @transform_4(%arg0: i32) -> (i32, i32) {
    %c0_i32 = arith.constant 0 : i32
    %c0_i32_0 = arith.constant 0 : i32
    %c0_i32_1 = arith.constant 0 : i32
    return %c0_i32, %c0_i32_0 : i32, i32
  }
  func.func @transform_5(%arg0: i32) -> (i32, i32) {
    %c0_i32 = arith.constant 0 : i32
    %c0_i32_0 = arith.constant 0 : i32
    %c0_i32_1 = arith.constant 0 : i32
    return %c0_i32, %c0_i32_0 : i32, i32
  }
  func.func @transform_6(%arg0: i32) -> (i32, i32, i32) {
    %c0_i32 = arith.constant 0 : i32
    %c0_i32_0 = arith.constant 0 : i32
    %c0_i32_1 = arith.constant 0 : i32
    return %arg0, %c0_i32, %c0_i32_0 : i32, i32, i32
  }
  func.func @transform_7(%arg0: i32) -> (i32, i32, i32) {
    %c0_i32 = arith.constant 0 : i32
    %0 = arith.subi %c0_i32, %arg0 : i32
    %c0_i32_0 = arith.constant 0 : i32
    %c0_i32_1 = arith.constant 0 : i32
    %c0_i32_2 = arith.constant 0 : i32
    return %0, %c0_i32_0, %c0_i32_1 : i32, i32, i32
  }
  func.func @transform_8(%arg0: i32) -> (i32, i32) {
    %c0_i32 = arith.constant 0 : i32
    %c0_i32_0 = arith.constant 0 : i32
    %c0_i32_1 = arith.constant 0 : i32
    return %c0_i32, %c0_i32_0 : i32, i32
  }
  func.func @transform_9(%arg0: i32) -> (i32, i32) {
    %c0_i32 = arith.constant 0 : i32
    %c0_i32_0 = arith.constant 0 : i32
    %c0_i32_1 = arith.constant 0 : i32
    return %c0_i32, %c0_i32_0 : i32, i32
  }
  func.func @transform_10(%arg0: i32) -> (i32, i32) {
    %c0_i32 = arith.constant 0 : i32
    %c0_i32_0 = arith.constant 0 : i32
    %c0_i32_1 = arith.constant 0 : i32
    return %c0_i32, %c0_i32_0 : i32, i32
  }
  func.func @transform_11(%arg0: i32) -> (i32, i32) {
    %c0_i32 = arith.constant 0 : i32
    %c0_i32_0 = arith.constant 0 : i32
    %c0_i32_1 = arith.constant 0 : i32
    return %c0_i32, %c0_i32_0 : i32, i32
  }
  func.func @transform_12(%arg0: i32) -> (i32, i32) {
    %c0_i32 = arith.constant 0 : i32
    %c0_i32_0 = arith.constant 0 : i32
    %c0_i32_1 = arith.constant 0 : i32
    return %c0_i32, %c0_i32_0 : i32, i32
  }
  func.func @transform_13(%arg0: i32) -> (i32, i32) {
    %c0_i32 = arith.constant 0 : i32
    %c0_i32_0 = arith.constant 0 : i32
    %c0_i32_1 = arith.constant 0 : i32
    return %c0_i32, %c0_i32_0 : i32, i32
  }
}

module attributes {stable_mosaic.version = 11 : i64} {
  func.func @_fc_kernel(%arg0: i32, %arg1: memref<2x16xf32, #tpu.memory_space<vmem>>, %arg2: memref<2x16xf32, #tpu.memory_space<vmem>>, %arg3: memref<16x32xbf16, #tpu.memory_space<vmem>>, %arg4: memref<16x32xbf16, #tpu.memory_space<vmem>>, %arg5: memref<1x32xf32, #tpu.memory_space<vmem>>, %arg6: memref<2x32xf32, #tpu.memory_space<vmem>>) attributes {dimension_semantics = [#tpu.dimension_semantics<parallel>], iteration_bounds = array<i64: 1>, scalar_prefetch = 0 : i64, scratch_operands = 0 : i64, tpu.core_type = #tpu.core_type<tc>, window_params = [{transform_indices = @transform_0, window_bounds = array<i64: 2, 16>}, {transform_indices = @transform_1, window_bounds = array<i64: 2, 16>}, {pipeline_mode = #tpu.pipeline_mode<synchronous>, transform_indices = @transform_2, window_bounds = array<i64: 16, 32>}, {pipeline_mode = #tpu.pipeline_mode<synchronous>, transform_indices = @transform_3, window_bounds = array<i64: 16, 32>}, {pipeline_mode = #tpu.pipeline_mode<synchronous>, transform_indices = @transform_4, window_bounds = array<i64: 1, 32>}, {transform_indices = @transform_5, window_bounds = array<i64: 2, 32>}]} {
    %c0 = arith.constant 0 : index
    %c0_0 = arith.constant 0 : index
    %0 = vector.load %arg1[%c0, %c0_0] : memref<2x16xf32, #tpu.memory_space<vmem>>, vector<2x16xf32>
    %1 = arith.truncf %0 : vector<2x16xf32> to vector<2x16xbf16>
    %c0_1 = arith.constant 0 : index
    %c0_2 = arith.constant 0 : index
    %2 = vector.load %arg2[%c0_1, %c0_2] : memref<2x16xf32, #tpu.memory_space<vmem>>, vector<2x16xf32>
    %3 = arith.truncf %2 : vector<2x16xf32> to vector<2x16xbf16>
    %c0_3 = arith.constant 0 : index
    %c0_4 = arith.constant 0 : index
    %4 = vector.load %arg3[%c0_3, %c0_4] : memref<16x32xbf16, #tpu.memory_space<vmem>>, vector<16x32xbf16>
    %cst = arith.constant dense<0.000000e+00> : vector<2x32xf32>
    %5 = tpu.matmul %1, %4, %cst {dimension_numbers = #tpu.dot_dimension_numbers<[1], [0], [0], [1], [0, 0, 1, 1], [], []>} : vector<2x16xbf16>, vector<16x32xbf16>, vector<2x32xf32> -> vector<2x32xf32>
    %c0_5 = arith.constant 0 : index
    %c0_6 = arith.constant 0 : index
    %6 = vector.load %arg4[%c0_5, %c0_6] : memref<16x32xbf16, #tpu.memory_space<vmem>>, vector<16x32xbf16>
    %cst_7 = arith.constant dense<0.000000e+00> : vector<2x32xf32>
    %7 = tpu.matmul %3, %6, %cst_7 {dimension_numbers = #tpu.dot_dimension_numbers<[1], [0], [0], [1], [0, 0, 1, 1], [], []>} : vector<2x16xbf16>, vector<16x32xbf16>, vector<2x32xf32> -> vector<2x32xf32>
    %8 = arith.addf %5, %7 : vector<2x32xf32>
    %c0_8 = arith.constant 0 : index
    %c0_9 = arith.constant 0 : index
    %9 = vector.load %arg5[%c0_8, %c0_9] : memref<1x32xf32, #tpu.memory_space<vmem>>, vector<1x32xf32>
    %10 = vector.broadcast %9 : vector<1x32xf32> to vector<2x32xf32>
    %11 = arith.addf %8, %10 : vector<2x32xf32>
    %c0_10 = arith.constant 0 : index
    %c0_11 = arith.constant 0 : index
    %12 = vector.load %arg6[%c0_10, %c0_11] : memref<2x32xf32, #tpu.memory_space<vmem>>, vector<2x32xf32>
    tpu.vector_store %arg6[%c0_10, %c0_11], %11 {strides = array<i32>} : memref<2x32xf32, #tpu.memory_space<vmem>>, vector<2x32xf32>,
    return
  }
  func.func @transform_0(%arg0: i32) -> (i32, i32) {
    %c0_i32 = arith.constant 0 : i32
    %c0_i32_0 = arith.constant 0 : i32
    return %arg0, %c0_i32 : i32, i32
  }
  func.func @transform_1(%arg0: i32) -> (i32, i32) {
    %c0_i32 = arith.constant 0 : i32
    %c0_i32_0 = arith.constant 0 : i32
    return %arg0, %c0_i32 : i32, i32
  }
  func.func @transform_2(%arg0: i32) -> (i32, i32) {
    %c0_i32 = arith.constant 0 : i32
    %c0_i32_0 = arith.constant 0 : i32
    %c0_i32_1 = arith.constant 0 : i32
    return %c0_i32, %c0_i32_0 : i32, i32
  }
  func.func @transform_3(%arg0: i32) -> (i32, i32) {
    %c0_i32 = arith.constant 0 : i32
    %c0_i32_0 = arith.constant 0 : i32
    %c0_i32_1 = arith.constant 0 : i32
    return %c0_i32, %c0_i32_0 : i32, i32
  }
  func.func @transform_4(%arg0: i32) -> (i32, i32) {
    %c0_i32 = arith.constant 0 : i32
    %c0_i32_0 = arith.constant 0 : i32
    %c0_i32_1 = arith.constant 0 : i32
    return %c0_i32, %c0_i32_0 : i32, i32
  }
  func.func @transform_5(%arg0: i32) -> (i32, i32) {
    %c0_i32 = arith.constant 0 : i32
    %c0_i32_0 = arith.constant 0 : i32
    return %arg0, %c0_i32 : i32, i32
  }
}

module attributes {stable_mosaic.version = 11 : i64} {
  func.func @_final_bn_lrelu_kernel(%arg0: i32, %arg1: memref<16x16xf32, #tpu.memory_space<vmem>>, %arg2: memref<16x16xf32, #tpu.memory_space<vmem>>, %arg3: memref<1x16xf32, #tpu.memory_space<vmem>>, %arg4: memref<1x16xf32, #tpu.memory_space<vmem>>, %arg5: memref<1x16xf32, #tpu.memory_space<vmem>>, %arg6: memref<1x16xf32, #tpu.memory_space<vmem>>, %arg7: memref<16x32xf32, #tpu.memory_space<vmem>>) attributes {dimension_semantics = [#tpu.dimension_semantics<parallel>], iteration_bounds = array<i64: 1>, scalar_prefetch = 0 : i64, scratch_operands = 0 : i64, tpu.core_type = #tpu.core_type<tc>, window_params = [{transform_indices = @transform_0, window_bounds = array<i64: 16, 16>}, {transform_indices = @transform_1, window_bounds = array<i64: 16, 16>}, {pipeline_mode = #tpu.pipeline_mode<synchronous>, transform_indices = @transform_2, window_bounds = array<i64: 1, 16>}, {pipeline_mode = #tpu.pipeline_mode<synchronous>, transform_indices = @transform_3, window_bounds = array<i64: 1, 16>}, {pipeline_mode = #tpu.pipeline_mode<synchronous>, transform_indices = @transform_4, window_bounds = array<i64: 1, 16>}, {pipeline_mode = #tpu.pipeline_mode<synchronous>, transform_indices = @transform_5, window_bounds = array<i64: 1, 16>}, {transform_indices = @transform_6, window_bounds = array<i64: 16, 32>}]} {
    %c0 = arith.constant 0 : index
    %c0_0 = arith.constant 0 : index
    %0 = vector.load %arg1[%c0, %c0_0] : memref<16x16xf32, #tpu.memory_space<vmem>>, vector<16x16xf32>
    %c0_1 = arith.constant 0 : index
    %c0_2 = arith.constant 0 : index
    %1 = vector.load %arg3[%c0_1, %c0_2] : memref<1x16xf32, #tpu.memory_space<vmem>>, vector<1x16xf32>
    %c0_3 = arith.constant 0 : index
    %c0_4 = arith.constant 0 : index
    %2 = vector.load %arg4[%c0_3, %c0_4] : memref<1x16xf32, #tpu.memory_space<vmem>>, vector<1x16xf32>
    %3 = vector.broadcast %1 : vector<1x16xf32> to vector<16x16xf32>
    %4 = arith.subf %0, %3 : vector<16x16xf32>
    %cst = arith.constant 9.99999974E-6 : f32
    %5 = vector.broadcast %cst : f32 to vector<1x16xf32>
    %6 = arith.addf %2, %5 : vector<1x16xf32>
    %7 = math.rsqrt %6 : vector<1x16xf32>
    %8 = vector.broadcast %7 : vector<1x16xf32> to vector<16x16xf32>
    %9 = arith.mulf %4, %8 : vector<16x16xf32>
    %cst_5 = arith.constant 0.000000e+00 : f32
    %10 = vector.broadcast %cst_5 : f32 to vector<16x16xf32>
    %11 = arith.cmpf oge, %9, %10 : vector<16x16xf32>
    %cst_6 = arith.constant 0.00999999977 : f32
    %12 = vector.broadcast %cst_6 : f32 to vector<16x16xf32>
    %13 = arith.mulf %12, %9 : vector<16x16xf32>
    %14 = arith.select %11, %9, %13 : vector<16x16xi1>, vector<16x16xf32>
    %c0_7 = arith.constant 0 : index
    %c0_8 = arith.constant 0 : index
    %15 = vector.load %arg2[%c0_7, %c0_8] : memref<16x16xf32, #tpu.memory_space<vmem>>, vector<16x16xf32>
    %c0_9 = arith.constant 0 : index
    %c0_10 = arith.constant 0 : index
    %16 = vector.load %arg5[%c0_9, %c0_10] : memref<1x16xf32, #tpu.memory_space<vmem>>, vector<1x16xf32>
    %c0_11 = arith.constant 0 : index
    %c0_12 = arith.constant 0 : index
    %17 = vector.load %arg6[%c0_11, %c0_12] : memref<1x16xf32, #tpu.memory_space<vmem>>, vector<1x16xf32>
    %18 = vector.broadcast %16 : vector<1x16xf32> to vector<16x16xf32>
    %19 = arith.subf %15, %18 : vector<16x16xf32>
    %cst_13 = arith.constant 9.99999974E-6 : f32
    %20 = vector.broadcast %cst_13 : f32 to vector<1x16xf32>
    %21 = arith.addf %17, %20 : vector<1x16xf32>
    %22 = math.rsqrt %21 : vector<1x16xf32>
    %23 = vector.broadcast %22 : vector<1x16xf32> to vector<16x16xf32>
    %24 = arith.mulf %19, %23 : vector<16x16xf32>
    %cst_14 = arith.constant 0.000000e+00 : f32
    %25 = vector.broadcast %cst_14 : f32 to vector<16x16xf32>
    %26 = arith.cmpf oge, %24, %25 : vector<16x16xf32>
    %cst_15 = arith.constant 0.00999999977 : f32
    %27 = vector.broadcast %cst_15 : f32 to vector<16x16xf32>
    %28 = arith.mulf %27, %24 : vector<16x16xf32>
    %29 = arith.select %26, %24, %28 : vector<16x16xi1>, vector<16x16xf32>
    %30 = tpu.concatenate %14, %29 in 1 : vector<16x16xf32>, vector<16x16xf32> -> vector<16x32xf32>
    %c0_16 = arith.constant 0 : index
    %c0_17 = arith.constant 0 : index
    %31 = vector.load %arg7[%c0_16, %c0_17] : memref<16x32xf32, #tpu.memory_space<vmem>>, vector<16x32xf32>
    tpu.vector_store %arg7[%c0_16, %c0_17], %30 {strides = array<i32>} : memref<16x32xf32, #tpu.memory_space<vmem>>, vector<16x32xf32>,
    return
  }
  func.func @transform_0(%arg0: i32) -> (i32, i32) {
    %c0_i32 = arith.constant 0 : i32
    %c0_i32_0 = arith.constant 0 : i32
    return %arg0, %c0_i32 : i32, i32
  }
  func.func @transform_1(%arg0: i32) -> (i32, i32) {
    %c0_i32 = arith.constant 0 : i32
    %c0_i32_0 = arith.constant 0 : i32
    return %arg0, %c0_i32 : i32, i32
  }
  func.func @transform_2(%arg0: i32) -> (i32, i32) {
    %c0_i32 = arith.constant 0 : i32
    %c0_i32_0 = arith.constant 0 : i32
    %c0_i32_1 = arith.constant 0 : i32
    return %c0_i32, %c0_i32_0 : i32, i32
  }
  func.func @transform_3(%arg0: i32) -> (i32, i32) {
    %c0_i32 = arith.constant 0 : i32
    %c0_i32_0 = arith.constant 0 : i32
    %c0_i32_1 = arith.constant 0 : i32
    return %c0_i32, %c0_i32_0 : i32, i32
  }
  func.func @transform_4(%arg0: i32) -> (i32, i32) {
    %c0_i32 = arith.constant 0 : i32
    %c0_i32_0 = arith.constant 0 : i32
    %c0_i32_1 = arith.constant 0 : i32
    return %c0_i32, %c0_i32_0 : i32, i32
  }
  func.func @transform_5(%arg0: i32) -> (i32, i32) {
    %c0_i32 = arith.constant 0 : i32
    %c0_i32_0 = arith.constant 0 : i32
    %c0_i32_1 = arith.constant 0 : i32
    return %c0_i32, %c0_i32_0 : i32, i32
  }
  func.func @transform_6(%arg0: i32) -> (i32, i32) {
    %c0_i32 = arith.constant 0 : i32
    %c0_i32_0 = arith.constant 0 : i32
    return %arg0, %c0_i32 : i32, i32
  }
}

</mosaic_0001>

<bundles_post_ra>
// kernel: encoder_forward.6
= control target key start
LH: loop header
LB: loop body
LE: loop exit
PB: predicated region body
PF: predicated region fallthrough
CT: control target
= control target key end

     0   :  { %vm35_vm0 = vcmask 1041408   ;;  %vm31_vm1 = vcmask 31744   ;;  %vm55_vm2 = vcmask 388096   ;;  %s161_s1 = inlined_call_operand.vmem [shape: bf16[4,48], index: 1, kind: input, shape index: {}]   ;;  %s162_s2 = inlined_call_operand.vmem [shape: bf16[4,48], index: 2, kind: input, shape index: {}]   ;;  %s163_s0 = inlined_call_operand.vmem [shape: f32[16,4], index: 0, kind: input, shape index: {}]   ;;  %s164_s3 = inlined_call_operand.vmem [shape: f32[1,48], index: 3, kind: input, shape index: {}]   ;;  %s165_s4 = inlined_call_operand.vmem [shape: f32[1,48], index: 4, kind: input, shape index: {}]   ;;  %s166_s5 = inlined_call_operand.vmem [shape: bf16[16,48], index: 5, kind: output, shape index: {0}]   ;;  %s167_s6 = inlined_call_operand.vmem [shape: bf16[16,48], index: 6, kind: output, shape index: {1}]  }
   0x1   :  { %v26_v0 = vld [vmem:[%s161_s1] sm:$0x3]  ;;  %v24_v5 = vld [vmem:[%s163_s0 + $0x8] sm:$0xff] }
   0x2   :  { %v58_v1 = vld [vmem:[%s162_s2] sm:$0x3]  ;;  %v37_v3 = vsel %vm35_vm0, %v26_v0, 0 }
   0x3   :  { %v23_v2 = vld [vmem:[%s163_s0] sm:$0xff]  ;;  %v64_v4 = vsel %vm35_vm0, %v58_v1, 0  ;;  %46 = vmatpush.bf16.msra.mxu0 %v37_v3 }
   0x4   :  { %73 = vmatpush.bf16.msra.mxu1 %v64_v4  ;;  %v25_v6 = vpack.c.bf16 %v24_v5, %v23_v2  ;;  %v94_v7 = vld [vmem:[%s164_s3] ss:$0 sm:$0xff] }
   0x5   :  { %v95_v8 = vld [vmem:[%s165_s4] ss:$0 sm:$0xff] }
   0x6   :  { %92 = vmatmul.msk.bf16.vlgmr.msra.gmra.mxu0 %vm31_vm1, %v25_v6 }
   0x7   :  { %93 = vmatmul.msk.bf16.vlgmr.msra.gmra.mxu1 %vm31_vm1, %v25_v6 }
  0x83   :  { %v48_v9 = vpop.f32.mrf.mxu0 }
  0x84   :  { %v75_v10 = vpop.f32.mrf.mxu1  ;;  %v49_v11 = vadd.f32 %v94_v7, %v48_v9 }
  0x85   :  { %v76_v12 = vadd.f32 %v95_v8, %v75_v10 }
  0x86   :  { %v53_v13 = vpack.c.bf16 %v49_v11, %v49_v11 }
  0x87   :  { %v80_v14 = vpack.c.bf16 %v76_v12, %v76_v12 }
  0x88   :  { %56 = vst.msk [vmem:[%s166_s5] sm:$0xf] %vm55_vm2, %v53_v13 }
  0x89   :  { %82 = vst.msk [vmem:[%s167_s6] sm:$0xf] %vm55_vm2, %v80_v14 }
  0x8b   :  { %v50_v15 = vpop.f32.mrf.mxu0 }
  0x8c   :  { %v77_v16 = vpop.f32.mrf.mxu1  ;;  %v51_v17 = vadd.f32 %v94_v7, %v50_v15 }
  0x8d   :  { %v78_v18 = vadd.f32 %v95_v8, %v77_v16 }
  0x8e   :  { %v54_v19 = vpack.c.bf16 %v51_v17, %v51_v17 }
  0x8f   :  { %v81_v20 = vpack.c.bf16 %v78_v18, %v78_v18 }
  0x90   :  { %57 = vst.msk [vmem:[%s166_s5 + $0x4] sm:$0xf] %vm55_vm2, %v54_v19 }
  0x91   :  { %83 = vst.msk [vmem:[%s167_s6 + $0x4] sm:$0xf] %vm55_vm2, %v81_v20 }

// kernel: encoder_forward.8
= control target key start
LH: loop header
LB: loop body
LE: loop exit
PB: predicated region body
PF: predicated region fallthrough
CT: control target
= control target key end

     0   :  { %vm108_vm10 = vcmask 130048   ;;  %vm132_vm11 = vcmask 261120   ;;  %vm152_vm12 = vcmask 388096   ;;  %s352_s4 = inlined_call_operand.vmem [shape: f32[1,16], index: 4, kind: input, shape index: {}]   ;;  %s353_s5 = inlined_call_operand.vmem [shape: f32[1,16], index: 5, kind: input, shape index: {}]   ;;  %s354_s6 = inlined_call_operand.vmem [shape: bf16[32,48], index: 6, kind: input, shape index: {}]   ;;  %s355_s7 = inlined_call_operand.vmem [shape: bf16[32,48], index: 7, kind: input, shape index: {}]   ;;  %s356_s2 = inlined_call_operand.vmem [shape: f32[1,16], index: 2, kind: input, shape index: {}]   ;;  %s357_s1 = inlined_call_operand.vmem [shape: f32[16,16], index: 1, kind: input, shape index: {}]   ;;  %s358_s8 = inlined_call_operand.vmem [shape: f32[1,48], index: 8, kind: input, shape index: {}]   ;;  %s359_s3 = inlined_call_operand.vmem [shape: f32[1,16], index: 3, kind: input, shape index: {}]   ;;  %s360_s0 = inlined_call_operand.vmem [shape: f32[16,16], index: 0, kind: input, shape index: {}]   ;;  %s361_s9 = inlined_call_operand.vmem [shape: f32[1,48], index: 9, kind: input, shape index: {}]   ;;  %s362_s10 = inlined_call_operand.vmem [shape: bf16[16,48], index: 10, kind: output, shape index: {0}]   ;;  %s363_s11 = inlined_call_operand.vmem [shape: bf16[16,48], index: 11, kind: output, shape index: {1}]  }
   0x1   :  { %v72_v0 = vld [vmem:[%s353_s5] sm:$0x1]  ;;  %v220_v1 = vld [vmem:[%s354_s6 + $0x8] sm:$0xff] }
   0x2   :  { %v78_v2 = vadd.f32 1e-05, %v72_v0  ;;  %v222_v3 = vld [vmem:[%s355_s7 + $0x8] sm:$0xff]  ;;  %142 = vmatpush.bf16.msra.mxu0 %v220_v1  ;;  %v229_v8 = vld [vmem:[%s352_s4] ss:$0 sm:$0xff]  ;;  %s237_s4 = smov 16  }
   0x3   :  { %181 = vmatpush.bf16.msra.mxu1 %v222_v3  ;;  %v69_v9 = vld [vmem:[%s357_s1] sm:$0xff]  ;;  %v70_v10 = vld [vmem:[%s357_s1 + $0x8] sm:$0xff] }
   0x4   :  { %233 = vrsqrt.f32 %v78_v2  ;;  %vm85_vm0 = vweird.f32 %v78_v2  ;;  %v76_v13 = vsub.f32 %v69_v9, %v229_v8  ;;  %v77_v14 = vsub.f32 %v70_v10, %v229_v8  ;;  %v41_v24 = vld [vmem:[%s359_s3] sm:$0x1]  ;;  %v39_v36 = vld [vmem:[%s360_s0 + $0x8] sm:$0xff] }
   0x5   :  { %v47_v25 = vadd.f32 1e-05, %v41_v24  ;;  %v219_v28 = vld [vmem:[%s354_s6] sm:$0xff] }
   0x6   :  { %v221_v29 = vld [vmem:[%s355_s7] sm:$0xff]  ;;  %143 = vmatpush.bf16.msra.mxu0 %v219_v28 }
   0x7   :  { %235 = vrsqrt.f32 %v47_v25  ;;  %182 = vmatpush.bf16.msra.mxu1 %v221_v29  ;;  %vm54_vm5 = vweird.f32 %v47_v25  ;;  %v230_v34 = vld [vmem:[%s356_s2] ss:$0 sm:$0xff] }
   0x8   :  { %v38_v35 = vld [vmem:[%s360_s0] sm:$0xff]  ;;  %v46_v39 = vsub.f32 %v39_v36, %v230_v34 }
   0x9   :  { %v45_v38 = vsub.f32 %v38_v35, %v230_v34  ;;  %v231_v53 = vld [vmem:[%s358_s8] ss:$0 sm:$0xff] }
   0xa   :  { %v234_v4 = vpop.eup %233  ;;  %v232_v54 = vld [vmem:[%s361_s9] ss:$0 sm:$0xff] }
   0xb   :  { %v80_v5 = vmul.f32 %v234_v4, %v78_v2  ;;  %vm86_vm1 = vweird.f32 %v234_v4 }
   0xc   :  { %vm87_vm2 = vmor %vm85_vm0, %vm86_vm1 }
   0xd   :  { %v81_v6 = vmul.f32 %v234_v4, %v80_v5  ;;  %v236_v26 = vpop.eup %235 }
   0xe   :  { %v49_v27 = vmul.f32 %v236_v26, %v47_v25  ;;  %vm55_vm6 = vweird.f32 %v236_v26 }
   0xf   :  { %v82_v7 = vmul.f32 0.5, %v81_v6  ;;  %vm56_vm7 = vmor %vm54_vm5, %vm55_vm6 }
  0x10   :  { %v50_v30 = vmul.f32 %v236_v26, %v49_v27 }
  0x11   :  { %v83_v11 = vsub.f32 1.5, %v82_v7 }
  0x12   :  { %v51_v31 = vmul.f32 0.5, %v50_v30 }
  0x13   :  { %v84_v12 = vmul.f32 %v234_v4, %v83_v11 }
  0x14   :  { %v52_v32 = vsub.f32 1.5, %v51_v31 }
  0x15   :  { %v88_v15 = vsel %vm87_vm2, %v234_v4, %v84_v12 }
  0x16   :  { %v90_v16 = vperm.slane %v88_v15, 0  ;;  %v53_v33 = vmul.f32 %v236_v26, %v52_v32 }
  0x18   :  { %v92_v17 = vmul.f32 %v90_v16, %v76_v13  ;;  %v93_v18 = vmul.f32 %v90_v16, %v77_v14  ;;  %v57_v37 = vsel %vm56_vm7, %v236_v26, %v53_v33 }
  0x19   :  { %v59_v40 = vperm.slane %v57_v37, 0 }
  0x1a   :  { %vm94_vm3 = vcmp.ge.f32.partialorder %v92_v17, 0.0  ;;  %vm95_vm4 = vcmp.ge.f32.partialorder %v93_v18, 0.0  ;;  %v96_v19 = vmul.f32 0.01, %v92_v17  ;;  %v97_v20 = vmul.f32 0.01, %v93_v18 }
  0x1b   :  { %v61_v41 = vmul.f32 %v59_v40, %v45_v38  ;;  %v62_v42 = vmul.f32 %v59_v40, %v46_v39 }
  0x1c   :  { %v98_v21 = vsel %vm94_vm3, %v92_v17, %v96_v19  ;;  %v99_v22 = vsel %vm95_vm4, %v93_v18, %v97_v20 }
  0x1d   :  { %v224_v23 = vpack.i.bf16 %v99_v22, %v98_v21  ;;  %v65_v43 = vmul.f32 0.01, %v61_v41  ;;  %v66_v44 = vmul.f32 0.01, %v62_v42  ;;  %vm63_vm8 = vcmp.ge.f32.partialorder %v61_v41, 0.0 }
  0x1e   :  { %vm64_vm9 = vcmp.ge.f32.partialorder %v62_v42, 0.0 }
  0x1f   :  { %225 = vrot.lane.b32.xlu0 %v224_v23, %s237_s4  ;;  %v67_v46 = vsel %vm63_vm8, %v61_v41, %v65_v43  ;;  %v68_v47 = vsel %vm64_vm9, %v62_v42, %v66_v44 }
  0x91   :  { %v226_v45 = vpop.permute.xlu0 %225 }
  0x92   :  { %v228_v48 = vunpack.i.h.bf16 %v226_v45  ;;  %v227_v49 = vunpack.i.l.bf16 %v226_v45 }
  0x94   :  { %v109_v50 = vsel %vm108_vm10, %v67_v46, %v227_v49  ;;  %v110_v51 = vsel %vm108_vm10, %v68_v47, %v228_v48 }
  0x95   :  { %v111_v52 = vpack.c.bf16 %v110_v51, %v109_v50 }
  0x97   :  { %209 = vmatmul.msk.bf16.vlgmr.msra.gmra.mxu0 %vm132_vm11, %v111_v52  ;;  %218 = vmatmul.msk.bf16.vlgmr.msra.gmra.mxu1 %vm132_vm11, %v111_v52 }
 0x114   :  { %v145_v55 = vpop.f32.mrf.mxu0  ;;  %v184_v56 = vpop.f32.mrf.mxu1 }
 0x115   :  { %v146_v57 = vadd.f32 %v231_v53, %v145_v55  ;;  %v185_v58 = vadd.f32 %v232_v54, %v184_v56 }
 0x117   :  { %v150_v59 = vpack.c.bf16 %v146_v57, %v146_v57  ;;  %v189_v60 = vpack.c.bf16 %v185_v58, %v185_v58 }
 0x119   :  { %153 = vst.msk [vmem:[%s362_s10] sm:$0xf] %vm152_vm12, %v150_v59 }
 0x11a   :  { %191 = vst.msk [vmem:[%s363_s11] sm:$0xf] %vm152_vm12, %v189_v60 }
 0x11c   :  { %v147_v61 = vpop.f32.mrf.mxu0  ;;  %v186_v62 = vpop.f32.mrf.mxu1 }
 0x11d   :  { %v148_v63 = vadd.f32 %v231_v53, %v147_v61  ;;  %v187_v0 = vadd.f32 %v232_v54, %v186_v62 }
 0x11f   :  { %v151_v1 = vpack.c.bf16 %v148_v63, %v148_v63  ;;  %v190_v2 = vpack.c.bf16 %v187_v0, %v187_v0 }
 0x121   :  { %154 = vst.msk [vmem:[%s362_s10 + $0x4] sm:$0xf] %vm152_vm12, %v151_v1 }
 0x122   :  { %192 = vst.msk [vmem:[%s363_s11 + $0x4] sm:$0xf] %vm152_vm12, %v190_v2 }

// kernel: encoder_forward.11
= control target key start
LH: loop header
LB: loop body
LE: loop exit
PB: predicated region body
PF: predicated region fallthrough
CT: control target
= control target key end

     0   :  { %s187_s0 = inlined_call_operand.vmem [shape: f32[2,16], index: 0, kind: input, shape index: {}]   ;;  %s188_s1 = inlined_call_operand.vmem [shape: f32[2,16], index: 1, kind: input, shape index: {}]   ;;  %s189_s2 = inlined_call_operand.vmem [shape: bf16[16,32], index: 2, kind: input, shape index: {}]   ;;  %s190_s3 = inlined_call_operand.vmem [shape: bf16[16,32], index: 3, kind: input, shape index: {}]   ;;  %s191_s4 = inlined_call_operand.vmem [shape: f32[1,32], index: 4, kind: input, shape index: {}]   ;;  %s192_s5 = inlined_call_operand.hbm [shape: f32[2,32], index: 5, kind: output, shape index: {}]  }
   0x1   :  { %v109_v0 = vld [vmem:[%s190_s3] sm:$0xff] }
   0x2   :  { %v108_v1 = vld [vmem:[%s189_s2] sm:$0xff] }
   0x3   :  { %v24_v2 = vld [vmem:[%s188_s1] sm:$0x3] }
   0x4   :  { %v25_v3 = vpack.c.bf16 %v24_v2, %v24_v2  ;;  %v22_v4 = vld [vmem:[%s187_s0] sm:$0x3] }
   0x5   :  { %10 = vsyncpa [#allocation3], 0  ;;  %47 = vmatpush.bf16.msra.mxu0 %v109_v0  ;;  %69 = vmatpush.bf16.msra.mxu1 %v108_v1  ;;  %vm36_vm0 = vcmask 130048   ;;  %v23_v5 = vpack.c.bf16 %v22_v4, %v22_v4  ;;  %v111_v6 = vld [vmem:[%s191_s4] ss:$0 sm:$0xff]  ;;  %s138_s2 = smov [#allocation2]  }
   0x6   :  { %s87_s1 = sshll.u32 %s138_s2, 4  ;;  %s89_s29 = sshll.u32 %s192_s5, 4  ;;  %vm80_vm1 = vcmask 254976   ;;  %s88_s1 = int_to_ptr.vmem [resolvable:$true] %s87_s1  ;;  %s90_s29 = int_to_ptr.hbm [resolvable:$true] %s89_s29 }
   0x8   :  { %102 = vmatmul.msk.bf16.vlgmr.msra.gmra.mxu0 %vm36_vm0, %v25_v3  ;;  %107 = vmatmul.msk.bf16.vlgmr.msra.gmra.mxu1 %vm36_vm0, %v23_v5 }
  0x85   :  { %v49_v7 = vpop.f32.mrf.mxu0  ;;  %v71_v8 = vpop.f32.mrf.mxu1 }
  0x86   :  { %v72_v9 = vadd.f32 %v71_v8, %v49_v7 }
  0x88   :  { %v79_v10 = vadd.f32 %v111_v6, %v72_v9 }
  0x8a   :  { %81 = vst.msk [vmem:[#allocation2] sm:$0x3] %vm80_vm1, %v79_v10 }
  0x8b   :  { %92 = dma.vmem_to_hbm [thread:$0]  %s88_s1, 32, %s90_s29, [#allocation3]  }
  0x8d   :  { %v51_v11 = vpop.f32.mrf.mxu0  ;;  %v73_v12 = vpop.f32.mrf.mxu1 }
  0x8e   :  { %136 = dma.done.wait [#allocation3], 32  }
  0x8f   :  { %137 = vsyncadd [#allocation3], 4294967264 }
  0x90   :  { %97 = vsyncpa [#allocation3], 1 }

// kernel: encoder_forward.10
= control target key start
LH: loop header
LB: loop body
LE: loop exit
PB: predicated region body
PF: predicated region fallthrough
CT: control target
= control target key end

     0   :  { %vm93_vm9 = vcmask 130048   ;;  %vm96_vm10 = vcmask 261120   ;;  %s176_s4 = inlined_call_operand.vmem [shape: f32[1,16], index: 4, kind: input, shape index: {}]   ;;  %s177_s5 = inlined_call_operand.vmem [shape: f32[1,16], index: 5, kind: input, shape index: {}]   ;;  %s178_s2 = inlined_call_operand.vmem [shape: f32[1,16], index: 2, kind: input, shape index: {}]   ;;  %s179_s1 = inlined_call_operand.vmem [shape: f32[16,16], index: 1, kind: input, shape index: {}]   ;;  %s180_s3 = inlined_call_operand.vmem [shape: f32[1,16], index: 3, kind: input, shape index: {}]   ;;  %s181_s0 = inlined_call_operand.vmem [shape: f32[16,16], index: 0, kind: input, shape index: {}]   ;;  %s182_s6 = inlined_call_operand.vmem [shape: f32[16,32], index: 6, kind: output, shape index: {}]  }
   0x1   :  { %v57_v0 = vld [vmem:[%s177_s5] sm:$0x1]  ;;  %v55_v10 = vld [vmem:[%s179_s1 + $0x8] sm:$0xff] }
   0x2   :  { %v63_v1 = vadd.f32 1e-05, %v57_v0  ;;  %v104_v6 = vld [vmem:[%s176_s4] ss:$0 sm:$0xff]  ;;  %s110_s4 = smov 16   ;;  %v24_v35 = vld [vmem:[%s181_s0 + $0x8] sm:$0xff] }
   0x3   :  { %v54_v7 = vld [vmem:[%s179_s1] sm:$0xff]  ;;  %v62_v14 = vsub.f32 %v55_v10, %v104_v6 }
   0x4   :  { %106 = vrsqrt.f32 %v63_v1  ;;  %vm70_vm0 = vweird.f32 %v63_v1  ;;  %v61_v11 = vsub.f32 %v54_v7, %v104_v6  ;;  %v26_v21 = vld [vmem:[%s180_s3] sm:$0x1] }
   0x5   :  { %v32_v22 = vadd.f32 1e-05, %v26_v21  ;;  %v105_v29 = vld [vmem:[%s178_s2] ss:$0 sm:$0xff] }
   0x6   :  { %v23_v31 = vld [vmem:[%s181_s0] sm:$0xff]  ;;  %v31_v37 = vsub.f32 %v24_v35, %v105_v29 }
   0x7   :  { %108 = vrsqrt.f32 %v32_v22  ;;  %vm39_vm5 = vweird.f32 %v32_v22  ;;  %v30_v33 = vsub.f32 %v23_v31, %v105_v29 }
   0xa   :  { %v107_v2 = vpop.eup %106 }
   0xb   :  { %v65_v3 = vmul.f32 %v107_v2, %v63_v1  ;;  %vm71_vm1 = vweird.f32 %v107_v2 }
   0xc   :  { %vm72_vm2 = vmor %vm70_vm0, %vm71_vm1 }
   0xd   :  { %v66_v4 = vmul.f32 %v107_v2, %v65_v3  ;;  %v109_v23 = vpop.eup %108 }
   0xe   :  { %v34_v24 = vmul.f32 %v109_v23, %v32_v22  ;;  %vm40_vm6 = vweird.f32 %v109_v23 }
   0xf   :  { %v67_v5 = vmul.f32 0.5, %v66_v4  ;;  %vm41_vm7 = vmor %vm39_vm5, %vm40_vm6 }
  0x10   :  { %v35_v25 = vmul.f32 %v109_v23, %v34_v24 }
  0x11   :  { %v68_v8 = vsub.f32 1.5, %v67_v5 }
  0x12   :  { %v36_v26 = vmul.f32 0.5, %v35_v25 }
  0x13   :  { %v69_v9 = vmul.f32 %v107_v2, %v68_v8 }
  0x14   :  { %v37_v27 = vsub.f32 1.5, %v36_v26 }
  0x15   :  { %v73_v12 = vsel %vm72_vm2, %v107_v2, %v69_v9 }
  0x16   :  { %v75_v13 = vperm.slane %v73_v12, 0  ;;  %v38_v28 = vmul.f32 %v109_v23, %v37_v27 }
  0x18   :  { %v77_v15 = vmul.f32 %v75_v13, %v61_v11  ;;  %v78_v17 = vmul.f32 %v75_v13, %v62_v14  ;;  %v42_v30 = vsel %vm41_vm7, %v109_v23, %v38_v28 }
  0x19   :  { %v44_v32 = vperm.slane %v42_v30, 0 }
  0x1a   :  { %vm79_vm3 = vcmp.ge.f32.partialorder %v77_v15, 0.0  ;;  %v81_v16 = vmul.f32 0.01, %v77_v15  ;;  %v82_v19 = vmul.f32 0.01, %v78_v17  ;;  %vm80_vm4 = vcmp.ge.f32.partialorder %v78_v17, 0.0 }
  0x1b   :  { %v46_v34 = vmul.f32 %v44_v32, %v30_v33  ;;  %v47_v39 = vmul.f32 %v44_v32, %v31_v37 }
  0x1c   :  { %v83_v18 = vsel %vm79_vm3, %v77_v15, %v81_v16  ;;  %v84_v20 = vsel %vm80_vm4, %v78_v17, %v82_v19 }
  0x1d   :  { %87 = vrot.lane.b32.xlu0 %v83_v18, %s110_s4  ;;  %v50_v36 = vmul.f32 0.01, %v46_v34  ;;  %vm48_vm8 = vcmp.ge.f32.partialorder %v46_v34, 0.0  ;;  %v51_v42 = vmul.f32 0.01, %v47_v39  ;;  %vm49_vm11 = vcmp.ge.f32.partialorder %v47_v39, 0.0 }
  0x1f   :  { %v52_v38 = vsel %vm48_vm8, %v46_v34, %v50_v36  ;;  %v53_v43 = vsel %vm49_vm11, %v47_v39, %v51_v42 }
  0x25   :  { %89 = vrot.lane.b32.xlu0 %v84_v20, %s110_s4 }
  0x8f   :  { %v88_v40 = vpop.permute.xlu0 %87 }
  0x90   :  { %v94_v41 = vsel %vm93_vm9, %v52_v38, %v88_v40 }
  0x91   :  { %97 = vst.msk [vmem:[%s182_s6] sm:$0xff] %vm96_vm10, %v94_v41 }
  0x97   :  { %v90_v44 = vpop.permute.xlu0 %89 }
  0x98   :  { %v95_v45 = vsel %vm93_vm9, %v53_v43, %v90_v44 }
  0x99   :  { %98 = vst.msk [vmem:[%s182_s6 + $0x8] sm:$0xff] %vm96_vm10, %v95_v45 }

// kernel: encoder_forward.9
= control target key start
LH: loop header
LB: loop body
LE: loop exit
PB: predicated region body
PF: predicated region fallthrough
CT: control target
= control target key end

     0   :  { %vm69_vm0 = vcmask 123904   ;;  %vm72_vm1 = vcmask 122880   ;;  %v1741_v2 = vmov 0.0   ;;  %vm100_vm2 = vcmask 130048   ;;  %s1742_s20 = smov 96   ;;  %s1743_s27 = smov 32   ;;  %s2394_s2 = inlined_call_operand.vmem [shape: bf16[16,48], index: 2, kind: input, shape index: {}]   ;;  %s2395_s3 = inlined_call_operand.vmem [shape: bf16[16,48], index: 3, kind: input, shape index: {}]   ;;  %s2396_s10 = inlined_call_operand.vmem [shape: f32[1,16], index: 10, kind: output, shape index: {4}]   ;;  %s2397_s11 = inlined_call_operand.vmem [shape: f32[1,16], index: 11, kind: output, shape index: {5}]   ;;  %s2398_s4 = inlined_call_operand.vmem [shape: f32[1,48], index: 4, kind: input, shape index: {}]   ;;  %s2399_s12 = inlined_call_operand.vmem [shape: f32[1,16], index: 12, kind: output, shape index: {6}]   ;;  %s2400_s13 = inlined_call_operand.vmem [shape: f32[1,16], index: 13, kind: output, shape index: {7}]   ;;  %s2401_s5 = inlined_call_operand.vmem [shape: f32[1,48], index: 5, kind: input, shape index: {}]   ;;  %s2402_s0 = inlined_call_operand.vmem [shape: bf16[8,2,48], index: 0, kind: input, shape index: {}]   ;;  %s2403_s1 = inlined_call_operand.vmem [shape: bf16[8,2,48], index: 1, kind: input, shape index: {}]   ;;  %s2404_s6 = inlined_call_operand.vmem [shape: f32[8,2,16], index: 6, kind: output, shape index: {0}]   ;;  %s2405_s7 = inlined_call_operand.vmem [shape: f32[8,2,16], index: 7, kind: output, shape index: {1}]   ;;  %s2406_s8 = inlined_call_operand.vmem [shape: f32[2,16], index: 8, kind: output, shape index: {2}]   ;;  %s2407_s9 = inlined_call_operand.vmem [shape: f32[2,16], index: 9, kind: output, shape index: {3}]  }
   0x1   :  { %v1819_v0 = vld [vmem:[%s2394_s2] sm:$0xff]  ;;  %70 = vst.msk [vmem:[#allocation2] sm:$0x3] %vm69_vm0, %v1741_v2  ;;  %s1744_s28 = smov 16  }
   0x2   :  { %v1824_v1 = vld [vmem:[%s2395_s3] sm:$0xff]  ;;  %73 = vst.msk [vmem:[%s2396_s10] sm:$0x1] %vm72_vm1, %v1741_v2  ;;  %111 = vmatpush.bf16.msra.mxu0 %v1819_v0  ;;  %275 = vmatpush.bf16.msra.mxu2 %v1819_v0  ;;  %s1745_s3 = smov 112  }
   0x3   :  { %185 = vmatpush.bf16.msra.mxu1 %v1824_v1  ;;  %74 = vst.msk [vmem:[%s2397_s11] sm:$0x1] %vm72_vm1, %v1741_v2  ;;  %337 = vmatpush.bf16.msra.mxu3 %v1824_v1  ;;  %v1867_v7 = vld [vmem:[%s2398_s4] ss:$0 sm:$0xff]  ;;  %v1566_v18 = vld [vmem:[%s2403_s1 + $0x7] sm:$0x1] }
   0x4   :  { %75 = vst.msk [vmem:[%s2399_s12] sm:$0x1] %vm72_vm1, %v1741_v2  ;;  %v1874_v10 = vld [vmem:[%s2401_s5] ss:$0 sm:$0xff]  ;;  %v89_v20 = vunpack.c.l.bf16 %v1566_v18 }
   0x5   :  { %76 = vst.msk [vmem:[%s2400_s13] sm:$0x1] %vm72_vm1, %v1741_v2  ;;  %v85_v15 = vld [vmem:[%s2402_s0] sm:$0x1] }
   0x6   :  { %421 = vmatpush.bf16.msrb.mxu0 %v1819_v0  ;;  %71 = vst.msk [vmem:[#allocation3] sm:$0x3] %vm69_vm0, %v1741_v2  ;;  %567 = vmatpush.bf16.msrb.mxu2 %v1819_v0  ;;  %v86_v16 = vunpack.c.l.bf16 %v85_v15 }
   0x7   :  { %483 = vmatpush.bf16.msrb.mxu1 %v1824_v1  ;;  %629 = vmatpush.bf16.msrb.mxu3 %v1824_v1 }
   0x8   :  { %v1852_v3 = vld [vmem:[#allocation2] sm:$0x3] }
   0x9   :  { %v90_v4 = vpack.c.bf16 %v1852_v3, %v1852_v3 }
   0xb   :  { %1571 = vmatmul.msk.bf16.vlgmr.msra.gmra.mxu0 %vm100_vm2, %v90_v4 }
   0xc   :  { %713 = vmatpush.bf16.msra.mxu0 %v1819_v0 }
   0xd   :  { %v1858_v5 = vld [vmem:[#allocation3] sm:$0x3] }
   0xe   :  { %v165_v6 = vpack.c.bf16 %v1858_v5, %v1858_v5 }
  0x10   :  { %1577 = vmatmul.msk.bf16.vlgmr.msra.gmra.mxu1 %vm100_vm2, %v165_v6 }
  0x11   :  { %775 = vmatpush.bf16.msra.mxu1 %v1824_v1 }
  0x88   :  { %v113_v8 = vpop.f32.mrf.mxu0 }
  0x89   :  { %v114_v9 = vadd.f32 %v1867_v7, %v113_v8 }
  0x8b   :  { %138 = vrot.lane.b32.xlu0 %v114_v9, %s1742_s20  ;;  %v117_v17 = vadd.f32 %v114_v9, %v86_v16 }
  0x8d   :  { %v187_v11 = vpop.f32.mrf.mxu1  ;;  %v1572_v19 = vmul.f32 -1.442695, %v117_v17 }
  0x8e   :  { %v188_v13 = vadd.f32 %v1874_v10, %v187_v11 }
  0x8f   :  { %1643 = vpow2.f32 %v1572_v19 }
  0x90   :  { %v115_v12 = vpop.f32.mrf.mxu0  ;;  %v191_v21 = vadd.f32 %v188_v13, %v89_v20 }
  0x92   :  { %v1578_v22 = vmul.f32 -1.442695, %v191_v21 }
  0x93   :  { %212 = vrot.lane.b32.xlu0 %v188_v13, %s1742_s20 }
  0x94   :  { %1645 = vpow2.f32 %v1578_v22  ;;  %v1580_v22 = vld [vmem:[%s2402_s0 + $0x1] sm:$0x1] }
  0x95   :  { %v189_v14 = vpop.f32.mrf.mxu1  ;;  %v1644_v23 = vpop.eup %1643 }
  0x96   :  { %v121_v24 = vadd.f32 1.0, %v1644_v23  ;;  %v257_v23 = vunpack.c.l.bf16 %v1580_v22 }
  0x98   :  { %1647 = vrcp.f32 %v121_v24  ;;  %v133_v35 = vand.u32 2147483648, %v121_v24  ;;  %vm127_vm4 = vweird.f32 %v121_v24  ;;  %v131_v36 = vand.u32 2147483647, %v121_v24 }
  0x9a   :  { %v1646_v25 = vpop.eup %1645  ;;  %v134_v39 = vor.u32 1.1754944e-38, %v133_v35  ;;  %vm132_vm6 = vcmp.eq.f32.partialorder %v131_v36, 8.507059e+37 }
  0x9b   :  { %v195_v26 = vadd.f32 1.0, %v1646_v25  ;;  %v1581_v25 = vld [vmem:[%s2403_s1 + $0x6] sm:$0x1] }
  0x9d   :  { %1649 = vrcp.f32 %v195_v26  ;;  %vm201_vm7 = vweird.f32 %v195_v26  ;;  %v207_v44 = vand.u32 2147483648, %v195_v26  ;;  %v205_v45 = vand.u32 2147483647, %v195_v26 }
  0x9e   :  { %v1648_v27 = vpop.eup %1647 }
  0x9f   :  { %v123_v28 = vmul.f32 %v1648_v27, %v121_v24  ;;  %vm128_vm3 = vweird.f32 %v1648_v27  ;;  %v208_v47 = vor.u32 1.1754944e-38, %v207_v44  ;;  %vm206_vm10 = vcmp.eq.f32.partialorder %v205_v45, 8.507059e+37 }
  0xa0   :  { %vm129_vm5 = vmor %vm127_vm4, %vm128_vm3 }
  0xa1   :  { %v124_v29 = vsub.f32 1.0, %v123_v28 }
  0xa3   :  { %v1650_v30 = vpop.eup %1649  ;;  %v125_v31 = vmul.f32 %v1648_v27, %v124_v29 }
  0xa4   :  { %v197_v32 = vmul.f32 %v1650_v30, %v195_v26  ;;  %vm202_vm8 = vweird.f32 %v1650_v30 }
  0xa5   :  { %v126_v33 = vadd.f32 %v1648_v27, %v125_v31  ;;  %vm203_vm9 = vmor %vm201_vm7, %vm202_vm8 }
  0xa6   :  { %v198_v34 = vsub.f32 1.0, %v197_v32 }
  0xa7   :  { %v130_v37 = vsel %vm129_vm5, %v1648_v27, %v126_v33  ;;  %v260_v27 = vunpack.c.l.bf16 %v1581_v25 }
  0xa8   :  { %v199_v38 = vmul.f32 %v1650_v30, %v198_v34  ;;  %v135_v41 = vsel %vm132_vm6, %v134_v39, %v130_v37 }
  0xaa   :  { %v200_v43 = vadd.f32 %v1650_v30, %v199_v38 }
  0xac   :  { %v204_v46 = vsel %vm203_vm9, %v1650_v30, %v200_v43 }
  0xad   :  { %v209_v49 = vsel %vm206_vm10, %v208_v47, %v204_v46 }
  0xfd   :  { %v139_v40 = vpop.permute.xlu0 %138 }
  0xfe   :  { %v141_v42 = vmul.f32 %v139_v40, %v135_v41 }
 0x100   :  { %143 = vrot.lane.b32.xlu1 %v141_v42, %s1743_s27 }
 0x105   :  { %v213_v48 = vpop.permute.xlu0 %212 }
 0x106   :  { %v215_v50 = vmul.f32 %v213_v48, %v209_v49 }
 0x108   :  { %217 = vrot.lane.b32.xlu1 %v215_v50, %s1743_s27 }
 0x172   :  { %v144_v51 = vpop.permute.xlu1 %143 }
 0x173   :  { %v146_v52 = vadd.f32 %v144_v51, %v86_v16 }
 0x175   :  { %1651 = vtanh.f32 %v146_v52 }
 0x17a   :  { %v218_v53 = vpop.permute.xlu1 %217 }
 0x17b   :  { %v1652_v54 = vpop.eup %1651  ;;  %v220_v55 = vadd.f32 %v218_v53, %v89_v20 }
 0x17c   :  { %149 = vst [vmem:[#allocation1] ss:$4 sm:$0xff] %v1652_v54 }
 0x17d   :  { %1653 = vtanh.f32 %v220_v55 }
 0x183   :  { %v1654_v56 = vpop.eup %1653  ;;  %v150_v57 = vld.sshfl [vmem:[#allocation1] sm:$0xff pattern:$0x73625140] }
 0x184   :  { %223 = vst [vmem:[#allocation1] ss:$4 sm:$0xff] %v1654_v56  ;;  %151 = vrot.lane.b32.xlu2 %v150_v57, %s1742_s20 }
 0x18b   :  { %v224_v58 = vld.sshfl [vmem:[#allocation1] sm:$0xff pattern:$0x73625140] }
 0x18c   :  { %225 = vrot.lane.b32.xlu2 %v224_v58, %s1742_s20 }
 0x1de   :  { %v152_v59 = vpop.permute.xlu2 %151 }
 0x1df   :  { %v154_v60 = vsub.f32 %v1852_v3, %v152_v59 }
 0x1e1   :  { %156 = vrot.lane.b32.xlu0 %v154_v60, %s1744_s28 }
 0x1e6   :  { %v226_v61 = vpop.permute.xlu2 %225 }
 0x1e7   :  { %v228_v62 = vsub.f32 %v1858_v5, %v226_v61 }
 0x1e9   :  { %230 = vrot.lane.b32.xlu1 %v228_v62, %s1744_s28 }
 0x253   :  { %v157_v63 = vpop.permute.xlu0 %156 }
 0x254   :  { %v159_v2 = vmul.f32 %v157_v63, %v135_v41 }
 0x256   :  { %161 = vrot.lane.b32.xlu2 %v159_v2, %s1744_s28 }
 0x25b   :  { %v231_v4 = vpop.permute.xlu1 %230 }
 0x25c   :  { %v233_v6 = vmul.f32 %v231_v4, %v209_v49 }
 0x25e   :  { %235 = vrot.lane.b32.xlu0 %v233_v6, %s1744_s28 }
 0x2b0   :  { %v162_v8 = vpop.permute.xlu2 %161 }
 0x2b1   :  { %v1894_v9 = vadd.f32 %v1652_v54, %v162_v8 }
 0x2b3   :  { %240 = vst [vmem:[#allocation1] ss:$4 sm:$0xff] %v1894_v9  ;;  %v261_v3 = vpack.c.bf16 %v1894_v9, %v1894_v9 }
 0x2b5   :  { %263 = vrot.lane.b32.xlu1 %v261_v3, %s1742_s20 }
 0x2ba   :  { %v1902_v12 = vld.sshfl [vmem:[#allocation1] sm:$0xff pattern:$0x73625140] }
 0x2d0   :  { %v236_v5 = vpop.permute.xlu0 %235 }
 0x2d1   :  { %v1900_v11 = vadd.f32 %v1654_v56, %v236_v5 }
 0x2d3   :  { %248 = vst [vmem:[#allocation1] ss:$4 sm:$0xff] %v1900_v11  ;;  %v323_v13 = vpack.c.bf16 %v1900_v11, %v1900_v11 }
 0x2d5   :  { %325 = vrot.lane.b32.xlu2 %v323_v13, %s1742_s20 }
 0x327   :  { %v264_v14 = vpop.permute.xlu1 %263 }
 0x328   :  { %1582 = vmatmul.msk.bf16.vlgmr.msra.gmra.mxu2 %vm100_vm2, %v264_v14  ;;  %v1932_v14 = vld.sshfl [vmem:[#allocation1] sm:$0xff pattern:$0x73625140] }
 0x329   :  { %859 = vmatpush.bf16.msra.mxu2 %v1819_v0 }
 0x32f   :  { %v326_v15 = vpop.permute.xlu2 %325 }
 0x330   :  { %1584 = vmatmul.msk.bf16.vlgmr.msra.gmra.mxu3 %vm100_vm2, %v326_v15 }
 0x331   :  { %921 = vmatpush.bf16.msra.mxu3 %v1824_v1 }
 0x3ab   :  { %v277_v16 = vpop.f32.mrf.mxu2 }
 0x3ac   :  { %v278_v17 = vadd.f32 %v1867_v7, %v277_v16 }
 0x3ae   :  { %302 = vrot.lane.b32.xlu0 %v278_v17, %s1742_s20  ;;  %v281_v24 = vadd.f32 %v278_v17, %v257_v23 }
 0x3b0   :  { %v1583_v26 = vmul.f32 -1.442695, %v281_v24 }
 0x3b2   :  { %1655 = vpow2.f32 %v1583_v26 }
 0x3b3   :  { %v279_v18 = vpop.f32.mrf.mxu2  ;;  %v339_v19 = vpop.f32.mrf.mxu3 }
 0x3b4   :  { %v340_v20 = vadd.f32 %v1874_v10, %v339_v19 }
 0x3b6   :  { %364 = vrot.lane.b32.xlu1 %v340_v20, %s1742_s20  ;;  %v343_v28 = vadd.f32 %v340_v20, %v260_v27 }
 0x3b8   :  { %v1585_v29 = vmul.f32 -1.442695, %v343_v28  ;;  %v1656_v30 = vpop.eup %1655 }
 0x3b9   :  { %v285_v31 = vadd.f32 1.0, %v1656_v30  ;;  %v1589_v30 = vld [vmem:[%s2403_s1 + $0x5] sm:$0x1] }
 0x3ba   :  { %1657 = vpow2.f32 %v1585_v29 }
 0x3bb   :  { %v341_v21 = vpop.f32.mrf.mxu3  ;;  %1659 = vrcp.f32 %v285_v31  ;;  %v297_v42 = vand.u32 2147483648, %v285_v31  ;;  %vm291_vm12 = vweird.f32 %v285_v31  ;;  %v295_v43 = vand.u32 2147483647, %v285_v31 }
 0x3bd   :  { %v298_v46 = vor.u32 1.1754944e-38, %v297_v42  ;;  %vm296_vm14 = vcmp.eq.f32.partialorder %v295_v43, 8.507059e+37 }
 0x3c0   :  { %v1658_v32 = vpop.eup %1657 }
 0x3c1   :  { %v347_v33 = vadd.f32 1.0, %v1658_v32  ;;  %v1660_v34 = vpop.eup %1659  ;;  %v406_v32 = vunpack.c.l.bf16 %v1589_v30 }
 0x3c2   :  { %v287_v35 = vmul.f32 %v1660_v34, %v285_v31  ;;  %vm292_vm11 = vweird.f32 %v1660_v34 }
 0x3c3   :  { %1661 = vrcp.f32 %v347_v33  ;;  %vm293_vm13 = vmor %vm291_vm12, %vm292_vm11  ;;  %v359_v51 = vand.u32 2147483648, %v347_v33  ;;  %vm353_vm3 = vweird.f32 %v347_v33  ;;  %v357_v52 = vand.u32 2147483647, %v347_v33 }
 0x3c4   :  { %v288_v36 = vsub.f32 1.0, %v287_v35 }
 0x3c5   :  { %v360_v54 = vor.u32 1.1754944e-38, %v359_v51  ;;  %vm358_vm5 = vcmp.eq.f32.partialorder %v357_v52, 8.507059e+37 }
 0x3c6   :  { %v289_v38 = vmul.f32 %v1660_v34, %v288_v36 }
 0x3c8   :  { %v290_v40 = vadd.f32 %v1660_v34, %v289_v38 }
 0x3c9   :  { %v1662_v37 = vpop.eup %1661 }
 0x3ca   :  { %v349_v39 = vmul.f32 %v1662_v37, %v347_v33  ;;  %v294_v44 = vsel %vm293_vm13, %v1660_v34, %v290_v40  ;;  %vm354_vm15 = vweird.f32 %v1662_v37 }
 0x3cb   :  { %v299_v48 = vsel %vm296_vm14, %v298_v46, %v294_v44  ;;  %vm355_vm4 = vmor %vm353_vm3, %vm354_vm15 }
 0x3cc   :  { %v350_v41 = vsub.f32 1.0, %v349_v39 }
 0x3ce   :  { %v351_v45 = vmul.f32 %v1662_v37, %v350_v41 }
 0x3d0   :  { %v352_v50 = vadd.f32 %v1662_v37, %v351_v45 }
 0x3d2   :  { %v356_v53 = vsel %vm355_vm4, %v1662_v37, %v352_v50 }
 0x3d3   :  { %v361_v56 = vsel %vm358_vm5, %v360_v54, %v356_v53 }
 0x420   :  { %v303_v47 = vpop.permute.xlu0 %302 }
 0x421   :  { %v305_v49 = vmul.f32 %v303_v47, %v299_v48 }
 0x423   :  { %307 = vrot.lane.b32.xlu2 %v305_v49, %s1743_s27 }
 0x428   :  { %v365_v55 = vpop.permute.xlu1 %364 }
 0x429   :  { %v367_v57 = vmul.f32 %v365_v55, %v361_v56 }
 0x42b   :  { %369 = vrot.lane.b32.xlu0 %v367_v57, %s1743_s27 }
 0x47d   :  { %v308_v58 = vpop.permute.xlu2 %307 }
 0x47e   :  { %v310_v59 = vadd.f32 %v308_v58, %v257_v23 }
 0x480   :  { %1663 = vtanh.f32 %v310_v59 }
 0x486   :  { %v1664_v60 = vpop.eup %1663 }
 0x487   :  { %v312_v61 = vsub.f32 %v1894_v9, %v1664_v60 }
 0x489   :  { %314 = vrot.lane.b32.xlu1 %v312_v61, %s1745_s3 }
 0x49d   :  { %v370_v62 = vpop.permute.xlu0 %369 }
 0x49e   :  { %v372_v63 = vadd.f32 %v370_v62, %v260_v27  ;;  %v1588_v27 = vld [vmem:[%s2402_s0 + $0x2] sm:$0x1] }
 0x49f   :  { %v403_v28 = vunpack.c.l.bf16 %v1588_v27 }
 0x4a0   :  { %1665 = vtanh.f32 %v372_v63 }
 0x4a6   :  { %v1666_v2 = vpop.eup %1665 }
 0x4a7   :  { %v374_v4 = vsub.f32 %v1900_v11, %v1666_v2 }
 0x4a9   :  { %376 = vrot.lane.b32.xlu2 %v374_v4, %s1745_s3 }
 0x4fb   :  { %v315_v6 = vpop.permute.xlu1 %314 }
 0x4fc   :  { %v317_v8 = vmul.f32 %v315_v6, %v299_v48 }
 0x4fe   :  { %319 = vrot.lane.b32.xlu0 %v317_v8, %s1744_s28 }
 0x503   :  { %v377_v3 = vpop.permute.xlu2 %376 }
 0x504   :  { %v379_v5 = vmul.f32 %v377_v3, %v361_v56 }
 0x506   :  { %381 = vrot.lane.b32.xlu1 %v379_v5, %s1744_s28 }
 0x570   :  { %v320_v9 = vpop.permute.xlu0 %319 }
 0x571   :  { %v1930_v13 = vadd.f32 %v1664_v60, %v320_v9 }
 0x573   :  { %386 = vst [vmem:[#allocation1] ss:$4 sm:$0xff] %v1930_v13  ;;  %v407_v11 = vpack.c.bf16 %v1930_v13, %v1930_v13 }
 0x575   :  { %409 = vrot.lane.b32.xlu2 %v407_v11, %s1742_s20 }
 0x578   :  { %v382_v15 = vpop.permute.xlu1 %381 }
 0x579   :  { %v1938_v16 = vadd.f32 %v1666_v2, %v382_v15 }
 0x57a   :  { %v1940_v17 = vld.sshfl [vmem:[#allocation1] sm:$0xff pattern:$0x73625140] }
 0x57b   :  { %394 = vst [vmem:[#allocation1] ss:$4 sm:$0xff] %v1938_v16  ;;  %v469_v18 = vpack.c.bf16 %v1938_v16, %v1938_v16 }
 0x57d   :  { %471 = vrot.lane.b32.xlu0 %v469_v18, %s1742_s20 }
 0x5cf   :  { %v410_v19 = vpop.permute.xlu2 %409 }
 0x5d0   :  { %1590 = vmatmul.msk.bf16.vlgmr.msrb.gmra.mxu0 %vm100_vm2, %v410_v19 }
 0x5d1   :  { %1005 = vmatpush.bf16.msrb.mxu0 %v1819_v0 }
 0x5ef   :  { %v472_v20 = vpop.permute.xlu0 %471 }
 0x5f0   :  { %1592 = vmatmul.msk.bf16.vlgmr.msrb.gmra.mxu1 %vm100_vm2, %v472_v20 }
 0x5f1   :  { %1067 = vmatpush.bf16.msrb.mxu1 %v1824_v1 }
 0x64d   :  { %v423_v21 = vpop.f32.mrf.mxu0 }
 0x64e   :  { %v424_v22 = vadd.f32 %v1867_v7, %v423_v21 }
 0x650   :  { %448 = vrot.lane.b32.xlu1 %v424_v22, %s1742_s20  ;;  %v427_v29 = vadd.f32 %v424_v22, %v403_v28 }
 0x652   :  { %v1591_v31 = vmul.f32 -1.442695, %v427_v29 }
 0x654   :  { %1667 = vpow2.f32 %v1591_v31 }
 0x655   :  { %v425_v23 = vpop.f32.mrf.mxu0 }
 0x65a   :  { %v1668_v35 = vpop.eup %1667 }
 0x65b   :  { %v431_v36 = vadd.f32 1.0, %v1668_v35 }
 0x65d   :  { %v443_v47 = vand.u32 2147483648, %v431_v36  ;;  %vm437_vm7 = vweird.f32 %v431_v36  ;;  %v441_v48 = vand.u32 2147483647, %v431_v36 }
 0x65f   :  { %v444_v51 = vor.u32 1.1754944e-38, %v443_v47  ;;  %vm442_vm9 = vcmp.eq.f32.partialorder %v441_v48, 8.507059e+37 }
 0x66d   :  { %v485_v24 = vpop.f32.mrf.mxu1 }
 0x66e   :  { %v486_v25 = vadd.f32 %v1874_v10, %v485_v24 }
 0x670   :  { %510 = vrot.lane.b32.xlu2 %v486_v25, %s1742_s20  ;;  %v489_v33 = vadd.f32 %v486_v25, %v406_v32 }
 0x672   :  { %v1593_v34 = vmul.f32 -1.442695, %v489_v33 }
 0x674   :  { %1669 = vpow2.f32 %v1593_v34 }
 0x675   :  { %v487_v26 = vpop.f32.mrf.mxu1  ;;  %1671 = vrcp.f32 %v431_v36 }
 0x67a   :  { %v1670_v37 = vpop.eup %1669 }
 0x67b   :  { %v493_v38 = vadd.f32 1.0, %v1670_v37  ;;  %v1672_v39 = vpop.eup %1671 }
 0x67c   :  { %v433_v40 = vmul.f32 %v1672_v39, %v431_v36  ;;  %vm438_vm6 = vweird.f32 %v1672_v39 }
 0x67d   :  { %1673 = vrcp.f32 %v493_v38  ;;  %vm439_vm8 = vmor %vm437_vm7, %vm438_vm6  ;;  %v505_v56 = vand.u32 2147483648, %v493_v38  ;;  %vm499_vm11 = vweird.f32 %v493_v38  ;;  %v503_v57 = vand.u32 2147483647, %v493_v38 }
 0x67e   :  { %v434_v41 = vsub.f32 1.0, %v433_v40 }
 0x67f   :  { %v506_v59 = vor.u32 1.1754944e-38, %v505_v56  ;;  %vm504_vm13 = vcmp.eq.f32.partialorder %v503_v57, 8.507059e+37 }
 0x680   :  { %v435_v43 = vmul.f32 %v1672_v39, %v434_v41 }
 0x682   :  { %v436_v45 = vadd.f32 %v1672_v39, %v435_v43 }
 0x683   :  { %v1674_v42 = vpop.eup %1673 }
 0x684   :  { %v495_v44 = vmul.f32 %v1674_v42, %v493_v38  ;;  %v440_v49 = vsel %vm439_vm8, %v1672_v39, %v436_v45  ;;  %vm500_vm10 = vweird.f32 %v1674_v42  ;;  %v1597_v38 = vld [vmem:[%s2403_s1 + $0x4] sm:$0x1] }
 0x685   :  { %v445_v53 = vsel %vm442_vm9, %v444_v51, %v440_v49  ;;  %vm501_vm12 = vmor %vm499_vm11, %vm500_vm10  ;;  %v552_v40 = vunpack.c.l.bf16 %v1597_v38 }
 0x686   :  { %v496_v46 = vsub.f32 1.0, %v495_v44 }
 0x688   :  { %v497_v50 = vmul.f32 %v1674_v42, %v496_v46 }
 0x68a   :  { %v498_v55 = vadd.f32 %v1674_v42, %v497_v50 }
 0x68c   :  { %v502_v58 = vsel %vm501_vm12, %v1674_v42, %v498_v55 }
 0x68d   :  { %v507_v60 = vsel %vm504_vm13, %v506_v59, %v502_v58 }
 0x6c2   :  { %v449_v52 = vpop.permute.xlu1 %448 }
 0x6c3   :  { %v451_v54 = vmul.f32 %v449_v52, %v445_v53 }
 0x6c5   :  { %453 = vrot.lane.b32.xlu0 %v451_v54, %s1743_s27 }
 0x6ca   :  { %v511_v61 = vpop.permute.xlu2 %510 }
 0x6cb   :  { %v513_v62 = vmul.f32 %v511_v61, %v507_v60 }
 0x6cd   :  { %515 = vrot.lane.b32.xlu1 %v513_v62, %s1743_s27 }
 0x737   :  { %v454_v63 = vpop.permute.xlu0 %453 }
 0x738   :  { %v456_v2 = vadd.f32 %v454_v63, %v403_v28 }
 0x73a   :  { %1675 = vtanh.f32 %v456_v2 }
 0x73f   :  { %v516_v4 = vpop.permute.xlu1 %515 }
 0x740   :  { %v1676_v6 = vpop.eup %1675  ;;  %v518_v8 = vadd.f32 %v516_v4, %v406_v32 }
 0x741   :  { %v458_v3 = vsub.f32 %v1930_v13, %v1676_v6  ;;  %v1970_v13 = vld.sshfl [vmem:[#allocation1] sm:$0xff pattern:$0x73625140] }
 0x742   :  { %1677 = vtanh.f32 %v518_v8 }
 0x743   :  { %460 = vrot.lane.b32.xlu2 %v458_v3, %s1745_s3 }
 0x748   :  { %v1678_v5 = vpop.eup %1677 }
 0x749   :  { %v520_v9 = vsub.f32 %v1938_v16, %v1678_v5 }
 0x74b   :  { %522 = vrot.lane.b32.xlu0 %v520_v9, %s1745_s3 }
 0x79d   :  { %v461_v11 = vpop.permute.xlu2 %460 }
 0x79e   :  { %v463_v15 = vmul.f32 %v461_v11, %v445_v53 }
 0x7a0   :  { %465 = vrot.lane.b32.xlu1 %v463_v15, %s1744_s28 }
 0x7bd   :  { %v523_v18 = vpop.permute.xlu0 %522 }
 0x7be   :  { %v525_v19 = vmul.f32 %v523_v18, %v507_v60 }
 0x7c0   :  { %527 = vrot.lane.b32.xlu2 %v525_v19, %s1744_s28 }
 0x812   :  { %v466_v20 = vpop.permute.xlu1 %465 }
 0x813   :  { %v1968_v21 = vadd.f32 %v1676_v6, %v466_v20 }
 0x815   :  { %532 = vst [vmem:[#allocation1] ss:$4 sm:$0xff] %v1968_v21  ;;  %v553_v16 = vpack.c.bf16 %v1968_v21, %v1968_v21 }
 0x817   :  { %555 = vrot.lane.b32.xlu0 %v553_v16, %s1742_s20 }
 0x81a   :  { %v528_v22 = vpop.permute.xlu2 %527 }
 0x81b   :  { %v1976_v23 = vadd.f32 %v1678_v5, %v528_v22 }
 0x81c   :  { %v1978_v24 = vld.sshfl [vmem:[#allocation1] sm:$0xff pattern:$0x73625140] }
 0x81d   :  { %540 = vst [vmem:[#allocation1] ss:$4 sm:$0xff] %v1976_v23  ;;  %v615_v25 = vpack.c.bf16 %v1976_v23, %v1976_v23 }
 0x81f   :  { %617 = vrot.lane.b32.xlu1 %v615_v25, %s1742_s20 }
 0x889   :  { %v556_v26 = vpop.permute.xlu0 %555 }
 0x88a   :  { %1598 = vmatmul.msk.bf16.vlgmr.msrb.gmra.mxu2 %vm100_vm2, %v556_v26 }
 0x88b   :  { %1150 = vmatpush.bf16.msrb.mxu2 %v1819_v0  ;;  %v1596_v0 = vld [vmem:[%s2402_s0 + $0x3] sm:$0x1] }
 0x88c   :  { %v549_v34 = vunpack.c.l.bf16 %v1596_v0 }
 0x891   :  { %v618_v27 = vpop.permute.xlu1 %617 }
 0x892   :  { %1600 = vmatmul.msk.bf16.vlgmr.msrb.gmra.mxu3 %vm100_vm2, %v618_v27 }
 0x893   :  { %1212 = vmatpush.bf16.msrb.mxu3 %v1824_v1 }
 0x90d   :  { %v569_v28 = vpop.f32.mrf.mxu2 }
 0x90e   :  { %v570_v29 = vadd.f32 %v1867_v7, %v569_v28 }
 0x910   :  { %594 = vrot.lane.b32.xlu2 %v570_v29, %s1742_s20  ;;  %v573_v35 = vadd.f32 %v570_v29, %v549_v34 }
 0x912   :  { %v1599_v36 = vmul.f32 -1.442695, %v573_v35 }
 0x914   :  { %1679 = vpow2.f32 %v1599_v36 }
 0x915   :  { %v571_v30 = vpop.f32.mrf.mxu2  ;;  %v631_v31 = vpop.f32.mrf.mxu3 }
 0x916   :  { %v632_v32 = vadd.f32 %v1874_v10, %v631_v31 }
 0x918   :  { %656 = vrot.lane.b32.xlu0 %v632_v32, %s1742_s20  ;;  %v635_v42 = vadd.f32 %v632_v32, %v552_v40 }
 0x91a   :  { %v1680_v1 = vpop.eup %1679  ;;  %v1601_v44 = vmul.f32 -1.442695, %v635_v42  ;;  %v1605_v42 = vld [vmem:[%s2403_s1 + $0x3] sm:$0x1] }
 0x91b   :  { %v577_v37 = vadd.f32 1.0, %v1680_v1 }
 0x91d   :  { %v633_v33 = vpop.f32.mrf.mxu3  ;;  %1681 = vrcp.f32 %v577_v37  ;;  %v589_v47 = vand.u32 2147483648, %v577_v37  ;;  %vm583_vm15 = vweird.f32 %v577_v37  ;;  %v587_v48 = vand.u32 2147483647, %v577_v37 }
 0x91e   :  { %1683 = vpow2.f32 %v1601_v44  ;;  %v698_v44 = vunpack.c.l.bf16 %v1605_v42 }
 0x91f   :  { %v590_v51 = vor.u32 1.1754944e-38, %v589_v47  ;;  %vm588_vm4 = vcmp.eq.f32.partialorder %v587_v48, 8.507059e+37 }
 0x923   :  { %v1682_v39 = vpop.eup %1681 }
 0x924   :  { %v579_v41 = vmul.f32 %v1682_v39, %v577_v37  ;;  %vm584_vm14 = vweird.f32 %v1682_v39  ;;  %v1684_v49 = vpop.eup %1683 }
 0x925   :  { %vm585_vm3 = vmor %vm583_vm15, %vm584_vm14  ;;  %v639_v52 = vadd.f32 1.0, %v1684_v49 }
 0x926   :  { %v580_v43 = vsub.f32 1.0, %v579_v41 }
 0x927   :  { %1685 = vrcp.f32 %v639_v52  ;;  %v651_v61 = vand.u32 2147483648, %v639_v52  ;;  %vm645_vm6 = vweird.f32 %v639_v52  ;;  %v649_v62 = vand.u32 2147483647, %v639_v52 }
 0x928   :  { %v581_v45 = vmul.f32 %v1682_v39, %v580_v43 }
 0x929   :  { %v652_v2 = vor.u32 1.1754944e-38, %v651_v61  ;;  %vm650_vm8 = vcmp.eq.f32.partialorder %v649_v62, 8.507059e+37 }
 0x92a   :  { %v582_v46 = vadd.f32 %v1682_v39, %v581_v45 }
 0x92c   :  { %v586_v50 = vsel %vm585_vm3, %v1682_v39, %v582_v46  ;;  %v1604_v39 = vld [vmem:[%s2402_s0 + $0x4] sm:$0x1] }
 0x92d   :  { %v591_v53 = vsel %vm588_vm4, %v590_v51, %v586_v50  ;;  %v1686_v56 = vpop.eup %1685 }
 0x92e   :  { %v641_v57 = vmul.f32 %v1686_v56, %v639_v52  ;;  %vm646_vm5 = vweird.f32 %v1686_v56 }
 0x92f   :  { %vm647_vm7 = vmor %vm645_vm6, %vm646_vm5 }
 0x930   :  { %v642_v58 = vsub.f32 1.0, %v641_v57 }
 0x932   :  { %v643_v59 = vmul.f32 %v1686_v56, %v642_v58 }
 0x934   :  { %v644_v60 = vadd.f32 %v1686_v56, %v643_v59 }
 0x936   :  { %v648_v63 = vsel %vm647_vm7, %v1686_v56, %v644_v60 }
 0x937   :  { %v653_v6 = vsel %vm650_vm8, %v652_v2, %v648_v63 }
 0x96a   :  { %v595_v54 = vpop.permute.xlu2 %594 }
 0x96b   :  { %v597_v55 = vmul.f32 %v595_v54, %v591_v53 }
 0x96d   :  { %599 = vrot.lane.b32.xlu1 %v597_v55, %s1743_s27 }
 0x98a   :  { %v657_v4 = vpop.permute.xlu0 %656 }
 0x98b   :  { %v659_v8 = vmul.f32 %v657_v4, %v653_v6 }
 0x98d   :  { %661 = vrot.lane.b32.xlu2 %v659_v8, %s1743_s27 }
 0x9df   :  { %v600_v3 = vpop.permute.xlu1 %599 }
 0x9e0   :  { %v602_v5 = vadd.f32 %v600_v3, %v549_v34 }
 0x9e2   :  { %1687 = vtanh.f32 %v602_v5 }
 0x9e7   :  { %v662_v9 = vpop.permute.xlu2 %661 }
 0x9e8   :  { %v1688_v11 = vpop.eup %1687  ;;  %v664_v15 = vadd.f32 %v662_v9, %v552_v40  ;;  %v695_v40 = vunpack.c.l.bf16 %v1604_v39 }
 0x9e9   :  { %v604_v18 = vsub.f32 %v1968_v21, %v1688_v11  ;;  %v2008_v21 = vld.sshfl [vmem:[#allocation1] sm:$0xff pattern:$0x73625140] }
 0x9ea   :  { %1689 = vtanh.f32 %v664_v15 }
 0x9eb   :  { %606 = vrot.lane.b32.xlu0 %v604_v18, %s1745_s3 }
 0x9f0   :  { %v1690_v19 = vpop.eup %1689 }
 0x9f1   :  { %v666_v20 = vsub.f32 %v1976_v23, %v1690_v19 }
 0x9f3   :  { %668 = vrot.lane.b32.xlu1 %v666_v20, %s1745_s3 }
 0xa5d   :  { %v607_v16 = vpop.permute.xlu0 %606 }
 0xa5e   :  { %v609_v22 = vmul.f32 %v607_v16, %v591_v53 }
 0xa60   :  { %611 = vrot.lane.b32.xlu2 %v609_v22, %s1744_s28 }
 0xa65   :  { %v669_v25 = vpop.permute.xlu1 %668 }
 0xa66   :  { %v671_v26 = vmul.f32 %v669_v25, %v653_v6 }
 0xa68   :  { %673 = vrot.lane.b32.xlu0 %v671_v26, %s1744_s28 }
 0xaba   :  { %v612_v27 = vpop.permute.xlu2 %611 }
 0xabb   :  { %v2006_v28 = vadd.f32 %v1688_v11, %v612_v27 }
 0xabd   :  { %678 = vst [vmem:[#allocation1] ss:$4 sm:$0xff] %v2006_v28  ;;  %v699_v23 = vpack.c.bf16 %v2006_v28, %v2006_v28 }
 0xabf   :  { %701 = vrot.lane.b32.xlu1 %v699_v23, %s1742_s20 }
 0xac4   :  { %v2016_v31 = vld.sshfl [vmem:[#allocation1] sm:$0xff pattern:$0x73625140] }
 0xada   :  { %v674_v29 = vpop.permute.xlu0 %673 }
 0xadb   :  { %v2014_v30 = vadd.f32 %v1690_v19, %v674_v29 }
 0xadd   :  { %686 = vst [vmem:[#allocation1] ss:$4 sm:$0xff] %v2014_v30  ;;  %v761_v32 = vpack.c.bf16 %v2014_v30, %v2014_v30 }
 0xadf   :  { %763 = vrot.lane.b32.xlu2 %v761_v32, %s1742_s20 }
 0xb31   :  { %v702_v33 = vpop.permute.xlu1 %701 }
 0xb32   :  { %1606 = vmatmul.msk.bf16.vlgmr.msra.gmra.mxu0 %vm100_vm2, %v702_v33 }
 0xb39   :  { %v764_v0 = vpop.permute.xlu2 %763 }
 0xb3a   :  { %1608 = vmatmul.msk.bf16.vlgmr.msra.gmra.mxu1 %vm100_vm2, %v764_v0 }
 0xbaf   :  { %v715_v34 = vpop.f32.mrf.mxu0 }
 0xbb0   :  { %v716_v35 = vadd.f32 %v1867_v7, %v715_v34 }
 0xbb2   :  { %740 = vrot.lane.b32.xlu0 %v716_v35, %s1742_s20  ;;  %v719_v41 = vadd.f32 %v716_v35, %v695_v40 }
 0xbb4   :  { %v1607_v43 = vmul.f32 -1.442695, %v719_v41 }
 0xbb6   :  { %1691 = vpow2.f32 %v1607_v43 }
 0xbb7   :  { %v717_v36 = vpop.f32.mrf.mxu0  ;;  %v777_v1 = vpop.f32.mrf.mxu1 }
 0xbb8   :  { %v778_v37 = vadd.f32 %v1874_v10, %v777_v1  ;;  %v2044_v36 = vld.sshfl [vmem:[#allocation1] sm:$0xff pattern:$0x73625140] }
 0xbba   :  { %802 = vrot.lane.b32.xlu1 %v778_v37, %s1742_s20  ;;  %v781_v45 = vadd.f32 %v778_v37, %v698_v44 }
 0xbbc   :  { %v1609_v46 = vmul.f32 -1.442695, %v781_v45  ;;  %v1692_v47 = vpop.eup %1691 }
 0xbbd   :  { %v723_v48 = vadd.f32 1.0, %v1692_v47 }
 0xbbe   :  { %1693 = vpow2.f32 %v1609_v46 }
 0xbbf   :  { %v779_v38 = vpop.f32.mrf.mxu1  ;;  %1695 = vrcp.f32 %v723_v48  ;;  %v735_v59 = vand.u32 2147483648, %v723_v48  ;;  %vm729_vm10 = vweird.f32 %v723_v48  ;;  %v733_v60 = vand.u32 2147483647, %v723_v48 }
 0xbc1   :  { %v736_v63 = vor.u32 1.1754944e-38, %v735_v59  ;;  %vm734_vm12 = vcmp.eq.f32.partialorder %v733_v60, 8.507059e+37 }
 0xbc4   :  { %v1694_v49 = vpop.eup %1693 }
 0xbc5   :  { %v785_v50 = vadd.f32 1.0, %v1694_v49  ;;  %v1696_v51 = vpop.eup %1695 }
 0xbc6   :  { %v725_v52 = vmul.f32 %v1696_v51, %v723_v48  ;;  %vm730_vm9 = vweird.f32 %v1696_v51  ;;  %v1612_v48 = vld [vmem:[%s2402_s0 + $0x5] sm:$0x1] }
 0xbc7   :  { %1697 = vrcp.f32 %v785_v50  ;;  %vm731_vm11 = vmor %vm729_vm10, %vm730_vm9  ;;  %v797_v3 = vand.u32 2147483648, %v785_v50  ;;  %vm791_vm14 = vweird.f32 %v785_v50  ;;  %v795_v5 = vand.u32 2147483647, %v785_v50 }
 0xbc8   :  { %v726_v53 = vsub.f32 1.0, %v725_v52  ;;  %v841_v49 = vunpack.c.l.bf16 %v1612_v48 }
 0xbc9   :  { %v798_v11 = vor.u32 1.1754944e-38, %v797_v3  ;;  %vm796_vm3 = vcmp.eq.f32.partialorder %v795_v5, 8.507059e+37 }
 0xbca   :  { %v727_v55 = vmul.f32 %v1696_v51, %v726_v53 }
 0xbcc   :  { %v728_v57 = vadd.f32 %v1696_v51, %v727_v55 }
 0xbcd   :  { %v1698_v54 = vpop.eup %1697 }
 0xbce   :  { %v787_v56 = vmul.f32 %v1698_v54, %v785_v50  ;;  %v732_v61 = vsel %vm731_vm11, %v1696_v51, %v728_v57  ;;  %vm792_vm13 = vweird.f32 %v1698_v54  ;;  %v1613_v51 = vld [vmem:[%s2403_s1 + $0x2] sm:$0x1] }
 0xbcf   :  { %v737_v4 = vsel %vm734_vm12, %v736_v63, %v732_v61  ;;  %vm793_vm15 = vmor %vm791_vm14, %vm792_vm13  ;;  %v844_v52 = vunpack.c.l.bf16 %v1613_v51 }
 0xbd0   :  { %v788_v58 = vsub.f32 1.0, %v787_v56 }
 0xbd2   :  { %v789_v62 = vmul.f32 %v1698_v54, %v788_v58 }
 0xbd4   :  { %v790_v8 = vadd.f32 %v1698_v54, %v789_v62 }
 0xbd6   :  { %v794_v9 = vsel %vm793_vm15, %v1698_v54, %v790_v8 }
 0xbd7   :  { %v799_v18 = vsel %vm796_vm3, %v798_v11, %v794_v9 }
 0xc24   :  { %v741_v2 = vpop.permute.xlu0 %740 }
 0xc25   :  { %v743_v6 = vmul.f32 %v741_v2, %v737_v4 }
 0xc27   :  { %745 = vrot.lane.b32.xlu2 %v743_v6, %s1743_s27 }
 0xc2c   :  { %v803_v15 = vpop.permute.xlu1 %802 }
 0xc2d   :  { %v805_v19 = vmul.f32 %v803_v15, %v799_v18 }
 0xc2f   :  { %807 = vrot.lane.b32.xlu0 %v805_v19, %s1743_s27 }
 0xc81   :  { %v746_v20 = vpop.permute.xlu2 %745 }
 0xc82   :  { %v748_v16 = vadd.f32 %v746_v20, %v695_v40 }
 0xc84   :  { %1699 = vtanh.f32 %v748_v16 }
 0xc8a   :  { %v1700_v22 = vpop.eup %1699 }
 0xc8b   :  { %v750_v25 = vsub.f32 %v2006_v28, %v1700_v22 }
 0xc8d   :  { %752 = vrot.lane.b32.xlu1 %v750_v25, %s1745_s3 }
 0xca1   :  { %v808_v26 = vpop.permute.xlu0 %807 }
 0xca2   :  { %v810_v27 = vadd.f32 %v808_v26, %v698_v44 }
 0xca4   :  { %1701 = vtanh.f32 %v810_v27 }
 0xcaa   :  { %v1702_v23 = vpop.eup %1701 }
 0xcab   :  { %v812_v29 = vsub.f32 %v2014_v30, %v1702_v23 }
 0xcad   :  { %814 = vrot.lane.b32.xlu2 %v812_v29, %s1745_s3 }
 0xcff   :  { %v753_v32 = vpop.permute.xlu1 %752 }
 0xd00   :  { %v755_v33 = vmul.f32 %v753_v32, %v737_v4 }
 0xd02   :  { %757 = vrot.lane.b32.xlu0 %v755_v33, %s1744_s28 }
 0xd07   :  { %v815_v0 = vpop.permute.xlu2 %814 }
 0xd08   :  { %v817_v34 = vmul.f32 %v815_v0, %v799_v18 }
 0xd0a   :  { %819 = vrot.lane.b32.xlu1 %v817_v34, %s1744_s28 }
 0xd74   :  { %v758_v35 = vpop.permute.xlu0 %757 }
 0xd75   :  { %v2042_v28 = vadd.f32 %v1700_v22, %v758_v35 }
 0xd77   :  { %824 = vst [vmem:[#allocation1] ss:$4 sm:$0xff] %v2042_v28  ;;  %v845_v30 = vpack.c.bf16 %v2042_v28, %v2042_v28 }
 0xd79   :  { %847 = vrot.lane.b32.xlu2 %v845_v30, %s1742_s20 }
 0xd7c   :  { %v820_v1 = vpop.permute.xlu1 %819 }
 0xd7d   :  { %v2050_v37 = vadd.f32 %v1702_v23, %v820_v1 }
 0xd7e   :  { %v2052_v38 = vld.sshfl [vmem:[#allocation1] sm:$0xff pattern:$0x73625140] }
 0xd7f   :  { %832 = vst [vmem:[#allocation1] ss:$4 sm:$0xff] %v2050_v37  ;;  %v907_v39 = vpack.c.bf16 %v2050_v37, %v2050_v37 }
 0xd81   :  { %909 = vrot.lane.b32.xlu0 %v907_v39, %s1742_s20 }
 0xdd3   :  { %v848_v40 = vpop.permute.xlu2 %847 }
 0xdd4   :  { %1614 = vmatmul.msk.bf16.vlgmr.msra.gmra.mxu2 %vm100_vm2, %v848_v40 }
 0xdf3   :  { %v910_v41 = vpop.permute.xlu0 %909 }
 0xdf4   :  { %1616 = vmatmul.msk.bf16.vlgmr.msra.gmra.mxu3 %vm100_vm2, %v910_v41 }
 0xe57   :  { %v861_v42 = vpop.f32.mrf.mxu2 }
 0xe58   :  { %v862_v43 = vadd.f32 %v1867_v7, %v861_v42 }
 0xe5a   :  { %886 = vrot.lane.b32.xlu1 %v862_v43, %s1742_s20  ;;  %v865_v50 = vadd.f32 %v862_v43, %v841_v49 }
 0xe5c   :  { %v1615_v7 = vmul.f32 -1.442695, %v865_v50 }
 0xe5e   :  { %1703 = vpow2.f32 %v1615_v7  ;;  %v2099_v7 = vld [vmem:[%s2398_s4] ss:$0 sm:$0xff] }
 0xe5f   :  { %v863_v44 = vpop.f32.mrf.mxu2 }
 0xe64   :  { %v1704_v55 = vpop.eup %1703 }
 0xe77   :  { %v923_v45 = vpop.f32.mrf.mxu3 }
 0xe78   :  { %v924_v46 = vadd.f32 %v1874_v10, %v923_v45  ;;  %v869_v10 = vadd.f32 1.0, %v1704_v55  ;;  %v2106_v55 = vld [vmem:[%s2401_s5] ss:$0 sm:$0xff] }
 0xe7a   :  { %948 = vrot.lane.b32.xlu2 %v924_v46, %s1742_s20  ;;  %v927_v53 = vadd.f32 %v924_v46, %v844_v52  ;;  %v881_v6 = vand.u32 2147483648, %v869_v10  ;;  %vm875_vm5 = vweird.f32 %v869_v10  ;;  %v879_v8 = vand.u32 2147483647, %v869_v10 }
 0xe7c   :  { %v1617_v54 = vmul.f32 -1.442695, %v927_v53  ;;  %v882_v9 = vor.u32 1.1754944e-38, %v881_v6  ;;  %vm880_vm7 = vcmp.eq.f32.partialorder %v879_v8, 8.507059e+37 }
 0xe7e   :  { %1705 = vpow2.f32 %v1617_v54 }
 0xe7f   :  { %v925_v47 = vpop.f32.mrf.mxu3  ;;  %1707 = vrcp.f32 %v869_v10 }
 0xe84   :  { %v1706_v56 = vpop.eup %1705 }
 0xe85   :  { %v931_v57 = vadd.f32 1.0, %v1706_v56  ;;  %v1708_v58 = vpop.eup %1707 }
 0xe86   :  { %v871_v59 = vmul.f32 %v1708_v58, %v869_v10  ;;  %vm876_vm4 = vweird.f32 %v1708_v58 }
 0xe87   :  { %1709 = vrcp.f32 %v931_v57  ;;  %vm877_vm6 = vmor %vm875_vm5, %vm876_vm4  ;;  %v943_v20 = vand.u32 2147483648, %v931_v57  ;;  %vm937_vm9 = vweird.f32 %v931_v57  ;;  %v941_v16 = vand.u32 2147483647, %v931_v57 }
 0xe88   :  { %v872_v60 = vsub.f32 1.0, %v871_v59 }
 0xe89   :  { %v944_v25 = vor.u32 1.1754944e-38, %v943_v20  ;;  %vm942_vm11 = vcmp.eq.f32.partialorder %v941_v16, 8.507059e+37 }
 0xe8a   :  { %v873_v62 = vmul.f32 %v1708_v58, %v872_v60 }
 0xe8c   :  { %v874_v2 = vadd.f32 %v1708_v58, %v873_v62 }
 0xe8d   :  { %v1710_v61 = vpop.eup %1709 }
 0xe8e   :  { %v933_v63 = vmul.f32 %v1710_v61, %v931_v57  ;;  %v878_v3 = vsel %vm877_vm6, %v1708_v58, %v874_v2  ;;  %vm938_vm8 = vweird.f32 %v1710_v61  ;;  %v1620_v57 = vld [vmem:[%s2402_s0 + $0x6] sm:$0x1] }
 0xe8f   :  { %v883_v15 = vsel %vm880_vm7, %v882_v9, %v878_v3  ;;  %vm939_vm10 = vmor %vm937_vm9, %vm938_vm8  ;;  %v987_v58 = vunpack.c.l.bf16 %v1620_v57 }
 0xe90   :  { %v934_v4 = vsub.f32 1.0, %v933_v63  ;;  %v1621_v63 = vld [vmem:[%s2403_s1 + $0x1] sm:$0x1] }
 0xe92   :  { %v935_v5 = vmul.f32 %v1710_v61, %v934_v4  ;;  %v990_v4 = vunpack.c.l.bf16 %v1621_v63 }
 0xe94   :  { %v936_v19 = vadd.f32 %v1710_v61, %v935_v5 }
 0xe96   :  { %v940_v22 = vsel %vm939_vm10, %v1710_v61, %v936_v19 }
 0xe97   :  { %v945_v26 = vsel %vm942_vm11, %v944_v25, %v940_v22 }
 0xecc   :  { %v887_v11 = vpop.permute.xlu1 %886 }
 0xecd   :  { %v889_v18 = vmul.f32 %v887_v11, %v883_v15 }
 0xecf   :  { %891 = vrot.lane.b32.xlu0 %v889_v18, %s1743_s27 }
 0xed4   :  { %v949_v27 = vpop.permute.xlu2 %948 }
 0xed5   :  { %v951_v23 = vmul.f32 %v949_v27, %v945_v26 }
 0xed7   :  { %953 = vrot.lane.b32.xlu1 %v951_v23, %s1743_s27 }
 0xf41   :  { %v892_v29 = vpop.permute.xlu0 %891 }
 0xf42   :  { %v894_v32 = vadd.f32 %v892_v29, %v841_v49 }
 0xf44   :  { %1711 = vtanh.f32 %v894_v32 }
 0xf49   :  { %v954_v33 = vpop.permute.xlu1 %953 }
 0xf4a   :  { %v1712_v0 = vpop.eup %1711  ;;  %v956_v34 = vadd.f32 %v954_v33, %v844_v52 }
 0xf4b   :  { %v896_v35 = vsub.f32 %v2042_v28, %v1712_v0  ;;  %v2080_v28 = vld.sshfl [vmem:[#allocation1] sm:$0xff pattern:$0x73625140] }
 0xf4c   :  { %1713 = vtanh.f32 %v956_v34 }
 0xf4d   :  { %898 = vrot.lane.b32.xlu2 %v896_v35, %s1745_s3 }
 0xf52   :  { %v1714_v30 = vpop.eup %1713 }
 0xf53   :  { %v958_v1 = vsub.f32 %v2050_v37, %v1714_v30 }
 0xf55   :  { %960 = vrot.lane.b32.xlu0 %v958_v1, %s1745_s3 }
 0xfa7   :  { %v899_v39 = vpop.permute.xlu2 %898 }
 0xfa8   :  { %v901_v40 = vmul.f32 %v899_v39, %v883_v15 }
 0xfaa   :  { %903 = vrot.lane.b32.xlu1 %v901_v40, %s1744_s28 }
 0xfc7   :  { %v961_v41 = vpop.permute.xlu0 %960 }
 0xfc8   :  { %v963_v42 = vmul.f32 %v961_v41, %v945_v26 }
 0xfca   :  { %965 = vrot.lane.b32.xlu2 %v963_v42, %s1744_s28 }
0x101c   :  { %v904_v43 = vpop.permute.xlu1 %903 }
0x101d   :  { %v2078_v44 = vadd.f32 %v1712_v0, %v904_v43 }
0x101f   :  { %970 = vst [vmem:[#allocation1] ss:$4 sm:$0xff] %v2078_v44  ;;  %v991_v37 = vpack.c.bf16 %v2078_v44, %v2078_v44 }
0x1021   :  { %993 = vrot.lane.b32.xlu0 %v991_v37, %s1742_s20 }
0x1024   :  { %v966_v45 = vpop.permute.xlu2 %965 }
0x1025   :  { %v2086_v46 = vadd.f32 %v1714_v30, %v966_v45 }
0x1026   :  { %v2088_v47 = vld.sshfl [vmem:[#allocation1] sm:$0xff pattern:$0x73625140] }
0x1027   :  { %978 = vst [vmem:[#allocation1] ss:$4 sm:$0xff] %v2086_v46  ;;  %v1053_v48 = vpack.c.bf16 %v2086_v46, %v2086_v46 }
0x1029   :  { %1055 = vrot.lane.b32.xlu1 %v1053_v48, %s1742_s20 }
0x1093   :  { %v994_v49 = vpop.permute.xlu0 %993 }
0x1094   :  { %1622 = vmatmul.msk.bf16.vlgmr.msrb.gmra.mxu0 %vm100_vm2, %v994_v49 }
0x109b   :  { %v1056_v50 = vpop.permute.xlu1 %1055 }
0x109c   :  { %1624 = vmatmul.msk.bf16.vlgmr.msrb.gmra.mxu1 %vm100_vm2, %v1056_v50 }
0x1111   :  { %v1007_v51 = vpop.f32.mrf.mxu0 }
0x1112   :  { %v1008_v52 = vadd.f32 %v2099_v7, %v1007_v51 }
0x1114   :  { %1032 = vrot.lane.b32.xlu2 %v1008_v52, %s1742_s20  ;;  %v1011_v59 = vadd.f32 %v1008_v52, %v987_v58 }
0x1116   :  { %v1623_v60 = vmul.f32 -1.442695, %v1011_v59 }
0x1118   :  { %1715 = vpow2.f32 %v1623_v60 }
0x1119   :  { %v1009_v53 = vpop.f32.mrf.mxu0  ;;  %v1069_v54 = vpop.f32.mrf.mxu1 }
0x111a   :  { %v1070_v10 = vadd.f32 %v2106_v55, %v1069_v54 }
0x111c   :  { %1094 = vrot.lane.b32.xlu0 %v1070_v10, %s1742_s20  ;;  %v1073_v8 = vadd.f32 %v1070_v10, %v990_v4 }
0x111e   :  { %v1716_v61 = vpop.eup %1715  ;;  %v1625_v5 = vmul.f32 -1.442695, %v1073_v8 }
0x111f   :  { %v1015_v62 = vadd.f32 1.0, %v1716_v61 }
0x1121   :  { %v1071_v56 = vpop.f32.mrf.mxu1  ;;  %1717 = vrcp.f32 %v1015_v62  ;;  %v1027_v15 = vand.u32 2147483648, %v1015_v62  ;;  %vm1021_vm13 = vweird.f32 %v1015_v62  ;;  %v1025_v18 = vand.u32 2147483647, %v1015_v62 }
0x1122   :  { %1719 = vpow2.f32 %v1625_v5 }
0x1123   :  { %v1028_v16 = vor.u32 1.1754944e-38, %v1027_v15  ;;  %vm1026_vm15 = vcmp.eq.f32.partialorder %v1025_v18, 8.507059e+37  ;;  %v1134_v18 = vld [vmem:[%s2403_s1] sm:$0x1] }
0x1127   :  { %v1718_v2 = vpop.eup %1717 }
0x1128   :  { %v1017_v6 = vmul.f32 %v1718_v2, %v1015_v62  ;;  %vm1022_vm12 = vweird.f32 %v1718_v2  ;;  %v1720_v19 = vpop.eup %1719 }
0x1129   :  { %vm1023_vm14 = vmor %vm1021_vm13, %vm1022_vm12  ;;  %v1077_v22 = vadd.f32 1.0, %v1720_v19  ;;  %v1135_v19 = vunpack.c.l.bf16 %v1134_v18 }
0x112a   :  { %v1018_v3 = vsub.f32 1.0, %v1017_v6 }
0x112b   :  { %1721 = vrcp.f32 %v1077_v22  ;;  %v1089_v34 = vand.u32 2147483648, %v1077_v22  ;;  %vm1083_vm4 = vweird.f32 %v1077_v22  ;;  %v1087_v35 = vand.u32 2147483647, %v1077_v22 }
0x112c   :  { %v1019_v9 = vmul.f32 %v1718_v2, %v1018_v3 }
0x112d   :  { %v1090_v1 = vor.u32 1.1754944e-38, %v1089_v34  ;;  %vm1088_vm6 = vcmp.eq.f32.partialorder %v1087_v35, 8.507059e+37 }
0x112e   :  { %v1020_v11 = vadd.f32 %v1718_v2, %v1019_v9  ;;  %v1628_v9 = vld [vmem:[%s2402_s0 + $0x7] sm:$0x1] }
0x1130   :  { %v1024_v20 = vsel %vm1023_vm14, %v1718_v2, %v1020_v11  ;;  %v1133_v11 = vunpack.c.l.bf16 %v1628_v9 }
0x1131   :  { %v1029_v25 = vsel %vm1026_vm15, %v1028_v16, %v1024_v20  ;;  %v1722_v23 = vpop.eup %1721 }
0x1132   :  { %v1079_v29 = vmul.f32 %v1722_v23, %v1077_v22  ;;  %vm1084_vm3 = vweird.f32 %v1722_v23 }
0x1133   :  { %vm1085_vm5 = vmor %vm1083_vm4, %vm1084_vm3 }
0x1134   :  { %v1080_v32 = vsub.f32 1.0, %v1079_v29 }
0x1136   :  { %v1081_v33 = vmul.f32 %v1722_v23, %v1080_v32 }
0x1138   :  { %v1082_v0 = vadd.f32 %v1722_v23, %v1081_v33 }
0x113a   :  { %v1086_v30 = vsel %vm1085_vm5, %v1722_v23, %v1082_v0 }
0x113b   :  { %v1091_v40 = vsel %vm1088_vm6, %v1090_v1, %v1086_v30 }
0x116e   :  { %v1033_v26 = vpop.permute.xlu2 %1032 }
0x116f   :  { %v1035_v27 = vmul.f32 %v1033_v26, %v1029_v25 }
0x1171   :  { %1037 = vrot.lane.b32.xlu1 %v1035_v27, %s1743_s27 }
0x118e   :  { %v1095_v39 = vpop.permute.xlu0 %1094 }
0x118f   :  { %v1097_v41 = vmul.f32 %v1095_v39, %v1091_v40 }
0x1191   :  { %1099 = vrot.lane.b32.xlu2 %v1097_v41, %s1743_s27 }
0x11e3   :  { %v1038_v42 = vpop.permute.xlu1 %1037 }
0x11e4   :  { %v1040_v43 = vadd.f32 %v1038_v42, %v987_v58 }
0x11e6   :  { %1723 = vtanh.f32 %v1040_v43 }
0x11eb   :  { %v1100_v37 = vpop.permute.xlu2 %1099 }
0x11ec   :  { %v1724_v45 = vpop.eup %1723  ;;  %v1102_v48 = vadd.f32 %v1100_v37, %v990_v4 }
0x11ed   :  { %v1042_v49 = vsub.f32 %v2078_v44, %v1724_v45  ;;  %v2126_v44 = vld.sshfl [vmem:[#allocation1] sm:$0xff pattern:$0x73625140] }
0x11ee   :  { %1725 = vtanh.f32 %v1102_v48 }
0x11ef   :  { %1044 = vrot.lane.b32.xlu0 %v1042_v49, %s1745_s3 }
0x11f4   :  { %v1726_v50 = vpop.eup %1725 }
0x11f5   :  { %v1104_v51 = vsub.f32 %v2086_v46, %v1726_v50 }
0x11f7   :  { %1106 = vrot.lane.b32.xlu1 %v1104_v51, %s1745_s3 }
0x1261   :  { %v1045_v52 = vpop.permute.xlu0 %1044 }
0x1262   :  { %v1047_v53 = vmul.f32 %v1045_v52, %v1029_v25 }
0x1264   :  { %1049 = vrot.lane.b32.xlu2 %v1047_v53, %s1744_s28 }
0x1269   :  { %v1107_v54 = vpop.permute.xlu1 %1106 }
0x126a   :  { %v1109_v10 = vmul.f32 %v1107_v54, %v1091_v40 }
0x126c   :  { %1111 = vrot.lane.b32.xlu0 %v1109_v10, %s1744_s28 }
0x12be   :  { %v1050_v56 = vpop.permute.xlu2 %1049 }
0x12bf   :  { %v2124_v57 = vadd.f32 %v1724_v45, %v1050_v56 }
0x12c1   :  { %1116 = vst [vmem:[#allocation1] ss:$4 sm:$0xff] %v2124_v57  ;;  %v1136_v46 = vpack.c.bf16 %v2124_v57, %v2124_v57 }
0x12c3   :  { %1138 = vrot.lane.b32.xlu1 %v1136_v46, %s1742_s20 }
0x12c8   :  { %v2134_v60 = vld.sshfl [vmem:[#allocation1] sm:$0xff pattern:$0x73625140] }
0x12de   :  { %v1112_v58 = vpop.permute.xlu0 %1111 }
0x12df   :  { %v2132_v59 = vadd.f32 %v1726_v50, %v1112_v58 }
0x12e1   :  { %1124 = vst [vmem:[#allocation1] ss:$4 sm:$0xff] %v2132_v59  ;;  %v1198_v61 = vpack.c.bf16 %v2132_v59, %v2132_v59 }
0x12e3   :  { %1200 = vrot.lane.b32.xlu2 %v1198_v61, %s1742_s20 }
0x1335   :  { %v1139_v62 = vpop.permute.xlu1 %1138 }
0x1336   :  { %1629 = vmatmul.msk.bf16.vlgmr.msrb.gmra.mxu2 %vm100_vm2, %v1139_v62 }
0x133d   :  { %v1201_v63 = vpop.permute.xlu2 %1200 }
0x133e   :  { %1631 = vmatmul.msk.bf16.vlgmr.msrb.gmra.mxu3 %vm100_vm2, %v1201_v63 }
0x13b9   :  { %v1152_v2 = vpop.f32.mrf.mxu2 }
0x13ba   :  { %v1153_v4 = vadd.f32 %v2099_v7, %v1152_v2 }
0x13bc   :  { %1177 = vrot.lane.b32.xlu0 %v1153_v4, %s1742_s20  ;;  %v1156_v15 = vadd.f32 %v1153_v4, %v1133_v11  ;;  %v1125_v4 = vld.sshfl [vmem:[#allocation1] sm:$0xff pattern:$0x73625140] }
0x13be   :  { %v1630_v7 = vmul.f32 -1.442695, %v1156_v15 }
0x13c0   :  { %1727 = vpow2.f32 %v1630_v7 }
0x13c1   :  { %v1154_v6 = vpop.f32.mrf.mxu2  ;;  %v1214_v8 = vpop.f32.mrf.mxu3 }
0x13c2   :  { %v1215_v3 = vadd.f32 %v2106_v55, %v1214_v8 }
0x13c4   :  { %1239 = vrot.lane.b32.xlu1 %v1215_v3, %s1742_s20  ;;  %v1218_v20 = vadd.f32 %v1215_v3, %v1135_v19 }
0x13c6   :  { %v1632_v16 = vmul.f32 -1.442695, %v1218_v20  ;;  %v1728_v22 = vpop.eup %1727 }
0x13c7   :  { %v1160_v55 = vadd.f32 1.0, %v1728_v22 }
0x13c8   :  { %1729 = vpow2.f32 %v1632_v16 }
0x13c9   :  { %v1216_v5 = vpop.f32.mrf.mxu3  ;;  %1731 = vrcp.f32 %v1160_v55  ;;  %v1172_v30 = vand.u32 2147483648, %v1160_v55  ;;  %vm1166_vm8 = vweird.f32 %v1160_v55  ;;  %v1170_v1 = vand.u32 2147483647, %v1160_v55 }
0x13cb   :  { %v1173_v41 = vor.u32 1.1754944e-38, %v1172_v30  ;;  %vm1171_vm10 = vcmp.eq.f32.partialorder %v1170_v1, 8.507059e+37 }
0x13ce   :  { %v1730_v25 = vpop.eup %1729 }
0x13cf   :  { %v1222_v26 = vadd.f32 1.0, %v1730_v25  ;;  %v1732_v27 = vpop.eup %1731 }
0x13d0   :  { %v1162_v23 = vmul.f32 %v1732_v27, %v1160_v55  ;;  %vm1167_vm7 = vweird.f32 %v1732_v27 }
0x13d1   :  { %1733 = vrcp.f32 %v1222_v26  ;;  %vm1168_vm9 = vmor %vm1166_vm8, %vm1167_vm7  ;;  %v1234_v48 = vand.u32 2147483648, %v1222_v26  ;;  %vm1228_vm12 = vweird.f32 %v1222_v26  ;;  %v1232_v49 = vand.u32 2147483647, %v1222_v26 }
0x13d2   :  { %v1163_v29 = vsub.f32 1.0, %v1162_v23 }
0x13d3   :  { %v1235_v51 = vor.u32 1.1754944e-38, %v1234_v48  ;;  %vm1233_vm14 = vcmp.eq.f32.partialorder %v1232_v49, 8.507059e+37 }
0x13d4   :  { %v1164_v33 = vmul.f32 %v1732_v27, %v1163_v29 }
0x13d6   :  { %v1165_v34 = vadd.f32 %v1732_v27, %v1164_v33 }
0x13d7   :  { %v1734_v32 = vpop.eup %1733 }
0x13d8   :  { %v1224_v0 = vmul.f32 %v1734_v32, %v1222_v26  ;;  %v1169_v39 = vsel %vm1168_vm9, %v1732_v27, %v1165_v34  ;;  %vm1229_vm11 = vweird.f32 %v1734_v32 }
0x13d9   :  { %v1174_v43 = vsel %vm1171_vm10, %v1173_v41, %v1169_v39  ;;  %vm1230_vm13 = vmor %vm1228_vm12, %vm1229_vm11 }
0x13da   :  { %v1225_v35 = vsub.f32 1.0, %v1224_v0 }
0x13dc   :  { %v1226_v40 = vmul.f32 %v1734_v32, %v1225_v35 }
0x13de   :  { %v1227_v45 = vadd.f32 %v1734_v32, %v1226_v40 }
0x13e0   :  { %v1231_v50 = vsel %vm1230_vm13, %v1734_v32, %v1227_v45 }
0x13e1   :  { %v1236_v53 = vsel %vm1233_vm14, %v1235_v51, %v1231_v50 }
0x142e   :  { %v1178_v42 = vpop.permute.xlu0 %1177 }
0x142f   :  { %v1180_v37 = vmul.f32 %v1178_v42, %v1174_v43 }
0x1431   :  { %1182 = vrot.lane.b32.xlu2 %v1180_v37, %s1743_s27 }
0x1436   :  { %v1240_v52 = vpop.permute.xlu1 %1239 }
0x1437   :  { %v1242_v54 = vmul.f32 %v1240_v52, %v1236_v53 }
0x1439   :  { %1244 = vrot.lane.b32.xlu0 %v1242_v54, %s1743_s27 }
0x148b   :  { %v1183_v10 = vpop.permute.xlu2 %1182 }
0x148c   :  { %v1185_v56 = vadd.f32 %v1183_v10, %v1133_v11 }
0x148e   :  { %1735 = vtanh.f32 %v1185_v56 }
0x1494   :  { %v1736_v46 = vpop.eup %1735 }
0x1495   :  { %v1187_v58 = vsub.f32 %v2124_v57, %v1736_v46 }
0x1497   :  { %1189 = vrot.lane.b32.xlu1 %v1187_v58, %s1745_s3 }
0x14ab   :  { %v1245_v61 = vpop.permute.xlu0 %1244 }
0x14ac   :  { %v1247_v62 = vadd.f32 %v1245_v61, %v1135_v19 }
0x14ae   :  { %1737 = vtanh.f32 %v1247_v62 }
0x14b4   :  { %v1738_v63 = vpop.eup %1737 }
0x14b5   :  { %v1249_v2 = vsub.f32 %v2132_v59, %v1738_v63 }
0x14b7   :  { %1251 = vrot.lane.b32.xlu2 %v1249_v2, %s1745_s3 }
0x14bf   :  { %242 = vrot.lane.b32.xlu2 %v1902_v12, %s1742_s20 }
0x14c7   :  { %680 = vrot.lane.b32.xlu2 %v2016_v31, %s1742_s20 }
0x14cf   :  { %1126 = vrot.lane.b32.xlu2 %v1125_v4, %s1742_s20 }
0x14d7   :  { %972 = vrot.lane.b32.xlu2 %v2088_v47, %s1742_s20 }
0x14df   :  { %250 = vrot.lane.b32.xlu2 %v1932_v14, %s1742_s20 }
0x14e7   :  { %688 = vrot.lane.b32.xlu2 %v2044_v36, %s1742_s20 }
0x1509   :  { %v1190_v57 = vpop.permute.xlu1 %1189 }
0x150a   :  { %v1192_v59 = vmul.f32 %v1190_v57, %v1174_v43 }
0x150c   :  { %1194 = vrot.lane.b32.xlu0 %v1192_v59, %s1744_s28 }
0x1511   :  { %v1252_v12 = vpop.permute.xlu2 %1251 }
0x1512   :  { %v1254_v6 = vmul.f32 %v1252_v12, %v1236_v53 }
0x1514   :  { %388 = vrot.lane.b32.xlu0 %v1940_v17, %s1742_s20  ;;  %1256 = vrot.lane.b32.xlu1 %v1254_v6, %s1744_s28  ;;  %v1303_v6 = vld [vmem:[%s2396_s10] sm:$0x1] }
0x1519   :  { %v243_v31 = vpop.permute.xlu2 %242 }
0x151a   :  { %246 = vst.msk [vmem:[%s2404_s6] sm:$0x3] %vm69_vm0, %v243_v31 }
0x151c   :  { %834 = vrot.lane.b32.xlu0 %v2080_v28, %s1742_s20  ;;  %534 = vrot.lane.b32.xlu1 %v1978_v24, %s1742_s20 }
0x1521   :  { %v681_v14 = vpop.permute.xlu2 %680  ;;  %v1287_v22 = vld [vmem:[%s2404_s6] sm:$0x3] }
0x1522   :  { %1602 = vst.msk [vmem:[%s2404_s6 + $0x6] sm:$0x3] %vm69_vm0, %v681_v14 }
0x1524   :  { %980 = vrot.lane.b32.xlu1 %v2126_v44, %s1742_s20 }
0x1529   :  { %v1127_v17 = vpop.permute.xlu2 %1126  ;;  %v1290_v55 = vld [vmem:[%s2404_s6 + $0x6] sm:$0x3] }
0x152a   :  { %1627 = vst.msk [vmem:[%s2405_s7 + $0x2] sm:$0x3] %vm69_vm0, %v1127_v17  ;;  %v1347_v29 = vmul.f32 %v1290_v55, %v1290_v55 }
0x152c   :  { %826 = vrot.lane.b32.xlu1 %v2052_v38, %s1742_s20 }
0x1531   :  { %v973_v36 = vpop.permute.xlu2 %972  ;;  %v1296_v32 = vld [vmem:[%s2405_s7 + $0x2] sm:$0x3] }
0x1532   :  { %1618 = vst.msk [vmem:[%s2404_s6 + $0xa] sm:$0x3] %vm69_vm0, %v973_v36  ;;  %v1431_v48 = vmul.f32 %v1296_v32, %v1296_v32 }
0x1539   :  { %v2200_v24 = vld [vmem:[%s2404_s6 + $0xa] sm:$0x3]  ;;  %v251_v28 = vpop.permute.xlu2 %250 }
0x153a   :  { %1322 = vst [vmem:[#allocation1 + $0x21] ss:$4 sm:$0xff] %v2200_v24  ;;  %v1349_v10 = vmul.f32 %v2200_v24, %v2200_v24 }
0x153b   :  { %1579 = vst.msk [vmem:[%s2405_s7 + $0xe] sm:$0x3] %vm69_vm0, %v251_v28 }
0x1541   :  { %v689_v38 = vpop.permute.xlu2 %688 }
0x1542   :  { %1603 = vst.msk [vmem:[%s2405_s7 + $0x8] sm:$0x3] %vm69_vm0, %v689_v38 }
0x1549   :  { %v1299_v59 = vld [vmem:[%s2405_s7 + $0x8] sm:$0x3] }
0x157e   :  { %v1195_v47 = vpop.permute.xlu0 %1194 }
0x157f   :  { %v2211_v44 = vadd.f32 %v1736_v46, %v1195_v47 }
0x1581   :  { %1261 = vst [vmem:[#allocation1] ss:$4 sm:$0xff] %v2211_v44 }
0x1586   :  { %v389_v8 = vpop.permute.xlu0 %388  ;;  %v1257_v3 = vpop.permute.xlu1 %1256 }
0x1587   :  { %1586 = vst.msk [vmem:[%s2404_s6 + $0x2] sm:$0x3] %vm69_vm0, %v389_v8  ;;  %v2218_v5 = vadd.f32 %v1738_v63, %v1257_v3 }
0x1588   :  { %v1262_v9 = vld.sshfl [vmem:[#allocation1] sm:$0xff pattern:$0x73625140] }
0x1589   :  { %1263 = vrot.lane.b32.xlu1 %v1262_v9, %s1742_s20  ;;  %1269 = vst [vmem:[#allocation1] ss:$4 sm:$0xff] %v2218_v5 }
0x158e   :  { %v835_v11 = vpop.permute.xlu0 %834  ;;  %v535_v15 = vpop.permute.xlu1 %534 }
0x158f   :  { %1611 = vst.msk [vmem:[%s2405_s7 + $0x6] sm:$0x3] %vm69_vm0, %v835_v11 }
0x1590   :  { %v1270_v18 = vld.sshfl [vmem:[#allocation1] sm:$0xff pattern:$0x73625140]  ;;  %1594 = vst.msk [vmem:[%s2404_s6 + $0x4] sm:$0x3] %vm69_vm0, %v535_v15 }
0x1591   :  { %1275 = vst [vmem:[#allocation1] ss:$4 sm:$0xff] %v2211_v44  ;;  %542 = vrot.lane.b32.xlu1 %v2008_v21, %s1742_s20  ;;  %1271 = vrot.lane.b32.xlu0 %v1270_v18, %s1742_s20  ;;  %v1434_v18 = vmul.f32 %v1299_v59, %v1299_v59 }
0x1596   :  { %v981_v7 = vpop.permute.xlu1 %980  ;;  %v1298_v34 = vld [vmem:[%s2405_s7 + $0x6] sm:$0x3] }
0x1597   :  { %1619 = vst.msk [vmem:[%s2405_s7 + $0x4] sm:$0x3] %vm69_vm0, %v981_v7  ;;  %v1289_v16 = vld [vmem:[%s2404_s6 + $0x4] sm:$0x3]  ;;  %v1433_v50 = vmul.f32 %v1298_v34, %v1298_v34 }
0x1598   :  { %v1276_v19 = vld.sshfl [vmem:[#allocation1] sm:$0xff pattern:$0x73625140]  ;;  %v1346_v23 = vmul.f32 %v1289_v16, %v1289_v16 }
0x1599   :  { %1281 = vst [vmem:[#allocation1] ss:$4 sm:$0xff] %v2218_v5  ;;  %1118 = vrot.lane.b32.xlu0 %v2134_v60, %s1742_s20  ;;  %v1288_v60 = vld [vmem:[%s2404_s6 + $0x2] sm:$0x3] }
0x159a   :  { %v1345_v26 = vmul.f32 %v1288_v60, %v1288_v60 }
0x159e   :  { %v827_v20 = vpop.permute.xlu1 %826  ;;  %v1297_v0 = vld [vmem:[%s2405_s7 + $0x4] sm:$0x3] }
0x159f   :  { %1610 = vst.msk [vmem:[%s2404_s6 + $0x8] sm:$0x3] %vm69_vm0, %v827_v20  ;;  %v1432_v49 = vmul.f32 %v1297_v0, %v1297_v0 }
0x15a0   :  { %v1282_v21 = vld.sshfl [vmem:[#allocation1] sm:$0xff pattern:$0x73625140] }
0x15a1   :  { %1316 = vst [vmem:[#allocation1 + $0x2] ss:$4 sm:$0xff] %v1289_v16  ;;  %396 = vrot.lane.b32.xlu0 %v1970_v13, %s1742_s20  ;;  %1283 = vrot.lane.b32.xlu1 %v1282_v21, %s1742_s20  ;;  %v1344_v13 = vmul.f32 %v1287_v22, %v1287_v22 }
0x15a2   :  { %1312 = vst [vmem:[#allocation1] ss:$4 sm:$0xff] %v1287_v22 }
0x15a3   :  { %1314 = vst [vmem:[#allocation1 + $0x1] ss:$4 sm:$0xff] %v1288_v60 }
0x15a4   :  { %1318 = vst [vmem:[#allocation1 + $0x3] ss:$4 sm:$0xff] %v1290_v55 }
0x15a6   :  { %v1291_v25 = vld [vmem:[%s2404_s6 + $0x8] sm:$0x3] }
0x15a7   :  { %1320 = vst [vmem:[#allocation1 + $0x20] ss:$4 sm:$0xff] %v1291_v25  ;;  %v1348_v53 = vmul.f32 %v1291_v25, %v1291_v25 }
0x15a9   :  { %1277 = vrot.lane.b32.xlu0 %v1276_v19, %s1742_s20  ;;  %v1343_v19 = vld [vmem:[%s2397_s11] sm:$0x1] }
0x15ab   :  { %v1327_v27 = vld.sshfl [vmem:[#allocation1] sm:$0xff pattern:$0x73625140] }
0x15ac   :  { %1360 = vst [vmem:[#allocation1] ss:$4 sm:$0xff] %v1344_v13  ;;  %v1331_v56 = vsel %vm100_vm2, %v1327_v27, 0.0 }
0x15ad   :  { %1362 = vst [vmem:[#allocation1 + $0x1] ss:$4 sm:$0xff] %v1345_v26 }
0x15ae   :  { %1364 = vst [vmem:[#allocation1 + $0x2] ss:$4 sm:$0xff] %v1346_v23 }
0x15af   :  { %1366 = vst [vmem:[#allocation1 + $0x3] ss:$4 sm:$0xff] %v1347_v29 }
0x15b6   :  { %v1375_v33 = vld.sshfl [vmem:[#allocation1] sm:$0xff pattern:$0x73625140] }
0x15b7   :  { %1401 = vst [vmem:[#allocation1 + $0x1] ss:$4 sm:$0xff] %v1296_v32  ;;  %v1379_v17 = vsel %vm100_vm2, %v1375_v33, 0.0 }
0x15b8   :  { %1403 = vst [vmem:[#allocation1 + $0x2] ss:$4 sm:$0xff] %v1297_v0 }
0x15b9   :  { %1405 = vst [vmem:[#allocation1 + $0x3] ss:$4 sm:$0xff] %v1298_v34 }
0x15fb   :  { %v1264_v35 = vpop.permute.xlu1 %1263 }
0x15fc   :  { %1633 = vst.msk [vmem:[%s2404_s6 + $0xe] sm:$0x3] %vm69_vm0, %v1264_v35 }
0x1603   :  { %v1294_v30 = vld [vmem:[%s2404_s6 + $0xe] sm:$0x3]  ;;  %v1272_v1 = vpop.permute.xlu0 %1271  ;;  %v543_v39 = vpop.permute.xlu1 %542 }
0x1604   :  { %1326 = vst [vmem:[#allocation1 + $0x23] ss:$4 sm:$0xff] %v1294_v30  ;;  %v1351_v58 = vmul.f32 %v1294_v30, %v1294_v30 }
0x1605   :  { %1274 = vst.msk [vmem:[%s2405_s7] sm:$0x3] %vm69_vm0, %v1272_v1 }
0x1606   :  { %1595 = vst.msk [vmem:[%s2405_s7 + $0xa] sm:$0x3] %vm69_vm0, %v543_v39 }
0x160b   :  { %v1119_v40 = vpop.permute.xlu0 %1118 }
0x160c   :  { %v1295_v41 = vld [vmem:[%s2405_s7] sm:$0x3]  ;;  %1626 = vst.msk [vmem:[%s2404_s6 + $0xc] sm:$0x3] %vm69_vm0, %v1119_v40 }
0x160d   :  { %1399 = vst [vmem:[#allocation1] ss:$4 sm:$0xff] %v1295_v41  ;;  %v1430_v37 = vmul.f32 %v1295_v41, %v1295_v41  ;;  %v1300_v31 = vld [vmem:[%s2405_s7 + $0xa] sm:$0x3]  ;;  %v1390_v40 = vld [vmem:[%s2399_s12] sm:$0x1] }
0x160e   :  { %v1435_v20 = vmul.f32 %v1300_v31, %v1300_v31 }
0x1613   :  { %v1293_v42 = vld [vmem:[%s2404_s6 + $0xc] sm:$0x3]  ;;  %v397_v43 = vpop.permute.xlu0 %396  ;;  %v1284_v51 = vpop.permute.xlu1 %1283 }
0x1614   :  { %1324 = vst [vmem:[#allocation1 + $0x22] ss:$4 sm:$0xff] %v1293_v42  ;;  %v1414_v45 = vld.sshfl [vmem:[#allocation1] sm:$0xff pattern:$0x73625140]  ;;  %v1350_v52 = vmul.f32 %v1293_v42, %v1293_v42 }
0x1615   :  { %1587 = vst.msk [vmem:[%s2405_s7 + $0xc] sm:$0x3] %vm69_vm0, %v397_v43  ;;  %v1418_v22 = vsel %vm100_vm2, %v1414_v45, 0.0 }
0x1616   :  { %1446 = vst [vmem:[#allocation1] ss:$4 sm:$0xff] %v1430_v37 }
0x1617   :  { %1448 = vst [vmem:[#allocation1 + $0x1] ss:$4 sm:$0xff] %v1431_v48 }
0x1618   :  { %1450 = vst [vmem:[#allocation1 + $0x2] ss:$4 sm:$0xff] %v1432_v49 }
0x1619   :  { %1452 = vst [vmem:[#allocation1 + $0x3] ss:$4 sm:$0xff] %v1433_v50 }
0x161a   :  { %1286 = vst.msk [vmem:[#allocation3] sm:$0x3] %vm69_vm0, %v1284_v51 }
0x161b   :  { %v1328_v54 = vld.sshfl [vmem:[#allocation1 + $0x20] sm:$0xff pattern:$0x73625140]  ;;  %v1278_v62 = vpop.permute.xlu0 %1277 }
0x161c   :  { %v1332_v46 = vsel %vm100_vm2, %v1328_v54, 0.0  ;;  %1372 = vst [vmem:[#allocation1 + $0x22] ss:$4 sm:$0xff] %v1350_v52  ;;  %v1301_v24 = vld [vmem:[%s2405_s7 + $0xc] sm:$0x3] }
0x161d   :  { %v1333_v61 = vadd.f32 %v1332_v46, %v1331_v56  ;;  %1368 = vst [vmem:[#allocation1 + $0x20] ss:$4 sm:$0xff] %v1348_v53  ;;  %v1436_v60 = vmul.f32 %v1301_v24, %v1301_v24  ;;  %v1429_v56 = vld [vmem:[%s2400_s13] sm:$0x1] }
0x161e   :  { %1370 = vst [vmem:[#allocation1 + $0x21] ss:$4 sm:$0xff] %v1349_v10 }
0x161f   :  { %v1334_v63 = vrot.slane %v1333_v61, 4  ;;  %1374 = vst [vmem:[#allocation1 + $0x23] ss:$4 sm:$0xff] %v1351_v58 }
0x1620   :  { %1280 = vst.msk [vmem:[#allocation2] sm:$0x3] %vm69_vm0, %v1278_v62  ;;  %v1461_v2 = vld.sshfl [vmem:[#allocation1] sm:$0xff pattern:$0x73625140] }
0x1621   :  { %v1335_v4 = vadd.f32 %v1334_v63, %v1333_v61  ;;  %1479 = vst [vmem:[#allocation1] ss:$4 sm:$0xff] %v2211_v44  ;;  %v1302_v44 = vld [vmem:[%s2405_s7 + $0xe] sm:$0x3]  ;;  %v1465_v1 = vsel %vm100_vm2, %v1461_v2, 0.0 }
0x1622   :  { %v1437_v55 = vmul.f32 %v1302_v44, %v1302_v44 }
0x1623   :  { %v1336_v57 = vrot.slane %v1335_v4, 2 }
0x1625   :  { %v1337_v12 = vadd.f32 %v1336_v57, %v1335_v4 }
0x1626   :  { %v1376_v14 = vld.sshfl [vmem:[#allocation1 + $0x20] sm:$0xff pattern:$0x73625140] }
0x1627   :  { %v1338_v36 = vrot.slane %v1337_v12, 1  ;;  %v1380_v28 = vsel %vm100_vm2, %v1376_v14, 0.0  ;;  %1407 = vst [vmem:[#allocation1 + $0x20] ss:$4 sm:$0xff] %v1299_v59 }
0x1628   :  { %v1381_v38 = vadd.f32 %v1380_v28, %v1379_v17  ;;  %1409 = vst [vmem:[#allocation1 + $0x21] ss:$4 sm:$0xff] %v1300_v31  ;;  %v1480_v47 = vld.sshfl [vmem:[#allocation1] sm:$0xff pattern:$0x73625140] }
0x1629   :  { %v1339_v8 = vadd.f32 %v1338_v36, %v1337_v12  ;;  %1411 = vst [vmem:[#allocation1 + $0x22] ss:$4 sm:$0xff] %v1301_v24  ;;  %1481 = vrot.lane.b32.xlu2 %v1480_v47, %s1742_s20 }
0x162a   :  { %v1382_v3 = vrot.slane %v1381_v38, 4  ;;  %1413 = vst [vmem:[#allocation1 + $0x23] ss:$4 sm:$0xff] %v1302_v44 }
0x162b   :  { %v1340_v9 = vadd.f32 %v1339_v8, %v1303_v6  ;;  %1485 = vst [vmem:[#allocation1] ss:$4 sm:$0xff] %v2218_v5 }
0x162c   :  { %v1383_v11 = vadd.f32 %v1382_v3, %v1381_v38 }
0x162d   :  { %1342 = vst.msk [vmem:[%s2396_s10] sm:$0x1] %vm72_vm1, %v1340_v9 }
0x162e   :  { %v1384_v15 = vrot.slane %v1383_v11, 2 }
0x1630   :  { %v1385_v7 = vadd.f32 %v1384_v15, %v1383_v11 }
0x1631   :  { %v1415_v21 = vld.sshfl [vmem:[#allocation1 + $0x20] sm:$0xff pattern:$0x73625140] }
0x1632   :  { %v1386_v16 = vrot.slane %v1385_v7, 1  ;;  %v1419_v5 = vsel %vm100_vm2, %v1415_v21, 0.0  ;;  %1454 = vst [vmem:[#allocation1 + $0x20] ss:$4 sm:$0xff] %v1434_v18 }
0x1633   :  { %v1420_v25 = vadd.f32 %v1419_v5, %v1418_v22  ;;  %1456 = vst [vmem:[#allocation1 + $0x21] ss:$4 sm:$0xff] %v1435_v20  ;;  %v1486_v13 = vld.sshfl [vmem:[#allocation1] sm:$0xff pattern:$0x73625140] }
0x1634   :  { %v1387_v26 = vadd.f32 %v1386_v16, %v1385_v7  ;;  %1458 = vst [vmem:[#allocation1 + $0x22] ss:$4 sm:$0xff] %v1436_v60  ;;  %v1491_v27 = vld [vmem:[%s2396_s10] sm:$0x1]  ;;  %1487 = vrot.lane.b32.xlu0 %v1486_v13, %s1742_s20 }
0x1635   :  { %v1421_v23 = vrot.slane %v1420_v25, 4  ;;  %1460 = vst [vmem:[#allocation1 + $0x23] ss:$4 sm:$0xff] %v1437_v55  ;;  %v1492_v29 = vmul.f32 0.0625, %v1491_v27 }
0x1636   :  { %v1388_v32 = vadd.f32 %v1387_v26, %v1343_v19 }
0x1637   :  { %v1422_v33 = vadd.f32 %v1421_v23, %v1420_v25  ;;  %1495 = vst.msk [vmem:[%s2396_s10] sm:$0x1] %vm72_vm1, %v1492_v29  ;;  %v1499_v45 = vmul.f32 %v1492_v29, %v1492_v29 }
0x1638   :  { %1389 = vst.msk [vmem:[%s2397_s11] sm:$0x1] %vm72_vm1, %v1388_v32 }
0x1639   :  { %v1423_v0 = vrot.slane %v1422_v33, 2 }
0x163b   :  { %v1424_v34 = vadd.f32 %v1423_v0, %v1422_v33 }
0x163c   :  { %v1462_v35 = vld.sshfl [vmem:[#allocation1 + $0x20] sm:$0xff pattern:$0x73625140] }
0x163d   :  { %v1425_v30 = vrot.slane %v1424_v34, 1  ;;  %v1466_v39 = vsel %vm100_vm2, %v1462_v35, 0.0 }
0x163e   :  { %v1467_v41 = vadd.f32 %v1466_v39, %v1465_v1 }
0x163f   :  { %v1426_v42 = vadd.f32 %v1425_v30, %v1424_v34  ;;  %v1497_v43 = vld [vmem:[%s2397_s11] sm:$0x1] }
0x1640   :  { %v1498_v37 = vmul.f32 0.0625, %v1497_v43  ;;  %v1468_v48 = vrot.slane %v1467_v41, 4 }
0x1641   :  { %v1427_v49 = vadd.f32 %v1426_v42, %v1390_v40 }
0x1642   :  { %v1500_v50 = vsub.f32 %v1498_v37, %v1499_v45  ;;  %v1469_v51 = vadd.f32 %v1468_v48, %v1467_v41 }
0x1643   :  { %1428 = vst.msk [vmem:[%s2399_s12] sm:$0x1] %vm72_vm1, %v1427_v49 }
0x1644   :  { %v1501_v52 = vmax.f32 %v1500_v50, 0.0  ;;  %v1470_v53 = vrot.slane %v1469_v51, 2 }
0x1646   :  { %1502 = vst.msk [vmem:[%s2397_s11] sm:$0x1] %vm72_vm1, %v1501_v52  ;;  %v1471_v54 = vadd.f32 %v1470_v53, %v1469_v51 }
0x1648   :  { %v1472_v10 = vrot.slane %v1471_v54, 1 }
0x164a   :  { %v1493_v46 = vld [vmem:[%s2399_s12] sm:$0x1]  ;;  %v1473_v58 = vadd.f32 %v1472_v10, %v1471_v54 }
0x164b   :  { %v1494_v61 = vmul.f32 0.0625, %v1493_v46 }
0x164c   :  { %v1474_v62 = vadd.f32 %v1473_v58, %v1429_v56 }
0x164d   :  { %1496 = vst.msk [vmem:[%s2399_s12] sm:$0x1] %vm72_vm1, %v1494_v61  ;;  %v1505_v2 = vmul.f32 %v1494_v61, %v1494_v61 }
0x164e   :  { %1475 = vst.msk [vmem:[%s2400_s13] sm:$0x1] %vm72_vm1, %v1474_v62 }
0x1655   :  { %v1503_v63 = vld [vmem:[%s2400_s13] sm:$0x1] }
0x1656   :  { %v1504_v4 = vmul.f32 0.0625, %v1503_v63 }
0x1658   :  { %v1506_v57 = vsub.f32 %v1504_v4, %v1505_v2 }
0x165a   :  { %v1507_v59 = vmax.f32 %v1506_v57, 0.0 }
0x165c   :  { %1508 = vst.msk [vmem:[%s2400_s13] sm:$0x1] %vm72_vm1, %v1507_v59 }
0x1683   :  { %v1482_v12 = vpop.permute.xlu2 %1481 }
0x1684   :  { %1484 = vst.msk [vmem:[%s2406_s8] sm:$0x3] %vm69_vm0, %v1482_v12 }
0x16a6   :  { %v1488_v6 = vpop.permute.xlu0 %1487 }
0x16a7   :  { %1490 = vst.msk [vmem:[%s2407_s9] sm:$0x3] %vm69_vm0, %v1488_v6 }

// kernel: encoder_forward.7
= control target key start
LH: loop header
LB: loop body
LE: loop exit
PB: predicated region body
PF: predicated region fallthrough
CT: control target
= control target key end

     0   :  { %19 = vsyncpa [#allocation5], 0  ;;  %vm71_vm0 = vcmask 123904   ;;  %vm74_vm1 = vcmask 122880   ;;  %v1821_v2 = vmov 0.0   ;;  %s2479_s0 = inlined_call_operand.vmem [shape: bf16[8,2,48], index: 0, kind: input, shape index: {}]   ;;  %s2480_s1 = inlined_call_operand.vmem [shape: bf16[8,2,48], index: 1, kind: input, shape index: {}]   ;;  %s2481_s2 = inlined_call_operand.vmem [shape: bf16[16,48], index: 2, kind: input, shape index: {}]   ;;  %s2482_s3 = inlined_call_operand.vmem [shape: bf16[16,48], index: 3, kind: input, shape index: {}]   ;;  %s2483_s4 = inlined_call_operand.vmem [shape: f32[1,48], index: 4, kind: input, shape index: {}]   ;;  %s2484_s5 = inlined_call_operand.vmem [shape: f32[1,48], index: 5, kind: input, shape index: {}]   ;;  %s2485_s6 = inlined_call_operand.vmem [shape: f32[8,2,16], index: 6, kind: output, shape index: {0}]   ;;  %s2486_s7 = inlined_call_operand.vmem [shape: f32[8,2,16], index: 7, kind: output, shape index: {1}]   ;;  %s2487_s8 = inlined_call_operand.hbm [shape: f32[2,16], index: 8, kind: output, shape index: {2}]   ;;  %s2488_s9 = inlined_call_operand.hbm [shape: f32[2,16], index: 9, kind: output, shape index: {3}]   ;;  %s2489_s10 = inlined_call_operand.vmem [shape: f32[1,16], index: 10, kind: output, shape index: {4}]   ;;  %s2490_s11 = inlined_call_operand.vmem [shape: f32[1,16], index: 11, kind: output, shape index: {5}]   ;;  %s2491_s12 = inlined_call_operand.vmem [shape: f32[1,16], index: 12, kind: output, shape index: {6}]   ;;  %s2492_s13 = inlined_call_operand.vmem [shape: f32[1,16], index: 13, kind: output, shape index: {7}]  }
   0x1   :  { %v1901_v0 = vld [vmem:[%s2481_s2] sm:$0xff]  ;;  %72 = vst.msk [vmem:[#allocation2] sm:$0x3] %vm71_vm0, %v1821_v2 }
   0x2   :  { %v1906_v1 = vld [vmem:[%s2482_s3] sm:$0xff]  ;;  %113 = vmatpush.bf16.msra.mxu0 %v1901_v0  ;;  %75 = vst.msk [vmem:[%s2489_s10] sm:$0x1] %vm74_vm1, %v1821_v2  ;;  %277 = vmatpush.bf16.msra.mxu2 %v1901_v0 }
   0x3   :  { %187 = vmatpush.bf16.msra.mxu1 %v1906_v1  ;;  %76 = vst.msk [vmem:[%s2490_s11] sm:$0x1] %vm74_vm1, %v1821_v2  ;;  %339 = vmatpush.bf16.msra.mxu3 %v1906_v1 }
   0x4   :  { %20 = vsyncpa [#allocation7], 0  ;;  %77 = vst.msk [vmem:[%s2491_s12] sm:$0x1] %vm74_vm1, %v1821_v2  ;;  %vm102_vm2 = vcmask 130048   ;;  %s1822_s20 = smov 96  }
   0x5   :  { %78 = vst.msk [vmem:[%s2492_s13] sm:$0x1] %vm74_vm1, %v1821_v2  ;;  %v1949_v7 = vld [vmem:[%s2483_s4] ss:$0 sm:$0xff]  ;;  %v1592_v18 = vld [vmem:[%s2480_s1 + $0x7] sm:$0x1] }
   0x6   :  { %423 = vmatpush.bf16.msrb.mxu0 %v1901_v0  ;;  %569 = vmatpush.bf16.msrb.mxu2 %v1901_v0  ;;  %73 = vst.msk [vmem:[#allocation3] sm:$0x3] %vm71_vm0, %v1821_v2  ;;  %v1956_v10 = vld [vmem:[%s2484_s5] ss:$0 sm:$0xff]  ;;  %v91_v20 = vunpack.c.l.bf16 %v1592_v18  ;;  %s1823_s27 = smov 32   ;;  %s1824_s28 = smov 16  }
   0x7   :  { %485 = vmatpush.bf16.msrb.mxu1 %v1906_v1  ;;  %631 = vmatpush.bf16.msrb.mxu3 %v1906_v1  ;;  %v87_v15 = vld [vmem:[%s2479_s0] sm:$0x1]  ;;  %s1825_s3 = smov 112   ;;  %s1827_s29 = smov [#allocation6]  }
   0x8   :  { %v1934_v3 = vld [vmem:[#allocation2] sm:$0x3]  ;;  %v88_v16 = vunpack.c.l.bf16 %v87_v15  ;;  %s1539_s30 = sshll.u32 %s1827_s29, 4  ;;  %s1541_s14 = sshll.u32 %s2488_s9, 4  ;;  %s1540_s30 = int_to_ptr.vmem [resolvable:$true] %s1539_s30  ;;  %s1542_s14 = int_to_ptr.hbm [resolvable:$true] %s1541_s14 }
   0x9   :  { %v92_v4 = vpack.c.bf16 %v1934_v3, %v1934_v3 }
   0xb   :  { %1597 = vmatmul.msk.bf16.vlgmr.msra.gmra.mxu0 %vm102_vm2, %v92_v4 }
   0xc   :  { %715 = vmatpush.bf16.msra.mxu0 %v1901_v0 }
   0xd   :  { %v1940_v5 = vld [vmem:[#allocation3] sm:$0x3] }
   0xe   :  { %v167_v6 = vpack.c.bf16 %v1940_v5, %v1940_v5 }
  0x10   :  { %1603 = vmatmul.msk.bf16.vlgmr.msra.gmra.mxu1 %vm102_vm2, %v167_v6 }
  0x11   :  { %777 = vmatpush.bf16.msra.mxu1 %v1906_v1 }
  0x88   :  { %v115_v8 = vpop.f32.mrf.mxu0 }
  0x89   :  { %v116_v9 = vadd.f32 %v1949_v7, %v115_v8 }
  0x8b   :  { %140 = vrot.lane.b32.xlu0 %v116_v9, %s1822_s20  ;;  %v119_v17 = vadd.f32 %v116_v9, %v88_v16 }
  0x8d   :  { %v189_v11 = vpop.f32.mrf.mxu1  ;;  %v1598_v19 = vmul.f32 -1.442695, %v119_v17 }
  0x8e   :  { %v190_v13 = vadd.f32 %v1956_v10, %v189_v11 }
  0x8f   :  { %1671 = vpow2.f32 %v1598_v19 }
  0x90   :  { %v117_v12 = vpop.f32.mrf.mxu0  ;;  %v193_v21 = vadd.f32 %v190_v13, %v91_v20 }
  0x92   :  { %v1604_v22 = vmul.f32 -1.442695, %v193_v21 }
  0x93   :  { %214 = vrot.lane.b32.xlu0 %v190_v13, %s1822_s20 }
  0x94   :  { %1673 = vpow2.f32 %v1604_v22  ;;  %v1606_v22 = vld [vmem:[%s2479_s0 + $0x1] sm:$0x1] }
  0x95   :  { %v191_v14 = vpop.f32.mrf.mxu1  ;;  %v1672_v23 = vpop.eup %1671 }
  0x96   :  { %v123_v24 = vadd.f32 1.0, %v1672_v23  ;;  %v259_v23 = vunpack.c.l.bf16 %v1606_v22 }
  0x98   :  { %1675 = vrcp.f32 %v123_v24  ;;  %v135_v35 = vand.u32 2147483648, %v123_v24  ;;  %vm129_vm4 = vweird.f32 %v123_v24  ;;  %v133_v36 = vand.u32 2147483647, %v123_v24 }
  0x9a   :  { %v1674_v25 = vpop.eup %1673  ;;  %v136_v39 = vor.u32 1.1754944e-38, %v135_v35  ;;  %vm134_vm6 = vcmp.eq.f32.partialorder %v133_v36, 8.507059e+37 }
  0x9b   :  { %v197_v26 = vadd.f32 1.0, %v1674_v25  ;;  %v1607_v25 = vld [vmem:[%s2480_s1 + $0x6] sm:$0x1] }
  0x9d   :  { %1677 = vrcp.f32 %v197_v26  ;;  %vm203_vm7 = vweird.f32 %v197_v26  ;;  %v209_v44 = vand.u32 2147483648, %v197_v26  ;;  %v207_v45 = vand.u32 2147483647, %v197_v26 }
  0x9e   :  { %v1676_v27 = vpop.eup %1675 }
  0x9f   :  { %v125_v28 = vmul.f32 %v1676_v27, %v123_v24  ;;  %vm130_vm3 = vweird.f32 %v1676_v27  ;;  %v210_v47 = vor.u32 1.1754944e-38, %v209_v44  ;;  %vm208_vm10 = vcmp.eq.f32.partialorder %v207_v45, 8.507059e+37 }
  0xa0   :  { %vm131_vm5 = vmor %vm129_vm4, %vm130_vm3 }
  0xa1   :  { %v126_v29 = vsub.f32 1.0, %v125_v28 }
  0xa3   :  { %v1678_v30 = vpop.eup %1677  ;;  %v127_v31 = vmul.f32 %v1676_v27, %v126_v29 }
  0xa4   :  { %v199_v32 = vmul.f32 %v1678_v30, %v197_v26  ;;  %vm204_vm8 = vweird.f32 %v1678_v30 }
  0xa5   :  { %v128_v33 = vadd.f32 %v1676_v27, %v127_v31  ;;  %vm205_vm9 = vmor %vm203_vm7, %vm204_vm8 }
  0xa6   :  { %v200_v34 = vsub.f32 1.0, %v199_v32 }
  0xa7   :  { %v132_v37 = vsel %vm131_vm5, %v1676_v27, %v128_v33  ;;  %v262_v27 = vunpack.c.l.bf16 %v1607_v25 }
  0xa8   :  { %v201_v38 = vmul.f32 %v1678_v30, %v200_v34  ;;  %v137_v41 = vsel %vm134_vm6, %v136_v39, %v132_v37 }
  0xaa   :  { %v202_v43 = vadd.f32 %v1678_v30, %v201_v38 }
  0xac   :  { %v206_v46 = vsel %vm205_vm9, %v1678_v30, %v202_v43 }
  0xad   :  { %v211_v48 = vsel %vm208_vm10, %v210_v47, %v206_v46 }
  0xfd   :  { %v141_v40 = vpop.permute.xlu0 %140 }
  0xfe   :  { %v143_v42 = vmul.f32 %v141_v40, %v137_v41 }
 0x100   :  { %145 = vrot.lane.b32.xlu1 %v143_v42, %s1823_s27 }
 0x105   :  { %v215_v49 = vpop.permute.xlu0 %214 }
 0x106   :  { %v217_v50 = vmul.f32 %v215_v49, %v211_v48 }
 0x108   :  { %219 = vrot.lane.b32.xlu1 %v217_v50, %s1823_s27 }
 0x172   :  { %v146_v51 = vpop.permute.xlu1 %145 }
 0x173   :  { %v148_v52 = vadd.f32 %v146_v51, %v88_v16 }
 0x175   :  { %1679 = vtanh.f32 %v148_v52 }
 0x17a   :  { %v220_v53 = vpop.permute.xlu1 %219 }
 0x17b   :  { %v1680_v54 = vpop.eup %1679  ;;  %v222_v55 = vadd.f32 %v220_v53, %v91_v20 }
 0x17c   :  { %151 = vst [vmem:[#allocation1] ss:$4 sm:$0xff] %v1680_v54 }
 0x17d   :  { %1681 = vtanh.f32 %v222_v55 }
 0x183   :  { %v1682_v56 = vpop.eup %1681  ;;  %v152_v57 = vld.sshfl [vmem:[#allocation1] sm:$0xff pattern:$0x73625140] }
 0x184   :  { %225 = vst [vmem:[#allocation1] ss:$4 sm:$0xff] %v1682_v56  ;;  %153 = vrot.lane.b32.xlu2 %v152_v57, %s1822_s20 }
 0x18b   :  { %v226_v58 = vld.sshfl [vmem:[#allocation1] sm:$0xff pattern:$0x73625140] }
 0x18c   :  { %227 = vrot.lane.b32.xlu2 %v226_v58, %s1822_s20 }
 0x1de   :  { %v154_v59 = vpop.permute.xlu2 %153 }
 0x1df   :  { %v156_v60 = vsub.f32 %v1934_v3, %v154_v59 }
 0x1e1   :  { %158 = vrot.lane.b32.xlu0 %v156_v60, %s1824_s28 }
 0x1e6   :  { %v228_v61 = vpop.permute.xlu2 %227 }
 0x1e7   :  { %v230_v62 = vsub.f32 %v1940_v5, %v228_v61 }
 0x1e9   :  { %232 = vrot.lane.b32.xlu1 %v230_v62, %s1824_s28 }
 0x253   :  { %v159_v63 = vpop.permute.xlu0 %158 }
 0x254   :  { %v161_v2 = vmul.f32 %v159_v63, %v137_v41 }
 0x256   :  { %163 = vrot.lane.b32.xlu2 %v161_v2, %s1824_s28 }
 0x25b   :  { %v233_v4 = vpop.permute.xlu1 %232 }
 0x25c   :  { %v235_v6 = vmul.f32 %v233_v4, %v211_v48 }
 0x25e   :  { %237 = vrot.lane.b32.xlu0 %v235_v6, %s1824_s28 }
 0x2b0   :  { %v164_v8 = vpop.permute.xlu2 %163 }
 0x2b1   :  { %v1976_v9 = vadd.f32 %v1680_v54, %v164_v8 }
 0x2b3   :  { %242 = vst [vmem:[#allocation1] ss:$4 sm:$0xff] %v1976_v9  ;;  %v263_v3 = vpack.c.bf16 %v1976_v9, %v1976_v9 }
 0x2b5   :  { %265 = vrot.lane.b32.xlu1 %v263_v3, %s1822_s20 }
 0x2ba   :  { %v1984_v12 = vld.sshfl [vmem:[#allocation1] sm:$0xff pattern:$0x73625140] }
 0x2d0   :  { %v238_v5 = vpop.permute.xlu0 %237 }
 0x2d1   :  { %v1982_v11 = vadd.f32 %v1682_v56, %v238_v5 }
 0x2d3   :  { %250 = vst [vmem:[#allocation1] ss:$4 sm:$0xff] %v1982_v11  ;;  %v325_v13 = vpack.c.bf16 %v1982_v11, %v1982_v11 }
 0x2d5   :  { %327 = vrot.lane.b32.xlu2 %v325_v13, %s1822_s20 }
 0x327   :  { %v266_v14 = vpop.permute.xlu1 %265 }
 0x328   :  { %1608 = vmatmul.msk.bf16.vlgmr.msra.gmra.mxu2 %vm102_vm2, %v266_v14  ;;  %v2014_v14 = vld.sshfl [vmem:[#allocation1] sm:$0xff pattern:$0x73625140] }
 0x329   :  { %861 = vmatpush.bf16.msra.mxu2 %v1901_v0 }
 0x32f   :  { %v328_v15 = vpop.permute.xlu2 %327 }
 0x330   :  { %1610 = vmatmul.msk.bf16.vlgmr.msra.gmra.mxu3 %vm102_vm2, %v328_v15 }
 0x331   :  { %923 = vmatpush.bf16.msra.mxu3 %v1906_v1 }
 0x3ab   :  { %v279_v16 = vpop.f32.mrf.mxu2 }
 0x3ac   :  { %v280_v17 = vadd.f32 %v1949_v7, %v279_v16 }
 0x3ae   :  { %304 = vrot.lane.b32.xlu0 %v280_v17, %s1822_s20  ;;  %v283_v24 = vadd.f32 %v280_v17, %v259_v23 }
 0x3b0   :  { %v1609_v26 = vmul.f32 -1.442695, %v283_v24 }
 0x3b2   :  { %1683 = vpow2.f32 %v1609_v26 }
 0x3b3   :  { %v281_v18 = vpop.f32.mrf.mxu2  ;;  %v341_v19 = vpop.f32.mrf.mxu3 }
 0x3b4   :  { %v342_v20 = vadd.f32 %v1956_v10, %v341_v19 }
 0x3b6   :  { %366 = vrot.lane.b32.xlu1 %v342_v20, %s1822_s20  ;;  %v345_v28 = vadd.f32 %v342_v20, %v262_v27 }
 0x3b8   :  { %v1611_v29 = vmul.f32 -1.442695, %v345_v28  ;;  %v1684_v30 = vpop.eup %1683 }
 0x3b9   :  { %v287_v31 = vadd.f32 1.0, %v1684_v30  ;;  %v1615_v30 = vld [vmem:[%s2480_s1 + $0x5] sm:$0x1] }
 0x3ba   :  { %1685 = vpow2.f32 %v1611_v29 }
 0x3bb   :  { %v343_v21 = vpop.f32.mrf.mxu3  ;;  %1687 = vrcp.f32 %v287_v31  ;;  %v299_v42 = vand.u32 2147483648, %v287_v31  ;;  %vm293_vm12 = vweird.f32 %v287_v31  ;;  %v297_v43 = vand.u32 2147483647, %v287_v31 }
 0x3bd   :  { %v300_v46 = vor.u32 1.1754944e-38, %v299_v42  ;;  %vm298_vm14 = vcmp.eq.f32.partialorder %v297_v43, 8.507059e+37 }
 0x3c0   :  { %v1686_v32 = vpop.eup %1685 }
 0x3c1   :  { %v349_v33 = vadd.f32 1.0, %v1686_v32  ;;  %v1688_v34 = vpop.eup %1687  ;;  %v408_v32 = vunpack.c.l.bf16 %v1615_v30 }
 0x3c2   :  { %v289_v35 = vmul.f32 %v1688_v34, %v287_v31  ;;  %vm294_vm11 = vweird.f32 %v1688_v34 }
 0x3c3   :  { %1689 = vrcp.f32 %v349_v33  ;;  %vm295_vm13 = vmor %vm293_vm12, %vm294_vm11  ;;  %v361_v51 = vand.u32 2147483648, %v349_v33  ;;  %vm355_vm3 = vweird.f32 %v349_v33  ;;  %v359_v52 = vand.u32 2147483647, %v349_v33 }
 0x3c4   :  { %v290_v36 = vsub.f32 1.0, %v289_v35 }
 0x3c5   :  { %v362_v54 = vor.u32 1.1754944e-38, %v361_v51  ;;  %vm360_vm5 = vcmp.eq.f32.partialorder %v359_v52, 8.507059e+37 }
 0x3c6   :  { %v291_v38 = vmul.f32 %v1688_v34, %v290_v36 }
 0x3c8   :  { %v292_v40 = vadd.f32 %v1688_v34, %v291_v38 }
 0x3c9   :  { %v1690_v37 = vpop.eup %1689 }
 0x3ca   :  { %v351_v39 = vmul.f32 %v1690_v37, %v349_v33  ;;  %v296_v44 = vsel %vm295_vm13, %v1688_v34, %v292_v40  ;;  %vm356_vm15 = vweird.f32 %v1690_v37 }
 0x3cb   :  { %v301_v48 = vsel %vm298_vm14, %v300_v46, %v296_v44  ;;  %vm357_vm4 = vmor %vm355_vm3, %vm356_vm15 }
 0x3cc   :  { %v352_v41 = vsub.f32 1.0, %v351_v39 }
 0x3ce   :  { %v353_v45 = vmul.f32 %v1690_v37, %v352_v41 }
 0x3d0   :  { %v354_v50 = vadd.f32 %v1690_v37, %v353_v45 }
 0x3d2   :  { %v358_v53 = vsel %vm357_vm4, %v1690_v37, %v354_v50 }
 0x3d3   :  { %v363_v56 = vsel %vm360_vm5, %v362_v54, %v358_v53 }
 0x420   :  { %v305_v47 = vpop.permute.xlu0 %304 }
 0x421   :  { %v307_v49 = vmul.f32 %v305_v47, %v301_v48 }
 0x423   :  { %309 = vrot.lane.b32.xlu2 %v307_v49, %s1823_s27 }
 0x428   :  { %v367_v55 = vpop.permute.xlu1 %366 }
 0x429   :  { %v369_v57 = vmul.f32 %v367_v55, %v363_v56 }
 0x42b   :  { %371 = vrot.lane.b32.xlu0 %v369_v57, %s1823_s27 }
 0x47d   :  { %v310_v58 = vpop.permute.xlu2 %309 }
 0x47e   :  { %v312_v59 = vadd.f32 %v310_v58, %v259_v23 }
 0x480   :  { %1691 = vtanh.f32 %v312_v59 }
 0x486   :  { %v1692_v60 = vpop.eup %1691 }
 0x487   :  { %v314_v61 = vsub.f32 %v1976_v9, %v1692_v60 }
 0x489   :  { %316 = vrot.lane.b32.xlu1 %v314_v61, %s1825_s3 }
 0x49d   :  { %v372_v62 = vpop.permute.xlu0 %371 }
 0x49e   :  { %v374_v63 = vadd.f32 %v372_v62, %v262_v27  ;;  %v1614_v27 = vld [vmem:[%s2479_s0 + $0x2] sm:$0x1] }
 0x49f   :  { %v405_v28 = vunpack.c.l.bf16 %v1614_v27 }
 0x4a0   :  { %1693 = vtanh.f32 %v374_v63 }
 0x4a6   :  { %v1694_v2 = vpop.eup %1693 }
 0x4a7   :  { %v376_v4 = vsub.f32 %v1982_v11, %v1694_v2 }
 0x4a9   :  { %378 = vrot.lane.b32.xlu2 %v376_v4, %s1825_s3 }
 0x4fb   :  { %v317_v6 = vpop.permute.xlu1 %316 }
 0x4fc   :  { %v319_v8 = vmul.f32 %v317_v6, %v301_v48 }
 0x4fe   :  { %321 = vrot.lane.b32.xlu0 %v319_v8, %s1824_s28 }
 0x503   :  { %v379_v3 = vpop.permute.xlu2 %378 }
 0x504   :  { %v381_v5 = vmul.f32 %v379_v3, %v363_v56 }
 0x506   :  { %383 = vrot.lane.b32.xlu1 %v381_v5, %s1824_s28 }
 0x570   :  { %v322_v9 = vpop.permute.xlu0 %321 }
 0x571   :  { %v2012_v13 = vadd.f32 %v1692_v60, %v322_v9 }
 0x573   :  { %388 = vst [vmem:[#allocation1] ss:$4 sm:$0xff] %v2012_v13  ;;  %v409_v11 = vpack.c.bf16 %v2012_v13, %v2012_v13 }
 0x575   :  { %411 = vrot.lane.b32.xlu2 %v409_v11, %s1822_s20 }
 0x578   :  { %v384_v15 = vpop.permute.xlu1 %383 }
 0x579   :  { %v2020_v16 = vadd.f32 %v1694_v2, %v384_v15 }
 0x57a   :  { %v2022_v17 = vld.sshfl [vmem:[#allocation1] sm:$0xff pattern:$0x73625140] }
 0x57b   :  { %396 = vst [vmem:[#allocation1] ss:$4 sm:$0xff] %v2020_v16  ;;  %v471_v18 = vpack.c.bf16 %v2020_v16, %v2020_v16 }
 0x57d   :  { %473 = vrot.lane.b32.xlu0 %v471_v18, %s1822_s20 }
 0x5cf   :  { %v412_v19 = vpop.permute.xlu2 %411 }
 0x5d0   :  { %1616 = vmatmul.msk.bf16.vlgmr.msrb.gmra.mxu0 %vm102_vm2, %v412_v19 }
 0x5d1   :  { %1007 = vmatpush.bf16.msrb.mxu0 %v1901_v0 }
 0x5ef   :  { %v474_v20 = vpop.permute.xlu0 %473 }
 0x5f0   :  { %1618 = vmatmul.msk.bf16.vlgmr.msrb.gmra.mxu1 %vm102_vm2, %v474_v20 }
 0x5f1   :  { %1069 = vmatpush.bf16.msrb.mxu1 %v1906_v1 }
 0x64d   :  { %v425_v21 = vpop.f32.mrf.mxu0 }
 0x64e   :  { %v426_v22 = vadd.f32 %v1949_v7, %v425_v21 }
 0x650   :  { %450 = vrot.lane.b32.xlu1 %v426_v22, %s1822_s20  ;;  %v429_v29 = vadd.f32 %v426_v22, %v405_v28 }
 0x652   :  { %v1617_v31 = vmul.f32 -1.442695, %v429_v29 }
 0x654   :  { %1695 = vpow2.f32 %v1617_v31 }
 0x655   :  { %v427_v23 = vpop.f32.mrf.mxu0 }
 0x65a   :  { %v1696_v35 = vpop.eup %1695 }
 0x65b   :  { %v433_v36 = vadd.f32 1.0, %v1696_v35 }
 0x65d   :  { %v445_v47 = vand.u32 2147483648, %v433_v36  ;;  %vm439_vm7 = vweird.f32 %v433_v36  ;;  %v443_v48 = vand.u32 2147483647, %v433_v36 }
 0x65f   :  { %v446_v51 = vor.u32 1.1754944e-38, %v445_v47  ;;  %vm444_vm9 = vcmp.eq.f32.partialorder %v443_v48, 8.507059e+37 }
 0x66d   :  { %v487_v24 = vpop.f32.mrf.mxu1 }
 0x66e   :  { %v488_v25 = vadd.f32 %v1956_v10, %v487_v24 }
 0x670   :  { %512 = vrot.lane.b32.xlu2 %v488_v25, %s1822_s20  ;;  %v491_v33 = vadd.f32 %v488_v25, %v408_v32 }
 0x672   :  { %v1619_v34 = vmul.f32 -1.442695, %v491_v33 }
 0x674   :  { %1697 = vpow2.f32 %v1619_v34 }
 0x675   :  { %v489_v26 = vpop.f32.mrf.mxu1  ;;  %1699 = vrcp.f32 %v433_v36 }
 0x67a   :  { %v1698_v37 = vpop.eup %1697 }
 0x67b   :  { %v495_v38 = vadd.f32 1.0, %v1698_v37  ;;  %v1700_v39 = vpop.eup %1699 }
 0x67c   :  { %v435_v40 = vmul.f32 %v1700_v39, %v433_v36  ;;  %vm440_vm6 = vweird.f32 %v1700_v39 }
 0x67d   :  { %1701 = vrcp.f32 %v495_v38  ;;  %vm441_vm8 = vmor %vm439_vm7, %vm440_vm6  ;;  %v507_v56 = vand.u32 2147483648, %v495_v38  ;;  %vm501_vm11 = vweird.f32 %v495_v38  ;;  %v505_v57 = vand.u32 2147483647, %v495_v38 }
 0x67e   :  { %v436_v41 = vsub.f32 1.0, %v435_v40 }
 0x67f   :  { %v508_v59 = vor.u32 1.1754944e-38, %v507_v56  ;;  %vm506_vm13 = vcmp.eq.f32.partialorder %v505_v57, 8.507059e+37 }
 0x680   :  { %v437_v43 = vmul.f32 %v1700_v39, %v436_v41 }
 0x682   :  { %v438_v45 = vadd.f32 %v1700_v39, %v437_v43 }
 0x683   :  { %v1702_v42 = vpop.eup %1701 }
 0x684   :  { %v497_v44 = vmul.f32 %v1702_v42, %v495_v38  ;;  %v442_v49 = vsel %vm441_vm8, %v1700_v39, %v438_v45  ;;  %vm502_vm10 = vweird.f32 %v1702_v42  ;;  %v1623_v38 = vld [vmem:[%s2480_s1 + $0x4] sm:$0x1] }
 0x685   :  { %v447_v53 = vsel %vm444_vm9, %v446_v51, %v442_v49  ;;  %vm503_vm12 = vmor %vm501_vm11, %vm502_vm10  ;;  %v554_v40 = vunpack.c.l.bf16 %v1623_v38 }
 0x686   :  { %v498_v46 = vsub.f32 1.0, %v497_v44 }
 0x688   :  { %v499_v50 = vmul.f32 %v1702_v42, %v498_v46 }
 0x68a   :  { %v500_v55 = vadd.f32 %v1702_v42, %v499_v50 }
 0x68c   :  { %v504_v58 = vsel %vm503_vm12, %v1702_v42, %v500_v55 }
 0x68d   :  { %v509_v60 = vsel %vm506_vm13, %v508_v59, %v504_v58 }
 0x6c2   :  { %v451_v52 = vpop.permute.xlu1 %450 }
 0x6c3   :  { %v453_v54 = vmul.f32 %v451_v52, %v447_v53 }
 0x6c5   :  { %455 = vrot.lane.b32.xlu0 %v453_v54, %s1823_s27 }
 0x6ca   :  { %v513_v61 = vpop.permute.xlu2 %512 }
 0x6cb   :  { %v515_v62 = vmul.f32 %v513_v61, %v509_v60 }
 0x6cd   :  { %517 = vrot.lane.b32.xlu1 %v515_v62, %s1823_s27 }
 0x737   :  { %v456_v63 = vpop.permute.xlu0 %455 }
 0x738   :  { %v458_v2 = vadd.f32 %v456_v63, %v405_v28 }
 0x73a   :  { %1703 = vtanh.f32 %v458_v2 }
 0x73f   :  { %v518_v4 = vpop.permute.xlu1 %517 }
 0x740   :  { %v1704_v6 = vpop.eup %1703  ;;  %v520_v8 = vadd.f32 %v518_v4, %v408_v32 }
 0x741   :  { %v460_v3 = vsub.f32 %v2012_v13, %v1704_v6  ;;  %v2052_v13 = vld.sshfl [vmem:[#allocation1] sm:$0xff pattern:$0x73625140] }
 0x742   :  { %1705 = vtanh.f32 %v520_v8 }
 0x743   :  { %462 = vrot.lane.b32.xlu2 %v460_v3, %s1825_s3 }
 0x748   :  { %v1706_v5 = vpop.eup %1705 }
 0x749   :  { %v522_v9 = vsub.f32 %v2020_v16, %v1706_v5 }
 0x74b   :  { %524 = vrot.lane.b32.xlu0 %v522_v9, %s1825_s3 }
 0x79d   :  { %v463_v11 = vpop.permute.xlu2 %462 }
 0x79e   :  { %v465_v15 = vmul.f32 %v463_v11, %v447_v53 }
 0x7a0   :  { %467 = vrot.lane.b32.xlu1 %v465_v15, %s1824_s28 }
 0x7bd   :  { %v525_v18 = vpop.permute.xlu0 %524 }
 0x7be   :  { %v527_v19 = vmul.f32 %v525_v18, %v509_v60 }
 0x7c0   :  { %529 = vrot.lane.b32.xlu2 %v527_v19, %s1824_s28 }
 0x812   :  { %v468_v20 = vpop.permute.xlu1 %467 }
 0x813   :  { %v2050_v21 = vadd.f32 %v1704_v6, %v468_v20 }
 0x815   :  { %534 = vst [vmem:[#allocation1] ss:$4 sm:$0xff] %v2050_v21  ;;  %v555_v16 = vpack.c.bf16 %v2050_v21, %v2050_v21 }
 0x817   :  { %557 = vrot.lane.b32.xlu0 %v555_v16, %s1822_s20 }
 0x81a   :  { %v530_v22 = vpop.permute.xlu2 %529 }
 0x81b   :  { %v2058_v23 = vadd.f32 %v1706_v5, %v530_v22 }
 0x81c   :  { %v2060_v24 = vld.sshfl [vmem:[#allocation1] sm:$0xff pattern:$0x73625140] }
 0x81d   :  { %542 = vst [vmem:[#allocation1] ss:$4 sm:$0xff] %v2058_v23  ;;  %v617_v25 = vpack.c.bf16 %v2058_v23, %v2058_v23 }
 0x81f   :  { %619 = vrot.lane.b32.xlu1 %v617_v25, %s1822_s20 }
 0x889   :  { %v558_v26 = vpop.permute.xlu0 %557 }
 0x88a   :  { %1624 = vmatmul.msk.bf16.vlgmr.msrb.gmra.mxu2 %vm102_vm2, %v558_v26 }
 0x88b   :  { %1152 = vmatpush.bf16.msrb.mxu2 %v1901_v0  ;;  %v1622_v0 = vld [vmem:[%s2479_s0 + $0x3] sm:$0x1] }
 0x88c   :  { %v551_v34 = vunpack.c.l.bf16 %v1622_v0 }
 0x891   :  { %v620_v27 = vpop.permute.xlu1 %619 }
 0x892   :  { %1626 = vmatmul.msk.bf16.vlgmr.msrb.gmra.mxu3 %vm102_vm2, %v620_v27 }
 0x893   :  { %1214 = vmatpush.bf16.msrb.mxu3 %v1906_v1 }
 0x90d   :  { %v571_v28 = vpop.f32.mrf.mxu2 }
 0x90e   :  { %v572_v29 = vadd.f32 %v1949_v7, %v571_v28 }
 0x910   :  { %596 = vrot.lane.b32.xlu2 %v572_v29, %s1822_s20  ;;  %v575_v35 = vadd.f32 %v572_v29, %v551_v34 }
 0x912   :  { %v1625_v36 = vmul.f32 -1.442695, %v575_v35 }
 0x914   :  { %1707 = vpow2.f32 %v1625_v36 }
 0x915   :  { %v573_v30 = vpop.f32.mrf.mxu2  ;;  %v633_v31 = vpop.f32.mrf.mxu3 }
 0x916   :  { %v634_v32 = vadd.f32 %v1956_v10, %v633_v31 }
 0x918   :  { %658 = vrot.lane.b32.xlu0 %v634_v32, %s1822_s20  ;;  %v637_v42 = vadd.f32 %v634_v32, %v554_v40 }
 0x91a   :  { %v1708_v1 = vpop.eup %1707  ;;  %v1627_v44 = vmul.f32 -1.442695, %v637_v42  ;;  %v1631_v42 = vld [vmem:[%s2480_s1 + $0x3] sm:$0x1] }
 0x91b   :  { %v579_v37 = vadd.f32 1.0, %v1708_v1 }
 0x91d   :  { %v635_v33 = vpop.f32.mrf.mxu3  ;;  %1709 = vrcp.f32 %v579_v37  ;;  %v591_v47 = vand.u32 2147483648, %v579_v37  ;;  %vm585_vm15 = vweird.f32 %v579_v37  ;;  %v589_v48 = vand.u32 2147483647, %v579_v37 }
 0x91e   :  { %1711 = vpow2.f32 %v1627_v44  ;;  %v700_v44 = vunpack.c.l.bf16 %v1631_v42 }
 0x91f   :  { %v592_v51 = vor.u32 1.1754944e-38, %v591_v47  ;;  %vm590_vm4 = vcmp.eq.f32.partialorder %v589_v48, 8.507059e+37 }
 0x923   :  { %v1710_v39 = vpop.eup %1709 }
 0x924   :  { %v581_v41 = vmul.f32 %v1710_v39, %v579_v37  ;;  %vm586_vm14 = vweird.f32 %v1710_v39  ;;  %v1712_v49 = vpop.eup %1711 }
 0x925   :  { %vm587_vm3 = vmor %vm585_vm15, %vm586_vm14  ;;  %v641_v52 = vadd.f32 1.0, %v1712_v49 }
 0x926   :  { %v582_v43 = vsub.f32 1.0, %v581_v41 }
 0x927   :  { %1713 = vrcp.f32 %v641_v52  ;;  %v653_v61 = vand.u32 2147483648, %v641_v52  ;;  %vm647_vm6 = vweird.f32 %v641_v52  ;;  %v651_v62 = vand.u32 2147483647, %v641_v52 }
 0x928   :  { %v583_v45 = vmul.f32 %v1710_v39, %v582_v43 }
 0x929   :  { %v654_v2 = vor.u32 1.1754944e-38, %v653_v61  ;;  %vm652_vm8 = vcmp.eq.f32.partialorder %v651_v62, 8.507059e+37 }
 0x92a   :  { %v584_v46 = vadd.f32 %v1710_v39, %v583_v45 }
 0x92c   :  { %v588_v50 = vsel %vm587_vm3, %v1710_v39, %v584_v46  ;;  %v1630_v39 = vld [vmem:[%s2479_s0 + $0x4] sm:$0x1] }
 0x92d   :  { %v593_v53 = vsel %vm590_vm4, %v592_v51, %v588_v50  ;;  %v1714_v56 = vpop.eup %1713 }
 0x92e   :  { %v643_v57 = vmul.f32 %v1714_v56, %v641_v52  ;;  %vm648_vm5 = vweird.f32 %v1714_v56 }
 0x92f   :  { %vm649_vm7 = vmor %vm647_vm6, %vm648_vm5 }
 0x930   :  { %v644_v58 = vsub.f32 1.0, %v643_v57 }
 0x932   :  { %v645_v59 = vmul.f32 %v1714_v56, %v644_v58 }
 0x934   :  { %v646_v60 = vadd.f32 %v1714_v56, %v645_v59 }
 0x936   :  { %v650_v63 = vsel %vm649_vm7, %v1714_v56, %v646_v60 }
 0x937   :  { %v655_v6 = vsel %vm652_vm8, %v654_v2, %v650_v63 }
 0x96a   :  { %v597_v54 = vpop.permute.xlu2 %596 }
 0x96b   :  { %v599_v55 = vmul.f32 %v597_v54, %v593_v53 }
 0x96d   :  { %601 = vrot.lane.b32.xlu1 %v599_v55, %s1823_s27 }
 0x98a   :  { %v659_v4 = vpop.permute.xlu0 %658 }
 0x98b   :  { %v661_v8 = vmul.f32 %v659_v4, %v655_v6 }
 0x98d   :  { %663 = vrot.lane.b32.xlu2 %v661_v8, %s1823_s27 }
 0x9df   :  { %v602_v3 = vpop.permute.xlu1 %601 }
 0x9e0   :  { %v604_v5 = vadd.f32 %v602_v3, %v551_v34 }
 0x9e2   :  { %1715 = vtanh.f32 %v604_v5 }
 0x9e7   :  { %v664_v9 = vpop.permute.xlu2 %663 }
 0x9e8   :  { %v1716_v11 = vpop.eup %1715  ;;  %v666_v15 = vadd.f32 %v664_v9, %v554_v40  ;;  %v697_v40 = vunpack.c.l.bf16 %v1630_v39 }
 0x9e9   :  { %v606_v18 = vsub.f32 %v2050_v21, %v1716_v11  ;;  %v2090_v21 = vld.sshfl [vmem:[#allocation1] sm:$0xff pattern:$0x73625140] }
 0x9ea   :  { %1717 = vtanh.f32 %v666_v15 }
 0x9eb   :  { %608 = vrot.lane.b32.xlu0 %v606_v18, %s1825_s3 }
 0x9f0   :  { %v1718_v19 = vpop.eup %1717 }
 0x9f1   :  { %v668_v20 = vsub.f32 %v2058_v23, %v1718_v19 }
 0x9f3   :  { %670 = vrot.lane.b32.xlu1 %v668_v20, %s1825_s3 }
 0xa5d   :  { %v609_v16 = vpop.permute.xlu0 %608 }
 0xa5e   :  { %v611_v22 = vmul.f32 %v609_v16, %v593_v53 }
 0xa60   :  { %613 = vrot.lane.b32.xlu2 %v611_v22, %s1824_s28 }
 0xa65   :  { %v671_v25 = vpop.permute.xlu1 %670 }
 0xa66   :  { %v673_v26 = vmul.f32 %v671_v25, %v655_v6 }
 0xa68   :  { %675 = vrot.lane.b32.xlu0 %v673_v26, %s1824_s28 }
 0xaba   :  { %v614_v27 = vpop.permute.xlu2 %613 }
 0xabb   :  { %v2088_v28 = vadd.f32 %v1716_v11, %v614_v27 }
 0xabd   :  { %680 = vst [vmem:[#allocation1] ss:$4 sm:$0xff] %v2088_v28  ;;  %v701_v23 = vpack.c.bf16 %v2088_v28, %v2088_v28 }
 0xabf   :  { %703 = vrot.lane.b32.xlu1 %v701_v23, %s1822_s20 }
 0xac4   :  { %v2098_v31 = vld.sshfl [vmem:[#allocation1] sm:$0xff pattern:$0x73625140] }
 0xada   :  { %v676_v29 = vpop.permute.xlu0 %675 }
 0xadb   :  { %v2096_v30 = vadd.f32 %v1718_v19, %v676_v29 }
 0xadd   :  { %688 = vst [vmem:[#allocation1] ss:$4 sm:$0xff] %v2096_v30  ;;  %v763_v32 = vpack.c.bf16 %v2096_v30, %v2096_v30 }
 0xadf   :  { %765 = vrot.lane.b32.xlu2 %v763_v32, %s1822_s20 }
 0xb31   :  { %v704_v33 = vpop.permute.xlu1 %703 }
 0xb32   :  { %1632 = vmatmul.msk.bf16.vlgmr.msra.gmra.mxu0 %vm102_vm2, %v704_v33 }
 0xb39   :  { %v766_v0 = vpop.permute.xlu2 %765 }
 0xb3a   :  { %1634 = vmatmul.msk.bf16.vlgmr.msra.gmra.mxu1 %vm102_vm2, %v766_v0 }
 0xbaf   :  { %v717_v34 = vpop.f32.mrf.mxu0 }
 0xbb0   :  { %v718_v35 = vadd.f32 %v1949_v7, %v717_v34 }
 0xbb2   :  { %742 = vrot.lane.b32.xlu0 %v718_v35, %s1822_s20  ;;  %v721_v41 = vadd.f32 %v718_v35, %v697_v40 }
 0xbb4   :  { %v1633_v43 = vmul.f32 -1.442695, %v721_v41 }
 0xbb6   :  { %1719 = vpow2.f32 %v1633_v43 }
 0xbb7   :  { %v719_v36 = vpop.f32.mrf.mxu0  ;;  %v779_v1 = vpop.f32.mrf.mxu1 }
 0xbb8   :  { %v780_v37 = vadd.f32 %v1956_v10, %v779_v1  ;;  %v2126_v36 = vld.sshfl [vmem:[#allocation1] sm:$0xff pattern:$0x73625140] }
 0xbba   :  { %804 = vrot.lane.b32.xlu1 %v780_v37, %s1822_s20  ;;  %v783_v45 = vadd.f32 %v780_v37, %v700_v44 }
 0xbbc   :  { %v1635_v46 = vmul.f32 -1.442695, %v783_v45  ;;  %v1720_v47 = vpop.eup %1719 }
 0xbbd   :  { %v725_v48 = vadd.f32 1.0, %v1720_v47 }
 0xbbe   :  { %1721 = vpow2.f32 %v1635_v46 }
 0xbbf   :  { %v781_v38 = vpop.f32.mrf.mxu1  ;;  %1723 = vrcp.f32 %v725_v48  ;;  %v737_v59 = vand.u32 2147483648, %v725_v48  ;;  %vm731_vm10 = vweird.f32 %v725_v48  ;;  %v735_v60 = vand.u32 2147483647, %v725_v48 }
 0xbc1   :  { %v738_v63 = vor.u32 1.1754944e-38, %v737_v59  ;;  %vm736_vm12 = vcmp.eq.f32.partialorder %v735_v60, 8.507059e+37 }
 0xbc4   :  { %v1722_v49 = vpop.eup %1721 }
 0xbc5   :  { %v787_v50 = vadd.f32 1.0, %v1722_v49  ;;  %v1724_v51 = vpop.eup %1723 }
 0xbc6   :  { %v727_v52 = vmul.f32 %v1724_v51, %v725_v48  ;;  %vm732_vm9 = vweird.f32 %v1724_v51  ;;  %v1638_v48 = vld [vmem:[%s2479_s0 + $0x5] sm:$0x1] }
 0xbc7   :  { %1725 = vrcp.f32 %v787_v50  ;;  %vm733_vm11 = vmor %vm731_vm10, %vm732_vm9  ;;  %v799_v3 = vand.u32 2147483648, %v787_v50  ;;  %vm793_vm14 = vweird.f32 %v787_v50  ;;  %v797_v5 = vand.u32 2147483647, %v787_v50 }
 0xbc8   :  { %v728_v53 = vsub.f32 1.0, %v727_v52  ;;  %v843_v49 = vunpack.c.l.bf16 %v1638_v48 }
 0xbc9   :  { %v800_v11 = vor.u32 1.1754944e-38, %v799_v3  ;;  %vm798_vm3 = vcmp.eq.f32.partialorder %v797_v5, 8.507059e+37 }
 0xbca   :  { %v729_v55 = vmul.f32 %v1724_v51, %v728_v53 }
 0xbcc   :  { %v730_v57 = vadd.f32 %v1724_v51, %v729_v55 }
 0xbcd   :  { %v1726_v54 = vpop.eup %1725 }
 0xbce   :  { %v789_v56 = vmul.f32 %v1726_v54, %v787_v50  ;;  %v734_v61 = vsel %vm733_vm11, %v1724_v51, %v730_v57  ;;  %vm794_vm13 = vweird.f32 %v1726_v54  ;;  %v1639_v51 = vld [vmem:[%s2480_s1 + $0x2] sm:$0x1] }
 0xbcf   :  { %v739_v4 = vsel %vm736_vm12, %v738_v63, %v734_v61  ;;  %vm795_vm15 = vmor %vm793_vm14, %vm794_vm13  ;;  %v846_v52 = vunpack.c.l.bf16 %v1639_v51 }
 0xbd0   :  { %v790_v58 = vsub.f32 1.0, %v789_v56 }
 0xbd2   :  { %v791_v62 = vmul.f32 %v1726_v54, %v790_v58 }
 0xbd4   :  { %v792_v8 = vadd.f32 %v1726_v54, %v791_v62 }
 0xbd6   :  { %v796_v9 = vsel %vm795_vm15, %v1726_v54, %v792_v8 }
 0xbd7   :  { %v801_v18 = vsel %vm798_vm3, %v800_v11, %v796_v9 }
 0xc24   :  { %v743_v2 = vpop.permute.xlu0 %742 }
 0xc25   :  { %v745_v6 = vmul.f32 %v743_v2, %v739_v4 }
 0xc27   :  { %747 = vrot.lane.b32.xlu2 %v745_v6, %s1823_s27 }
 0xc2c   :  { %v805_v15 = vpop.permute.xlu1 %804 }
 0xc2d   :  { %v807_v19 = vmul.f32 %v805_v15, %v801_v18 }
 0xc2f   :  { %809 = vrot.lane.b32.xlu0 %v807_v19, %s1823_s27 }
 0xc81   :  { %v748_v20 = vpop.permute.xlu2 %747 }
 0xc82   :  { %v750_v16 = vadd.f32 %v748_v20, %v697_v40 }
 0xc84   :  { %1727 = vtanh.f32 %v750_v16 }
 0xc8a   :  { %v1728_v22 = vpop.eup %1727 }
 0xc8b   :  { %v752_v25 = vsub.f32 %v2088_v28, %v1728_v22 }
 0xc8d   :  { %754 = vrot.lane.b32.xlu1 %v752_v25, %s1825_s3 }
 0xca1   :  { %v810_v26 = vpop.permute.xlu0 %809 }
 0xca2   :  { %v812_v27 = vadd.f32 %v810_v26, %v700_v44 }
 0xca4   :  { %1729 = vtanh.f32 %v812_v27 }
 0xcaa   :  { %v1730_v23 = vpop.eup %1729 }
 0xcab   :  { %v814_v29 = vsub.f32 %v2096_v30, %v1730_v23 }
 0xcad   :  { %816 = vrot.lane.b32.xlu2 %v814_v29, %s1825_s3 }
 0xcff   :  { %v755_v32 = vpop.permute.xlu1 %754 }
 0xd00   :  { %v757_v33 = vmul.f32 %v755_v32, %v739_v4 }
 0xd02   :  { %759 = vrot.lane.b32.xlu0 %v757_v33, %s1824_s28 }
 0xd07   :  { %v817_v0 = vpop.permute.xlu2 %816 }
 0xd08   :  { %v819_v34 = vmul.f32 %v817_v0, %v801_v18 }
 0xd0a   :  { %821 = vrot.lane.b32.xlu1 %v819_v34, %s1824_s28 }
 0xd74   :  { %v760_v35 = vpop.permute.xlu0 %759 }
 0xd75   :  { %v2124_v28 = vadd.f32 %v1728_v22, %v760_v35 }
 0xd77   :  { %826 = vst [vmem:[#allocation1] ss:$4 sm:$0xff] %v2124_v28  ;;  %v847_v30 = vpack.c.bf16 %v2124_v28, %v2124_v28 }
 0xd79   :  { %849 = vrot.lane.b32.xlu2 %v847_v30, %s1822_s20 }
 0xd7c   :  { %v822_v1 = vpop.permute.xlu1 %821 }
 0xd7d   :  { %v2132_v37 = vadd.f32 %v1730_v23, %v822_v1 }
 0xd7e   :  { %v2134_v38 = vld.sshfl [vmem:[#allocation1] sm:$0xff pattern:$0x73625140] }
 0xd7f   :  { %834 = vst [vmem:[#allocation1] ss:$4 sm:$0xff] %v2132_v37  ;;  %v909_v39 = vpack.c.bf16 %v2132_v37, %v2132_v37 }
 0xd81   :  { %911 = vrot.lane.b32.xlu0 %v909_v39, %s1822_s20 }
 0xdd3   :  { %v850_v40 = vpop.permute.xlu2 %849 }
 0xdd4   :  { %1640 = vmatmul.msk.bf16.vlgmr.msra.gmra.mxu2 %vm102_vm2, %v850_v40 }
 0xdf3   :  { %v912_v41 = vpop.permute.xlu0 %911 }
 0xdf4   :  { %1642 = vmatmul.msk.bf16.vlgmr.msra.gmra.mxu3 %vm102_vm2, %v912_v41 }
 0xe57   :  { %v863_v42 = vpop.f32.mrf.mxu2 }
 0xe58   :  { %v864_v43 = vadd.f32 %v1949_v7, %v863_v42 }
 0xe5a   :  { %888 = vrot.lane.b32.xlu1 %v864_v43, %s1822_s20  ;;  %v867_v50 = vadd.f32 %v864_v43, %v843_v49 }
 0xe5c   :  { %v1641_v7 = vmul.f32 -1.442695, %v867_v50 }
 0xe5e   :  { %1731 = vpow2.f32 %v1641_v7  ;;  %v2181_v7 = vld [vmem:[%s2483_s4] ss:$0 sm:$0xff] }
 0xe5f   :  { %v865_v44 = vpop.f32.mrf.mxu2 }
 0xe64   :  { %v1732_v55 = vpop.eup %1731 }
 0xe77   :  { %v925_v45 = vpop.f32.mrf.mxu3 }
 0xe78   :  { %v926_v46 = vadd.f32 %v1956_v10, %v925_v45  ;;  %v871_v10 = vadd.f32 1.0, %v1732_v55  ;;  %v2188_v55 = vld [vmem:[%s2484_s5] ss:$0 sm:$0xff] }
 0xe7a   :  { %950 = vrot.lane.b32.xlu2 %v926_v46, %s1822_s20  ;;  %v929_v53 = vadd.f32 %v926_v46, %v846_v52  ;;  %v883_v6 = vand.u32 2147483648, %v871_v10  ;;  %vm877_vm5 = vweird.f32 %v871_v10  ;;  %v881_v8 = vand.u32 2147483647, %v871_v10 }
 0xe7c   :  { %v1643_v54 = vmul.f32 -1.442695, %v929_v53  ;;  %v884_v9 = vor.u32 1.1754944e-38, %v883_v6  ;;  %vm882_vm7 = vcmp.eq.f32.partialorder %v881_v8, 8.507059e+37 }
 0xe7e   :  { %1733 = vpow2.f32 %v1643_v54 }
 0xe7f   :  { %v927_v47 = vpop.f32.mrf.mxu3  ;;  %1735 = vrcp.f32 %v871_v10 }
 0xe84   :  { %v1734_v56 = vpop.eup %1733 }
 0xe85   :  { %v933_v57 = vadd.f32 1.0, %v1734_v56  ;;  %v1736_v58 = vpop.eup %1735 }
 0xe86   :  { %v873_v59 = vmul.f32 %v1736_v58, %v871_v10  ;;  %vm878_vm4 = vweird.f32 %v1736_v58 }
 0xe87   :  { %1737 = vrcp.f32 %v933_v57  ;;  %vm879_vm6 = vmor %vm877_vm5, %vm878_vm4  ;;  %v945_v20 = vand.u32 2147483648, %v933_v57  ;;  %vm939_vm9 = vweird.f32 %v933_v57  ;;  %v943_v16 = vand.u32 2147483647, %v933_v57 }
 0xe88   :  { %v874_v60 = vsub.f32 1.0, %v873_v59 }
 0xe89   :  { %v946_v25 = vor.u32 1.1754944e-38, %v945_v20  ;;  %vm944_vm11 = vcmp.eq.f32.partialorder %v943_v16, 8.507059e+37 }
 0xe8a   :  { %v875_v62 = vmul.f32 %v1736_v58, %v874_v60 }
 0xe8c   :  { %v876_v2 = vadd.f32 %v1736_v58, %v875_v62 }
 0xe8d   :  { %v1738_v61 = vpop.eup %1737 }
 0xe8e   :  { %v935_v63 = vmul.f32 %v1738_v61, %v933_v57  ;;  %v880_v3 = vsel %vm879_vm6, %v1736_v58, %v876_v2  ;;  %vm940_vm8 = vweird.f32 %v1738_v61  ;;  %v1646_v57 = vld [vmem:[%s2479_s0 + $0x6] sm:$0x1] }
 0xe8f   :  { %v885_v15 = vsel %vm882_vm7, %v884_v9, %v880_v3  ;;  %vm941_vm10 = vmor %vm939_vm9, %vm940_vm8  ;;  %v989_v58 = vunpack.c.l.bf16 %v1646_v57 }
 0xe90   :  { %v936_v4 = vsub.f32 1.0, %v935_v63  ;;  %v1647_v63 = vld [vmem:[%s2480_s1 + $0x1] sm:$0x1] }
 0xe92   :  { %v937_v5 = vmul.f32 %v1738_v61, %v936_v4  ;;  %v992_v4 = vunpack.c.l.bf16 %v1647_v63 }
 0xe94   :  { %v938_v19 = vadd.f32 %v1738_v61, %v937_v5 }
 0xe96   :  { %v942_v22 = vsel %vm941_vm10, %v1738_v61, %v938_v19 }
 0xe97   :  { %v947_v26 = vsel %vm944_vm11, %v946_v25, %v942_v22 }
 0xecc   :  { %v889_v11 = vpop.permute.xlu1 %888 }
 0xecd   :  { %v891_v18 = vmul.f32 %v889_v11, %v885_v15 }
 0xecf   :  { %893 = vrot.lane.b32.xlu0 %v891_v18, %s1823_s27 }
 0xed4   :  { %v951_v27 = vpop.permute.xlu2 %950 }
 0xed5   :  { %v953_v23 = vmul.f32 %v951_v27, %v947_v26 }
 0xed7   :  { %955 = vrot.lane.b32.xlu1 %v953_v23, %s1823_s27 }
 0xf41   :  { %v894_v29 = vpop.permute.xlu0 %893 }
 0xf42   :  { %v896_v32 = vadd.f32 %v894_v29, %v843_v49 }
 0xf44   :  { %1739 = vtanh.f32 %v896_v32 }
 0xf49   :  { %v956_v33 = vpop.permute.xlu1 %955 }
 0xf4a   :  { %v1740_v0 = vpop.eup %1739  ;;  %v958_v34 = vadd.f32 %v956_v33, %v846_v52 }
 0xf4b   :  { %v898_v35 = vsub.f32 %v2124_v28, %v1740_v0  ;;  %v2162_v28 = vld.sshfl [vmem:[#allocation1] sm:$0xff pattern:$0x73625140] }
 0xf4c   :  { %1741 = vtanh.f32 %v958_v34 }
 0xf4d   :  { %900 = vrot.lane.b32.xlu2 %v898_v35, %s1825_s3 }
 0xf52   :  { %v1742_v30 = vpop.eup %1741 }
 0xf53   :  { %v960_v1 = vsub.f32 %v2132_v37, %v1742_v30 }
 0xf55   :  { %962 = vrot.lane.b32.xlu0 %v960_v1, %s1825_s3 }
 0xfa7   :  { %v901_v39 = vpop.permute.xlu2 %900 }
 0xfa8   :  { %v903_v40 = vmul.f32 %v901_v39, %v885_v15 }
 0xfaa   :  { %905 = vrot.lane.b32.xlu1 %v903_v40, %s1824_s28 }
 0xfc7   :  { %v963_v41 = vpop.permute.xlu0 %962 }
 0xfc8   :  { %v965_v42 = vmul.f32 %v963_v41, %v947_v26 }
 0xfca   :  { %967 = vrot.lane.b32.xlu2 %v965_v42, %s1824_s28 }
0x101c   :  { %v906_v43 = vpop.permute.xlu1 %905 }
0x101d   :  { %v2160_v44 = vadd.f32 %v1740_v0, %v906_v43 }
0x101f   :  { %972 = vst [vmem:[#allocation1] ss:$4 sm:$0xff] %v2160_v44  ;;  %v993_v37 = vpack.c.bf16 %v2160_v44, %v2160_v44 }
0x1021   :  { %995 = vrot.lane.b32.xlu0 %v993_v37, %s1822_s20 }
0x1024   :  { %v968_v45 = vpop.permute.xlu2 %967 }
0x1025   :  { %v2168_v46 = vadd.f32 %v1742_v30, %v968_v45 }
0x1026   :  { %v2170_v47 = vld.sshfl [vmem:[#allocation1] sm:$0xff pattern:$0x73625140] }
0x1027   :  { %980 = vst [vmem:[#allocation1] ss:$4 sm:$0xff] %v2168_v46  ;;  %v1055_v48 = vpack.c.bf16 %v2168_v46, %v2168_v46 }
0x1029   :  { %1057 = vrot.lane.b32.xlu1 %v1055_v48, %s1822_s20 }
0x1093   :  { %v996_v49 = vpop.permute.xlu0 %995 }
0x1094   :  { %1648 = vmatmul.msk.bf16.vlgmr.msrb.gmra.mxu0 %vm102_vm2, %v996_v49 }
0x109b   :  { %v1058_v50 = vpop.permute.xlu1 %1057 }
0x109c   :  { %1650 = vmatmul.msk.bf16.vlgmr.msrb.gmra.mxu1 %vm102_vm2, %v1058_v50 }
0x1111   :  { %v1009_v51 = vpop.f32.mrf.mxu0 }
0x1112   :  { %v1010_v52 = vadd.f32 %v2181_v7, %v1009_v51 }
0x1114   :  { %1034 = vrot.lane.b32.xlu2 %v1010_v52, %s1822_s20  ;;  %v1013_v59 = vadd.f32 %v1010_v52, %v989_v58 }
0x1116   :  { %v1649_v60 = vmul.f32 -1.442695, %v1013_v59 }
0x1118   :  { %1743 = vpow2.f32 %v1649_v60 }
0x1119   :  { %v1011_v53 = vpop.f32.mrf.mxu0  ;;  %v1071_v54 = vpop.f32.mrf.mxu1 }
0x111a   :  { %v1072_v10 = vadd.f32 %v2188_v55, %v1071_v54 }
0x111c   :  { %1096 = vrot.lane.b32.xlu0 %v1072_v10, %s1822_s20  ;;  %v1075_v8 = vadd.f32 %v1072_v10, %v992_v4 }
0x111e   :  { %v1744_v61 = vpop.eup %1743  ;;  %v1651_v5 = vmul.f32 -1.442695, %v1075_v8 }
0x111f   :  { %v1017_v62 = vadd.f32 1.0, %v1744_v61 }
0x1121   :  { %v1073_v56 = vpop.f32.mrf.mxu1  ;;  %1745 = vrcp.f32 %v1017_v62  ;;  %v1029_v15 = vand.u32 2147483648, %v1017_v62  ;;  %vm1023_vm13 = vweird.f32 %v1017_v62  ;;  %v1027_v18 = vand.u32 2147483647, %v1017_v62 }
0x1122   :  { %1747 = vpow2.f32 %v1651_v5 }
0x1123   :  { %v1030_v16 = vor.u32 1.1754944e-38, %v1029_v15  ;;  %vm1028_vm15 = vcmp.eq.f32.partialorder %v1027_v18, 8.507059e+37  ;;  %v1136_v18 = vld [vmem:[%s2480_s1] sm:$0x1]  ;;  %s1826_s1 = smov [#allocation4]  }
0x1127   :  { %v1746_v2 = vpop.eup %1745 }
0x1128   :  { %v1019_v6 = vmul.f32 %v1746_v2, %v1017_v62  ;;  %vm1024_vm12 = vweird.f32 %v1746_v2  ;;  %v1748_v19 = vpop.eup %1747 }
0x1129   :  { %vm1025_vm14 = vmor %vm1023_vm13, %vm1024_vm12  ;;  %v1079_v22 = vadd.f32 1.0, %v1748_v19  ;;  %v1137_v19 = vunpack.c.l.bf16 %v1136_v18 }
0x112a   :  { %v1020_v3 = vsub.f32 1.0, %v1019_v6 }
0x112b   :  { %1749 = vrcp.f32 %v1079_v22  ;;  %v1091_v34 = vand.u32 2147483648, %v1079_v22  ;;  %vm1085_vm4 = vweird.f32 %v1079_v22  ;;  %v1089_v35 = vand.u32 2147483647, %v1079_v22 }
0x112c   :  { %v1021_v9 = vmul.f32 %v1746_v2, %v1020_v3 }
0x112d   :  { %v1092_v1 = vor.u32 1.1754944e-38, %v1091_v34  ;;  %vm1090_vm6 = vcmp.eq.f32.partialorder %v1089_v35, 8.507059e+37 }
0x112e   :  { %v1022_v11 = vadd.f32 %v1746_v2, %v1021_v9  ;;  %v1654_v9 = vld [vmem:[%s2479_s0 + $0x7] sm:$0x1] }
0x1130   :  { %v1026_v20 = vsel %vm1025_vm14, %v1746_v2, %v1022_v11  ;;  %v1135_v11 = vunpack.c.l.bf16 %v1654_v9 }
0x1131   :  { %v1031_v25 = vsel %vm1028_vm15, %v1030_v16, %v1026_v20  ;;  %v1750_v23 = vpop.eup %1749 }
0x1132   :  { %v1081_v29 = vmul.f32 %v1750_v23, %v1079_v22  ;;  %vm1086_vm3 = vweird.f32 %v1750_v23 }
0x1133   :  { %vm1087_vm5 = vmor %vm1085_vm4, %vm1086_vm3 }
0x1134   :  { %v1082_v32 = vsub.f32 1.0, %v1081_v29 }
0x1136   :  { %v1083_v33 = vmul.f32 %v1750_v23, %v1082_v32 }
0x1138   :  { %v1084_v0 = vadd.f32 %v1750_v23, %v1083_v33 }
0x113a   :  { %v1088_v30 = vsel %vm1087_vm5, %v1750_v23, %v1084_v0 }
0x113b   :  { %v1093_v40 = vsel %vm1090_vm6, %v1092_v1, %v1088_v30 }
0x116e   :  { %v1035_v26 = vpop.permute.xlu2 %1034 }
0x116f   :  { %v1037_v27 = vmul.f32 %v1035_v26, %v1031_v25 }
0x1171   :  { %1039 = vrot.lane.b32.xlu1 %v1037_v27, %s1823_s27 }
0x118e   :  { %v1097_v39 = vpop.permute.xlu0 %1096 }
0x118f   :  { %v1099_v41 = vmul.f32 %v1097_v39, %v1093_v40 }
0x1191   :  { %1101 = vrot.lane.b32.xlu2 %v1099_v41, %s1823_s27 }
0x11e3   :  { %v1040_v42 = vpop.permute.xlu1 %1039 }
0x11e4   :  { %v1042_v43 = vadd.f32 %v1040_v42, %v989_v58 }
0x11e6   :  { %1751 = vtanh.f32 %v1042_v43 }
0x11eb   :  { %v1102_v37 = vpop.permute.xlu2 %1101 }
0x11ec   :  { %v1752_v45 = vpop.eup %1751  ;;  %v1104_v48 = vadd.f32 %v1102_v37, %v992_v4 }
0x11ed   :  { %v1044_v49 = vsub.f32 %v2160_v44, %v1752_v45  ;;  %v2208_v44 = vld.sshfl [vmem:[#allocation1] sm:$0xff pattern:$0x73625140] }
0x11ee   :  { %1753 = vtanh.f32 %v1104_v48 }
0x11ef   :  { %1046 = vrot.lane.b32.xlu0 %v1044_v49, %s1825_s3 }
0x11f4   :  { %v1754_v50 = vpop.eup %1753 }
0x11f5   :  { %v1106_v51 = vsub.f32 %v2168_v46, %v1754_v50 }
0x11f7   :  { %1108 = vrot.lane.b32.xlu1 %v1106_v51, %s1825_s3 }
0x1261   :  { %v1047_v52 = vpop.permute.xlu0 %1046 }
0x1262   :  { %v1049_v53 = vmul.f32 %v1047_v52, %v1031_v25 }
0x1264   :  { %1051 = vrot.lane.b32.xlu2 %v1049_v53, %s1824_s28 }
0x1269   :  { %v1109_v54 = vpop.permute.xlu1 %1108 }
0x126a   :  { %v1111_v10 = vmul.f32 %v1109_v54, %v1093_v40 }
0x126c   :  { %1113 = vrot.lane.b32.xlu0 %v1111_v10, %s1824_s28 }
0x12be   :  { %v1052_v56 = vpop.permute.xlu2 %1051 }
0x12bf   :  { %v2206_v57 = vadd.f32 %v1752_v45, %v1052_v56 }
0x12c1   :  { %1118 = vst [vmem:[#allocation1] ss:$4 sm:$0xff] %v2206_v57  ;;  %v1138_v46 = vpack.c.bf16 %v2206_v57, %v2206_v57 }
0x12c3   :  { %1140 = vrot.lane.b32.xlu1 %v1138_v46, %s1822_s20 }
0x12c8   :  { %v2216_v60 = vld.sshfl [vmem:[#allocation1] sm:$0xff pattern:$0x73625140] }
0x12de   :  { %v1114_v58 = vpop.permute.xlu0 %1113 }
0x12df   :  { %v2214_v59 = vadd.f32 %v1754_v50, %v1114_v58 }
0x12e1   :  { %1126 = vst [vmem:[#allocation1] ss:$4 sm:$0xff] %v2214_v59  ;;  %v1200_v61 = vpack.c.bf16 %v2214_v59, %v2214_v59 }
0x12e3   :  { %1202 = vrot.lane.b32.xlu2 %v1200_v61, %s1822_s20 }
0x1335   :  { %v1141_v62 = vpop.permute.xlu1 %1140 }
0x1336   :  { %1655 = vmatmul.msk.bf16.vlgmr.msrb.gmra.mxu2 %vm102_vm2, %v1141_v62 }
0x133d   :  { %v1203_v63 = vpop.permute.xlu2 %1202 }
0x133e   :  { %1657 = vmatmul.msk.bf16.vlgmr.msrb.gmra.mxu3 %vm102_vm2, %v1203_v63 }
0x13b9   :  { %v1154_v2 = vpop.f32.mrf.mxu2 }
0x13ba   :  { %v1155_v4 = vadd.f32 %v2181_v7, %v1154_v2 }
0x13bc   :  { %1179 = vrot.lane.b32.xlu0 %v1155_v4, %s1822_s20  ;;  %v1158_v15 = vadd.f32 %v1155_v4, %v1135_v11  ;;  %v1127_v4 = vld.sshfl [vmem:[#allocation1] sm:$0xff pattern:$0x73625140] }
0x13be   :  { %v1656_v7 = vmul.f32 -1.442695, %v1158_v15 }
0x13c0   :  { %1755 = vpow2.f32 %v1656_v7 }
0x13c1   :  { %v1156_v6 = vpop.f32.mrf.mxu2  ;;  %v1216_v8 = vpop.f32.mrf.mxu3 }
0x13c2   :  { %v1217_v3 = vadd.f32 %v2188_v55, %v1216_v8 }
0x13c4   :  { %1241 = vrot.lane.b32.xlu1 %v1217_v3, %s1822_s20  ;;  %v1220_v20 = vadd.f32 %v1217_v3, %v1137_v19 }
0x13c6   :  { %v1658_v16 = vmul.f32 -1.442695, %v1220_v20  ;;  %v1756_v22 = vpop.eup %1755 }
0x13c7   :  { %v1162_v55 = vadd.f32 1.0, %v1756_v22 }
0x13c8   :  { %1757 = vpow2.f32 %v1658_v16 }
0x13c9   :  { %v1218_v5 = vpop.f32.mrf.mxu3  ;;  %1759 = vrcp.f32 %v1162_v55  ;;  %v1174_v30 = vand.u32 2147483648, %v1162_v55  ;;  %vm1168_vm8 = vweird.f32 %v1162_v55  ;;  %v1172_v1 = vand.u32 2147483647, %v1162_v55 }
0x13cb   :  { %v1175_v41 = vor.u32 1.1754944e-38, %v1174_v30  ;;  %vm1173_vm10 = vcmp.eq.f32.partialorder %v1172_v1, 8.507059e+37 }
0x13ce   :  { %v1758_v25 = vpop.eup %1757 }
0x13cf   :  { %v1224_v26 = vadd.f32 1.0, %v1758_v25  ;;  %v1760_v27 = vpop.eup %1759 }
0x13d0   :  { %v1164_v23 = vmul.f32 %v1760_v27, %v1162_v55  ;;  %vm1169_vm7 = vweird.f32 %v1760_v27 }
0x13d1   :  { %1761 = vrcp.f32 %v1224_v26  ;;  %vm1170_vm9 = vmor %vm1168_vm8, %vm1169_vm7  ;;  %v1236_v48 = vand.u32 2147483648, %v1224_v26  ;;  %vm1230_vm12 = vweird.f32 %v1224_v26  ;;  %v1234_v49 = vand.u32 2147483647, %v1224_v26 }
0x13d2   :  { %v1165_v29 = vsub.f32 1.0, %v1164_v23 }
0x13d3   :  { %v1237_v51 = vor.u32 1.1754944e-38, %v1236_v48  ;;  %vm1235_vm14 = vcmp.eq.f32.partialorder %v1234_v49, 8.507059e+37 }
0x13d4   :  { %v1166_v33 = vmul.f32 %v1760_v27, %v1165_v29 }
0x13d6   :  { %v1167_v34 = vadd.f32 %v1760_v27, %v1166_v33 }
0x13d7   :  { %v1762_v32 = vpop.eup %1761 }
0x13d8   :  { %v1226_v0 = vmul.f32 %v1762_v32, %v1224_v26  ;;  %v1171_v39 = vsel %vm1170_vm9, %v1760_v27, %v1167_v34  ;;  %vm1231_vm11 = vweird.f32 %v1762_v32 }
0x13d9   :  { %v1176_v43 = vsel %vm1173_vm10, %v1175_v41, %v1171_v39  ;;  %vm1232_vm13 = vmor %vm1230_vm12, %vm1231_vm11 }
0x13da   :  { %v1227_v35 = vsub.f32 1.0, %v1226_v0 }
0x13dc   :  { %v1228_v40 = vmul.f32 %v1762_v32, %v1227_v35 }
0x13de   :  { %v1229_v45 = vadd.f32 %v1762_v32, %v1228_v40 }
0x13e0   :  { %v1233_v50 = vsel %vm1232_vm13, %v1762_v32, %v1229_v45 }
0x13e1   :  { %v1238_v53 = vsel %vm1235_vm14, %v1237_v51, %v1233_v50 }
0x142e   :  { %v1180_v42 = vpop.permute.xlu0 %1179 }
0x142f   :  { %v1182_v37 = vmul.f32 %v1180_v42, %v1176_v43 }
0x1431   :  { %1184 = vrot.lane.b32.xlu2 %v1182_v37, %s1823_s27 }
0x1436   :  { %v1242_v52 = vpop.permute.xlu1 %1241 }
0x1437   :  { %v1244_v54 = vmul.f32 %v1242_v52, %v1238_v53 }
0x1439   :  { %1246 = vrot.lane.b32.xlu0 %v1244_v54, %s1823_s27 }
0x148b   :  { %v1185_v10 = vpop.permute.xlu2 %1184 }
0x148c   :  { %v1187_v56 = vadd.f32 %v1185_v10, %v1135_v11 }
0x148e   :  { %1763 = vtanh.f32 %v1187_v56 }
0x1494   :  { %v1764_v46 = vpop.eup %1763 }
0x1495   :  { %v1189_v58 = vsub.f32 %v2206_v57, %v1764_v46 }
0x1497   :  { %1191 = vrot.lane.b32.xlu1 %v1189_v58, %s1825_s3 }
0x14ab   :  { %v1247_v61 = vpop.permute.xlu0 %1246 }
0x14ac   :  { %v1249_v62 = vadd.f32 %v1247_v61, %v1137_v19 }
0x14ae   :  { %1765 = vtanh.f32 %v1249_v62 }
0x14b4   :  { %v1766_v63 = vpop.eup %1765 }
0x14b5   :  { %v1251_v2 = vsub.f32 %v2214_v59, %v1766_v63 }
0x14b7   :  { %1253 = vrot.lane.b32.xlu2 %v1251_v2, %s1825_s3 }
0x14bf   :  { %244 = vrot.lane.b32.xlu2 %v1984_v12, %s1822_s20 }
0x14c7   :  { %682 = vrot.lane.b32.xlu2 %v2098_v31, %s1822_s20 }
0x14cf   :  { %1128 = vrot.lane.b32.xlu2 %v1127_v4, %s1822_s20 }
0x14d7   :  { %974 = vrot.lane.b32.xlu2 %v2170_v47, %s1822_s20 }
0x14df   :  { %252 = vrot.lane.b32.xlu2 %v2014_v14, %s1822_s20 }
0x14e7   :  { %690 = vrot.lane.b32.xlu2 %v2126_v36, %s1822_s20 }
0x1509   :  { %v1192_v57 = vpop.permute.xlu1 %1191 }
0x150a   :  { %v1194_v59 = vmul.f32 %v1192_v57, %v1176_v43 }
0x150c   :  { %1196 = vrot.lane.b32.xlu0 %v1194_v59, %s1824_s28 }
0x1511   :  { %v1254_v12 = vpop.permute.xlu2 %1253 }
0x1512   :  { %v1256_v6 = vmul.f32 %v1254_v12, %v1238_v53  ;;  %v1305_v12 = vld [vmem:[%s2489_s10] sm:$0x1] }
0x1514   :  { %390 = vrot.lane.b32.xlu0 %v2022_v17, %s1822_s20  ;;  %1258 = vrot.lane.b32.xlu1 %v1256_v6, %s1824_s28  ;;  %s1530_s28 = sshll.u32 %s2487_s8, 4  ;;  %s1531_s28 = int_to_ptr.hbm [resolvable:$true] %s1530_s28 }
0x1519   :  { %v245_v31 = vpop.permute.xlu2 %244 }
0x151a   :  { %248 = vst.msk [vmem:[%s2485_s6] sm:$0x3] %vm71_vm0, %v245_v31 }
0x151c   :  { %836 = vrot.lane.b32.xlu0 %v2162_v28, %s1822_s20  ;;  %536 = vrot.lane.b32.xlu1 %v2060_v24, %s1822_s20 }
0x1521   :  { %v683_v14 = vpop.permute.xlu2 %682  ;;  %v1289_v22 = vld [vmem:[%s2485_s6] sm:$0x3] }
0x1522   :  { %1628 = vst.msk [vmem:[%s2485_s6 + $0x6] sm:$0x3] %vm71_vm0, %v683_v14  ;;  %v1346_v26 = vmul.f32 %v1289_v22, %v1289_v22 }
0x1524   :  { %982 = vrot.lane.b32.xlu1 %v2208_v44, %s1822_s20 }
0x1529   :  { %v1129_v17 = vpop.permute.xlu2 %1128  ;;  %v1292_v55 = vld [vmem:[%s2485_s6 + $0x6] sm:$0x3] }
0x152a   :  { %1653 = vst.msk [vmem:[%s2486_s7 + $0x2] sm:$0x3] %vm71_vm0, %v1129_v17  ;;  %v1349_v29 = vmul.f32 %v1292_v55, %v1292_v55 }
0x152c   :  { %828 = vrot.lane.b32.xlu1 %v2134_v38, %s1822_s20 }
0x1531   :  { %v975_v36 = vpop.permute.xlu2 %974  ;;  %v1298_v32 = vld [vmem:[%s2486_s7 + $0x2] sm:$0x3] }
0x1532   :  { %1644 = vst.msk [vmem:[%s2485_s6 + $0xa] sm:$0x3] %vm71_vm0, %v975_v36  ;;  %v1433_v48 = vmul.f32 %v1298_v32, %v1298_v32 }
0x1539   :  { %v2282_v24 = vld [vmem:[%s2485_s6 + $0xa] sm:$0x3]  ;;  %v253_v28 = vpop.permute.xlu2 %252 }
0x153a   :  { %1324 = vst [vmem:[#allocation1 + $0x21] ss:$4 sm:$0xff] %v2282_v24  ;;  %v1351_v10 = vmul.f32 %v2282_v24, %v2282_v24 }
0x153b   :  { %1605 = vst.msk [vmem:[%s2486_s7 + $0xe] sm:$0x3] %vm71_vm0, %v253_v28 }
0x1541   :  { %v691_v38 = vpop.permute.xlu2 %690 }
0x1542   :  { %1629 = vst.msk [vmem:[%s2486_s7 + $0x8] sm:$0x3] %vm71_vm0, %v691_v38 }
0x1549   :  { %v1301_v57 = vld [vmem:[%s2486_s7 + $0x8] sm:$0x3] }
0x157e   :  { %v1197_v47 = vpop.permute.xlu0 %1196 }
0x157f   :  { %v2293_v44 = vadd.f32 %v1764_v46, %v1197_v47  ;;  %v1304_v47 = vld [vmem:[%s2486_s7 + $0xe] sm:$0x3] }
0x1581   :  { %1263 = vst [vmem:[#allocation1] ss:$4 sm:$0xff] %v2293_v44 }
0x1586   :  { %v391_v8 = vpop.permute.xlu0 %390  ;;  %v1259_v3 = vpop.permute.xlu1 %1258 }
0x1587   :  { %1612 = vst.msk [vmem:[%s2485_s6 + $0x2] sm:$0x3] %vm71_vm0, %v391_v8  ;;  %v2300_v5 = vadd.f32 %v1766_v63, %v1259_v3 }
0x1588   :  { %v1264_v9 = vld.sshfl [vmem:[#allocation1] sm:$0xff pattern:$0x73625140] }
0x1589   :  { %1265 = vrot.lane.b32.xlu1 %v1264_v9, %s1822_s20  ;;  %1271 = vst [vmem:[#allocation1] ss:$4 sm:$0xff] %v2300_v5 }
0x158e   :  { %v837_v11 = vpop.permute.xlu0 %836  ;;  %v537_v15 = vpop.permute.xlu1 %536 }
0x158f   :  { %1637 = vst.msk [vmem:[%s2486_s7 + $0x6] sm:$0x3] %vm71_vm0, %v837_v11 }
0x1590   :  { %v1272_v18 = vld.sshfl [vmem:[#allocation1] sm:$0xff pattern:$0x73625140]  ;;  %1620 = vst.msk [vmem:[%s2485_s6 + $0x4] sm:$0x3] %vm71_vm0, %v537_v15  ;;  %v1436_v15 = vmul.f32 %v1301_v57, %v1301_v57 }
0x1591   :  { %1277 = vst [vmem:[#allocation1] ss:$4 sm:$0xff] %v2293_v44  ;;  %544 = vrot.lane.b32.xlu1 %v2090_v21, %s1822_s20  ;;  %1273 = vrot.lane.b32.xlu0 %v1272_v18, %s1822_s20 }
0x1596   :  { %v983_v7 = vpop.permute.xlu1 %982  ;;  %v1300_v34 = vld [vmem:[%s2486_s7 + $0x6] sm:$0x3] }
0x1597   :  { %1645 = vst.msk [vmem:[%s2486_s7 + $0x4] sm:$0x3] %vm71_vm0, %v983_v7  ;;  %v1291_v16 = vld [vmem:[%s2485_s6 + $0x4] sm:$0x3]  ;;  %v1435_v51 = vmul.f32 %v1300_v34, %v1300_v34 }
0x1598   :  { %v1278_v19 = vld.sshfl [vmem:[#allocation1] sm:$0xff pattern:$0x73625140] }
0x1599   :  { %1283 = vst [vmem:[#allocation1] ss:$4 sm:$0xff] %v2300_v5  ;;  %1120 = vrot.lane.b32.xlu0 %v2216_v60, %s1822_s20  ;;  %1279 = vrot.lane.b32.xlu2 %v1278_v19, %s1822_s20  ;;  %v1290_v60 = vld [vmem:[%s2485_s6 + $0x2] sm:$0x3]  ;;  %v1345_v19 = vld [vmem:[%s2490_s11] sm:$0x1] }
0x159a   :  { %v1347_v27 = vmul.f32 %v1290_v60, %v1290_v60 }
0x159e   :  { %v829_v20 = vpop.permute.xlu1 %828  ;;  %v1299_v0 = vld [vmem:[%s2486_s7 + $0x4] sm:$0x3] }
0x159f   :  { %1636 = vst.msk [vmem:[%s2485_s6 + $0x8] sm:$0x3] %vm71_vm0, %v829_v20  ;;  %v1434_v50 = vmul.f32 %v1299_v0, %v1299_v0 }
0x15a0   :  { %v2328_v21 = vld.sshfl [vmem:[#allocation1] sm:$0xff pattern:$0x73625140] }
0x15a1   :  { %1318 = vst [vmem:[#allocation1 + $0x2] ss:$4 sm:$0xff] %v1291_v16  ;;  %398 = vrot.lane.b32.xlu0 %v2052_v13, %s1822_s20  ;;  %v1348_v13 = vmul.f32 %v1291_v16, %v1291_v16 }
0x15a2   :  { %1314 = vst [vmem:[#allocation1] ss:$4 sm:$0xff] %v1289_v22 }
0x15a3   :  { %1316 = vst [vmem:[#allocation1 + $0x1] ss:$4 sm:$0xff] %v1290_v60 }
0x15a4   :  { %1320 = vst [vmem:[#allocation1 + $0x3] ss:$4 sm:$0xff] %v1292_v55  ;;  %v1439_v55 = vmul.f32 %v1304_v47, %v1304_v47 }
0x15a6   :  { %v1293_v25 = vld [vmem:[%s2485_s6 + $0x8] sm:$0x3] }
0x15a7   :  { %1322 = vst [vmem:[#allocation1 + $0x20] ss:$4 sm:$0xff] %v1293_v25  ;;  %v1350_v53 = vmul.f32 %v1293_v25, %v1293_v25 }
0x15ab   :  { %v1329_v23 = vld.sshfl [vmem:[#allocation1] sm:$0xff pattern:$0x73625140] }
0x15ac   :  { %1362 = vst [vmem:[#allocation1] ss:$4 sm:$0xff] %v1346_v26  ;;  %v1333_v56 = vsel %vm102_vm2, %v1329_v23, 0.0 }
0x15ad   :  { %1364 = vst [vmem:[#allocation1 + $0x1] ss:$4 sm:$0xff] %v1347_v27 }
0x15ae   :  { %1366 = vst [vmem:[#allocation1 + $0x2] ss:$4 sm:$0xff] %v1348_v13 }
0x15af   :  { %1368 = vst [vmem:[#allocation1 + $0x3] ss:$4 sm:$0xff] %v1349_v29 }
0x15b6   :  { %v1377_v33 = vld.sshfl [vmem:[#allocation1] sm:$0xff pattern:$0x73625140] }
0x15b7   :  { %1403 = vst [vmem:[#allocation1 + $0x1] ss:$4 sm:$0xff] %v1298_v32  ;;  %v1381_v14 = vsel %vm102_vm2, %v1377_v33, 0.0 }
0x15b8   :  { %1405 = vst [vmem:[#allocation1 + $0x2] ss:$4 sm:$0xff] %v1299_v0 }
0x15b9   :  { %1407 = vst [vmem:[#allocation1 + $0x3] ss:$4 sm:$0xff] %v1300_v34 }
0x15f3   :  { %v1280_v35 = vpop.permute.xlu2 %1279 }
0x15f4   :  { %1282 = vst.msk [vmem:[#allocation2] sm:$0x3] %vm71_vm0, %v1280_v35 }
0x15fb   :  { %v1266_v30 = vpop.permute.xlu1 %1265 }
0x15fc   :  { %1659 = vst.msk [vmem:[%s2485_s6 + $0xe] sm:$0x3] %vm71_vm0, %v1266_v30 }
0x1603   :  { %v1296_v1 = vld [vmem:[%s2485_s6 + $0xe] sm:$0x3]  ;;  %v1274_v39 = vpop.permute.xlu0 %1273  ;;  %v545_v40 = vpop.permute.xlu1 %544 }
0x1604   :  { %1328 = vst [vmem:[#allocation1 + $0x23] ss:$4 sm:$0xff] %v1296_v1  ;;  %v1353_v58 = vmul.f32 %v1296_v1, %v1296_v1 }
0x1605   :  { %1276 = vst.msk [vmem:[%s2486_s7] sm:$0x3] %vm71_vm0, %v1274_v39  ;;  %v1392_v39 = vld [vmem:[%s2491_s12] sm:$0x1] }
0x1606   :  { %1621 = vst.msk [vmem:[%s2486_s7 + $0xa] sm:$0x3] %vm71_vm0, %v545_v40 }
0x160b   :  { %v1121_v41 = vpop.permute.xlu0 %1120 }
0x160c   :  { %v1297_v42 = vld [vmem:[%s2486_s7] sm:$0x3]  ;;  %1652 = vst.msk [vmem:[%s2485_s6 + $0xc] sm:$0x3] %vm71_vm0, %v1121_v41 }
0x160d   :  { %1401 = vst [vmem:[#allocation1] ss:$4 sm:$0xff] %v1297_v42  ;;  %v1432_v45 = vmul.f32 %v1297_v42, %v1297_v42  ;;  %v1302_v6 = vld [vmem:[%s2486_s7 + $0xa] sm:$0x3] }
0x160e   :  { %v1437_v7 = vmul.f32 %v1302_v6, %v1302_v6 }
0x1613   :  { %v1295_v43 = vld [vmem:[%s2485_s6 + $0xc] sm:$0x3]  ;;  %v399_v37 = vpop.permute.xlu0 %398 }
0x1614   :  { %1326 = vst [vmem:[#allocation1 + $0x22] ss:$4 sm:$0xff] %v1295_v43  ;;  %v1416_v49 = vld.sshfl [vmem:[#allocation1] sm:$0xff pattern:$0x73625140]  ;;  %v1352_v52 = vmul.f32 %v1295_v43, %v1295_v43 }
0x1615   :  { %1613 = vst.msk [vmem:[%s2486_s7 + $0xc] sm:$0x3] %vm71_vm0, %v399_v37 }
0x1616   :  { %1448 = vst [vmem:[#allocation1] ss:$4 sm:$0xff] %v1432_v45 }
0x1617   :  { %1450 = vst [vmem:[#allocation1 + $0x1] ss:$4 sm:$0xff] %v1433_v48 }
0x1618   :  { %1452 = vst [vmem:[#allocation1 + $0x2] ss:$4 sm:$0xff] %v1434_v50 }
0x1619   :  { %1454 = vst [vmem:[#allocation1 + $0x3] ss:$4 sm:$0xff] %v1435_v51 }
0x161b   :  { %v1330_v54 = vld.sshfl [vmem:[#allocation1 + $0x20] sm:$0xff pattern:$0x73625140] }
0x161c   :  { %v1334_v46 = vsel %vm102_vm2, %v1330_v54, 0.0  ;;  %1374 = vst [vmem:[#allocation1 + $0x22] ss:$4 sm:$0xff] %v1352_v52  ;;  %v1303_v36 = vld [vmem:[%s2486_s7 + $0xc] sm:$0x3] }
0x161d   :  { %v1335_v61 = vadd.f32 %v1334_v46, %v1333_v56  ;;  %1370 = vst [vmem:[#allocation1 + $0x20] ss:$4 sm:$0xff] %v1350_v53  ;;  %v1438_v60 = vmul.f32 %v1303_v36, %v1303_v36 }
0x161e   :  { %1372 = vst [vmem:[#allocation1 + $0x21] ss:$4 sm:$0xff] %v1351_v10  ;;  %v1431_v10 = vld [vmem:[%s2492_s13] sm:$0x1] }
0x161f   :  { %v1336_v62 = vrot.slane %v1335_v61, 4  ;;  %1376 = vst [vmem:[#allocation1 + $0x23] ss:$4 sm:$0xff] %v1353_v58 }
0x1620   :  { %v1463_v63 = vld.sshfl [vmem:[#allocation1] sm:$0xff pattern:$0x73625140] }
0x1621   :  { %v1337_v2 = vadd.f32 %v1336_v62, %v1335_v61  ;;  %1481 = vst [vmem:[#allocation1] ss:$4 sm:$0xff] %v2293_v44  ;;  %v1467_v30 = vsel %vm102_vm2, %v1463_v63, 0.0 }
0x1623   :  { %v1338_v4 = vrot.slane %v1337_v2, 2 }
0x1625   :  { %v1339_v59 = vadd.f32 %v1338_v4, %v1337_v2 }
0x1626   :  { %v1378_v31 = vld.sshfl [vmem:[#allocation1 + $0x20] sm:$0xff pattern:$0x73625140] }
0x1627   :  { %v1340_v17 = vrot.slane %v1339_v59, 1  ;;  %v1382_v24 = vsel %vm102_vm2, %v1378_v31, 0.0  ;;  %1409 = vst [vmem:[#allocation1 + $0x20] ss:$4 sm:$0xff] %v1301_v57 }
0x1628   :  { %v1383_v28 = vadd.f32 %v1382_v24, %v1381_v14  ;;  %1411 = vst [vmem:[#allocation1 + $0x21] ss:$4 sm:$0xff] %v1302_v6  ;;  %v1482_v38 = vld.sshfl [vmem:[#allocation1] sm:$0xff pattern:$0x73625140] }
0x1629   :  { %v1341_v44 = vadd.f32 %v1340_v17, %v1339_v59  ;;  %1413 = vst [vmem:[#allocation1 + $0x22] ss:$4 sm:$0xff] %v1303_v36  ;;  %1483 = vrot.lane.b32.xlu0 %v1482_v38, %s1822_s20 }
0x162a   :  { %v1384_v8 = vrot.slane %v1383_v28, 4  ;;  %1415 = vst [vmem:[#allocation1 + $0x23] ss:$4 sm:$0xff] %v1304_v47 }
0x162b   :  { %v1342_v3 = vadd.f32 %v1341_v44, %v1305_v12  ;;  %1487 = vst [vmem:[#allocation1] ss:$4 sm:$0xff] %v2300_v5  ;;  %v1420_v5 = vsel %vm102_vm2, %v1416_v49, 0.0 }
0x162c   :  { %v1385_v9 = vadd.f32 %v1384_v8, %v1383_v28 }
0x162d   :  { %1344 = vst.msk [vmem:[%s2489_s10] sm:$0x1] %vm74_vm1, %v1342_v3 }
0x162e   :  { %v1386_v11 = vrot.slane %v1385_v9, 2 }
0x1630   :  { %v1387_v18 = vadd.f32 %v1386_v11, %v1385_v9 }
0x1631   :  { %v1417_v20 = vld.sshfl [vmem:[#allocation1 + $0x20] sm:$0xff pattern:$0x73625140]  ;;  %1285 = vrot.lane.b32.xlu0 %v2328_v21, %s1822_s20 }
0x1632   :  { %v1388_v16 = vrot.slane %v1387_v18, 1  ;;  %v1421_v22 = vsel %vm102_vm2, %v1417_v20, 0.0  ;;  %1456 = vst [vmem:[#allocation1 + $0x20] ss:$4 sm:$0xff] %v1436_v15 }
0x1633   :  { %v1422_v25 = vadd.f32 %v1421_v22, %v1420_v5  ;;  %1458 = vst [vmem:[#allocation1 + $0x21] ss:$4 sm:$0xff] %v1437_v7  ;;  %v1488_v26 = vld.sshfl [vmem:[#allocation1] sm:$0xff pattern:$0x73625140] }
0x1634   :  { %v1389_v27 = vadd.f32 %v1388_v16, %v1387_v18  ;;  %1460 = vst [vmem:[#allocation1 + $0x22] ss:$4 sm:$0xff] %v1438_v60  ;;  %v1493_v23 = vld [vmem:[%s2489_s10] sm:$0x1]  ;;  %1489 = vrot.lane.b32.xlu1 %v1488_v26, %s1822_s20 }
0x1635   :  { %v1423_v21 = vrot.slane %v1422_v25, 4  ;;  %1462 = vst [vmem:[#allocation1 + $0x23] ss:$4 sm:$0xff] %v1439_v55  ;;  %v1494_v13 = vmul.f32 0.0625, %v1493_v23 }
0x1636   :  { %v1390_v29 = vadd.f32 %v1389_v27, %v1345_v19 }
0x1637   :  { %v1424_v32 = vadd.f32 %v1423_v21, %v1422_v25  ;;  %1497 = vst.msk [vmem:[%s2489_s10] sm:$0x1] %vm74_vm1, %v1494_v13  ;;  %v1501_v37 = vmul.f32 %v1494_v13, %v1494_v13 }
0x1638   :  { %1391 = vst.msk [vmem:[%s2490_s11] sm:$0x1] %vm74_vm1, %v1390_v29 }
0x1639   :  { %v1425_v33 = vrot.slane %v1424_v32, 2 }
0x163b   :  { %v1426_v0 = vadd.f32 %v1425_v33, %v1424_v32 }
0x163c   :  { %v1464_v34 = vld.sshfl [vmem:[#allocation1 + $0x20] sm:$0xff pattern:$0x73625140] }
0x163d   :  { %v1427_v35 = vrot.slane %v1426_v0, 1  ;;  %v1468_v1 = vsel %vm102_vm2, %v1464_v34, 0.0 }
0x163e   :  { %v1469_v40 = vadd.f32 %v1468_v1, %v1467_v30 }
0x163f   :  { %v1428_v41 = vadd.f32 %v1427_v35, %v1426_v0  ;;  %v1499_v42 = vld [vmem:[%s2490_s11] sm:$0x1] }
0x1640   :  { %v1500_v43 = vmul.f32 0.0625, %v1499_v42  ;;  %v1470_v45 = vrot.slane %v1469_v40, 4 }
0x1641   :  { %v1429_v48 = vadd.f32 %v1428_v41, %v1392_v39 }
0x1642   :  { %v1502_v49 = vsub.f32 %v1500_v43, %v1501_v37  ;;  %v1471_v50 = vadd.f32 %v1470_v45, %v1469_v40 }
0x1643   :  { %1430 = vst.msk [vmem:[%s2491_s12] sm:$0x1] %vm74_vm1, %v1429_v48 }
0x1644   :  { %v1503_v51 = vmax.f32 %v1502_v49, 0.0  ;;  %v1472_v52 = vrot.slane %v1471_v50, 2 }
0x1646   :  { %1504 = vst.msk [vmem:[%s2490_s11] sm:$0x1] %vm74_vm1, %v1503_v51  ;;  %v1473_v53 = vadd.f32 %v1472_v52, %v1471_v50 }
0x1648   :  { %v1474_v54 = vrot.slane %v1473_v53, 1 }
0x164a   :  { %v1495_v56 = vld [vmem:[%s2491_s12] sm:$0x1]  ;;  %v1475_v46 = vadd.f32 %v1474_v54, %v1473_v53 }
0x164b   :  { %v1496_v58 = vmul.f32 0.0625, %v1495_v56 }
0x164c   :  { %v1476_v61 = vadd.f32 %v1475_v46, %v1431_v10 }
0x164d   :  { %1498 = vst.msk [vmem:[%s2491_s12] sm:$0x1] %vm74_vm1, %v1496_v58  ;;  %v1507_v63 = vmul.f32 %v1496_v58, %v1496_v58  ;;  %s1528_s12 = sshll.u32 %s1826_s1, 4  ;;  %s1529_s12 = int_to_ptr.vmem [resolvable:$true] %s1528_s12 }
0x164e   :  { %1477 = vst.msk [vmem:[%s2492_s13] sm:$0x1] %vm74_vm1, %v1476_v61 }
0x1655   :  { %v1505_v62 = vld [vmem:[%s2492_s13] sm:$0x1] }
0x1656   :  { %v1506_v2 = vmul.f32 0.0625, %v1505_v62 }
0x1658   :  { %v1508_v4 = vsub.f32 %v1506_v2, %v1507_v63 }
0x165a   :  { %v1509_v57 = vmax.f32 %v1508_v4, 0.0 }
0x165c   :  { %1510 = vst.msk [vmem:[%s2492_s13] sm:$0x1] %vm74_vm1, %v1509_v57 }
0x169b   :  { %v1484_v59 = vpop.permute.xlu0 %1483 }
0x169c   :  { %1486 = vst.msk [vmem:[#allocation4] sm:$0x3] %vm71_vm0, %v1484_v59 }
0x169d   :  { %1533 = dma.vmem_to_hbm [thread:$0]  %s1529_s12, 32, %s1531_s28, [#allocation5]  }
0x16a3   :  { %v1286_v12 = vpop.permute.xlu0 %1285 }
0x16a4   :  { %1288 = vst.msk [vmem:[#allocation3] sm:$0x3] %vm71_vm0, %v1286_v12 }
0x16a6   :  { %v1490_v6 = vpop.permute.xlu1 %1489 }
0x16a7   :  { %1492 = vst.msk [vmem:[#allocation6] sm:$0x3] %vm71_vm0, %v1490_v6 }
0x16a8   :  { %1544 = dma.vmem_to_hbm [thread:$0]  %s1540_s30, 32, %s1542_s14, [#allocation7]  }
0x16a9   :  { %1817 = dma.done.wait [#allocation5], 32  }
0x16aa   :  { %1818 = vsyncadd [#allocation5], 4294967264 }
0x16ab   :  { %1819 = dma.done.wait [#allocation7], 32  }
0x16ac   :  { %1820 = vsyncadd [#allocation7], 4294967264 }
0x16ad   :  { %1579 = vsyncpa [#allocation5], 1 }
0x16ae   :  { %1580 = vsyncpa [#allocation7], 1 }

</bundles_post_ra>
